<compile_context>
chip_gen: v5e
topology: v5e:2x2
jax: 0.10.0
libtpu: 0.0.40
codegen_flags: <defaults>
</compile_context>

<pallas_src>
import jax
import jax.numpy as jnp
from jax.experimental import pallas as pl
from jax.experimental.pallas import tpu as pltpu


def _round_up(x, m):
    return (x + m - 1) // m * m


def _pick_tile(dim, candidates):
    """Largest candidate tile dividing `dim`; full dim if it already fits."""
    if dim <= candidates[0]:
        return dim
    for c in candidates:
        if dim % c == 0:
            return c
    return dim


# ---------------------------------------------------------------------------
# Tiled matmul + bias (hoisted input projections, vocab projection)
# ---------------------------------------------------------------------------

def _matmul_bias_kernel(x_ref, w_ref, b_ref, o_ref):
    """(tm, K) @ (K, tn) + (1, tn); bf16 operands, f32 accumulation."""
    x = x_ref[...].astype(jnp.bfloat16)
    o_ref[...] = (jnp.dot(x, w_ref[...], preferred_element_type=jnp.float32)
                  + b_ref[...])


def matmul_bias(x, w, b):
    M, K = x.shape
    N = w.shape[1]
    tm = _pick_tile(M, (256, 128, 64, 32, 16, 8))
    tn = _pick_tile(N, (512, 256, 128))
    grid = (M // tm, N // tn)
    cost = pl.CostEstimate(
        flops=2 * M * K * N,
        transcendentals=0,
        bytes_accessed=M * K * 4 + K * N * 2 + N * 4 + M * N * 4)
    return pl.pallas_call(
        _matmul_bias_kernel,
        out_shape=jax.ShapeDtypeStruct((M, N), jnp.float32),
        grid_spec=pltpu.PrefetchScalarGridSpec(
            num_scalar_prefetch=0,
            grid=grid,
            in_specs=[
                pl.BlockSpec((tm, K), lambda i, j: (i, 0)),
                pl.BlockSpec((K, tn), lambda i, j: (0, j)),
                pl.BlockSpec((1, tn), lambda i, j: (0, j)),
            ],
            out_specs=pl.BlockSpec((tm, tn), lambda i, j: (i, j)),
        ),
        compiler_params=pltpu.CompilerParams(
            dimension_semantics=("parallel", "parallel"),
            vmem_limit_bytes=32 << 20),
        cost_estimate=cost,
    )(x, w, b)


# ---------------------------------------------------------------------------
# Fused stacked-LSTM recurrence (all layers, time-blocked grid)
# ---------------------------------------------------------------------------

def _lstm_stack_kernel(len_ref, gx_ref, wih_ref, whh_ref, b_ref,
                       h0_ref, c0_ref,
                       hs_ref, hf_ref, cf_ref,
                       h_sc, c_sc):
    """One grid step = Tb timesteps of an L-layer stacked LSTM.

    len_ref: (B, 1) int32     valid lengths (state frozen for t >= len)
    gx_ref:  (Tb, B, 4H) f32  precomputed layer-0 x @ W_ih + (b_ih + b_hh)
    wih_ref: (Lr, H, 4H) bf16 input-proj weights for layers >= 1 (resident)
    whh_ref: (L, H, 4H) bf16  recurrent weights, all layers (resident)
    b_ref:   (Lr, 1, 4H) f32  folded biases for layers >= 1 (resident)
    h0/c0:   (L, B, H)        initial state (consumed at t == 0)
    hs_ref:  (Tb, B, H)       top-layer hidden output for this time block
    hf/cf:   (L, B, H)        final state (written only on the last grid step)
    h_sc/c_sc: (L, B, H) VMEM scratch carrying the recurrent state
    """
    tb = pl.program_id(0)
    Tb, B, G = gx_ref.shape
    L, H, _ = whh_ref.shape

    @pl.when(tb == 0)
    def _():
        h_sc[...] = h0_ref[...]
        c_sc[...] = c0_ref[...]

    lengths = len_ref[...]                                   # (B, 1) int32
    # Hoisted lane mask for the tanh (g) gate quarter of the (B, 4H) vreg row.
    lane = jax.lax.broadcasted_iota(jnp.int32, (B, G), 1)
    is_g = (lane >= 2 * H) & (lane < 3 * H)

    def step(i, carry):
        t = tb * Tb + i
        upd = t < lengths                                    # (B, 1) bool
        layer_in_gates = gx_ref[i]                           # (B, 4H)
        layer_in = None
        for l in range(L):                                   # L is static
            h_prev = h_sc[l]
            c_prev = c_sc[l]
            rec = jnp.dot(h_prev.astype(jnp.bfloat16), whh_ref[l],
                          preferred_element_type=jnp.float32)
            if l == 0:
                gates = layer_in_gates + rec
            else:
                gates = (b_ref[l - 1]
                         + jnp.dot(layer_in.astype(jnp.bfloat16),
                                   wih_ref[l - 1],
                                   preferred_element_type=jnp.float32)
                         + rec)
            # Single EUP push: sigmoid(x) = 0.5*tanh(x/2) + 0.5.
            z = jnp.where(is_g, gates, 0.5 * gates)
            a = jnp.tanh(z)
            act = jnp.where(is_g, a, 0.5 * a + 0.5)

            i_g = act[:, 0 * H:1 * H]
            f_g = act[:, 1 * H:2 * H]
            g_g = act[:, 2 * H:3 * H]
            o_g = act[:, 3 * H:4 * H]

            c_new = f_g * c_prev + i_g * g_g
            h_new = o_g * jnp.tanh(c_new)

            # pack_padded_sequence emulation: freeze state past each length.
            h_upd = jnp.where(upd, h_new, h_prev)
            c_upd = jnp.where(upd, c_new, c_prev)
            h_sc[l] = h_upd
            c_sc[l] = c_upd
            layer_in = h_upd
        hs_ref[i] = layer_in                                 # top-layer hidden
        return carry

    jax.lax.fori_loop(0, Tb, step, 0, unroll=True)

    @pl.when(tb == pl.num_programs(0) - 1)
    def _():
        hf_ref[...] = h_sc[...]
        cf_ref[...] = c_sc[...]


def lstm_stack(gx0, w_ih_rest, w_hh, b_rest, h0, c0, lengths, *, time_block=8):
    """Fused full-sequence L-layer LSTM.  gx0: (T, Bp, 4H) f32."""
    T, Bp, G = gx0.shape
    L, H, _ = w_hh.shape
    Lr = w_ih_rest.shape[0]

    Tb = min(time_block, T)
    Tpad = _round_up(T, Tb)
    if Tpad != T:
        # Padded steps have t >= lengths, so they never alter the state.
        gx0 = jnp.pad(gx0, ((0, Tpad - T), (0, 0), (0, 0)))
    n_steps = Tpad // Tb

    grid_spec = pltpu.PrefetchScalarGridSpec(
        num_scalar_prefetch=0,
        grid=(n_steps,),
        in_specs=[
            pl.BlockSpec((Bp, 1), lambda tb: (0, 0)),           # lengths
            pl.BlockSpec((Tb, Bp, G), lambda tb: (tb, 0, 0)),   # gx0 time block
            pl.BlockSpec((Lr, H, G), lambda tb: (0, 0, 0)),     # W_ih (l >= 1)
            pl.BlockSpec((L, H, G), lambda tb: (0, 0, 0)),      # W_hh
            pl.BlockSpec((Lr, 1, G), lambda tb: (0, 0, 0)),     # bias (l >= 1)
            pl.BlockSpec((L, Bp, H), lambda tb: (0, 0, 0)),     # h0
            pl.BlockSpec((L, Bp, H), lambda tb: (0, 0, 0)),     # c0
        ],
        out_specs=(
            pl.BlockSpec((Tb, Bp, H), lambda tb: (tb, 0, 0)),   # hs (top layer)
            pl.BlockSpec((L, Bp, H), lambda tb: (0, 0, 0)),     # final h
            pl.BlockSpec((L, Bp, H), lambda tb: (0, 0, 0)),     # final c
        ),
        scratch_shapes=[pltpu.VMEM((L, Bp, H), jnp.float32),
                        pltpu.VMEM((L, Bp, H), jnp.float32)],
    )
    hs, hf, cf = pl.pallas_call(
        _lstm_stack_kernel,
        out_shape=(jax.ShapeDtypeStruct((Tpad, Bp, H), jnp.float32),
                   jax.ShapeDtypeStruct((L, Bp, H), jnp.float32),
                   jax.ShapeDtypeStruct((L, Bp, H), jnp.float32)),
        grid_spec=grid_spec,
        compiler_params=pltpu.CompilerParams(
            dimension_semantics=("arbitrary",),
            vmem_limit_bytes=32 << 20),
    )(lengths, gx0, w_ih_rest, w_hh, b_rest, h0, c0)
    return hs[:T], hf, cf


# ---------------------------------------------------------------------------
# Seq2Seq orchestration (teacher-forced forward)
# ---------------------------------------------------------------------------

def seq2seq_forward(enc_params, dec_params, src, src_lengths, trg, *,
                    trg_vocab):
    """Equivalent of Seq2Seq.forward; returns (Tt, B, trg_vocab) f32.

    outputs[0] stays all-zeros exactly like the torch.zeros init."""
    Ts, B = src.shape
    Tt, _ = trg.shape
    L = enc_params["w_hh"].shape[0]
    H = enc_params["w_hh"].shape[1]

    # Pad batch to the f32 sublane minimum (8); strip at the end.
    Bp = max(8, _round_up(B, 8))
    pad_b = Bp - B
    src_p = jnp.pad(src, ((0, 0), (0, pad_b)))
    trg_p = jnp.pad(trg, ((0, 0), (0, pad_b)))
    enc_len = jnp.concatenate(
        [src_lengths.astype(jnp.int32),
         jnp.full((pad_b,), Ts, jnp.int32)])[:, None]            # (Bp, 1)

    # ---- Encoder ----------------------------------------------------------
    emb_src = jnp.take(enc_params["emb"], src_p, axis=0)         # (Ts, Bp, E)
    gx0 = matmul_bias(emb_src.reshape(Ts * Bp, -1),
                      enc_params["w_ih0"], enc_params["b0"])
    gx0 = gx0.reshape(Ts, Bp, 4 * H)
    h0 = jnp.zeros((L, Bp, H), jnp.float32)
    c0 = jnp.zeros((L, Bp, H), jnp.float32)
    _, hidden, cell = lstm_stack(gx0, enc_params["w_ih_rest"],
                                 enc_params["w_hh"], enc_params["b_rest"],
                                 h0, c0, enc_len)

    # ---- Decoder (teacher forcing => inputs known ahead of time) ----------
    dec_in = trg_p[:Tt - 1]                                      # tokens t=1..Tt-1
    emb_trg = jnp.take(dec_params["emb"], dec_in, axis=0)        # (Tt-1, Bp, E)
    gx0d = matmul_bias(emb_trg.reshape((Tt - 1) * Bp, -1),
                       dec_params["w_ih0"], dec_params["b0"])
    gx0d = gx0d.reshape(Tt - 1, Bp, 4 * H)
    dec_len = jnp.full((Bp, 1), Tt - 1, jnp.int32)               # no masking
    hs_top, _, _ = lstm_stack(gx0d, dec_params["w_ih_rest"],
                              dec_params["w_hh"], dec_params["b_rest"],
                              hidden, cell, dec_len)

    # ---- Batched, lane-dense vocab projection ------------------------------
    logits_p = matmul_bias(hs_top.reshape((Tt - 1) * Bp, H),
                           dec_params["fc_w"], dec_params["fc_b"])
    logits = logits_p.reshape(Tt - 1, Bp, -1)[:, :B, :trg_vocab]
    zeros0 = jnp.zeros((1, B, trg_vocab), jnp.float32)
    return jnp.concatenate([zeros0, logits], axis=0)

# TODO(synk): greedy `decode()` (argmax feedback with data-dependent early EOS
# break) is not kernelized; only the teacher-forced forward is implemented.
# TODO(synk): teacher_forcing_ratio sampling is a semantic narrowing (always
# full teacher forcing), matching the reference forward() loop.


# ---------------------------------------------------------------------------
# Deterministic parameter construction
# ---------------------------------------------------------------------------

def _uniform(key, shape, scale):
    return jax.random.uniform(key, shape, jnp.float32, -scale, scale)


def make_lstm_stack_params(key, vocab, emb_dim, hid_dim, n_layers,
                           fc_vocab=None):
    ks = jax.random.split(key, 3 + 4 * n_layers)
    scale = 1.0 / float(hid_dim) ** 0.5
    G = 4 * hid_dim
    w_ih, w_hh, b = [], [], []
    for l in range(n_layers):
        in_dim = emb_dim if l == 0 else hid_dim
        base = 1 + 4 * l
        w_ih.append(_uniform(ks[base + 0], (in_dim, G), scale)
                    .astype(jnp.bfloat16))
        w_hh.append(_uniform(ks[base + 1], (hid_dim, G), scale)
                    .astype(jnp.bfloat16))
        b_ih = _uniform(ks[base + 2], (1, G), scale)
        b_hh = _uniform(ks[base + 3], (1, G), scale)
        b.append(b_ih + b_hh)                                   # folded, f32

    p = {
        "emb": _uniform(ks[0], (vocab, emb_dim), 1.0),
        "w_ih0": w_ih[0],                                       # (E, 4H) bf16
        "b0": b[0],                                             # (1, 4H) f32
        "w_hh": jnp.stack(w_hh, axis=0),                        # (L, H, 4H) bf16
    }
    if n_layers > 1:
        p["w_ih_rest"] = jnp.stack(w_ih[1:], axis=0)            # (L-1, H, 4H)
        p["b_rest"] = jnp.stack(b[1:], axis=0)                  # (L-1, 1, 4H)
    else:
        p["w_ih_rest"] = jnp.zeros((1, hid_dim, G), jnp.bfloat16)
        p["b_rest"] = jnp.zeros((1, 1, G), jnp.float32)

    if fc_vocab is not None:
        v_pad = _round_up(fc_vocab, 128)                        # lane-dense
        fc_w = _uniform(ks[-2], (hid_dim, fc_vocab), scale)
        fc_b = _uniform(ks[-1], (1, fc_vocab), scale)
        p["fc_w"] = jnp.pad(
            fc_w, ((0, 0), (0, v_pad - fc_vocab))).astype(jnp.bfloat16)
        p["fc_b"] = jnp.pad(fc_b, ((0, 0), (0, v_pad - fc_vocab)))
    return p


# ---------------------------------------------------------------------------
# Main
# ---------------------------------------------------------------------------

if __name__ == "__main__":
    B = 4            # batch
    Ts = 8           # source length
    Tt = 7           # target length
    SRC_VOCAB = 20
    TRG_VOCAB = 24   # decoder.output_dim
    EMB = 16
    HID = 32         # encoder.hid_dim == decoder.hid_dim (4H = 128 lanes)
    N_LAYERS = 2     # encoder.n_layers == decoder.n_layers
    SOS, EOS = 1, 2  # unused in forward(), kept for parity with the module

    root = jax.random.PRNGKey(0)
    k_enc, k_dec, k_src, k_trg, k_len = jax.random.split(root, 5)

    enc_params = make_lstm_stack_params(k_enc, SRC_VOCAB, EMB, HID, N_LAYERS)
    dec_params = make_lstm_stack_params(k_dec, TRG_VOCAB, EMB, HID, N_LAYERS,
                                        fc_vocab=TRG_VOCAB)

    src = jax.random.randint(k_src, (Ts, B), 0, SRC_VOCAB, dtype=jnp.int32)
    trg = jax.random.randint(k_trg, (Tt, B), 0, TRG_VOCAB, dtype=jnp.int32)
    src_lengths = jax.random.randint(k_len, (B,), Ts // 2, Ts + 1,
                                     dtype=jnp.int32)

    fwd = jax.jit(seq2seq_forward, static_argnames=("trg_vocab",))
    outputs = fwd(enc_params, dec_params, src, src_lengths, trg,
                  trg_vocab=TRG_VOCAB)
    outputs = jax.block_until_ready(outputs)

    assert outputs.shape == (Tt, B, TRG_VOCAB)
    assert outputs.dtype == jnp.float32
    assert bool(jnp.all(outputs[0] == 0.0))          # outputs[0] never written
    assert bool(jnp.all(jnp.isfinite(outputs)))
    print("KERNEL_OK")
</pallas_src>

<mosaic_0001>
module attributes {stable_mosaic.version = 11 : i64} {
  func.func @_matmul_bias_kernel(%arg0: i32, %arg1: i32, %arg2: memref<64x16xf32, #tpu.memory_space<vmem>>, %arg3: memref<16x128xbf16, #tpu.memory_space<vmem>>, %arg4: memref<1x128xf32, #tpu.memory_space<vmem>>, %arg5: memref<64x128xf32, #tpu.memory_space<vmem>>) attributes {dimension_semantics = [#tpu.dimension_semantics<parallel>, #tpu.dimension_semantics<parallel>], iteration_bounds = array<i64: 1, 1>, scalar_prefetch = 0 : i64, scratch_operands = 0 : i64, tpu.core_type = #tpu.core_type<tc>, window_params = [{transform_indices = @transform_0, window_bounds = array<i64: 64, 16>}, {transform_indices = @transform_1, window_bounds = array<i64: 16, 128>}, {transform_indices = @transform_2, window_bounds = array<i64: 1, 128>}, {transform_indices = @transform_3, window_bounds = array<i64: 64, 128>}]} {
    %c0 = arith.constant 0 : index
    %c0_0 = arith.constant 0 : index
    %0 = vector.load %arg2[%c0, %c0_0] : memref<64x16xf32, #tpu.memory_space<vmem>>, vector<64x16xf32>
    %1 = arith.truncf %0 : vector<64x16xf32> to vector<64x16xbf16>
    %c0_1 = arith.constant 0 : index
    %c0_2 = arith.constant 0 : index
    %2 = vector.load %arg3[%c0_1, %c0_2] : memref<16x128xbf16, #tpu.memory_space<vmem>>, vector<16x128xbf16>
    %cst = arith.constant dense<0.000000e+00> : vector<64x128xf32>
    %3 = tpu.matmul %1, %2, %cst {dimension_numbers = #tpu.dot_dimension_numbers<[1], [0], [0], [1], [0, 0, 1, 1], [], []>} : vector<64x16xbf16>, vector<16x128xbf16>, vector<64x128xf32> -> vector<64x128xf32>
    %c0_3 = arith.constant 0 : index
    %c0_4 = arith.constant 0 : index
    %4 = vector.load %arg4[%c0_3, %c0_4] : memref<1x128xf32, #tpu.memory_space<vmem>>, vector<1x128xf32>
    %5 = vector.broadcast %4 : vector<1x128xf32> to vector<64x128xf32>
    %6 = arith.addf %3, %5 : vector<64x128xf32>
    %c0_5 = arith.constant 0 : index
    %c0_6 = arith.constant 0 : index
    %7 = vector.load %arg5[%c0_5, %c0_6] : memref<64x128xf32, #tpu.memory_space<vmem>>, vector<64x128xf32>
    tpu.vector_store %arg5[%c0_5, %c0_6], %6 {strides = array<i32>} : memref<64x128xf32, #tpu.memory_space<vmem>>, vector<64x128xf32>,
    return
  }
  func.func @transform_0(%arg0: i32, %arg1: i32) -> (i32, i32) {
    %c0_i32 = arith.constant 0 : i32
    %c0_i32_0 = arith.constant 0 : i32
    return %arg0, %c0_i32 : i32, i32
  }
  func.func @transform_1(%arg0: i32, %arg1: i32) -> (i32, i32) {
    %c0_i32 = arith.constant 0 : i32
    %c0_i32_0 = arith.constant 0 : i32
    return %c0_i32, %arg1 : i32, i32
  }
  func.func @transform_2(%arg0: i32, %arg1: i32) -> (i32, i32) {
    %c0_i32 = arith.constant 0 : i32
    %c0_i32_0 = arith.constant 0 : i32
    return %c0_i32, %arg1 : i32, i32
  }
  func.func @transform_3(%arg0: i32, %arg1: i32) -> (i32, i32) {
    %c0_i32 = arith.constant 0 : i32
    return %arg0, %arg1 : i32, i32
  }
}

module attributes {stable_mosaic.version = 11 : i64} {
  func.func @_lstm_stack_kernel(%arg0: i32, %arg1: memref<8x1xi32, #tpu.memory_space<vmem>>, %arg2: memref<8x8x128xf32, #tpu.memory_space<vmem>>, %arg3: memref<1x32x128xbf16, #tpu.memory_space<vmem>>, %arg4: memref<2x32x128xbf16, #tpu.memory_space<vmem>>, %arg5: memref<1x1x128xf32, #tpu.memory_space<vmem>>, %arg6: memref<2x8x32xf32, #tpu.memory_space<vmem>>, %arg7: memref<2x8x32xf32, #tpu.memory_space<vmem>>, %arg8: memref<8x8x32xf32, #tpu.memory_space<vmem>>, %arg9: memref<2x8x32xf32, #tpu.memory_space<vmem>>, %arg10: memref<2x8x32xf32, #tpu.memory_space<vmem>>, %arg11: memref<2x8x32xf32, #tpu.memory_space<vmem>>, %arg12: memref<2x8x32xf32, #tpu.memory_space<vmem>>) attributes {dimension_semantics = [#tpu.dimension_semantics<arbitrary>], iteration_bounds = array<i64: 1>, scalar_prefetch = 0 : i64, scratch_operands = 2 : i64, tpu.core_type = #tpu.core_type<tc>, window_params = [{pipeline_mode = #tpu.pipeline_mode<synchronous>, transform_indices = @transform_0, window_bounds = array<i64: 8, 1>}, {transform_indices = @transform_1, window_bounds = array<i64: 8, 8, 128>}, {pipeline_mode = #tpu.pipeline_mode<synchronous>, transform_indices = @transform_2, window_bounds = array<i64: 1, 32, 128>}, {pipeline_mode = #tpu.pipeline_mode<synchronous>, transform_indices = @transform_3, window_bounds = array<i64: 2, 32, 128>}, {pipeline_mode = #tpu.pipeline_mode<synchronous>, transform_indices = @transform_4, window_bounds = array<i64: 1, 1, 128>}, {pipeline_mode = #tpu.pipeline_mode<synchronous>, transform_indices = @transform_5, window_bounds = array<i64: 2, 8, 32>}, {pipeline_mode = #tpu.pipeline_mode<synchronous>, transform_indices = @transform_6, window_bounds = array<i64: 2, 8, 32>}, {transform_indices = @transform_7, window_bounds = array<i64: 8, 8, 32>}, {pipeline_mode = #tpu.pipeline_mode<synchronous>, transform_indices = @transform_8, window_bounds = array<i64: 2, 8, 32>}, {pipeline_mode = #tpu.pipeline_mode<synchronous>, transform_indices = @transform_9, window_bounds = array<i64: 2, 8, 32>}]} {
    %c0_i32 = arith.constant 0 : i32
    %0 = arith.cmpi eq, %arg0, %c0_i32 : i32
    %1 = arith.extui %0 : i1 to i32
    %c0_i32_0 = arith.constant 0 : i32
    %2 = arith.cmpi ne, %1, %c0_i32_0 : i32
    scf.if %2 {
      %c0_403 = arith.constant 0 : index
      %c0_404 = arith.constant 0 : index
      %c0_405 = arith.constant 0 : index
      %789 = vector.load %arg6[%c0_403, %c0_404, %c0_405] : memref<2x8x32xf32, #tpu.memory_space<vmem>>, vector<2x8x32xf32>
      %c0_406 = arith.constant 0 : index
      %c0_407 = arith.constant 0 : index
      %c0_408 = arith.constant 0 : index
      %790 = vector.load %arg11[%c0_406, %c0_407, %c0_408] : memref<2x8x32xf32, #tpu.memory_space<vmem>>, vector<2x8x32xf32>
      tpu.vector_store %arg11[%c0_406, %c0_407, %c0_408], %789 {strides = array<i32>} : memref<2x8x32xf32, #tpu.memory_space<vmem>>, vector<2x8x32xf32>,
      %c0_409 = arith.constant 0 : index
      %c0_410 = arith.constant 0 : index
      %c0_411 = arith.constant 0 : index
      %791 = vector.load %arg7[%c0_409, %c0_410, %c0_411] : memref<2x8x32xf32, #tpu.memory_space<vmem>>, vector<2x8x32xf32>
      %c0_412 = arith.constant 0 : index
      %c0_413 = arith.constant 0 : index
      %c0_414 = arith.constant 0 : index
      %792 = vector.load %arg12[%c0_412, %c0_413, %c0_414] : memref<2x8x32xf32, #tpu.memory_space<vmem>>, vector<2x8x32xf32>
      tpu.vector_store %arg12[%c0_412, %c0_413, %c0_414], %791 {strides = array<i32>} : memref<2x8x32xf32, #tpu.memory_space<vmem>>, vector<2x8x32xf32>,
    } else {
    }
    %c0 = arith.constant 0 : index
    %c0_1 = arith.constant 0 : index
    %3 = vector.load %arg1[%c0, %c0_1] : memref<8x1xi32, #tpu.memory_space<vmem>>, vector<8x1xi32>
    %4 = tpu.iota {dimensions = array<i32: 1>} : vector<8x128xi32>
    %c64_i32 = arith.constant 64 : i32
    %5 = vector.broadcast %c64_i32 : i32 to vector<8x128xi32>
    %6 = arith.cmpi sge, %4, %5 : vector<8x128xi32>
    %c96_i32 = arith.constant 96 : i32
    %7 = vector.broadcast %c96_i32 : i32 to vector<8x128xi32>
    %8 = arith.cmpi slt, %4, %7 : vector<8x128xi32>
    %9 = arith.andi %6, %8 : vector<8x128xi1>
    %c0_i32_2 = arith.constant 0 : i32
    %c8_i32 = arith.constant 8 : i32
    %10 = arith.muli %arg0, %c8_i32 : i32
    %11 = arith.addi %10, %c0_i32_2 : i32
    %12 = vector.broadcast %11 : i32 to vector<8x1xi32>
    %13 = arith.cmpi slt, %12, %3 : vector<8x1xi32>
    %14 = arith.index_cast %c0_i32_2 : i32 to index
    %c0_3 = arith.constant 0 : index
    %c0_4 = arith.constant 0 : index
    %15 = vector.load %arg2[%14, %c0_3, %c0_4] : memref<8x8x128xf32, #tpu.memory_space<vmem>>, vector<1x8x128xf32>
    %16 = vector.shape_cast %15 : vector<1x8x128xf32> to vector<8x128xf32>
    %c0_5 = arith.constant 0 : index
    %c0_6 = arith.constant 0 : index
    %c0_7 = arith.constant 0 : index
    %17 = vector.load %arg11[%c0_5, %c0_6, %c0_7] : memref<2x8x32xf32, #tpu.memory_space<vmem>>, vector<1x8x32xf32>
    %18 = vector.shape_cast %17 : vector<1x8x32xf32> to vector<8x32xf32>
    %c0_8 = arith.constant 0 : index
    %c0_9 = arith.constant 0 : index
    %c0_10 = arith.constant 0 : index
    %19 = vector.load %arg12[%c0_8, %c0_9, %c0_10] : memref<2x8x32xf32, #tpu.memory_space<vmem>>, vector<1x8x32xf32>
    %20 = vector.shape_cast %19 : vector<1x8x32xf32> to vector<8x32xf32>
    %21 = arith.truncf %18 : vector<8x32xf32> to vector<8x32xbf16>
    %c0_11 = arith.constant 0 : index
    %c0_12 = arith.constant 0 : index
    %c0_13 = arith.constant 0 : index
    %22 = vector.load %arg4[%c0_11, %c0_12, %c0_13] : memref<2x32x128xbf16, #tpu.memory_space<vmem>>, vector<1x32x128xbf16>
    %23 = vector.shape_cast %22 : vector<1x32x128xbf16> to vector<32x128xbf16>
    %cst = arith.constant dense<0.000000e+00> : vector<8x128xf32>
    %24 = tpu.matmul %21, %23, %cst {dimension_numbers = #tpu.dot_dimension_numbers<[1], [0], [0], [1], [0, 0, 1, 1], [], []>} : vector<8x32xbf16>, vector<32x128xbf16>, vector<8x128xf32> -> vector<8x128xf32>
    %25 = arith.addf %16, %24 : vector<8x128xf32>
    %cst_14 = arith.constant 5.000000e-01 : f32
    %26 = vector.broadcast %cst_14 : f32 to vector<8x128xf32>
    %27 = arith.mulf %26, %25 : vector<8x128xf32>
    %28 = arith.select %9, %25, %27 : vector<8x128xi1>, vector<8x128xf32>
    %29 = math.tanh %28 : vector<8x128xf32>
    %cst_15 = arith.constant 5.000000e-01 : f32
    %30 = vector.broadcast %cst_15 : f32 to vector<8x128xf32>
    %31 = arith.mulf %30, %29 : vector<8x128xf32>
    %cst_16 = arith.constant 5.000000e-01 : f32
    %32 = vector.broadcast %cst_16 : f32 to vector<8x128xf32>
    %33 = arith.addf %31, %32 : vector<8x128xf32>
    %34 = arith.select %9, %29, %33 : vector<8x128xi1>, vector<8x128xf32>
    %35 = vector.extract_strided_slice %34 {offsets = [0, 0], sizes = [8, 32], strides = [1, 1]} : vector<8x128xf32> to vector<8x32xf32>
    %36 = vector.extract_strided_slice %34 {offsets = [0, 32], sizes = [8, 32], strides = [1, 1]} : vector<8x128xf32> to vector<8x32xf32>
    %37 = vector.extract_strided_slice %34 {offsets = [0, 64], sizes = [8, 32], strides = [1, 1]} : vector<8x128xf32> to vector<8x32xf32>
    %38 = vector.extract_strided_slice %34 {offsets = [0, 96], sizes = [8, 32], strides = [1, 1]} : vector<8x128xf32> to vector<8x32xf32>
    %39 = arith.mulf %36, %20 : vector<8x32xf32>
    %40 = arith.mulf %35, %37 : vector<8x32xf32>
    %41 = arith.addf %39, %40 : vector<8x32xf32>
    %42 = math.tanh %41 : vector<8x32xf32>
    %43 = arith.mulf %38, %42 : vector<8x32xf32>
    %44 = vector.shape_cast %13 : vector<8x1xi1> to vector<8x1xi1>
    %45 = vector.broadcast %44 : vector<8x1xi1> to vector<8x32xi1>
    %46 = arith.select %45, %43, %18 : vector<8x32xi1>, vector<8x32xf32>
    %47 = vector.shape_cast %13 : vector<8x1xi1> to vector<8x1xi1>
    %48 = vector.broadcast %47 : vector<8x1xi1> to vector<8x32xi1>
    %49 = arith.select %48, %41, %20 : vector<8x32xi1>, vector<8x32xf32>
    %c0_17 = arith.constant 0 : index
    %c0_18 = arith.constant 0 : index
    %c0_19 = arith.constant 0 : index
    %50 = vector.load %arg11[%c0_17, %c0_18, %c0_19] : memref<2x8x32xf32, #tpu.memory_space<vmem>>, vector<1x8x32xf32>
    %51 = vector.shape_cast %50 : vector<1x8x32xf32> to vector<8x32xf32>
    %52 = vector.shape_cast %46 : vector<8x32xf32> to vector<1x8x32xf32>
    tpu.vector_store %arg11[%c0_17, %c0_18, %c0_19], %52 {strides = array<i32>} : memref<2x8x32xf32, #tpu.memory_space<vmem>>, vector<1x8x32xf32>,
    %c0_20 = arith.constant 0 : index
    %c0_21 = arith.constant 0 : index
    %c0_22 = arith.constant 0 : index
    %53 = vector.load %arg12[%c0_20, %c0_21, %c0_22] : memref<2x8x32xf32, #tpu.memory_space<vmem>>, vector<1x8x32xf32>
    %54 = vector.shape_cast %53 : vector<1x8x32xf32> to vector<8x32xf32>
    %55 = vector.shape_cast %49 : vector<8x32xf32> to vector<1x8x32xf32>
    tpu.vector_store %arg12[%c0_20, %c0_21, %c0_22], %55 {strides = array<i32>} : memref<2x8x32xf32, #tpu.memory_space<vmem>>, vector<1x8x32xf32>,
    %c1 = arith.constant 1 : index
    %c0_23 = arith.constant 0 : index
    %c0_24 = arith.constant 0 : index
    %56 = vector.load %arg11[%c1, %c0_23, %c0_24] : memref<2x8x32xf32, #tpu.memory_space<vmem>>, vector<1x8x32xf32>
    %57 = vector.shape_cast %56 : vector<1x8x32xf32> to vector<8x32xf32>
    %c1_25 = arith.constant 1 : index
    %c0_26 = arith.constant 0 : index
    %c0_27 = arith.constant 0 : index
    %58 = vector.load %arg12[%c1_25, %c0_26, %c0_27] : memref<2x8x32xf32, #tpu.memory_space<vmem>>, vector<1x8x32xf32>
    %59 = vector.shape_cast %58 : vector<1x8x32xf32> to vector<8x32xf32>
    %60 = arith.truncf %57 : vector<8x32xf32> to vector<8x32xbf16>
    %c1_28 = arith.constant 1 : index
    %c0_29 = arith.constant 0 : index
    %c0_30 = arith.constant 0 : index
    %61 = vector.load %arg4[%c1_28, %c0_29, %c0_30] : memref<2x32x128xbf16, #tpu.memory_space<vmem>>, vector<1x32x128xbf16>
    %62 = vector.shape_cast %61 : vector<1x32x128xbf16> to vector<32x128xbf16>
    %cst_31 = arith.constant dense<0.000000e+00> : vector<8x128xf32>
    %63 = tpu.matmul %60, %62, %cst_31 {dimension_numbers = #tpu.dot_dimension_numbers<[1], [0], [0], [1], [0, 0, 1, 1], [], []>} : vector<8x32xbf16>, vector<32x128xbf16>, vector<8x128xf32> -> vector<8x128xf32>
    %c0_32 = arith.constant 0 : index
    %c0_33 = arith.constant 0 : index
    %c0_34 = arith.constant 0 : index
    %64 = vector.load %arg5[%c0_32, %c0_33, %c0_34] : memref<1x1x128xf32, #tpu.memory_space<vmem>>, vector<1x1x128xf32>
    %65 = vector.shape_cast %64 : vector<1x1x128xf32> to vector<1x128xf32>
    %66 = arith.truncf %46 : vector<8x32xf32> to vector<8x32xbf16>
    %c0_35 = arith.constant 0 : index
    %c0_36 = arith.constant 0 : index
    %c0_37 = arith.constant 0 : index
    %67 = vector.load %arg3[%c0_35, %c0_36, %c0_37] : memref<1x32x128xbf16, #tpu.memory_space<vmem>>, vector<1x32x128xbf16>
    %68 = vector.shape_cast %67 : vector<1x32x128xbf16> to vector<32x128xbf16>
    %cst_38 = arith.constant dense<0.000000e+00> : vector<8x128xf32>
    %69 = tpu.matmul %66, %68, %cst_38 {dimension_numbers = #tpu.dot_dimension_numbers<[1], [0], [0], [1], [0, 0, 1, 1], [], []>} : vector<8x32xbf16>, vector<32x128xbf16>, vector<8x128xf32> -> vector<8x128xf32>
    %70 = vector.broadcast %65 : vector<1x128xf32> to vector<8x128xf32>
    %71 = arith.addf %70, %69 : vector<8x128xf32>
    %72 = arith.addf %71, %63 : vector<8x128xf32>
    %cst_39 = arith.constant 5.000000e-01 : f32
    %73 = vector.broadcast %cst_39 : f32 to vector<8x128xf32>
    %74 = arith.mulf %73, %72 : vector<8x128xf32>
    %75 = arith.select %9, %72, %74 : vector<8x128xi1>, vector<8x128xf32>
    %76 = math.tanh %75 : vector<8x128xf32>
    %cst_40 = arith.constant 5.000000e-01 : f32
    %77 = vector.broadcast %cst_40 : f32 to vector<8x128xf32>
    %78 = arith.mulf %77, %76 : vector<8x128xf32>
    %cst_41 = arith.constant 5.000000e-01 : f32
    %79 = vector.broadcast %cst_41 : f32 to vector<8x128xf32>
    %80 = arith.addf %78, %79 : vector<8x128xf32>
    %81 = arith.select %9, %76, %80 : vector<8x128xi1>, vector<8x128xf32>
    %82 = vector.extract_strided_slice %81 {offsets = [0, 0], sizes = [8, 32], strides = [1, 1]} : vector<8x128xf32> to vector<8x32xf32>
    %83 = vector.extract_strided_slice %81 {offsets = [0, 32], sizes = [8, 32], strides = [1, 1]} : vector<8x128xf32> to vector<8x32xf32>
    %84 = vector.extract_strided_slice %81 {offsets = [0, 64], sizes = [8, 32], strides = [1, 1]} : vector<8x128xf32> to vector<8x32xf32>
    %85 = vector.extract_strided_slice %81 {offsets = [0, 96], sizes = [8, 32], strides = [1, 1]} : vector<8x128xf32> to vector<8x32xf32>
    %86 = arith.mulf %83, %59 : vector<8x32xf32>
    %87 = arith.mulf %82, %84 : vector<8x32xf32>
    %88 = arith.addf %86, %87 : vector<8x32xf32>
    %89 = math.tanh %88 : vector<8x32xf32>
    %90 = arith.mulf %85, %89 : vector<8x32xf32>
    %91 = vector.shape_cast %13 : vector<8x1xi1> to vector<8x1xi1>
    %92 = vector.broadcast %91 : vector<8x1xi1> to vector<8x32xi1>
    %93 = arith.select %92, %90, %57 : vector<8x32xi1>, vector<8x32xf32>
    %94 = vector.shape_cast %13 : vector<8x1xi1> to vector<8x1xi1>
    %95 = vector.broadcast %94 : vector<8x1xi1> to vector<8x32xi1>
    %96 = arith.select %95, %88, %59 : vector<8x32xi1>, vector<8x32xf32>
    %c1_42 = arith.constant 1 : index
    %c0_43 = arith.constant 0 : index
    %c0_44 = arith.constant 0 : index
    %97 = vector.load %arg11[%c1_42, %c0_43, %c0_44] : memref<2x8x32xf32, #tpu.memory_space<vmem>>, vector<1x8x32xf32>
    %98 = vector.shape_cast %97 : vector<1x8x32xf32> to vector<8x32xf32>
    %99 = vector.shape_cast %93 : vector<8x32xf32> to vector<1x8x32xf32>
    tpu.vector_store %arg11[%c1_42, %c0_43, %c0_44], %99 {strides = array<i32>} : memref<2x8x32xf32, #tpu.memory_space<vmem>>, vector<1x8x32xf32>,
    %c1_45 = arith.constant 1 : index
    %c0_46 = arith.constant 0 : index
    %c0_47 = arith.constant 0 : index
    %100 = vector.load %arg12[%c1_45, %c0_46, %c0_47] : memref<2x8x32xf32, #tpu.memory_space<vmem>>, vector<1x8x32xf32>
    %101 = vector.shape_cast %100 : vector<1x8x32xf32> to vector<8x32xf32>
    %102 = vector.shape_cast %96 : vector<8x32xf32> to vector<1x8x32xf32>
    tpu.vector_store %arg12[%c1_45, %c0_46, %c0_47], %102 {strides = array<i32>} : memref<2x8x32xf32, #tpu.memory_space<vmem>>, vector<1x8x32xf32>,
    %103 = arith.index_cast %c0_i32_2 : i32 to index
    %c0_48 = arith.constant 0 : index
    %c0_49 = arith.constant 0 : index
    %104 = vector.load %arg8[%103, %c0_48, %c0_49] : memref<8x8x32xf32, #tpu.memory_space<vmem>>, vector<1x8x32xf32>
    %105 = vector.shape_cast %104 : vector<1x8x32xf32> to vector<8x32xf32>
    %106 = vector.shape_cast %93 : vector<8x32xf32> to vector<1x8x32xf32>
    tpu.vector_store %arg8[%103, %c0_48, %c0_49], %106 {strides = array<i32>} : memref<8x8x32xf32, #tpu.memory_space<vmem>>, vector<1x8x32xf32>,
    %c1_i32 = arith.constant 1 : i32
    %c8_i32_50 = arith.constant 8 : i32
    %107 = arith.muli %arg0, %c8_i32_50 : i32
    %108 = arith.addi %107, %c1_i32 : i32
    %109 = vector.broadcast %108 : i32 to vector<8x1xi32>
    %110 = arith.cmpi slt, %109, %3 : vector<8x1xi32>
    %111 = arith.index_cast %c1_i32 : i32 to index
    %c0_51 = arith.constant 0 : index
    %c0_52 = arith.constant 0 : index
    %112 = vector.load %arg2[%111, %c0_51, %c0_52] : memref<8x8x128xf32, #tpu.memory_space<vmem>>, vector<1x8x128xf32>
    %113 = vector.shape_cast %112 : vector<1x8x128xf32> to vector<8x128xf32>
    %c0_53 = arith.constant 0 : index
    %c0_54 = arith.constant 0 : index
    %c0_55 = arith.constant 0 : index
    %114 = vector.load %arg11[%c0_53, %c0_54, %c0_55] : memref<2x8x32xf32, #tpu.memory_space<vmem>>, vector<1x8x32xf32>
    %115 = vector.shape_cast %114 : vector<1x8x32xf32> to vector<8x32xf32>
    %c0_56 = arith.constant 0 : index
    %c0_57 = arith.constant 0 : index
    %c0_58 = arith.constant 0 : index
    %116 = vector.load %arg12[%c0_56, %c0_57, %c0_58] : memref<2x8x32xf32, #tpu.memory_space<vmem>>, vector<1x8x32xf32>
    %117 = vector.shape_cast %116 : vector<1x8x32xf32> to vector<8x32xf32>
    %118 = arith.truncf %115 : vector<8x32xf32> to vector<8x32xbf16>
    %c0_59 = arith.constant 0 : index
    %c0_60 = arith.constant 0 : index
    %c0_61 = arith.constant 0 : index
    %119 = vector.load %arg4[%c0_59, %c0_60, %c0_61] : memref<2x32x128xbf16, #tpu.memory_space<vmem>>, vector<1x32x128xbf16>
    %120 = vector.shape_cast %119 : vector<1x32x128xbf16> to vector<32x128xbf16>
    %cst_62 = arith.constant dense<0.000000e+00> : vector<8x128xf32>
    %121 = tpu.matmul %118, %120, %cst_62 {dimension_numbers = #tpu.dot_dimension_numbers<[1], [0], [0], [1], [0, 0, 1, 1], [], []>} : vector<8x32xbf16>, vector<32x128xbf16>, vector<8x128xf32> -> vector<8x128xf32>
    %122 = arith.addf %113, %121 : vector<8x128xf32>
    %cst_63 = arith.constant 5.000000e-01 : f32
    %123 = vector.broadcast %cst_63 : f32 to vector<8x128xf32>
    %124 = arith.mulf %123, %122 : vector<8x128xf32>
    %125 = arith.select %9, %122, %124 : vector<8x128xi1>, vector<8x128xf32>
    %126 = math.tanh %125 : vector<8x128xf32>
    %cst_64 = arith.constant 5.000000e-01 : f32
    %127 = vector.broadcast %cst_64 : f32 to vector<8x128xf32>
    %128 = arith.mulf %127, %126 : vector<8x128xf32>
    %cst_65 = arith.constant 5.000000e-01 : f32
    %129 = vector.broadcast %cst_65 : f32 to vector<8x128xf32>
    %130 = arith.addf %128, %129 : vector<8x128xf32>
    %131 = arith.select %9, %126, %130 : vector<8x128xi1>, vector<8x128xf32>
    %132 = vector.extract_strided_slice %131 {offsets = [0, 0], sizes = [8, 32], strides = [1, 1]} : vector<8x128xf32> to vector<8x32xf32>
    %133 = vector.extract_strided_slice %131 {offsets = [0, 32], sizes = [8, 32], strides = [1, 1]} : vector<8x128xf32> to vector<8x32xf32>
    %134 = vector.extract_strided_slice %131 {offsets = [0, 64], sizes = [8, 32], strides = [1, 1]} : vector<8x128xf32> to vector<8x32xf32>
    %135 = vector.extract_strided_slice %131 {offsets = [0, 96], sizes = [8, 32], strides = [1, 1]} : vector<8x128xf32> to vector<8x32xf32>
    %136 = arith.mulf %133, %117 : vector<8x32xf32>
    %137 = arith.mulf %132, %134 : vector<8x32xf32>
    %138 = arith.addf %136, %137 : vector<8x32xf32>
    %139 = math.tanh %138 : vector<8x32xf32>
    %140 = arith.mulf %135, %139 : vector<8x32xf32>
    %141 = vector.shape_cast %110 : vector<8x1xi1> to vector<8x1xi1>
    %142 = vector.broadcast %141 : vector<8x1xi1> to vector<8x32xi1>
    %143 = arith.select %142, %140, %115 : vector<8x32xi1>, vector<8x32xf32>
    %144 = vector.shape_cast %110 : vector<8x1xi1> to vector<8x1xi1>
    %145 = vector.broadcast %144 : vector<8x1xi1> to vector<8x32xi1>
    %146 = arith.select %145, %138, %117 : vector<8x32xi1>, vector<8x32xf32>
    %c0_66 = arith.constant 0 : index
    %c0_67 = arith.constant 0 : index
    %c0_68 = arith.constant 0 : index
    %147 = vector.load %arg11[%c0_66, %c0_67, %c0_68] : memref<2x8x32xf32, #tpu.memory_space<vmem>>, vector<1x8x32xf32>
    %148 = vector.shape_cast %147 : vector<1x8x32xf32> to vector<8x32xf32>
    %149 = vector.shape_cast %143 : vector<8x32xf32> to vector<1x8x32xf32>
    tpu.vector_store %arg11[%c0_66, %c0_67, %c0_68], %149 {strides = array<i32>} : memref<2x8x32xf32, #tpu.memory_space<vmem>>, vector<1x8x32xf32>,
    %c0_69 = arith.constant 0 : index
    %c0_70 = arith.constant 0 : index
    %c0_71 = arith.constant 0 : index
    %150 = vector.load %arg12[%c0_69, %c0_70, %c0_71] : memref<2x8x32xf32, #tpu.memory_space<vmem>>, vector<1x8x32xf32>
    %151 = vector.shape_cast %150 : vector<1x8x32xf32> to vector<8x32xf32>
    %152 = vector.shape_cast %146 : vector<8x32xf32> to vector<1x8x32xf32>
    tpu.vector_store %arg12[%c0_69, %c0_70, %c0_71], %152 {strides = array<i32>} : memref<2x8x32xf32, #tpu.memory_space<vmem>>, vector<1x8x32xf32>,
    %c1_72 = arith.constant 1 : index
    %c0_73 = arith.constant 0 : index
    %c0_74 = arith.constant 0 : index
    %153 = vector.load %arg11[%c1_72, %c0_73, %c0_74] : memref<2x8x32xf32, #tpu.memory_space<vmem>>, vector<1x8x32xf32>
    %154 = vector.shape_cast %153 : vector<1x8x32xf32> to vector<8x32xf32>
    %c1_75 = arith.constant 1 : index
    %c0_76 = arith.constant 0 : index
    %c0_77 = arith.constant 0 : index
    %155 = vector.load %arg12[%c1_75, %c0_76, %c0_77] : memref<2x8x32xf32, #tpu.memory_space<vmem>>, vector<1x8x32xf32>
    %156 = vector.shape_cast %155 : vector<1x8x32xf32> to vector<8x32xf32>
    %157 = arith.truncf %154 : vector<8x32xf32> to vector<8x32xbf16>
    %c1_78 = arith.constant 1 : index
    %c0_79 = arith.constant 0 : index
    %c0_80 = arith.constant 0 : index
    %158 = vector.load %arg4[%c1_78, %c0_79, %c0_80] : memref<2x32x128xbf16, #tpu.memory_space<vmem>>, vector<1x32x128xbf16>
    %159 = vector.shape_cast %158 : vector<1x32x128xbf16> to vector<32x128xbf16>
    %cst_81 = arith.constant dense<0.000000e+00> : vector<8x128xf32>
    %160 = tpu.matmul %157, %159, %cst_81 {dimension_numbers = #tpu.dot_dimension_numbers<[1], [0], [0], [1], [0, 0, 1, 1], [], []>} : vector<8x32xbf16>, vector<32x128xbf16>, vector<8x128xf32> -> vector<8x128xf32>
    %c0_82 = arith.constant 0 : index
    %c0_83 = arith.constant 0 : index
    %c0_84 = arith.constant 0 : index
    %161 = vector.load %arg5[%c0_82, %c0_83, %c0_84] : memref<1x1x128xf32, #tpu.memory_space<vmem>>, vector<1x1x128xf32>
    %162 = vector.shape_cast %161 : vector<1x1x128xf32> to vector<1x128xf32>
    %163 = arith.truncf %143 : vector<8x32xf32> to vector<8x32xbf16>
    %c0_85 = arith.constant 0 : index
    %c0_86 = arith.constant 0 : index
    %c0_87 = arith.constant 0 : index
    %164 = vector.load %arg3[%c0_85, %c0_86, %c0_87] : memref<1x32x128xbf16, #tpu.memory_space<vmem>>, vector<1x32x128xbf16>
    %165 = vector.shape_cast %164 : vector<1x32x128xbf16> to vector<32x128xbf16>
    %cst_88 = arith.constant dense<0.000000e+00> : vector<8x128xf32>
    %166 = tpu.matmul %163, %165, %cst_88 {dimension_numbers = #tpu.dot_dimension_numbers<[1], [0], [0], [1], [0, 0, 1, 1], [], []>} : vector<8x32xbf16>, vector<32x128xbf16>, vector<8x128xf32> -> vector<8x128xf32>
    %167 = vector.broadcast %162 : vector<1x128xf32> to vector<8x128xf32>
    %168 = arith.addf %167, %166 : vector<8x128xf32>
    %169 = arith.addf %168, %160 : vector<8x128xf32>
    %cst_89 = arith.constant 5.000000e-01 : f32
    %170 = vector.broadcast %cst_89 : f32 to vector<8x128xf32>
    %171 = arith.mulf %170, %169 : vector<8x128xf32>
    %172 = arith.select %9, %169, %171 : vector<8x128xi1>, vector<8x128xf32>
    %173 = math.tanh %172 : vector<8x128xf32>
    %cst_90 = arith.constant 5.000000e-01 : f32
    %174 = vector.broadcast %cst_90 : f32 to vector<8x128xf32>
    %175 = arith.mulf %174, %173 : vector<8x128xf32>
    %cst_91 = arith.constant 5.000000e-01 : f32
    %176 = vector.broadcast %cst_91 : f32 to vector<8x128xf32>
    %177 = arith.addf %175, %176 : vector<8x128xf32>
    %178 = arith.select %9, %173, %177 : vector<8x128xi1>, vector<8x128xf32>
    %179 = vector.extract_strided_slice %178 {offsets = [0, 0], sizes = [8, 32], strides = [1, 1]} : vector<8x128xf32> to vector<8x32xf32>
    %180 = vector.extract_strided_slice %178 {offsets = [0, 32], sizes = [8, 32], strides = [1, 1]} : vector<8x128xf32> to vector<8x32xf32>
    %181 = vector.extract_strided_slice %178 {offsets = [0, 64], sizes = [8, 32], strides = [1, 1]} : vector<8x128xf32> to vector<8x32xf32>
    %182 = vector.extract_strided_slice %178 {offsets = [0, 96], sizes = [8, 32], strides = [1, 1]} : vector<8x128xf32> to vector<8x32xf32>
    %183 = arith.mulf %180, %156 : vector<8x32xf32>
    %184 = arith.mulf %179, %181 : vector<8x32xf32>
    %185 = arith.addf %183, %184 : vector<8x32xf32>
    %186 = math.tanh %185 : vector<8x32xf32>
    %187 = arith.mulf %182, %186 : vector<8x32xf32>
    %188 = vector.shape_cast %110 : vector<8x1xi1> to vector<8x1xi1>
    %189 = vector.broadcast %188 : vector<8x1xi1> to vector<8x32xi1>
    %190 = arith.select %189, %187, %154 : vector<8x32xi1>, vector<8x32xf32>
    %191 = vector.shape_cast %110 : vector<8x1xi1> to vector<8x1xi1>
    %192 = vector.broadcast %191 : vector<8x1xi1> to vector<8x32xi1>
    %193 = arith.select %192, %185, %156 : vector<8x32xi1>, vector<8x32xf32>
    %c1_92 = arith.constant 1 : index
    %c0_93 = arith.constant 0 : index
    %c0_94 = arith.constant 0 : index
    %194 = vector.load %arg11[%c1_92, %c0_93, %c0_94] : memref<2x8x32xf32, #tpu.memory_space<vmem>>, vector<1x8x32xf32>
    %195 = vector.shape_cast %194 : vector<1x8x32xf32> to vector<8x32xf32>
    %196 = vector.shape_cast %190 : vector<8x32xf32> to vector<1x8x32xf32>
    tpu.vector_store %arg11[%c1_92, %c0_93, %c0_94], %196 {strides = array<i32>} : memref<2x8x32xf32, #tpu.memory_space<vmem>>, vector<1x8x32xf32>,
    %c1_95 = arith.constant 1 : index
    %c0_96 = arith.constant 0 : index
    %c0_97 = arith.constant 0 : index
    %197 = vector.load %arg12[%c1_95, %c0_96, %c0_97] : memref<2x8x32xf32, #tpu.memory_space<vmem>>, vector<1x8x32xf32>
    %198 = vector.shape_cast %197 : vector<1x8x32xf32> to vector<8x32xf32>
    %199 = vector.shape_cast %193 : vector<8x32xf32> to vector<1x8x32xf32>
    tpu.vector_store %arg12[%c1_95, %c0_96, %c0_97], %199 {strides = array<i32>} : memref<2x8x32xf32, #tpu.memory_space<vmem>>, vector<1x8x32xf32>,
    %200 = arith.index_cast %c1_i32 : i32 to index
    %c0_98 = arith.constant 0 : index
    %c0_99 = arith.constant 0 : index
    %201 = vector.load %arg8[%200, %c0_98, %c0_99] : memref<8x8x32xf32, #tpu.memory_space<vmem>>, vector<1x8x32xf32>
    %202 = vector.shape_cast %201 : vector<1x8x32xf32> to vector<8x32xf32>
    %203 = vector.shape_cast %190 : vector<8x32xf32> to vector<1x8x32xf32>
    tpu.vector_store %arg8[%200, %c0_98, %c0_99], %203 {strides = array<i32>} : memref<8x8x32xf32, #tpu.memory_space<vmem>>, vector<1x8x32xf32>,
    %c2_i32 = arith.constant 2 : i32
    %c8_i32_100 = arith.constant 8 : i32
    %204 = arith.muli %arg0, %c8_i32_100 : i32
    %205 = arith.addi %204, %c2_i32 : i32
    %206 = vector.broadcast %205 : i32 to vector<8x1xi32>
    %207 = arith.cmpi slt, %206, %3 : vector<8x1xi32>
    %208 = arith.index_cast %c2_i32 : i32 to index
    %c0_101 = arith.constant 0 : index
    %c0_102 = arith.constant 0 : index
    %209 = vector.load %arg2[%208, %c0_101, %c0_102] : memref<8x8x128xf32, #tpu.memory_space<vmem>>, vector<1x8x128xf32>
    %210 = vector.shape_cast %209 : vector<1x8x128xf32> to vector<8x128xf32>
    %c0_103 = arith.constant 0 : index
    %c0_104 = arith.constant 0 : index
    %c0_105 = arith.constant 0 : index
    %211 = vector.load %arg11[%c0_103, %c0_104, %c0_105] : memref<2x8x32xf32, #tpu.memory_space<vmem>>, vector<1x8x32xf32>
    %212 = vector.shape_cast %211 : vector<1x8x32xf32> to vector<8x32xf32>
    %c0_106 = arith.constant 0 : index
    %c0_107 = arith.constant 0 : index
    %c0_108 = arith.constant 0 : index
    %213 = vector.load %arg12[%c0_106, %c0_107, %c0_108] : memref<2x8x32xf32, #tpu.memory_space<vmem>>, vector<1x8x32xf32>
    %214 = vector.shape_cast %213 : vector<1x8x32xf32> to vector<8x32xf32>
    %215 = arith.truncf %212 : vector<8x32xf32> to vector<8x32xbf16>
    %c0_109 = arith.constant 0 : index
    %c0_110 = arith.constant 0 : index
    %c0_111 = arith.constant 0 : index
    %216 = vector.load %arg4[%c0_109, %c0_110, %c0_111] : memref<2x32x128xbf16, #tpu.memory_space<vmem>>, vector<1x32x128xbf16>
    %217 = vector.shape_cast %216 : vector<1x32x128xbf16> to vector<32x128xbf16>
    %cst_112 = arith.constant dense<0.000000e+00> : vector<8x128xf32>
    %218 = tpu.matmul %215, %217, %cst_112 {dimension_numbers = #tpu.dot_dimension_numbers<[1], [0], [0], [1], [0, 0, 1, 1], [], []>} : vector<8x32xbf16>, vector<32x128xbf16>, vector<8x128xf32> -> vector<8x128xf32>
    %219 = arith.addf %210, %218 : vector<8x128xf32>
    %cst_113 = arith.constant 5.000000e-01 : f32
    %220 = vector.broadcast %cst_113 : f32 to vector<8x128xf32>
    %221 = arith.mulf %220, %219 : vector<8x128xf32>
    %222 = arith.select %9, %219, %221 : vector<8x128xi1>, vector<8x128xf32>
    %223 = math.tanh %222 : vector<8x128xf32>
    %cst_114 = arith.constant 5.000000e-01 : f32
    %224 = vector.broadcast %cst_114 : f32 to vector<8x128xf32>
    %225 = arith.mulf %224, %223 : vector<8x128xf32>
    %cst_115 = arith.constant 5.000000e-01 : f32
    %226 = vector.broadcast %cst_115 : f32 to vector<8x128xf32>
    %227 = arith.addf %225, %226 : vector<8x128xf32>
    %228 = arith.select %9, %223, %227 : vector<8x128xi1>, vector<8x128xf32>
    %229 = vector.extract_strided_slice %228 {offsets = [0, 0], sizes = [8, 32], strides = [1, 1]} : vector<8x128xf32> to vector<8x32xf32>
    %230 = vector.extract_strided_slice %228 {offsets = [0, 32], sizes = [8, 32], strides = [1, 1]} : vector<8x128xf32> to vector<8x32xf32>
    %231 = vector.extract_strided_slice %228 {offsets = [0, 64], sizes = [8, 32], strides = [1, 1]} : vector<8x128xf32> to vector<8x32xf32>
    %232 = vector.extract_strided_slice %228 {offsets = [0, 96], sizes = [8, 32], strides = [1, 1]} : vector<8x128xf32> to vector<8x32xf32>
    %233 = arith.mulf %230, %214 : vector<8x32xf32>
    %234 = arith.mulf %229, %231 : vector<8x32xf32>
    %235 = arith.addf %233, %234 : vector<8x32xf32>
    %236 = math.tanh %235 : vector<8x32xf32>
    %237 = arith.mulf %232, %236 : vector<8x32xf32>
    %238 = vector.shape_cast %207 : vector<8x1xi1> to vector<8x1xi1>
    %239 = vector.broadcast %238 : vector<8x1xi1> to vector<8x32xi1>
    %240 = arith.select %239, %237, %212 : vector<8x32xi1>, vector<8x32xf32>
    %241 = vector.shape_cast %207 : vector<8x1xi1> to vector<8x1xi1>
    %242 = vector.broadcast %241 : vector<8x1xi1> to vector<8x32xi1>
    %243 = arith.select %242, %235, %214 : vector<8x32xi1>, vector<8x32xf32>
    %c0_116 = arith.constant 0 : index
    %c0_117 = arith.constant 0 : index
    %c0_118 = arith.constant 0 : index
    %244 = vector.load %arg11[%c0_116, %c0_117, %c0_118] : memref<2x8x32xf32, #tpu.memory_space<vmem>>, vector<1x8x32xf32>
    %245 = vector.shape_cast %244 : vector<1x8x32xf32> to vector<8x32xf32>
    %246 = vector.shape_cast %240 : vector<8x32xf32> to vector<1x8x32xf32>
    tpu.vector_store %arg11[%c0_116, %c0_117, %c0_118], %246 {strides = array<i32>} : memref<2x8x32xf32, #tpu.memory_space<vmem>>, vector<1x8x32xf32>,
    %c0_119 = arith.constant 0 : index
    %c0_120 = arith.constant 0 : index
    %c0_121 = arith.constant 0 : index
    %247 = vector.load %arg12[%c0_119, %c0_120, %c0_121] : memref<2x8x32xf32, #tpu.memory_space<vmem>>, vector<1x8x32xf32>
    %248 = vector.shape_cast %247 : vector<1x8x32xf32> to vector<8x32xf32>
    %249 = vector.shape_cast %243 : vector<8x32xf32> to vector<1x8x32xf32>
    tpu.vector_store %arg12[%c0_119, %c0_120, %c0_121], %249 {strides = array<i32>} : memref<2x8x32xf32, #tpu.memory_space<vmem>>, vector<1x8x32xf32>,
    %c1_122 = arith.constant 1 : index
    %c0_123 = arith.constant 0 : index
    %c0_124 = arith.constant 0 : index
    %250 = vector.load %arg11[%c1_122, %c0_123, %c0_124] : memref<2x8x32xf32, #tpu.memory_space<vmem>>, vector<1x8x32xf32>
    %251 = vector.shape_cast %250 : vector<1x8x32xf32> to vector<8x32xf32>
    %c1_125 = arith.constant 1 : index
    %c0_126 = arith.constant 0 : index
    %c0_127 = arith.constant 0 : index
    %252 = vector.load %arg12[%c1_125, %c0_126, %c0_127] : memref<2x8x32xf32, #tpu.memory_space<vmem>>, vector<1x8x32xf32>
    %253 = vector.shape_cast %252 : vector<1x8x32xf32> to vector<8x32xf32>
    %254 = arith.truncf %251 : vector<8x32xf32> to vector<8x32xbf16>
    %c1_128 = arith.constant 1 : index
    %c0_129 = arith.constant 0 : index
    %c0_130 = arith.constant 0 : index
    %255 = vector.load %arg4[%c1_128, %c0_129, %c0_130] : memref<2x32x128xbf16, #tpu.memory_space<vmem>>, vector<1x32x128xbf16>
    %256 = vector.shape_cast %255 : vector<1x32x128xbf16> to vector<32x128xbf16>
    %cst_131 = arith.constant dense<0.000000e+00> : vector<8x128xf32>
    %257 = tpu.matmul %254, %256, %cst_131 {dimension_numbers = #tpu.dot_dimension_numbers<[1], [0], [0], [1], [0, 0, 1, 1], [], []>} : vector<8x32xbf16>, vector<32x128xbf16>, vector<8x128xf32> -> vector<8x128xf32>
    %c0_132 = arith.constant 0 : index
    %c0_133 = arith.constant 0 : index
    %c0_134 = arith.constant 0 : index
    %258 = vector.load %arg5[%c0_132, %c0_133, %c0_134] : memref<1x1x128xf32, #tpu.memory_space<vmem>>, vector<1x1x128xf32>
    %259 = vector.shape_cast %258 : vector<1x1x128xf32> to vector<1x128xf32>
    %260 = arith.truncf %240 : vector<8x32xf32> to vector<8x32xbf16>
    %c0_135 = arith.constant 0 : index
    %c0_136 = arith.constant 0 : index
    %c0_137 = arith.constant 0 : index
    %261 = vector.load %arg3[%c0_135, %c0_136, %c0_137] : memref<1x32x128xbf16, #tpu.memory_space<vmem>>, vector<1x32x128xbf16>
    %262 = vector.shape_cast %261 : vector<1x32x128xbf16> to vector<32x128xbf16>
    %cst_138 = arith.constant dense<0.000000e+00> : vector<8x128xf32>
    %263 = tpu.matmul %260, %262, %cst_138 {dimension_numbers = #tpu.dot_dimension_numbers<[1], [0], [0], [1], [0, 0, 1, 1], [], []>} : vector<8x32xbf16>, vector<32x128xbf16>, vector<8x128xf32> -> vector<8x128xf32>
    %264 = vector.broadcast %259 : vector<1x128xf32> to vector<8x128xf32>
    %265 = arith.addf %264, %263 : vector<8x128xf32>
    %266 = arith.addf %265, %257 : vector<8x128xf32>
    %cst_139 = arith.constant 5.000000e-01 : f32
    %267 = vector.broadcast %cst_139 : f32 to vector<8x128xf32>
    %268 = arith.mulf %267, %266 : vector<8x128xf32>
    %269 = arith.select %9, %266, %268 : vector<8x128xi1>, vector<8x128xf32>
    %270 = math.tanh %269 : vector<8x128xf32>
    %cst_140 = arith.constant 5.000000e-01 : f32
    %271 = vector.broadcast %cst_140 : f32 to vector<8x128xf32>
    %272 = arith.mulf %271, %270 : vector<8x128xf32>
    %cst_141 = arith.constant 5.000000e-01 : f32
    %273 = vector.broadcast %cst_141 : f32 to vector<8x128xf32>
    %274 = arith.addf %272, %273 : vector<8x128xf32>
    %275 = arith.select %9, %270, %274 : vector<8x128xi1>, vector<8x128xf32>
    %276 = vector.extract_strided_slice %275 {offsets = [0, 0], sizes = [8, 32], strides = [1, 1]} : vector<8x128xf32> to vector<8x32xf32>
    %277 = vector.extract_strided_slice %275 {offsets = [0, 32], sizes = [8, 32], strides = [1, 1]} : vector<8x128xf32> to vector<8x32xf32>
    %278 = vector.extract_strided_slice %275 {offsets = [0, 64], sizes = [8, 32], strides = [1, 1]} : vector<8x128xf32> to vector<8x32xf32>
    %279 = vector.extract_strided_slice %275 {offsets = [0, 96], sizes = [8, 32], strides = [1, 1]} : vector<8x128xf32> to vector<8x32xf32>
    %280 = arith.mulf %277, %253 : vector<8x32xf32>
    %281 = arith.mulf %276, %278 : vector<8x32xf32>
    %282 = arith.addf %280, %281 : vector<8x32xf32>
    %283 = math.tanh %282 : vector<8x32xf32>
    %284 = arith.mulf %279, %283 : vector<8x32xf32>
    %285 = vector.shape_cast %207 : vector<8x1xi1> to vector<8x1xi1>
    %286 = vector.broadcast %285 : vector<8x1xi1> to vector<8x32xi1>
    %287 = arith.select %286, %284, %251 : vector<8x32xi1>, vector<8x32xf32>
    %288 = vector.shape_cast %207 : vector<8x1xi1> to vector<8x1xi1>
    %289 = vector.broadcast %288 : vector<8x1xi1> to vector<8x32xi1>
    %290 = arith.select %289, %282, %253 : vector<8x32xi1>, vector<8x32xf32>
    %c1_142 = arith.constant 1 : index
    %c0_143 = arith.constant 0 : index
    %c0_144 = arith.constant 0 : index
    %291 = vector.load %arg11[%c1_142, %c0_143, %c0_144] : memref<2x8x32xf32, #tpu.memory_space<vmem>>, vector<1x8x32xf32>
    %292 = vector.shape_cast %291 : vector<1x8x32xf32> to vector<8x32xf32>
    %293 = vector.shape_cast %287 : vector<8x32xf32> to vector<1x8x32xf32>
    tpu.vector_store %arg11[%c1_142, %c0_143, %c0_144], %293 {strides = array<i32>} : memref<2x8x32xf32, #tpu.memory_space<vmem>>, vector<1x8x32xf32>,
    %c1_145 = arith.constant 1 : index
    %c0_146 = arith.constant 0 : index
    %c0_147 = arith.constant 0 : index
    %294 = vector.load %arg12[%c1_145, %c0_146, %c0_147] : memref<2x8x32xf32, #tpu.memory_space<vmem>>, vector<1x8x32xf32>
    %295 = vector.shape_cast %294 : vector<1x8x32xf32> to vector<8x32xf32>
    %296 = vector.shape_cast %290 : vector<8x32xf32> to vector<1x8x32xf32>
    tpu.vector_store %arg12[%c1_145, %c0_146, %c0_147], %296 {strides = array<i32>} : memref<2x8x32xf32, #tpu.memory_space<vmem>>, vector<1x8x32xf32>,
    %297 = arith.index_cast %c2_i32 : i32 to index
    %c0_148 = arith.constant 0 : index
    %c0_149 = arith.constant 0 : index
    %298 = vector.load %arg8[%297, %c0_148, %c0_149] : memref<8x8x32xf32, #tpu.memory_space<vmem>>, vector<1x8x32xf32>
    %299 = vector.shape_cast %298 : vector<1x8x32xf32> to vector<8x32xf32>
    %300 = vector.shape_cast %287 : vector<8x32xf32> to vector<1x8x32xf32>
    tpu.vector_store %arg8[%297, %c0_148, %c0_149], %300 {strides = array<i32>} : memref<8x8x32xf32, #tpu.memory_space<vmem>>, vector<1x8x32xf32>,
    %c3_i32 = arith.constant 3 : i32
    %c8_i32_150 = arith.constant 8 : i32
    %301 = arith.muli %arg0, %c8_i32_150 : i32
    %302 = arith.addi %301, %c3_i32 : i32
    %303 = vector.broadcast %302 : i32 to vector<8x1xi32>
    %304 = arith.cmpi slt, %303, %3 : vector<8x1xi32>
    %305 = arith.index_cast %c3_i32 : i32 to index
    %c0_151 = arith.constant 0 : index
    %c0_152 = arith.constant 0 : index
    %306 = vector.load %arg2[%305, %c0_151, %c0_152] : memref<8x8x128xf32, #tpu.memory_space<vmem>>, vector<1x8x128xf32>
    %307 = vector.shape_cast %306 : vector<1x8x128xf32> to vector<8x128xf32>
    %c0_153 = arith.constant 0 : index
    %c0_154 = arith.constant 0 : index
    %c0_155 = arith.constant 0 : index
    %308 = vector.load %arg11[%c0_153, %c0_154, %c0_155] : memref<2x8x32xf32, #tpu.memory_space<vmem>>, vector<1x8x32xf32>
    %309 = vector.shape_cast %308 : vector<1x8x32xf32> to vector<8x32xf32>
    %c0_156 = arith.constant 0 : index
    %c0_157 = arith.constant 0 : index
    %c0_158 = arith.constant 0 : index
    %310 = vector.load %arg12[%c0_156, %c0_157, %c0_158] : memref<2x8x32xf32, #tpu.memory_space<vmem>>, vector<1x8x32xf32>
    %311 = vector.shape_cast %310 : vector<1x8x32xf32> to vector<8x32xf32>
    %312 = arith.truncf %309 : vector<8x32xf32> to vector<8x32xbf16>
    %c0_159 = arith.constant 0 : index
    %c0_160 = arith.constant 0 : index
    %c0_161 = arith.constant 0 : index
    %313 = vector.load %arg4[%c0_159, %c0_160, %c0_161] : memref<2x32x128xbf16, #tpu.memory_space<vmem>>, vector<1x32x128xbf16>
    %314 = vector.shape_cast %313 : vector<1x32x128xbf16> to vector<32x128xbf16>
    %cst_162 = arith.constant dense<0.000000e+00> : vector<8x128xf32>
    %315 = tpu.matmul %312, %314, %cst_162 {dimension_numbers = #tpu.dot_dimension_numbers<[1], [0], [0], [1], [0, 0, 1, 1], [], []>} : vector<8x32xbf16>, vector<32x128xbf16>, vector<8x128xf32> -> vector<8x128xf32>
    %316 = arith.addf %307, %315 : vector<8x128xf32>
    %cst_163 = arith.constant 5.000000e-01 : f32
    %317 = vector.broadcast %cst_163 : f32 to vector<8x128xf32>
    %318 = arith.mulf %317, %316 : vector<8x128xf32>
    %319 = arith.select %9, %316, %318 : vector<8x128xi1>, vector<8x128xf32>
    %320 = math.tanh %319 : vector<8x128xf32>
    %cst_164 = arith.constant 5.000000e-01 : f32
    %321 = vector.broadcast %cst_164 : f32 to vector<8x128xf32>
    %322 = arith.mulf %321, %320 : vector<8x128xf32>
    %cst_165 = arith.constant 5.000000e-01 : f32
    %323 = vector.broadcast %cst_165 : f32 to vector<8x128xf32>
    %324 = arith.addf %322, %323 : vector<8x128xf32>
    %325 = arith.select %9, %320, %324 : vector<8x128xi1>, vector<8x128xf32>
    %326 = vector.extract_strided_slice %325 {offsets = [0, 0], sizes = [8, 32], strides = [1, 1]} : vector<8x128xf32> to vector<8x32xf32>
    %327 = vector.extract_strided_slice %325 {offsets = [0, 32], sizes = [8, 32], strides = [1, 1]} : vector<8x128xf32> to vector<8x32xf32>
    %328 = vector.extract_strided_slice %325 {offsets = [0, 64], sizes = [8, 32], strides = [1, 1]} : vector<8x128xf32> to vector<8x32xf32>
    %329 = vector.extract_strided_slice %325 {offsets = [0, 96], sizes = [8, 32], strides = [1, 1]} : vector<8x128xf32> to vector<8x32xf32>
    %330 = arith.mulf %327, %311 : vector<8x32xf32>
    %331 = arith.mulf %326, %328 : vector<8x32xf32>
    %332 = arith.addf %330, %331 : vector<8x32xf32>
    %333 = math.tanh %332 : vector<8x32xf32>
    %334 = arith.mulf %329, %333 : vector<8x32xf32>
    %335 = vector.shape_cast %304 : vector<8x1xi1> to vector<8x1xi1>
    %336 = vector.broadcast %335 : vector<8x1xi1> to vector<8x32xi1>
    %337 = arith.select %336, %334, %309 : vector<8x32xi1>, vector<8x32xf32>
    %338 = vector.shape_cast %304 : vector<8x1xi1> to vector<8x1xi1>
    %339 = vector.broadcast %338 : vector<8x1xi1> to vector<8x32xi1>
    %340 = arith.select %339, %332, %311 : vector<8x32xi1>, vector<8x32xf32>
    %c0_166 = arith.constant 0 : index
    %c0_167 = arith.constant 0 : index
    %c0_168 = arith.constant 0 : index
    %341 = vector.load %arg11[%c0_166, %c0_167, %c0_168] : memref<2x8x32xf32, #tpu.memory_space<vmem>>, vector<1x8x32xf32>
    %342 = vector.shape_cast %341 : vector<1x8x32xf32> to vector<8x32xf32>
    %343 = vector.shape_cast %337 : vector<8x32xf32> to vector<1x8x32xf32>
    tpu.vector_store %arg11[%c0_166, %c0_167, %c0_168], %343 {strides = array<i32>} : memref<2x8x32xf32, #tpu.memory_space<vmem>>, vector<1x8x32xf32>,
    %c0_169 = arith.constant 0 : index
    %c0_170 = arith.constant 0 : index
    %c0_171 = arith.constant 0 : index
    %344 = vector.load %arg12[%c0_169, %c0_170, %c0_171] : memref<2x8x32xf32, #tpu.memory_space<vmem>>, vector<1x8x32xf32>
    %345 = vector.shape_cast %344 : vector<1x8x32xf32> to vector<8x32xf32>
    %346 = vector.shape_cast %340 : vector<8x32xf32> to vector<1x8x32xf32>
    tpu.vector_store %arg12[%c0_169, %c0_170, %c0_171], %346 {strides = array<i32>} : memref<2x8x32xf32, #tpu.memory_space<vmem>>, vector<1x8x32xf32>,
    %c1_172 = arith.constant 1 : index
    %c0_173 = arith.constant 0 : index
    %c0_174 = arith.constant 0 : index
    %347 = vector.load %arg11[%c1_172, %c0_173, %c0_174] : memref<2x8x32xf32, #tpu.memory_space<vmem>>, vector<1x8x32xf32>
    %348 = vector.shape_cast %347 : vector<1x8x32xf32> to vector<8x32xf32>
    %c1_175 = arith.constant 1 : index
    %c0_176 = arith.constant 0 : index
    %c0_177 = arith.constant 0 : index
    %349 = vector.load %arg12[%c1_175, %c0_176, %c0_177] : memref<2x8x32xf32, #tpu.memory_space<vmem>>, vector<1x8x32xf32>
    %350 = vector.shape_cast %349 : vector<1x8x32xf32> to vector<8x32xf32>
    %351 = arith.truncf %348 : vector<8x32xf32> to vector<8x32xbf16>
    %c1_178 = arith.constant 1 : index
    %c0_179 = arith.constant 0 : index
    %c0_180 = arith.constant 0 : index
    %352 = vector.load %arg4[%c1_178, %c0_179, %c0_180] : memref<2x32x128xbf16, #tpu.memory_space<vmem>>, vector<1x32x128xbf16>
    %353 = vector.shape_cast %352 : vector<1x32x128xbf16> to vector<32x128xbf16>
    %cst_181 = arith.constant dense<0.000000e+00> : vector<8x128xf32>
    %354 = tpu.matmul %351, %353, %cst_181 {dimension_numbers = #tpu.dot_dimension_numbers<[1], [0], [0], [1], [0, 0, 1, 1], [], []>} : vector<8x32xbf16>, vector<32x128xbf16>, vector<8x128xf32> -> vector<8x128xf32>
    %c0_182 = arith.constant 0 : index
    %c0_183 = arith.constant 0 : index
    %c0_184 = arith.constant 0 : index
    %355 = vector.load %arg5[%c0_182, %c0_183, %c0_184] : memref<1x1x128xf32, #tpu.memory_space<vmem>>, vector<1x1x128xf32>
    %356 = vector.shape_cast %355 : vector<1x1x128xf32> to vector<1x128xf32>
    %357 = arith.truncf %337 : vector<8x32xf32> to vector<8x32xbf16>
    %c0_185 = arith.constant 0 : index
    %c0_186 = arith.constant 0 : index
    %c0_187 = arith.constant 0 : index
    %358 = vector.load %arg3[%c0_185, %c0_186, %c0_187] : memref<1x32x128xbf16, #tpu.memory_space<vmem>>, vector<1x32x128xbf16>
    %359 = vector.shape_cast %358 : vector<1x32x128xbf16> to vector<32x128xbf16>
    %cst_188 = arith.constant dense<0.000000e+00> : vector<8x128xf32>
    %360 = tpu.matmul %357, %359, %cst_188 {dimension_numbers = #tpu.dot_dimension_numbers<[1], [0], [0], [1], [0, 0, 1, 1], [], []>} : vector<8x32xbf16>, vector<32x128xbf16>, vector<8x128xf32> -> vector<8x128xf32>
    %361 = vector.broadcast %356 : vector<1x128xf32> to vector<8x128xf32>
    %362 = arith.addf %361, %360 : vector<8x128xf32>
    %363 = arith.addf %362, %354 : vector<8x128xf32>
    %cst_189 = arith.constant 5.000000e-01 : f32
    %364 = vector.broadcast %cst_189 : f32 to vector<8x128xf32>
    %365 = arith.mulf %364, %363 : vector<8x128xf32>
    %366 = arith.select %9, %363, %365 : vector<8x128xi1>, vector<8x128xf32>
    %367 = math.tanh %366 : vector<8x128xf32>
    %cst_190 = arith.constant 5.000000e-01 : f32
    %368 = vector.broadcast %cst_190 : f32 to vector<8x128xf32>
    %369 = arith.mulf %368, %367 : vector<8x128xf32>
    %cst_191 = arith.constant 5.000000e-01 : f32
    %370 = vector.broadcast %cst_191 : f32 to vector<8x128xf32>
    %371 = arith.addf %369, %370 : vector<8x128xf32>
    %372 = arith.select %9, %367, %371 : vector<8x128xi1>, vector<8x128xf32>
    %373 = vector.extract_strided_slice %372 {offsets = [0, 0], sizes = [8, 32], strides = [1, 1]} : vector<8x128xf32> to vector<8x32xf32>
    %374 = vector.extract_strided_slice %372 {offsets = [0, 32], sizes = [8, 32], strides = [1, 1]} : vector<8x128xf32> to vector<8x32xf32>
    %375 = vector.extract_strided_slice %372 {offsets = [0, 64], sizes = [8, 32], strides = [1, 1]} : vector<8x128xf32> to vector<8x32xf32>
    %376 = vector.extract_strided_slice %372 {offsets = [0, 96], sizes = [8, 32], strides = [1, 1]} : vector<8x128xf32> to vector<8x32xf32>
    %377 = arith.mulf %374, %350 : vector<8x32xf32>
    %378 = arith.mulf %373, %375 : vector<8x32xf32>
    %379 = arith.addf %377, %378 : vector<8x32xf32>
    %380 = math.tanh %379 : vector<8x32xf32>
    %381 = arith.mulf %376, %380 : vector<8x32xf32>
    %382 = vector.shape_cast %304 : vector<8x1xi1> to vector<8x1xi1>
    %383 = vector.broadcast %382 : vector<8x1xi1> to vector<8x32xi1>
    %384 = arith.select %383, %381, %348 : vector<8x32xi1>, vector<8x32xf32>
    %385 = vector.shape_cast %304 : vector<8x1xi1> to vector<8x1xi1>
    %386 = vector.broadcast %385 : vector<8x1xi1> to vector<8x32xi1>
    %387 = arith.select %386, %379, %350 : vector<8x32xi1>, vector<8x32xf32>
    %c1_192 = arith.constant 1 : index
    %c0_193 = arith.constant 0 : index
    %c0_194 = arith.constant 0 : index
    %388 = vector.load %arg11[%c1_192, %c0_193, %c0_194] : memref<2x8x32xf32, #tpu.memory_space<vmem>>, vector<1x8x32xf32>
    %389 = vector.shape_cast %388 : vector<1x8x32xf32> to vector<8x32xf32>
    %390 = vector.shape_cast %384 : vector<8x32xf32> to vector<1x8x32xf32>
    tpu.vector_store %arg11[%c1_192, %c0_193, %c0_194], %390 {strides = array<i32>} : memref<2x8x32xf32, #tpu.memory_space<vmem>>, vector<1x8x32xf32>,
    %c1_195 = arith.constant 1 : index
    %c0_196 = arith.constant 0 : index
    %c0_197 = arith.constant 0 : index
    %391 = vector.load %arg12[%c1_195, %c0_196, %c0_197] : memref<2x8x32xf32, #tpu.memory_space<vmem>>, vector<1x8x32xf32>
    %392 = vector.shape_cast %391 : vector<1x8x32xf32> to vector<8x32xf32>
    %393 = vector.shape_cast %387 : vector<8x32xf32> to vector<1x8x32xf32>
    tpu.vector_store %arg12[%c1_195, %c0_196, %c0_197], %393 {strides = array<i32>} : memref<2x8x32xf32, #tpu.memory_space<vmem>>, vector<1x8x32xf32>,
    %394 = arith.index_cast %c3_i32 : i32 to index
    %c0_198 = arith.constant 0 : index
    %c0_199 = arith.constant 0 : index
    %395 = vector.load %arg8[%394, %c0_198, %c0_199] : memref<8x8x32xf32, #tpu.memory_space<vmem>>, vector<1x8x32xf32>
    %396 = vector.shape_cast %395 : vector<1x8x32xf32> to vector<8x32xf32>
    %397 = vector.shape_cast %384 : vector<8x32xf32> to vector<1x8x32xf32>
    tpu.vector_store %arg8[%394, %c0_198, %c0_199], %397 {strides = array<i32>} : memref<8x8x32xf32, #tpu.memory_space<vmem>>, vector<1x8x32xf32>,
    %c4_i32 = arith.constant 4 : i32
    %c8_i32_200 = arith.constant 8 : i32
    %398 = arith.muli %arg0, %c8_i32_200 : i32
    %399 = arith.addi %398, %c4_i32 : i32
    %400 = vector.broadcast %399 : i32 to vector<8x1xi32>
    %401 = arith.cmpi slt, %400, %3 : vector<8x1xi32>
    %402 = arith.index_cast %c4_i32 : i32 to index
    %c0_201 = arith.constant 0 : index
    %c0_202 = arith.constant 0 : index
    %403 = vector.load %arg2[%402, %c0_201, %c0_202] : memref<8x8x128xf32, #tpu.memory_space<vmem>>, vector<1x8x128xf32>
    %404 = vector.shape_cast %403 : vector<1x8x128xf32> to vector<8x128xf32>
    %c0_203 = arith.constant 0 : index
    %c0_204 = arith.constant 0 : index
    %c0_205 = arith.constant 0 : index
    %405 = vector.load %arg11[%c0_203, %c0_204, %c0_205] : memref<2x8x32xf32, #tpu.memory_space<vmem>>, vector<1x8x32xf32>
    %406 = vector.shape_cast %405 : vector<1x8x32xf32> to vector<8x32xf32>
    %c0_206 = arith.constant 0 : index
    %c0_207 = arith.constant 0 : index
    %c0_208 = arith.constant 0 : index
    %407 = vector.load %arg12[%c0_206, %c0_207, %c0_208] : memref<2x8x32xf32, #tpu.memory_space<vmem>>, vector<1x8x32xf32>
    %408 = vector.shape_cast %407 : vector<1x8x32xf32> to vector<8x32xf32>
    %409 = arith.truncf %406 : vector<8x32xf32> to vector<8x32xbf16>
    %c0_209 = arith.constant 0 : index
    %c0_210 = arith.constant 0 : index
    %c0_211 = arith.constant 0 : index
    %410 = vector.load %arg4[%c0_209, %c0_210, %c0_211] : memref<2x32x128xbf16, #tpu.memory_space<vmem>>, vector<1x32x128xbf16>
    %411 = vector.shape_cast %410 : vector<1x32x128xbf16> to vector<32x128xbf16>
    %cst_212 = arith.constant dense<0.000000e+00> : vector<8x128xf32>
    %412 = tpu.matmul %409, %411, %cst_212 {dimension_numbers = #tpu.dot_dimension_numbers<[1], [0], [0], [1], [0, 0, 1, 1], [], []>} : vector<8x32xbf16>, vector<32x128xbf16>, vector<8x128xf32> -> vector<8x128xf32>
    %413 = arith.addf %404, %412 : vector<8x128xf32>
    %cst_213 = arith.constant 5.000000e-01 : f32
    %414 = vector.broadcast %cst_213 : f32 to vector<8x128xf32>
    %415 = arith.mulf %414, %413 : vector<8x128xf32>
    %416 = arith.select %9, %413, %415 : vector<8x128xi1>, vector<8x128xf32>
    %417 = math.tanh %416 : vector<8x128xf32>
    %cst_214 = arith.constant 5.000000e-01 : f32
    %418 = vector.broadcast %cst_214 : f32 to vector<8x128xf32>
    %419 = arith.mulf %418, %417 : vector<8x128xf32>
    %cst_215 = arith.constant 5.000000e-01 : f32
    %420 = vector.broadcast %cst_215 : f32 to vector<8x128xf32>
    %421 = arith.addf %419, %420 : vector<8x128xf32>
    %422 = arith.select %9, %417, %421 : vector<8x128xi1>, vector<8x128xf32>
    %423 = vector.extract_strided_slice %422 {offsets = [0, 0], sizes = [8, 32], strides = [1, 1]} : vector<8x128xf32> to vector<8x32xf32>
    %424 = vector.extract_strided_slice %422 {offsets = [0, 32], sizes = [8, 32], strides = [1, 1]} : vector<8x128xf32> to vector<8x32xf32>
    %425 = vector.extract_strided_slice %422 {offsets = [0, 64], sizes = [8, 32], strides = [1, 1]} : vector<8x128xf32> to vector<8x32xf32>
    %426 = vector.extract_strided_slice %422 {offsets = [0, 96], sizes = [8, 32], strides = [1, 1]} : vector<8x128xf32> to vector<8x32xf32>
    %427 = arith.mulf %424, %408 : vector<8x32xf32>
    %428 = arith.mulf %423, %425 : vector<8x32xf32>
    %429 = arith.addf %427, %428 : vector<8x32xf32>
    %430 = math.tanh %429 : vector<8x32xf32>
    %431 = arith.mulf %426, %430 : vector<8x32xf32>
    %432 = vector.shape_cast %401 : vector<8x1xi1> to vector<8x1xi1>
    %433 = vector.broadcast %432 : vector<8x1xi1> to vector<8x32xi1>
    %434 = arith.select %433, %431, %406 : vector<8x32xi1>, vector<8x32xf32>
    %435 = vector.shape_cast %401 : vector<8x1xi1> to vector<8x1xi1>
    %436 = vector.broadcast %435 : vector<8x1xi1> to vector<8x32xi1>
    %437 = arith.select %436, %429, %408 : vector<8x32xi1>, vector<8x32xf32>
    %c0_216 = arith.constant 0 : index
    %c0_217 = arith.constant 0 : index
    %c0_218 = arith.constant 0 : index
    %438 = vector.load %arg11[%c0_216, %c0_217, %c0_218] : memref<2x8x32xf32, #tpu.memory_space<vmem>>, vector<1x8x32xf32>
    %439 = vector.shape_cast %438 : vector<1x8x32xf32> to vector<8x32xf32>
    %440 = vector.shape_cast %434 : vector<8x32xf32> to vector<1x8x32xf32>
    tpu.vector_store %arg11[%c0_216, %c0_217, %c0_218], %440 {strides = array<i32>} : memref<2x8x32xf32, #tpu.memory_space<vmem>>, vector<1x8x32xf32>,
    %c0_219 = arith.constant 0 : index
    %c0_220 = arith.constant 0 : index
    %c0_221 = arith.constant 0 : index
    %441 = vector.load %arg12[%c0_219, %c0_220, %c0_221] : memref<2x8x32xf32, #tpu.memory_space<vmem>>, vector<1x8x32xf32>
    %442 = vector.shape_cast %441 : vector<1x8x32xf32> to vector<8x32xf32>
    %443 = vector.shape_cast %437 : vector<8x32xf32> to vector<1x8x32xf32>
    tpu.vector_store %arg12[%c0_219, %c0_220, %c0_221], %443 {strides = array<i32>} : memref<2x8x32xf32, #tpu.memory_space<vmem>>, vector<1x8x32xf32>,
    %c1_222 = arith.constant 1 : index
    %c0_223 = arith.constant 0 : index
    %c0_224 = arith.constant 0 : index
    %444 = vector.load %arg11[%c1_222, %c0_223, %c0_224] : memref<2x8x32xf32, #tpu.memory_space<vmem>>, vector<1x8x32xf32>
    %445 = vector.shape_cast %444 : vector<1x8x32xf32> to vector<8x32xf32>
    %c1_225 = arith.constant 1 : index
    %c0_226 = arith.constant 0 : index
    %c0_227 = arith.constant 0 : index
    %446 = vector.load %arg12[%c1_225, %c0_226, %c0_227] : memref<2x8x32xf32, #tpu.memory_space<vmem>>, vector<1x8x32xf32>
    %447 = vector.shape_cast %446 : vector<1x8x32xf32> to vector<8x32xf32>
    %448 = arith.truncf %445 : vector<8x32xf32> to vector<8x32xbf16>
    %c1_228 = arith.constant 1 : index
    %c0_229 = arith.constant 0 : index
    %c0_230 = arith.constant 0 : index
    %449 = vector.load %arg4[%c1_228, %c0_229, %c0_230] : memref<2x32x128xbf16, #tpu.memory_space<vmem>>, vector<1x32x128xbf16>
    %450 = vector.shape_cast %449 : vector<1x32x128xbf16> to vector<32x128xbf16>
    %cst_231 = arith.constant dense<0.000000e+00> : vector<8x128xf32>
    %451 = tpu.matmul %448, %450, %cst_231 {dimension_numbers = #tpu.dot_dimension_numbers<[1], [0], [0], [1], [0, 0, 1, 1], [], []>} : vector<8x32xbf16>, vector<32x128xbf16>, vector<8x128xf32> -> vector<8x128xf32>
    %c0_232 = arith.constant 0 : index
    %c0_233 = arith.constant 0 : index
    %c0_234 = arith.constant 0 : index
    %452 = vector.load %arg5[%c0_232, %c0_233, %c0_234] : memref<1x1x128xf32, #tpu.memory_space<vmem>>, vector<1x1x128xf32>
    %453 = vector.shape_cast %452 : vector<1x1x128xf32> to vector<1x128xf32>
    %454 = arith.truncf %434 : vector<8x32xf32> to vector<8x32xbf16>
    %c0_235 = arith.constant 0 : index
    %c0_236 = arith.constant 0 : index
    %c0_237 = arith.constant 0 : index
    %455 = vector.load %arg3[%c0_235, %c0_236, %c0_237] : memref<1x32x128xbf16, #tpu.memory_space<vmem>>, vector<1x32x128xbf16>
    %456 = vector.shape_cast %455 : vector<1x32x128xbf16> to vector<32x128xbf16>
    %cst_238 = arith.constant dense<0.000000e+00> : vector<8x128xf32>
    %457 = tpu.matmul %454, %456, %cst_238 {dimension_numbers = #tpu.dot_dimension_numbers<[1], [0], [0], [1], [0, 0, 1, 1], [], []>} : vector<8x32xbf16>, vector<32x128xbf16>, vector<8x128xf32> -> vector<8x128xf32>
    %458 = vector.broadcast %453 : vector<1x128xf32> to vector<8x128xf32>
    %459 = arith.addf %458, %457 : vector<8x128xf32>
    %460 = arith.addf %459, %451 : vector<8x128xf32>
    %cst_239 = arith.constant 5.000000e-01 : f32
    %461 = vector.broadcast %cst_239 : f32 to vector<8x128xf32>
    %462 = arith.mulf %461, %460 : vector<8x128xf32>
    %463 = arith.select %9, %460, %462 : vector<8x128xi1>, vector<8x128xf32>
    %464 = math.tanh %463 : vector<8x128xf32>
    %cst_240 = arith.constant 5.000000e-01 : f32
    %465 = vector.broadcast %cst_240 : f32 to vector<8x128xf32>
    %466 = arith.mulf %465, %464 : vector<8x128xf32>
    %cst_241 = arith.constant 5.000000e-01 : f32
    %467 = vector.broadcast %cst_241 : f32 to vector<8x128xf32>
    %468 = arith.addf %466, %467 : vector<8x128xf32>
    %469 = arith.select %9, %464, %468 : vector<8x128xi1>, vector<8x128xf32>
    %470 = vector.extract_strided_slice %469 {offsets = [0, 0], sizes = [8, 32], strides = [1, 1]} : vector<8x128xf32> to vector<8x32xf32>
    %471 = vector.extract_strided_slice %469 {offsets = [0, 32], sizes = [8, 32], strides = [1, 1]} : vector<8x128xf32> to vector<8x32xf32>
    %472 = vector.extract_strided_slice %469 {offsets = [0, 64], sizes = [8, 32], strides = [1, 1]} : vector<8x128xf32> to vector<8x32xf32>
    %473 = vector.extract_strided_slice %469 {offsets = [0, 96], sizes = [8, 32], strides = [1, 1]} : vector<8x128xf32> to vector<8x32xf32>
    %474 = arith.mulf %471, %447 : vector<8x32xf32>
    %475 = arith.mulf %470, %472 : vector<8x32xf32>
    %476 = arith.addf %474, %475 : vector<8x32xf32>
    %477 = math.tanh %476 : vector<8x32xf32>
    %478 = arith.mulf %473, %477 : vector<8x32xf32>
    %479 = vector.shape_cast %401 : vector<8x1xi1> to vector<8x1xi1>
    %480 = vector.broadcast %479 : vector<8x1xi1> to vector<8x32xi1>
    %481 = arith.select %480, %478, %445 : vector<8x32xi1>, vector<8x32xf32>
    %482 = vector.shape_cast %401 : vector<8x1xi1> to vector<8x1xi1>
    %483 = vector.broadcast %482 : vector<8x1xi1> to vector<8x32xi1>
    %484 = arith.select %483, %476, %447 : vector<8x32xi1>, vector<8x32xf32>
    %c1_242 = arith.constant 1 : index
    %c0_243 = arith.constant 0 : index
    %c0_244 = arith.constant 0 : index
    %485 = vector.load %arg11[%c1_242, %c0_243, %c0_244] : memref<2x8x32xf32, #tpu.memory_space<vmem>>, vector<1x8x32xf32>
    %486 = vector.shape_cast %485 : vector<1x8x32xf32> to vector<8x32xf32>
    %487 = vector.shape_cast %481 : vector<8x32xf32> to vector<1x8x32xf32>
    tpu.vector_store %arg11[%c1_242, %c0_243, %c0_244], %487 {strides = array<i32>} : memref<2x8x32xf32, #tpu.memory_space<vmem>>, vector<1x8x32xf32>,
    %c1_245 = arith.constant 1 : index
    %c0_246 = arith.constant 0 : index
    %c0_247 = arith.constant 0 : index
    %488 = vector.load %arg12[%c1_245, %c0_246, %c0_247] : memref<2x8x32xf32, #tpu.memory_space<vmem>>, vector<1x8x32xf32>
    %489 = vector.shape_cast %488 : vector<1x8x32xf32> to vector<8x32xf32>
    %490 = vector.shape_cast %484 : vector<8x32xf32> to vector<1x8x32xf32>
    tpu.vector_store %arg12[%c1_245, %c0_246, %c0_247], %490 {strides = array<i32>} : memref<2x8x32xf32, #tpu.memory_space<vmem>>, vector<1x8x32xf32>,
    %491 = arith.index_cast %c4_i32 : i32 to index
    %c0_248 = arith.constant 0 : index
    %c0_249 = arith.constant 0 : index
    %492 = vector.load %arg8[%491, %c0_248, %c0_249] : memref<8x8x32xf32, #tpu.memory_space<vmem>>, vector<1x8x32xf32>
    %493 = vector.shape_cast %492 : vector<1x8x32xf32> to vector<8x32xf32>
    %494 = vector.shape_cast %481 : vector<8x32xf32> to vector<1x8x32xf32>
    tpu.vector_store %arg8[%491, %c0_248, %c0_249], %494 {strides = array<i32>} : memref<8x8x32xf32, #tpu.memory_space<vmem>>, vector<1x8x32xf32>,
    %c5_i32 = arith.constant 5 : i32
    %c8_i32_250 = arith.constant 8 : i32
    %495 = arith.muli %arg0, %c8_i32_250 : i32
    %496 = arith.addi %495, %c5_i32 : i32
    %497 = vector.broadcast %496 : i32 to vector<8x1xi32>
    %498 = arith.cmpi slt, %497, %3 : vector<8x1xi32>
    %499 = arith.index_cast %c5_i32 : i32 to index
    %c0_251 = arith.constant 0 : index
    %c0_252 = arith.constant 0 : index
    %500 = vector.load %arg2[%499, %c0_251, %c0_252] : memref<8x8x128xf32, #tpu.memory_space<vmem>>, vector<1x8x128xf32>
    %501 = vector.shape_cast %500 : vector<1x8x128xf32> to vector<8x128xf32>
    %c0_253 = arith.constant 0 : index
    %c0_254 = arith.constant 0 : index
    %c0_255 = arith.constant 0 : index
    %502 = vector.load %arg11[%c0_253, %c0_254, %c0_255] : memref<2x8x32xf32, #tpu.memory_space<vmem>>, vector<1x8x32xf32>
    %503 = vector.shape_cast %502 : vector<1x8x32xf32> to vector<8x32xf32>
    %c0_256 = arith.constant 0 : index
    %c0_257 = arith.constant 0 : index
    %c0_258 = arith.constant 0 : index
    %504 = vector.load %arg12[%c0_256, %c0_257, %c0_258] : memref<2x8x32xf32, #tpu.memory_space<vmem>>, vector<1x8x32xf32>
    %505 = vector.shape_cast %504 : vector<1x8x32xf32> to vector<8x32xf32>
    %506 = arith.truncf %503 : vector<8x32xf32> to vector<8x32xbf16>
    %c0_259 = arith.constant 0 : index
    %c0_260 = arith.constant 0 : index
    %c0_261 = arith.constant 0 : index
    %507 = vector.load %arg4[%c0_259, %c0_260, %c0_261] : memref<2x32x128xbf16, #tpu.memory_space<vmem>>, vector<1x32x128xbf16>
    %508 = vector.shape_cast %507 : vector<1x32x128xbf16> to vector<32x128xbf16>
    %cst_262 = arith.constant dense<0.000000e+00> : vector<8x128xf32>
    %509 = tpu.matmul %506, %508, %cst_262 {dimension_numbers = #tpu.dot_dimension_numbers<[1], [0], [0], [1], [0, 0, 1, 1], [], []>} : vector<8x32xbf16>, vector<32x128xbf16>, vector<8x128xf32> -> vector<8x128xf32>
    %510 = arith.addf %501, %509 : vector<8x128xf32>
    %cst_263 = arith.constant 5.000000e-01 : f32
    %511 = vector.broadcast %cst_263 : f32 to vector<8x128xf32>
    %512 = arith.mulf %511, %510 : vector<8x128xf32>
    %513 = arith.select %9, %510, %512 : vector<8x128xi1>, vector<8x128xf32>
    %514 = math.tanh %513 : vector<8x128xf32>
    %cst_264 = arith.constant 5.000000e-01 : f32
    %515 = vector.broadcast %cst_264 : f32 to vector<8x128xf32>
    %516 = arith.mulf %515, %514 : vector<8x128xf32>
    %cst_265 = arith.constant 5.000000e-01 : f32
    %517 = vector.broadcast %cst_265 : f32 to vector<8x128xf32>
    %518 = arith.addf %516, %517 : vector<8x128xf32>
    %519 = arith.select %9, %514, %518 : vector<8x128xi1>, vector<8x128xf32>
    %520 = vector.extract_strided_slice %519 {offsets = [0, 0], sizes = [8, 32], strides = [1, 1]} : vector<8x128xf32> to vector<8x32xf32>
    %521 = vector.extract_strided_slice %519 {offsets = [0, 32], sizes = [8, 32], strides = [1, 1]} : vector<8x128xf32> to vector<8x32xf32>
    %522 = vector.extract_strided_slice %519 {offsets = [0, 64], sizes = [8, 32], strides = [1, 1]} : vector<8x128xf32> to vector<8x32xf32>
    %523 = vector.extract_strided_slice %519 {offsets = [0, 96], sizes = [8, 32], strides = [1, 1]} : vector<8x128xf32> to vector<8x32xf32>
    %524 = arith.mulf %521, %505 : vector<8x32xf32>
    %525 = arith.mulf %520, %522 : vector<8x32xf32>
    %526 = arith.addf %524, %525 : vector<8x32xf32>
    %527 = math.tanh %526 : vector<8x32xf32>
    %528 = arith.mulf %523, %527 : vector<8x32xf32>
    %529 = vector.shape_cast %498 : vector<8x1xi1> to vector<8x1xi1>
    %530 = vector.broadcast %529 : vector<8x1xi1> to vector<8x32xi1>
    %531 = arith.select %530, %528, %503 : vector<8x32xi1>, vector<8x32xf32>
    %532 = vector.shape_cast %498 : vector<8x1xi1> to vector<8x1xi1>
    %533 = vector.broadcast %532 : vector<8x1xi1> to vector<8x32xi1>
    %534 = arith.select %533, %526, %505 : vector<8x32xi1>, vector<8x32xf32>
    %c0_266 = arith.constant 0 : index
    %c0_267 = arith.constant 0 : index
    %c0_268 = arith.constant 0 : index
    %535 = vector.load %arg11[%c0_266, %c0_267, %c0_268] : memref<2x8x32xf32, #tpu.memory_space<vmem>>, vector<1x8x32xf32>
    %536 = vector.shape_cast %535 : vector<1x8x32xf32> to vector<8x32xf32>
    %537 = vector.shape_cast %531 : vector<8x32xf32> to vector<1x8x32xf32>
    tpu.vector_store %arg11[%c0_266, %c0_267, %c0_268], %537 {strides = array<i32>} : memref<2x8x32xf32, #tpu.memory_space<vmem>>, vector<1x8x32xf32>,
    %c0_269 = arith.constant 0 : index
    %c0_270 = arith.constant 0 : index
    %c0_271 = arith.constant 0 : index
    %538 = vector.load %arg12[%c0_269, %c0_270, %c0_271] : memref<2x8x32xf32, #tpu.memory_space<vmem>>, vector<1x8x32xf32>
    %539 = vector.shape_cast %538 : vector<1x8x32xf32> to vector<8x32xf32>
    %540 = vector.shape_cast %534 : vector<8x32xf32> to vector<1x8x32xf32>
    tpu.vector_store %arg12[%c0_269, %c0_270, %c0_271], %540 {strides = array<i32>} : memref<2x8x32xf32, #tpu.memory_space<vmem>>, vector<1x8x32xf32>,
    %c1_272 = arith.constant 1 : index
    %c0_273 = arith.constant 0 : index
    %c0_274 = arith.constant 0 : index
    %541 = vector.load %arg11[%c1_272, %c0_273, %c0_274] : memref<2x8x32xf32, #tpu.memory_space<vmem>>, vector<1x8x32xf32>
    %542 = vector.shape_cast %541 : vector<1x8x32xf32> to vector<8x32xf32>
    %c1_275 = arith.constant 1 : index
    %c0_276 = arith.constant 0 : index
    %c0_277 = arith.constant 0 : index
    %543 = vector.load %arg12[%c1_275, %c0_276, %c0_277] : memref<2x8x32xf32, #tpu.memory_space<vmem>>, vector<1x8x32xf32>
    %544 = vector.shape_cast %543 : vector<1x8x32xf32> to vector<8x32xf32>
    %545 = arith.truncf %542 : vector<8x32xf32> to vector<8x32xbf16>
    %c1_278 = arith.constant 1 : index
    %c0_279 = arith.constant 0 : index
    %c0_280 = arith.constant 0 : index
    %546 = vector.load %arg4[%c1_278, %c0_279, %c0_280] : memref<2x32x128xbf16, #tpu.memory_space<vmem>>, vector<1x32x128xbf16>
    %547 = vector.shape_cast %546 : vector<1x32x128xbf16> to vector<32x128xbf16>
    %cst_281 = arith.constant dense<0.000000e+00> : vector<8x128xf32>
    %548 = tpu.matmul %545, %547, %cst_281 {dimension_numbers = #tpu.dot_dimension_numbers<[1], [0], [0], [1], [0, 0, 1, 1], [], []>} : vector<8x32xbf16>, vector<32x128xbf16>, vector<8x128xf32> -> vector<8x128xf32>
    %c0_282 = arith.constant 0 : index
    %c0_283 = arith.constant 0 : index
    %c0_284 = arith.constant 0 : index
    %549 = vector.load %arg5[%c0_282, %c0_283, %c0_284] : memref<1x1x128xf32, #tpu.memory_space<vmem>>, vector<1x1x128xf32>
    %550 = vector.shape_cast %549 : vector<1x1x128xf32> to vector<1x128xf32>
    %551 = arith.truncf %531 : vector<8x32xf32> to vector<8x32xbf16>
    %c0_285 = arith.constant 0 : index
    %c0_286 = arith.constant 0 : index
    %c0_287 = arith.constant 0 : index
    %552 = vector.load %arg3[%c0_285, %c0_286, %c0_287] : memref<1x32x128xbf16, #tpu.memory_space<vmem>>, vector<1x32x128xbf16>
    %553 = vector.shape_cast %552 : vector<1x32x128xbf16> to vector<32x128xbf16>
    %cst_288 = arith.constant dense<0.000000e+00> : vector<8x128xf32>
    %554 = tpu.matmul %551, %553, %cst_288 {dimension_numbers = #tpu.dot_dimension_numbers<[1], [0], [0], [1], [0, 0, 1, 1], [], []>} : vector<8x32xbf16>, vector<32x128xbf16>, vector<8x128xf32> -> vector<8x128xf32>
    %555 = vector.broadcast %550 : vector<1x128xf32> to vector<8x128xf32>
    %556 = arith.addf %555, %554 : vector<8x128xf32>
    %557 = arith.addf %556, %548 : vector<8x128xf32>
    %cst_289 = arith.constant 5.000000e-01 : f32
    %558 = vector.broadcast %cst_289 : f32 to vector<8x128xf32>
    %559 = arith.mulf %558, %557 : vector<8x128xf32>
    %560 = arith.select %9, %557, %559 : vector<8x128xi1>, vector<8x128xf32>
    %561 = math.tanh %560 : vector<8x128xf32>
    %cst_290 = arith.constant 5.000000e-01 : f32
    %562 = vector.broadcast %cst_290 : f32 to vector<8x128xf32>
    %563 = arith.mulf %562, %561 : vector<8x128xf32>
    %cst_291 = arith.constant 5.000000e-01 : f32
    %564 = vector.broadcast %cst_291 : f32 to vector<8x128xf32>
    %565 = arith.addf %563, %564 : vector<8x128xf32>
    %566 = arith.select %9, %561, %565 : vector<8x128xi1>, vector<8x128xf32>
    %567 = vector.extract_strided_slice %566 {offsets = [0, 0], sizes = [8, 32], strides = [1, 1]} : vector<8x128xf32> to vector<8x32xf32>
    %568 = vector.extract_strided_slice %566 {offsets = [0, 32], sizes = [8, 32], strides = [1, 1]} : vector<8x128xf32> to vector<8x32xf32>
    %569 = vector.extract_strided_slice %566 {offsets = [0, 64], sizes = [8, 32], strides = [1, 1]} : vector<8x128xf32> to vector<8x32xf32>
    %570 = vector.extract_strided_slice %566 {offsets = [0, 96], sizes = [8, 32], strides = [1, 1]} : vector<8x128xf32> to vector<8x32xf32>
    %571 = arith.mulf %568, %544 : vector<8x32xf32>
    %572 = arith.mulf %567, %569 : vector<8x32xf32>
    %573 = arith.addf %571, %572 : vector<8x32xf32>
    %574 = math.tanh %573 : vector<8x32xf32>
    %575 = arith.mulf %570, %574 : vector<8x32xf32>
    %576 = vector.shape_cast %498 : vector<8x1xi1> to vector<8x1xi1>
    %577 = vector.broadcast %576 : vector<8x1xi1> to vector<8x32xi1>
    %578 = arith.select %577, %575, %542 : vector<8x32xi1>, vector<8x32xf32>
    %579 = vector.shape_cast %498 : vector<8x1xi1> to vector<8x1xi1>
    %580 = vector.broadcast %579 : vector<8x1xi1> to vector<8x32xi1>
    %581 = arith.select %580, %573, %544 : vector<8x32xi1>, vector<8x32xf32>
    %c1_292 = arith.constant 1 : index
    %c0_293 = arith.constant 0 : index
    %c0_294 = arith.constant 0 : index
    %582 = vector.load %arg11[%c1_292, %c0_293, %c0_294] : memref<2x8x32xf32, #tpu.memory_space<vmem>>, vector<1x8x32xf32>
    %583 = vector.shape_cast %582 : vector<1x8x32xf32> to vector<8x32xf32>
    %584 = vector.shape_cast %578 : vector<8x32xf32> to vector<1x8x32xf32>
    tpu.vector_store %arg11[%c1_292, %c0_293, %c0_294], %584 {strides = array<i32>} : memref<2x8x32xf32, #tpu.memory_space<vmem>>, vector<1x8x32xf32>,
    %c1_295 = arith.constant 1 : index
    %c0_296 = arith.constant 0 : index
    %c0_297 = arith.constant 0 : index
    %585 = vector.load %arg12[%c1_295, %c0_296, %c0_297] : memref<2x8x32xf32, #tpu.memory_space<vmem>>, vector<1x8x32xf32>
    %586 = vector.shape_cast %585 : vector<1x8x32xf32> to vector<8x32xf32>
    %587 = vector.shape_cast %581 : vector<8x32xf32> to vector<1x8x32xf32>
    tpu.vector_store %arg12[%c1_295, %c0_296, %c0_297], %587 {strides = array<i32>} : memref<2x8x32xf32, #tpu.memory_space<vmem>>, vector<1x8x32xf32>,
    %588 = arith.index_cast %c5_i32 : i32 to index
    %c0_298 = arith.constant 0 : index
    %c0_299 = arith.constant 0 : index
    %589 = vector.load %arg8[%588, %c0_298, %c0_299] : memref<8x8x32xf32, #tpu.memory_space<vmem>>, vector<1x8x32xf32>
    %590 = vector.shape_cast %589 : vector<1x8x32xf32> to vector<8x32xf32>
    %591 = vector.shape_cast %578 : vector<8x32xf32> to vector<1x8x32xf32>
    tpu.vector_store %arg8[%588, %c0_298, %c0_299], %591 {strides = array<i32>} : memref<8x8x32xf32, #tpu.memory_space<vmem>>, vector<1x8x32xf32>,
    %c6_i32 = arith.constant 6 : i32
    %c8_i32_300 = arith.constant 8 : i32
    %592 = arith.muli %arg0, %c8_i32_300 : i32
    %593 = arith.addi %592, %c6_i32 : i32
    %594 = vector.broadcast %593 : i32 to vector<8x1xi32>
    %595 = arith.cmpi slt, %594, %3 : vector<8x1xi32>
    %596 = arith.index_cast %c6_i32 : i32 to index
    %c0_301 = arith.constant 0 : index
    %c0_302 = arith.constant 0 : index
    %597 = vector.load %arg2[%596, %c0_301, %c0_302] : memref<8x8x128xf32, #tpu.memory_space<vmem>>, vector<1x8x128xf32>
    %598 = vector.shape_cast %597 : vector<1x8x128xf32> to vector<8x128xf32>
    %c0_303 = arith.constant 0 : index
    %c0_304 = arith.constant 0 : index
    %c0_305 = arith.constant 0 : index
    %599 = vector.load %arg11[%c0_303, %c0_304, %c0_305] : memref<2x8x32xf32, #tpu.memory_space<vmem>>, vector<1x8x32xf32>
    %600 = vector.shape_cast %599 : vector<1x8x32xf32> to vector<8x32xf32>
    %c0_306 = arith.constant 0 : index
    %c0_307 = arith.constant 0 : index
    %c0_308 = arith.constant 0 : index
    %601 = vector.load %arg12[%c0_306, %c0_307, %c0_308] : memref<2x8x32xf32, #tpu.memory_space<vmem>>, vector<1x8x32xf32>
    %602 = vector.shape_cast %601 : vector<1x8x32xf32> to vector<8x32xf32>
    %603 = arith.truncf %600 : vector<8x32xf32> to vector<8x32xbf16>
    %c0_309 = arith.constant 0 : index
    %c0_310 = arith.constant 0 : index
    %c0_311 = arith.constant 0 : index
    %604 = vector.load %arg4[%c0_309, %c0_310, %c0_311] : memref<2x32x128xbf16, #tpu.memory_space<vmem>>, vector<1x32x128xbf16>
    %605 = vector.shape_cast %604 : vector<1x32x128xbf16> to vector<32x128xbf16>
    %cst_312 = arith.constant dense<0.000000e+00> : vector<8x128xf32>
    %606 = tpu.matmul %603, %605, %cst_312 {dimension_numbers = #tpu.dot_dimension_numbers<[1], [0], [0], [1], [0, 0, 1, 1], [], []>} : vector<8x32xbf16>, vector<32x128xbf16>, vector<8x128xf32> -> vector<8x128xf32>
    %607 = arith.addf %598, %606 : vector<8x128xf32>
    %cst_313 = arith.constant 5.000000e-01 : f32
    %608 = vector.broadcast %cst_313 : f32 to vector<8x128xf32>
    %609 = arith.mulf %608, %607 : vector<8x128xf32>
    %610 = arith.select %9, %607, %609 : vector<8x128xi1>, vector<8x128xf32>
    %611 = math.tanh %610 : vector<8x128xf32>
    %cst_314 = arith.constant 5.000000e-01 : f32
    %612 = vector.broadcast %cst_314 : f32 to vector<8x128xf32>
    %613 = arith.mulf %612, %611 : vector<8x128xf32>
    %cst_315 = arith.constant 5.000000e-01 : f32
    %614 = vector.broadcast %cst_315 : f32 to vector<8x128xf32>
    %615 = arith.addf %613, %614 : vector<8x128xf32>
    %616 = arith.select %9, %611, %615 : vector<8x128xi1>, vector<8x128xf32>
    %617 = vector.extract_strided_slice %616 {offsets = [0, 0], sizes = [8, 32], strides = [1, 1]} : vector<8x128xf32> to vector<8x32xf32>
    %618 = vector.extract_strided_slice %616 {offsets = [0, 32], sizes = [8, 32], strides = [1, 1]} : vector<8x128xf32> to vector<8x32xf32>
    %619 = vector.extract_strided_slice %616 {offsets = [0, 64], sizes = [8, 32], strides = [1, 1]} : vector<8x128xf32> to vector<8x32xf32>
    %620 = vector.extract_strided_slice %616 {offsets = [0, 96], sizes = [8, 32], strides = [1, 1]} : vector<8x128xf32> to vector<8x32xf32>
    %621 = arith.mulf %618, %602 : vector<8x32xf32>
    %622 = arith.mulf %617, %619 : vector<8x32xf32>
    %623 = arith.addf %621, %622 : vector<8x32xf32>
    %624 = math.tanh %623 : vector<8x32xf32>
    %625 = arith.mulf %620, %624 : vector<8x32xf32>
    %626 = vector.shape_cast %595 : vector<8x1xi1> to vector<8x1xi1>
    %627 = vector.broadcast %626 : vector<8x1xi1> to vector<8x32xi1>
    %628 = arith.select %627, %625, %600 : vector<8x32xi1>, vector<8x32xf32>
    %629 = vector.shape_cast %595 : vector<8x1xi1> to vector<8x1xi1>
    %630 = vector.broadcast %629 : vector<8x1xi1> to vector<8x32xi1>
    %631 = arith.select %630, %623, %602 : vector<8x32xi1>, vector<8x32xf32>
    %c0_316 = arith.constant 0 : index
    %c0_317 = arith.constant 0 : index
    %c0_318 = arith.constant 0 : index
    %632 = vector.load %arg11[%c0_316, %c0_317, %c0_318] : memref<2x8x32xf32, #tpu.memory_space<vmem>>, vector<1x8x32xf32>
    %633 = vector.shape_cast %632 : vector<1x8x32xf32> to vector<8x32xf32>
    %634 = vector.shape_cast %628 : vector<8x32xf32> to vector<1x8x32xf32>
    tpu.vector_store %arg11[%c0_316, %c0_317, %c0_318], %634 {strides = array<i32>} : memref<2x8x32xf32, #tpu.memory_space<vmem>>, vector<1x8x32xf32>,
    %c0_319 = arith.constant 0 : index
    %c0_320 = arith.constant 0 : index
    %c0_321 = arith.constant 0 : index
    %635 = vector.load %arg12[%c0_319, %c0_320, %c0_321] : memref<2x8x32xf32, #tpu.memory_space<vmem>>, vector<1x8x32xf32>
    %636 = vector.shape_cast %635 : vector<1x8x32xf32> to vector<8x32xf32>
    %637 = vector.shape_cast %631 : vector<8x32xf32> to vector<1x8x32xf32>
    tpu.vector_store %arg12[%c0_319, %c0_320, %c0_321], %637 {strides = array<i32>} : memref<2x8x32xf32, #tpu.memory_space<vmem>>, vector<1x8x32xf32>,
    %c1_322 = arith.constant 1 : index
    %c0_323 = arith.constant 0 : index
    %c0_324 = arith.constant 0 : index
    %638 = vector.load %arg11[%c1_322, %c0_323, %c0_324] : memref<2x8x32xf32, #tpu.memory_space<vmem>>, vector<1x8x32xf32>
    %639 = vector.shape_cast %638 : vector<1x8x32xf32> to vector<8x32xf32>
    %c1_325 = arith.constant 1 : index
    %c0_326 = arith.constant 0 : index
    %c0_327 = arith.constant 0 : index
    %640 = vector.load %arg12[%c1_325, %c0_326, %c0_327] : memref<2x8x32xf32, #tpu.memory_space<vmem>>, vector<1x8x32xf32>
    %641 = vector.shape_cast %640 : vector<1x8x32xf32> to vector<8x32xf32>
    %642 = arith.truncf %639 : vector<8x32xf32> to vector<8x32xbf16>
    %c1_328 = arith.constant 1 : index
    %c0_329 = arith.constant 0 : index
    %c0_330 = arith.constant 0 : index
    %643 = vector.load %arg4[%c1_328, %c0_329, %c0_330] : memref<2x32x128xbf16, #tpu.memory_space<vmem>>, vector<1x32x128xbf16>
    %644 = vector.shape_cast %643 : vector<1x32x128xbf16> to vector<32x128xbf16>
    %cst_331 = arith.constant dense<0.000000e+00> : vector<8x128xf32>
    %645 = tpu.matmul %642, %644, %cst_331 {dimension_numbers = #tpu.dot_dimension_numbers<[1], [0], [0], [1], [0, 0, 1, 1], [], []>} : vector<8x32xbf16>, vector<32x128xbf16>, vector<8x128xf32> -> vector<8x128xf32>
    %c0_332 = arith.constant 0 : index
    %c0_333 = arith.constant 0 : index
    %c0_334 = arith.constant 0 : index
    %646 = vector.load %arg5[%c0_332, %c0_333, %c0_334] : memref<1x1x128xf32, #tpu.memory_space<vmem>>, vector<1x1x128xf32>
    %647 = vector.shape_cast %646 : vector<1x1x128xf32> to vector<1x128xf32>
    %648 = arith.truncf %628 : vector<8x32xf32> to vector<8x32xbf16>
    %c0_335 = arith.constant 0 : index
    %c0_336 = arith.constant 0 : index
    %c0_337 = arith.constant 0 : index
    %649 = vector.load %arg3[%c0_335, %c0_336, %c0_337] : memref<1x32x128xbf16, #tpu.memory_space<vmem>>, vector<1x32x128xbf16>
    %650 = vector.shape_cast %649 : vector<1x32x128xbf16> to vector<32x128xbf16>
    %cst_338 = arith.constant dense<0.000000e+00> : vector<8x128xf32>
    %651 = tpu.matmul %648, %650, %cst_338 {dimension_numbers = #tpu.dot_dimension_numbers<[1], [0], [0], [1], [0, 0, 1, 1], [], []>} : vector<8x32xbf16>, vector<32x128xbf16>, vector<8x128xf32> -> vector<8x128xf32>
    %652 = vector.broadcast %647 : vector<1x128xf32> to vector<8x128xf32>
    %653 = arith.addf %652, %651 : vector<8x128xf32>
    %654 = arith.addf %653, %645 : vector<8x128xf32>
    %cst_339 = arith.constant 5.000000e-01 : f32
    %655 = vector.broadcast %cst_339 : f32 to vector<8x128xf32>
    %656 = arith.mulf %655, %654 : vector<8x128xf32>
    %657 = arith.select %9, %654, %656 : vector<8x128xi1>, vector<8x128xf32>
    %658 = math.tanh %657 : vector<8x128xf32>
    %cst_340 = arith.constant 5.000000e-01 : f32
    %659 = vector.broadcast %cst_340 : f32 to vector<8x128xf32>
    %660 = arith.mulf %659, %658 : vector<8x128xf32>
    %cst_341 = arith.constant 5.000000e-01 : f32
    %661 = vector.broadcast %cst_341 : f32 to vector<8x128xf32>
    %662 = arith.addf %660, %661 : vector<8x128xf32>
    %663 = arith.select %9, %658, %662 : vector<8x128xi1>, vector<8x128xf32>
    %664 = vector.extract_strided_slice %663 {offsets = [0, 0], sizes = [8, 32], strides = [1, 1]} : vector<8x128xf32> to vector<8x32xf32>
    %665 = vector.extract_strided_slice %663 {offsets = [0, 32], sizes = [8, 32], strides = [1, 1]} : vector<8x128xf32> to vector<8x32xf32>
    %666 = vector.extract_strided_slice %663 {offsets = [0, 64], sizes = [8, 32], strides = [1, 1]} : vector<8x128xf32> to vector<8x32xf32>
    %667 = vector.extract_strided_slice %663 {offsets = [0, 96], sizes = [8, 32], strides = [1, 1]} : vector<8x128xf32> to vector<8x32xf32>
    %668 = arith.mulf %665, %641 : vector<8x32xf32>
    %669 = arith.mulf %664, %666 : vector<8x32xf32>
    %670 = arith.addf %668, %669 : vector<8x32xf32>
    %671 = math.tanh %670 : vector<8x32xf32>
    %672 = arith.mulf %667, %671 : vector<8x32xf32>
    %673 = vector.shape_cast %595 : vector<8x1xi1> to vector<8x1xi1>
    %674 = vector.broadcast %673 : vector<8x1xi1> to vector<8x32xi1>
    %675 = arith.select %674, %672, %639 : vector<8x32xi1>, vector<8x32xf32>
    %676 = vector.shape_cast %595 : vector<8x1xi1> to vector<8x1xi1>
    %677 = vector.broadcast %676 : vector<8x1xi1> to vector<8x32xi1>
    %678 = arith.select %677, %670, %641 : vector<8x32xi1>, vector<8x32xf32>
    %c1_342 = arith.constant 1 : index
    %c0_343 = arith.constant 0 : index
    %c0_344 = arith.constant 0 : index
    %679 = vector.load %arg11[%c1_342, %c0_343, %c0_344] : memref<2x8x32xf32, #tpu.memory_space<vmem>>, vector<1x8x32xf32>
    %680 = vector.shape_cast %679 : vector<1x8x32xf32> to vector<8x32xf32>
    %681 = vector.shape_cast %675 : vector<8x32xf32> to vector<1x8x32xf32>
    tpu.vector_store %arg11[%c1_342, %c0_343, %c0_344], %681 {strides = array<i32>} : memref<2x8x32xf32, #tpu.memory_space<vmem>>, vector<1x8x32xf32>,
    %c1_345 = arith.constant 1 : index
    %c0_346 = arith.constant 0 : index
    %c0_347 = arith.constant 0 : index
    %682 = vector.load %arg12[%c1_345, %c0_346, %c0_347] : memref<2x8x32xf32, #tpu.memory_space<vmem>>, vector<1x8x32xf32>
    %683 = vector.shape_cast %682 : vector<1x8x32xf32> to vector<8x32xf32>
    %684 = vector.shape_cast %678 : vector<8x32xf32> to vector<1x8x32xf32>
    tpu.vector_store %arg12[%c1_345, %c0_346, %c0_347], %684 {strides = array<i32>} : memref<2x8x32xf32, #tpu.memory_space<vmem>>, vector<1x8x32xf32>,
    %685 = arith.index_cast %c6_i32 : i32 to index
    %c0_348 = arith.constant 0 : index
    %c0_349 = arith.constant 0 : index
    %686 = vector.load %arg8[%685, %c0_348, %c0_349] : memref<8x8x32xf32, #tpu.memory_space<vmem>>, vector<1x8x32xf32>
    %687 = vector.shape_cast %686 : vector<1x8x32xf32> to vector<8x32xf32>
    %688 = vector.shape_cast %675 : vector<8x32xf32> to vector<1x8x32xf32>
    tpu.vector_store %arg8[%685, %c0_348, %c0_349], %688 {strides = array<i32>} : memref<8x8x32xf32, #tpu.memory_space<vmem>>, vector<1x8x32xf32>,
    %c7_i32 = arith.constant 7 : i32
    %c8_i32_350 = arith.constant 8 : i32
    %689 = arith.muli %arg0, %c8_i32_350 : i32
    %690 = arith.addi %689, %c7_i32 : i32
    %691 = vector.broadcast %690 : i32 to vector<8x1xi32>
    %692 = arith.cmpi slt, %691, %3 : vector<8x1xi32>
    %693 = arith.index_cast %c7_i32 : i32 to index
    %c0_351 = arith.constant 0 : index
    %c0_352 = arith.constant 0 : index
    %694 = vector.load %arg2[%693, %c0_351, %c0_352] : memref<8x8x128xf32, #tpu.memory_space<vmem>>, vector<1x8x128xf32>
    %695 = vector.shape_cast %694 : vector<1x8x128xf32> to vector<8x128xf32>
    %c0_353 = arith.constant 0 : index
    %c0_354 = arith.constant 0 : index
    %c0_355 = arith.constant 0 : index
    %696 = vector.load %arg11[%c0_353, %c0_354, %c0_355] : memref<2x8x32xf32, #tpu.memory_space<vmem>>, vector<1x8x32xf32>
    %697 = vector.shape_cast %696 : vector<1x8x32xf32> to vector<8x32xf32>
    %c0_356 = arith.constant 0 : index
    %c0_357 = arith.constant 0 : index
    %c0_358 = arith.constant 0 : index
    %698 = vector.load %arg12[%c0_356, %c0_357, %c0_358] : memref<2x8x32xf32, #tpu.memory_space<vmem>>, vector<1x8x32xf32>
    %699 = vector.shape_cast %698 : vector<1x8x32xf32> to vector<8x32xf32>
    %700 = arith.truncf %697 : vector<8x32xf32> to vector<8x32xbf16>
    %c0_359 = arith.constant 0 : index
    %c0_360 = arith.constant 0 : index
    %c0_361 = arith.constant 0 : index
    %701 = vector.load %arg4[%c0_359, %c0_360, %c0_361] : memref<2x32x128xbf16, #tpu.memory_space<vmem>>, vector<1x32x128xbf16>
    %702 = vector.shape_cast %701 : vector<1x32x128xbf16> to vector<32x128xbf16>
    %cst_362 = arith.constant dense<0.000000e+00> : vector<8x128xf32>
    %703 = tpu.matmul %700, %702, %cst_362 {dimension_numbers = #tpu.dot_dimension_numbers<[1], [0], [0], [1], [0, 0, 1, 1], [], []>} : vector<8x32xbf16>, vector<32x128xbf16>, vector<8x128xf32> -> vector<8x128xf32>
    %704 = arith.addf %695, %703 : vector<8x128xf32>
    %cst_363 = arith.constant 5.000000e-01 : f32
    %705 = vector.broadcast %cst_363 : f32 to vector<8x128xf32>
    %706 = arith.mulf %705, %704 : vector<8x128xf32>
    %707 = arith.select %9, %704, %706 : vector<8x128xi1>, vector<8x128xf32>
    %708 = math.tanh %707 : vector<8x128xf32>
    %cst_364 = arith.constant 5.000000e-01 : f32
    %709 = vector.broadcast %cst_364 : f32 to vector<8x128xf32>
    %710 = arith.mulf %709, %708 : vector<8x128xf32>
    %cst_365 = arith.constant 5.000000e-01 : f32
    %711 = vector.broadcast %cst_365 : f32 to vector<8x128xf32>
    %712 = arith.addf %710, %711 : vector<8x128xf32>
    %713 = arith.select %9, %708, %712 : vector<8x128xi1>, vector<8x128xf32>
    %714 = vector.extract_strided_slice %713 {offsets = [0, 0], sizes = [8, 32], strides = [1, 1]} : vector<8x128xf32> to vector<8x32xf32>
    %715 = vector.extract_strided_slice %713 {offsets = [0, 32], sizes = [8, 32], strides = [1, 1]} : vector<8x128xf32> to vector<8x32xf32>
    %716 = vector.extract_strided_slice %713 {offsets = [0, 64], sizes = [8, 32], strides = [1, 1]} : vector<8x128xf32> to vector<8x32xf32>
    %717 = vector.extract_strided_slice %713 {offsets = [0, 96], sizes = [8, 32], strides = [1, 1]} : vector<8x128xf32> to vector<8x32xf32>
    %718 = arith.mulf %715, %699 : vector<8x32xf32>
    %719 = arith.mulf %714, %716 : vector<8x32xf32>
    %720 = arith.addf %718, %719 : vector<8x32xf32>
    %721 = math.tanh %720 : vector<8x32xf32>
    %722 = arith.mulf %717, %721 : vector<8x32xf32>
    %723 = vector.shape_cast %692 : vector<8x1xi1> to vector<8x1xi1>
    %724 = vector.broadcast %723 : vector<8x1xi1> to vector<8x32xi1>
    %725 = arith.select %724, %722, %697 : vector<8x32xi1>, vector<8x32xf32>
    %726 = vector.shape_cast %692 : vector<8x1xi1> to vector<8x1xi1>
    %727 = vector.broadcast %726 : vector<8x1xi1> to vector<8x32xi1>
    %728 = arith.select %727, %720, %699 : vector<8x32xi1>, vector<8x32xf32>
    %c0_366 = arith.constant 0 : index
    %c0_367 = arith.constant 0 : index
    %c0_368 = arith.constant 0 : index
    %729 = vector.load %arg11[%c0_366, %c0_367, %c0_368] : memref<2x8x32xf32, #tpu.memory_space<vmem>>, vector<1x8x32xf32>
    %730 = vector.shape_cast %729 : vector<1x8x32xf32> to vector<8x32xf32>
    %731 = vector.shape_cast %725 : vector<8x32xf32> to vector<1x8x32xf32>
    tpu.vector_store %arg11[%c0_366, %c0_367, %c0_368], %731 {strides = array<i32>} : memref<2x8x32xf32, #tpu.memory_space<vmem>>, vector<1x8x32xf32>,
    %c0_369 = arith.constant 0 : index
    %c0_370 = arith.constant 0 : index
    %c0_371 = arith.constant 0 : index
    %732 = vector.load %arg12[%c0_369, %c0_370, %c0_371] : memref<2x8x32xf32, #tpu.memory_space<vmem>>, vector<1x8x32xf32>
    %733 = vector.shape_cast %732 : vector<1x8x32xf32> to vector<8x32xf32>
    %734 = vector.shape_cast %728 : vector<8x32xf32> to vector<1x8x32xf32>
    tpu.vector_store %arg12[%c0_369, %c0_370, %c0_371], %734 {strides = array<i32>} : memref<2x8x32xf32, #tpu.memory_space<vmem>>, vector<1x8x32xf32>,
    %c1_372 = arith.constant 1 : index
    %c0_373 = arith.constant 0 : index
    %c0_374 = arith.constant 0 : index
    %735 = vector.load %arg11[%c1_372, %c0_373, %c0_374] : memref<2x8x32xf32, #tpu.memory_space<vmem>>, vector<1x8x32xf32>
    %736 = vector.shape_cast %735 : vector<1x8x32xf32> to vector<8x32xf32>
    %c1_375 = arith.constant 1 : index
    %c0_376 = arith.constant 0 : index
    %c0_377 = arith.constant 0 : index
    %737 = vector.load %arg12[%c1_375, %c0_376, %c0_377] : memref<2x8x32xf32, #tpu.memory_space<vmem>>, vector<1x8x32xf32>
    %738 = vector.shape_cast %737 : vector<1x8x32xf32> to vector<8x32xf32>
    %739 = arith.truncf %736 : vector<8x32xf32> to vector<8x32xbf16>
    %c1_378 = arith.constant 1 : index
    %c0_379 = arith.constant 0 : index
    %c0_380 = arith.constant 0 : index
    %740 = vector.load %arg4[%c1_378, %c0_379, %c0_380] : memref<2x32x128xbf16, #tpu.memory_space<vmem>>, vector<1x32x128xbf16>
    %741 = vector.shape_cast %740 : vector<1x32x128xbf16> to vector<32x128xbf16>
    %cst_381 = arith.constant dense<0.000000e+00> : vector<8x128xf32>
    %742 = tpu.matmul %739, %741, %cst_381 {dimension_numbers = #tpu.dot_dimension_numbers<[1], [0], [0], [1], [0, 0, 1, 1], [], []>} : vector<8x32xbf16>, vector<32x128xbf16>, vector<8x128xf32> -> vector<8x128xf32>
    %c0_382 = arith.constant 0 : index
    %c0_383 = arith.constant 0 : index
    %c0_384 = arith.constant 0 : index
    %743 = vector.load %arg5[%c0_382, %c0_383, %c0_384] : memref<1x1x128xf32, #tpu.memory_space<vmem>>, vector<1x1x128xf32>
    %744 = vector.shape_cast %743 : vector<1x1x128xf32> to vector<1x128xf32>
    %745 = arith.truncf %725 : vector<8x32xf32> to vector<8x32xbf16>
    %c0_385 = arith.constant 0 : index
    %c0_386 = arith.constant 0 : index
    %c0_387 = arith.constant 0 : index
    %746 = vector.load %arg3[%c0_385, %c0_386, %c0_387] : memref<1x32x128xbf16, #tpu.memory_space<vmem>>, vector<1x32x128xbf16>
    %747 = vector.shape_cast %746 : vector<1x32x128xbf16> to vector<32x128xbf16>
    %cst_388 = arith.constant dense<0.000000e+00> : vector<8x128xf32>
    %748 = tpu.matmul %745, %747, %cst_388 {dimension_numbers = #tpu.dot_dimension_numbers<[1], [0], [0], [1], [0, 0, 1, 1], [], []>} : vector<8x32xbf16>, vector<32x128xbf16>, vector<8x128xf32> -> vector<8x128xf32>
    %749 = vector.broadcast %744 : vector<1x128xf32> to vector<8x128xf32>
    %750 = arith.addf %749, %748 : vector<8x128xf32>
    %751 = arith.addf %750, %742 : vector<8x128xf32>
    %cst_389 = arith.constant 5.000000e-01 : f32
    %752 = vector.broadcast %cst_389 : f32 to vector<8x128xf32>
    %753 = arith.mulf %752, %751 : vector<8x128xf32>
    %754 = arith.select %9, %751, %753 : vector<8x128xi1>, vector<8x128xf32>
    %755 = math.tanh %754 : vector<8x128xf32>
    %cst_390 = arith.constant 5.000000e-01 : f32
    %756 = vector.broadcast %cst_390 : f32 to vector<8x128xf32>
    %757 = arith.mulf %756, %755 : vector<8x128xf32>
    %cst_391 = arith.constant 5.000000e-01 : f32
    %758 = vector.broadcast %cst_391 : f32 to vector<8x128xf32>
    %759 = arith.addf %757, %758 : vector<8x128xf32>
    %760 = arith.select %9, %755, %759 : vector<8x128xi1>, vector<8x128xf32>
    %761 = vector.extract_strided_slice %760 {offsets = [0, 0], sizes = [8, 32], strides = [1, 1]} : vector<8x128xf32> to vector<8x32xf32>
    %762 = vector.extract_strided_slice %760 {offsets = [0, 32], sizes = [8, 32], strides = [1, 1]} : vector<8x128xf32> to vector<8x32xf32>
    %763 = vector.extract_strided_slice %760 {offsets = [0, 64], sizes = [8, 32], strides = [1, 1]} : vector<8x128xf32> to vector<8x32xf32>
    %764 = vector.extract_strided_slice %760 {offsets = [0, 96], sizes = [8, 32], strides = [1, 1]} : vector<8x128xf32> to vector<8x32xf32>
    %765 = arith.mulf %762, %738 : vector<8x32xf32>
    %766 = arith.mulf %761, %763 : vector<8x32xf32>
    %767 = arith.addf %765, %766 : vector<8x32xf32>
    %768 = math.tanh %767 : vector<8x32xf32>
    %769 = arith.mulf %764, %768 : vector<8x32xf32>
    %770 = vector.shape_cast %692 : vector<8x1xi1> to vector<8x1xi1>
    %771 = vector.broadcast %770 : vector<8x1xi1> to vector<8x32xi1>
    %772 = arith.select %771, %769, %736 : vector<8x32xi1>, vector<8x32xf32>
    %773 = vector.shape_cast %692 : vector<8x1xi1> to vector<8x1xi1>
    %774 = vector.broadcast %773 : vector<8x1xi1> to vector<8x32xi1>
    %775 = arith.select %774, %767, %738 : vector<8x32xi1>, vector<8x32xf32>
    %c1_392 = arith.constant 1 : index
    %c0_393 = arith.constant 0 : index
    %c0_394 = arith.constant 0 : index
    %776 = vector.load %arg11[%c1_392, %c0_393, %c0_394] : memref<2x8x32xf32, #tpu.memory_space<vmem>>, vector<1x8x32xf32>
    %777 = vector.shape_cast %776 : vector<1x8x32xf32> to vector<8x32xf32>
    %778 = vector.shape_cast %772 : vector<8x32xf32> to vector<1x8x32xf32>
    tpu.vector_store %arg11[%c1_392, %c0_393, %c0_394], %778 {strides = array<i32>} : memref<2x8x32xf32, #tpu.memory_space<vmem>>, vector<1x8x32xf32>,
    %c1_395 = arith.constant 1 : index
    %c0_396 = arith.constant 0 : index
    %c0_397 = arith.constant 0 : index
    %779 = vector.load %arg12[%c1_395, %c0_396, %c0_397] : memref<2x8x32xf32, #tpu.memory_space<vmem>>, vector<1x8x32xf32>
    %780 = vector.shape_cast %779 : vector<1x8x32xf32> to vector<8x32xf32>
    %781 = vector.shape_cast %775 : vector<8x32xf32> to vector<1x8x32xf32>
    tpu.vector_store %arg12[%c1_395, %c0_396, %c0_397], %781 {strides = array<i32>} : memref<2x8x32xf32, #tpu.memory_space<vmem>>, vector<1x8x32xf32>,
    %782 = arith.index_cast %c7_i32 : i32 to index
    %c0_398 = arith.constant 0 : index
    %c0_399 = arith.constant 0 : index
    %783 = vector.load %arg8[%782, %c0_398, %c0_399] : memref<8x8x32xf32, #tpu.memory_space<vmem>>, vector<1x8x32xf32>
    %784 = vector.shape_cast %783 : vector<1x8x32xf32> to vector<8x32xf32>
    %785 = vector.shape_cast %772 : vector<8x32xf32> to vector<1x8x32xf32>
    tpu.vector_store %arg8[%782, %c0_398, %c0_399], %785 {strides = array<i32>} : memref<8x8x32xf32, #tpu.memory_space<vmem>>, vector<1x8x32xf32>,
    %c8_i32_400 = arith.constant 8 : i32
    %c0_i32_401 = arith.constant 0 : i32
    %786 = arith.cmpi eq, %arg0, %c0_i32_401 : i32
    %787 = arith.extui %786 : i1 to i32
    %c0_i32_402 = arith.constant 0 : i32
    %788 = arith.cmpi ne, %787, %c0_i32_402 : i32
    scf.if %788 {
      %c0_403 = arith.constant 0 : index
      %c0_404 = arith.constant 0 : index
      %c0_405 = arith.constant 0 : index
      %789 = vector.load %arg11[%c0_403, %c0_404, %c0_405] : memref<2x8x32xf32, #tpu.memory_space<vmem>>, vector<2x8x32xf32>
      %c0_406 = arith.constant 0 : index
      %c0_407 = arith.constant 0 : index
      %c0_408 = arith.constant 0 : index
      %790 = vector.load %arg9[%c0_406, %c0_407, %c0_408] : memref<2x8x32xf32, #tpu.memory_space<vmem>>, vector<2x8x32xf32>
      tpu.vector_store %arg9[%c0_406, %c0_407, %c0_408], %789 {strides = array<i32>} : memref<2x8x32xf32, #tpu.memory_space<vmem>>, vector<2x8x32xf32>,
      %c0_409 = arith.constant 0 : index
      %c0_410 = arith.constant 0 : index
      %c0_411 = arith.constant 0 : index
      %791 = vector.load %arg12[%c0_409, %c0_410, %c0_411] : memref<2x8x32xf32, #tpu.memory_space<vmem>>, vector<2x8x32xf32>
      %c0_412 = arith.constant 0 : index
      %c0_413 = arith.constant 0 : index
      %c0_414 = arith.constant 0 : index
      %792 = vector.load %arg10[%c0_412, %c0_413, %c0_414] : memref<2x8x32xf32, #tpu.memory_space<vmem>>, vector<2x8x32xf32>
      tpu.vector_store %arg10[%c0_412, %c0_413, %c0_414], %791 {strides = array<i32>} : memref<2x8x32xf32, #tpu.memory_space<vmem>>, vector<2x8x32xf32>,
    } else {
    }
    return
  }
  func.func @transform_0(%arg0: i32) -> (i32, i32) {
    %c0_i32 = arith.constant 0 : i32
    %c0_i32_0 = arith.constant 0 : i32
    %c0_i32_1 = arith.constant 0 : i32
    return %c0_i32, %c0_i32_0 : i32, i32
  }
  func.func @transform_1(%arg0: i32) -> (i32, i32, i32) {
    %c0_i32 = arith.constant 0 : i32
    %c0_i32_0 = arith.constant 0 : i32
    %c0_i32_1 = arith.constant 0 : i32
    return %arg0, %c0_i32, %c0_i32_0 : i32, i32, i32
  }
  func.func @transform_2(%arg0: i32) -> (i32, i32, i32) {
    %c0_i32 = arith.constant 0 : i32
    %c0_i32_0 = arith.constant 0 : i32
    %c0_i32_1 = arith.constant 0 : i32
    %c0_i32_2 = arith.constant 0 : i32
    return %c0_i32, %c0_i32_0, %c0_i32_1 : i32, i32, i32
  }
  func.func @transform_3(%arg0: i32) -> (i32, i32, i32) {
    %c0_i32 = arith.constant 0 : i32
    %c0_i32_0 = arith.constant 0 : i32
    %c0_i32_1 = arith.constant 0 : i32
    %c0_i32_2 = arith.constant 0 : i32
    return %c0_i32, %c0_i32_0, %c0_i32_1 : i32, i32, i32
  }
  func.func @transform_4(%arg0: i32) -> (i32, i32, i32) {
    %c0_i32 = arith.constant 0 : i32
    %c0_i32_0 = arith.constant 0 : i32
    %c0_i32_1 = arith.constant 0 : i32
    %c0_i32_2 = arith.constant 0 : i32
    return %c0_i32, %c0_i32_0, %c0_i32_1 : i32, i32, i32
  }
  func.func @transform_5(%arg0: i32) -> (i32, i32, i32) {
    %c0_i32 = arith.constant 0 : i32
    %c0_i32_0 = arith.constant 0 : i32
    %c0_i32_1 = arith.constant 0 : i32
    %c0_i32_2 = arith.constant 0 : i32
    return %c0_i32, %c0_i32_0, %c0_i32_1 : i32, i32, i32
  }
  func.func @transform_6(%arg0: i32) -> (i32, i32, i32) {
    %c0_i32 = arith.constant 0 : i32
    %c0_i32_0 = arith.constant 0 : i32
    %c0_i32_1 = arith.constant 0 : i32
    %c0_i32_2 = arith.constant 0 : i32
    return %c0_i32, %c0_i32_0, %c0_i32_1 : i32, i32, i32
  }
  func.func @transform_7(%arg0: i32) -> (i32, i32, i32) {
    %c0_i32 = arith.constant 0 : i32
    %c0_i32_0 = arith.constant 0 : i32
    %c0_i32_1 = arith.constant 0 : i32
    return %arg0, %c0_i32, %c0_i32_0 : i32, i32, i32
  }
  func.func @transform_8(%arg0: i32) -> (i32, i32, i32) {
    %c0_i32 = arith.constant 0 : i32
    %c0_i32_0 = arith.constant 0 : i32
    %c0_i32_1 = arith.constant 0 : i32
    %c0_i32_2 = arith.constant 0 : i32
    return %c0_i32, %c0_i32_0, %c0_i32_1 : i32, i32, i32
  }
  func.func @transform_9(%arg0: i32) -> (i32, i32, i32) {
    %c0_i32 = arith.constant 0 : i32
    %c0_i32_0 = arith.constant 0 : i32
    %c0_i32_1 = arith.constant 0 : i32
    %c0_i32_2 = arith.constant 0 : i32
    return %c0_i32, %c0_i32_0, %c0_i32_1 : i32, i32, i32
  }
}

module attributes {stable_mosaic.version = 11 : i64} {
  func.func @_matmul_bias_kernel(%arg0: i32, %arg1: i32, %arg2: memref<48x16xf32, #tpu.memory_space<vmem>>, %arg3: memref<16x128xbf16, #tpu.memory_space<vmem>>, %arg4: memref<1x128xf32, #tpu.memory_space<vmem>>, %arg5: memref<48x128xf32, #tpu.memory_space<vmem>>) attributes {dimension_semantics = [#tpu.dimension_semantics<parallel>, #tpu.dimension_semantics<parallel>], iteration_bounds = array<i64: 1, 1>, scalar_prefetch = 0 : i64, scratch_operands = 0 : i64, tpu.core_type = #tpu.core_type<tc>, window_params = [{transform_indices = @transform_0, window_bounds = array<i64: 48, 16>}, {transform_indices = @transform_1, window_bounds = array<i64: 16, 128>}, {transform_indices = @transform_2, window_bounds = array<i64: 1, 128>}, {transform_indices = @transform_3, window_bounds = array<i64: 48, 128>}]} {
    %c0 = arith.constant 0 : index
    %c0_0 = arith.constant 0 : index
    %0 = vector.load %arg2[%c0, %c0_0] : memref<48x16xf32, #tpu.memory_space<vmem>>, vector<48x16xf32>
    %1 = arith.truncf %0 : vector<48x16xf32> to vector<48x16xbf16>
    %c0_1 = arith.constant 0 : index
    %c0_2 = arith.constant 0 : index
    %2 = vector.load %arg3[%c0_1, %c0_2] : memref<16x128xbf16, #tpu.memory_space<vmem>>, vector<16x128xbf16>
    %cst = arith.constant dense<0.000000e+00> : vector<48x128xf32>
    %3 = tpu.matmul %1, %2, %cst {dimension_numbers = #tpu.dot_dimension_numbers<[1], [0], [0], [1], [0, 0, 1, 1], [], []>} : vector<48x16xbf16>, vector<16x128xbf16>, vector<48x128xf32> -> vector<48x128xf32>
    %c0_3 = arith.constant 0 : index
    %c0_4 = arith.constant 0 : index
    %4 = vector.load %arg4[%c0_3, %c0_4] : memref<1x128xf32, #tpu.memory_space<vmem>>, vector<1x128xf32>
    %5 = vector.broadcast %4 : vector<1x128xf32> to vector<48x128xf32>
    %6 = arith.addf %3, %5 : vector<48x128xf32>
    %c0_5 = arith.constant 0 : index
    %c0_6 = arith.constant 0 : index
    %7 = vector.load %arg5[%c0_5, %c0_6] : memref<48x128xf32, #tpu.memory_space<vmem>>, vector<48x128xf32>
    tpu.vector_store %arg5[%c0_5, %c0_6], %6 {strides = array<i32>} : memref<48x128xf32, #tpu.memory_space<vmem>>, vector<48x128xf32>,
    return
  }
  func.func @transform_0(%arg0: i32, %arg1: i32) -> (i32, i32) {
    %c0_i32 = arith.constant 0 : i32
    %c0_i32_0 = arith.constant 0 : i32
    return %arg0, %c0_i32 : i32, i32
  }
  func.func @transform_1(%arg0: i32, %arg1: i32) -> (i32, i32) {
    %c0_i32 = arith.constant 0 : i32
    %c0_i32_0 = arith.constant 0 : i32
    return %c0_i32, %arg1 : i32, i32
  }
  func.func @transform_2(%arg0: i32, %arg1: i32) -> (i32, i32) {
    %c0_i32 = arith.constant 0 : i32
    %c0_i32_0 = arith.constant 0 : i32
    return %c0_i32, %arg1 : i32, i32
  }
  func.func @transform_3(%arg0: i32, %arg1: i32) -> (i32, i32) {
    %c0_i32 = arith.constant 0 : i32
    return %arg0, %arg1 : i32, i32
  }
}

module attributes {stable_mosaic.version = 11 : i64} {
  func.func @_matmul_bias_kernel(%arg0: i32, %arg1: i32, %arg2: memref<48x32xf32, #tpu.memory_space<vmem>>, %arg3: memref<32x128xbf16, #tpu.memory_space<vmem>>, %arg4: memref<1x128xf32, #tpu.memory_space<vmem>>, %arg5: memref<48x128xf32, #tpu.memory_space<vmem>>) attributes {dimension_semantics = [#tpu.dimension_semantics<parallel>, #tpu.dimension_semantics<parallel>], iteration_bounds = array<i64: 1, 1>, scalar_prefetch = 0 : i64, scratch_operands = 0 : i64, tpu.core_type = #tpu.core_type<tc>, window_params = [{transform_indices = @transform_0, window_bounds = array<i64: 48, 32>}, {transform_indices = @transform_1, window_bounds = array<i64: 32, 128>}, {transform_indices = @transform_2, window_bounds = array<i64: 1, 128>}, {transform_indices = @transform_3, window_bounds = array<i64: 48, 128>}]} {
    %c0 = arith.constant 0 : index
    %c0_0 = arith.constant 0 : index
    %0 = vector.load %arg2[%c0, %c0_0] : memref<48x32xf32, #tpu.memory_space<vmem>>, vector<48x32xf32>
    %1 = arith.truncf %0 : vector<48x32xf32> to vector<48x32xbf16>
    %c0_1 = arith.constant 0 : index
    %c0_2 = arith.constant 0 : index
    %2 = vector.load %arg3[%c0_1, %c0_2] : memref<32x128xbf16, #tpu.memory_space<vmem>>, vector<32x128xbf16>
    %cst = arith.constant dense<0.000000e+00> : vector<48x128xf32>
    %3 = tpu.matmul %1, %2, %cst {dimension_numbers = #tpu.dot_dimension_numbers<[1], [0], [0], [1], [0, 0, 1, 1], [], []>} : vector<48x32xbf16>, vector<32x128xbf16>, vector<48x128xf32> -> vector<48x128xf32>
    %c0_3 = arith.constant 0 : index
    %c0_4 = arith.constant 0 : index
    %4 = vector.load %arg4[%c0_3, %c0_4] : memref<1x128xf32, #tpu.memory_space<vmem>>, vector<1x128xf32>
    %5 = vector.broadcast %4 : vector<1x128xf32> to vector<48x128xf32>
    %6 = arith.addf %3, %5 : vector<48x128xf32>
    %c0_5 = arith.constant 0 : index
    %c0_6 = arith.constant 0 : index
    %7 = vector.load %arg5[%c0_5, %c0_6] : memref<48x128xf32, #tpu.memory_space<vmem>>, vector<48x128xf32>
    tpu.vector_store %arg5[%c0_5, %c0_6], %6 {strides = array<i32>} : memref<48x128xf32, #tpu.memory_space<vmem>>, vector<48x128xf32>,
    return
  }
  func.func @transform_0(%arg0: i32, %arg1: i32) -> (i32, i32) {
    %c0_i32 = arith.constant 0 : i32
    %c0_i32_0 = arith.constant 0 : i32
    return %arg0, %c0_i32 : i32, i32
  }
  func.func @transform_1(%arg0: i32, %arg1: i32) -> (i32, i32) {
    %c0_i32 = arith.constant 0 : i32
    %c0_i32_0 = arith.constant 0 : i32
    return %c0_i32, %arg1 : i32, i32
  }
  func.func @transform_2(%arg0: i32, %arg1: i32) -> (i32, i32) {
    %c0_i32 = arith.constant 0 : i32
    %c0_i32_0 = arith.constant 0 : i32
    return %c0_i32, %arg1 : i32, i32
  }
  func.func @transform_3(%arg0: i32, %arg1: i32) -> (i32, i32) {
    %c0_i32 = arith.constant 0 : i32
    return %arg0, %arg1 : i32, i32
  }
}

module attributes {stable_mosaic.version = 11 : i64} {
  func.func @_lstm_stack_kernel(%arg0: i32, %arg1: memref<8x1xi32, #tpu.memory_space<vmem>>, %arg2: memref<6x8x128xf32, #tpu.memory_space<vmem>>, %arg3: memref<1x32x128xbf16, #tpu.memory_space<vmem>>, %arg4: memref<2x32x128xbf16, #tpu.memory_space<vmem>>, %arg5: memref<1x1x128xf32, #tpu.memory_space<vmem>>, %arg6: memref<2x8x32xf32, #tpu.memory_space<vmem>>, %arg7: memref<2x8x32xf32, #tpu.memory_space<vmem>>, %arg8: memref<6x8x32xf32, #tpu.memory_space<vmem>>, %arg9: memref<2x8x32xf32, #tpu.memory_space<vmem>>, %arg10: memref<2x8x32xf32, #tpu.memory_space<vmem>>, %arg11: memref<2x8x32xf32, #tpu.memory_space<vmem>>, %arg12: memref<2x8x32xf32, #tpu.memory_space<vmem>>) attributes {dimension_semantics = [#tpu.dimension_semantics<arbitrary>], iteration_bounds = array<i64: 1>, scalar_prefetch = 0 : i64, scratch_operands = 2 : i64, tpu.core_type = #tpu.core_type<tc>, window_params = [{pipeline_mode = #tpu.pipeline_mode<synchronous>, transform_indices = @transform_0, window_bounds = array<i64: 8, 1>}, {transform_indices = @transform_1, window_bounds = array<i64: 6, 8, 128>}, {pipeline_mode = #tpu.pipeline_mode<synchronous>, transform_indices = @transform_2, window_bounds = array<i64: 1, 32, 128>}, {pipeline_mode = #tpu.pipeline_mode<synchronous>, transform_indices = @transform_3, window_bounds = array<i64: 2, 32, 128>}, {pipeline_mode = #tpu.pipeline_mode<synchronous>, transform_indices = @transform_4, window_bounds = array<i64: 1, 1, 128>}, {pipeline_mode = #tpu.pipeline_mode<synchronous>, transform_indices = @transform_5, window_bounds = array<i64: 2, 8, 32>}, {pipeline_mode = #tpu.pipeline_mode<synchronous>, transform_indices = @transform_6, window_bounds = array<i64: 2, 8, 32>}, {transform_indices = @transform_7, window_bounds = array<i64: 6, 8, 32>}, {pipeline_mode = #tpu.pipeline_mode<synchronous>, transform_indices = @transform_8, window_bounds = array<i64: 2, 8, 32>}, {pipeline_mode = #tpu.pipeline_mode<synchronous>, transform_indices = @transform_9, window_bounds = array<i64: 2, 8, 32>}]} {
    %c0_i32 = arith.constant 0 : i32
    %0 = arith.cmpi eq, %arg0, %c0_i32 : i32
    %1 = arith.extui %0 : i1 to i32
    %c0_i32_0 = arith.constant 0 : i32
    %2 = arith.cmpi ne, %1, %c0_i32_0 : i32
    scf.if %2 {
      %c0_303 = arith.constant 0 : index
      %c0_304 = arith.constant 0 : index
      %c0_305 = arith.constant 0 : index
      %595 = vector.load %arg6[%c0_303, %c0_304, %c0_305] : memref<2x8x32xf32, #tpu.memory_space<vmem>>, vector<2x8x32xf32>
      %c0_306 = arith.constant 0 : index
      %c0_307 = arith.constant 0 : index
      %c0_308 = arith.constant 0 : index
      %596 = vector.load %arg11[%c0_306, %c0_307, %c0_308] : memref<2x8x32xf32, #tpu.memory_space<vmem>>, vector<2x8x32xf32>
      tpu.vector_store %arg11[%c0_306, %c0_307, %c0_308], %595 {strides = array<i32>} : memref<2x8x32xf32, #tpu.memory_space<vmem>>, vector<2x8x32xf32>,
      %c0_309 = arith.constant 0 : index
      %c0_310 = arith.constant 0 : index
      %c0_311 = arith.constant 0 : index
      %597 = vector.load %arg7[%c0_309, %c0_310, %c0_311] : memref<2x8x32xf32, #tpu.memory_space<vmem>>, vector<2x8x32xf32>
      %c0_312 = arith.constant 0 : index
      %c0_313 = arith.constant 0 : index
      %c0_314 = arith.constant 0 : index
      %598 = vector.load %arg12[%c0_312, %c0_313, %c0_314] : memref<2x8x32xf32, #tpu.memory_space<vmem>>, vector<2x8x32xf32>
      tpu.vector_store %arg12[%c0_312, %c0_313, %c0_314], %597 {strides = array<i32>} : memref<2x8x32xf32, #tpu.memory_space<vmem>>, vector<2x8x32xf32>,
    } else {
    }
    %c0 = arith.constant 0 : index
    %c0_1 = arith.constant 0 : index
    %3 = vector.load %arg1[%c0, %c0_1] : memref<8x1xi32, #tpu.memory_space<vmem>>, vector<8x1xi32>
    %4 = tpu.iota {dimensions = array<i32: 1>} : vector<8x128xi32>
    %c64_i32 = arith.constant 64 : i32
    %5 = vector.broadcast %c64_i32 : i32 to vector<8x128xi32>
    %6 = arith.cmpi sge, %4, %5 : vector<8x128xi32>
    %c96_i32 = arith.constant 96 : i32
    %7 = vector.broadcast %c96_i32 : i32 to vector<8x128xi32>
    %8 = arith.cmpi slt, %4, %7 : vector<8x128xi32>
    %9 = arith.andi %6, %8 : vector<8x128xi1>
    %c0_i32_2 = arith.constant 0 : i32
    %c6_i32 = arith.constant 6 : i32
    %10 = arith.muli %arg0, %c6_i32 : i32
    %11 = arith.addi %10, %c0_i32_2 : i32
    %12 = vector.broadcast %11 : i32 to vector<8x1xi32>
    %13 = arith.cmpi slt, %12, %3 : vector<8x1xi32>
    %14 = arith.index_cast %c0_i32_2 : i32 to index
    %c0_3 = arith.constant 0 : index
    %c0_4 = arith.constant 0 : index
    %15 = vector.load %arg2[%14, %c0_3, %c0_4] : memref<6x8x128xf32, #tpu.memory_space<vmem>>, vector<1x8x128xf32>
    %16 = vector.shape_cast %15 : vector<1x8x128xf32> to vector<8x128xf32>
    %c0_5 = arith.constant 0 : index
    %c0_6 = arith.constant 0 : index
    %c0_7 = arith.constant 0 : index
    %17 = vector.load %arg11[%c0_5, %c0_6, %c0_7] : memref<2x8x32xf32, #tpu.memory_space<vmem>>, vector<1x8x32xf32>
    %18 = vector.shape_cast %17 : vector<1x8x32xf32> to vector<8x32xf32>
    %c0_8 = arith.constant 0 : index
    %c0_9 = arith.constant 0 : index
    %c0_10 = arith.constant 0 : index
    %19 = vector.load %arg12[%c0_8, %c0_9, %c0_10] : memref<2x8x32xf32, #tpu.memory_space<vmem>>, vector<1x8x32xf32>
    %20 = vector.shape_cast %19 : vector<1x8x32xf32> to vector<8x32xf32>
    %21 = arith.truncf %18 : vector<8x32xf32> to vector<8x32xbf16>
    %c0_11 = arith.constant 0 : index
    %c0_12 = arith.constant 0 : index
    %c0_13 = arith.constant 0 : index
    %22 = vector.load %arg4[%c0_11, %c0_12, %c0_13] : memref<2x32x128xbf16, #tpu.memory_space<vmem>>, vector<1x32x128xbf16>
    %23 = vector.shape_cast %22 : vector<1x32x128xbf16> to vector<32x128xbf16>
    %cst = arith.constant dense<0.000000e+00> : vector<8x128xf32>
    %24 = tpu.matmul %21, %23, %cst {dimension_numbers = #tpu.dot_dimension_numbers<[1], [0], [0], [1], [0, 0, 1, 1], [], []>} : vector<8x32xbf16>, vector<32x128xbf16>, vector<8x128xf32> -> vector<8x128xf32>
    %25 = arith.addf %16, %24 : vector<8x128xf32>
    %cst_14 = arith.constant 5.000000e-01 : f32
    %26 = vector.broadcast %cst_14 : f32 to vector<8x128xf32>
    %27 = arith.mulf %26, %25 : vector<8x128xf32>
    %28 = arith.select %9, %25, %27 : vector<8x128xi1>, vector<8x128xf32>
    %29 = math.tanh %28 : vector<8x128xf32>
    %cst_15 = arith.constant 5.000000e-01 : f32
    %30 = vector.broadcast %cst_15 : f32 to vector<8x128xf32>
    %31 = arith.mulf %30, %29 : vector<8x128xf32>
    %cst_16 = arith.constant 5.000000e-01 : f32
    %32 = vector.broadcast %cst_16 : f32 to vector<8x128xf32>
    %33 = arith.addf %31, %32 : vector<8x128xf32>
    %34 = arith.select %9, %29, %33 : vector<8x128xi1>, vector<8x128xf32>
    %35 = vector.extract_strided_slice %34 {offsets = [0, 0], sizes = [8, 32], strides = [1, 1]} : vector<8x128xf32> to vector<8x32xf32>
    %36 = vector.extract_strided_slice %34 {offsets = [0, 32], sizes = [8, 32], strides = [1, 1]} : vector<8x128xf32> to vector<8x32xf32>
    %37 = vector.extract_strided_slice %34 {offsets = [0, 64], sizes = [8, 32], strides = [1, 1]} : vector<8x128xf32> to vector<8x32xf32>
    %38 = vector.extract_strided_slice %34 {offsets = [0, 96], sizes = [8, 32], strides = [1, 1]} : vector<8x128xf32> to vector<8x32xf32>
    %39 = arith.mulf %36, %20 : vector<8x32xf32>
    %40 = arith.mulf %35, %37 : vector<8x32xf32>
    %41 = arith.addf %39, %40 : vector<8x32xf32>
    %42 = math.tanh %41 : vector<8x32xf32>
    %43 = arith.mulf %38, %42 : vector<8x32xf32>
    %44 = vector.shape_cast %13 : vector<8x1xi1> to vector<8x1xi1>
    %45 = vector.broadcast %44 : vector<8x1xi1> to vector<8x32xi1>
    %46 = arith.select %45, %43, %18 : vector<8x32xi1>, vector<8x32xf32>
    %47 = vector.shape_cast %13 : vector<8x1xi1> to vector<8x1xi1>
    %48 = vector.broadcast %47 : vector<8x1xi1> to vector<8x32xi1>
    %49 = arith.select %48, %41, %20 : vector<8x32xi1>, vector<8x32xf32>
    %c0_17 = arith.constant 0 : index
    %c0_18 = arith.constant 0 : index
    %c0_19 = arith.constant 0 : index
    %50 = vector.load %arg11[%c0_17, %c0_18, %c0_19] : memref<2x8x32xf32, #tpu.memory_space<vmem>>, vector<1x8x32xf32>
    %51 = vector.shape_cast %50 : vector<1x8x32xf32> to vector<8x32xf32>
    %52 = vector.shape_cast %46 : vector<8x32xf32> to vector<1x8x32xf32>
    tpu.vector_store %arg11[%c0_17, %c0_18, %c0_19], %52 {strides = array<i32>} : memref<2x8x32xf32, #tpu.memory_space<vmem>>, vector<1x8x32xf32>,
    %c0_20 = arith.constant 0 : index
    %c0_21 = arith.constant 0 : index
    %c0_22 = arith.constant 0 : index
    %53 = vector.load %arg12[%c0_20, %c0_21, %c0_22] : memref<2x8x32xf32, #tpu.memory_space<vmem>>, vector<1x8x32xf32>
    %54 = vector.shape_cast %53 : vector<1x8x32xf32> to vector<8x32xf32>
    %55 = vector.shape_cast %49 : vector<8x32xf32> to vector<1x8x32xf32>
    tpu.vector_store %arg12[%c0_20, %c0_21, %c0_22], %55 {strides = array<i32>} : memref<2x8x32xf32, #tpu.memory_space<vmem>>, vector<1x8x32xf32>,
    %c1 = arith.constant 1 : index
    %c0_23 = arith.constant 0 : index
    %c0_24 = arith.constant 0 : index
    %56 = vector.load %arg11[%c1, %c0_23, %c0_24] : memref<2x8x32xf32, #tpu.memory_space<vmem>>, vector<1x8x32xf32>
    %57 = vector.shape_cast %56 : vector<1x8x32xf32> to vector<8x32xf32>
    %c1_25 = arith.constant 1 : index
    %c0_26 = arith.constant 0 : index
    %c0_27 = arith.constant 0 : index
    %58 = vector.load %arg12[%c1_25, %c0_26, %c0_27] : memref<2x8x32xf32, #tpu.memory_space<vmem>>, vector<1x8x32xf32>
    %59 = vector.shape_cast %58 : vector<1x8x32xf32> to vector<8x32xf32>
    %60 = arith.truncf %57 : vector<8x32xf32> to vector<8x32xbf16>
    %c1_28 = arith.constant 1 : index
    %c0_29 = arith.constant 0 : index
    %c0_30 = arith.constant 0 : index
    %61 = vector.load %arg4[%c1_28, %c0_29, %c0_30] : memref<2x32x128xbf16, #tpu.memory_space<vmem>>, vector<1x32x128xbf16>
    %62 = vector.shape_cast %61 : vector<1x32x128xbf16> to vector<32x128xbf16>
    %cst_31 = arith.constant dense<0.000000e+00> : vector<8x128xf32>
    %63 = tpu.matmul %60, %62, %cst_31 {dimension_numbers = #tpu.dot_dimension_numbers<[1], [0], [0], [1], [0, 0, 1, 1], [], []>} : vector<8x32xbf16>, vector<32x128xbf16>, vector<8x128xf32> -> vector<8x128xf32>
    %c0_32 = arith.constant 0 : index
    %c0_33 = arith.constant 0 : index
    %c0_34 = arith.constant 0 : index
    %64 = vector.load %arg5[%c0_32, %c0_33, %c0_34] : memref<1x1x128xf32, #tpu.memory_space<vmem>>, vector<1x1x128xf32>
    %65 = vector.shape_cast %64 : vector<1x1x128xf32> to vector<1x128xf32>
    %66 = arith.truncf %46 : vector<8x32xf32> to vector<8x32xbf16>
    %c0_35 = arith.constant 0 : index
    %c0_36 = arith.constant 0 : index
    %c0_37 = arith.constant 0 : index
    %67 = vector.load %arg3[%c0_35, %c0_36, %c0_37] : memref<1x32x128xbf16, #tpu.memory_space<vmem>>, vector<1x32x128xbf16>
    %68 = vector.shape_cast %67 : vector<1x32x128xbf16> to vector<32x128xbf16>
    %cst_38 = arith.constant dense<0.000000e+00> : vector<8x128xf32>
    %69 = tpu.matmul %66, %68, %cst_38 {dimension_numbers = #tpu.dot_dimension_numbers<[1], [0], [0], [1], [0, 0, 1, 1], [], []>} : vector<8x32xbf16>, vector<32x128xbf16>, vector<8x128xf32> -> vector<8x128xf32>
    %70 = vector.broadcast %65 : vector<1x128xf32> to vector<8x128xf32>
    %71 = arith.addf %70, %69 : vector<8x128xf32>
    %72 = arith.addf %71, %63 : vector<8x128xf32>
    %cst_39 = arith.constant 5.000000e-01 : f32
    %73 = vector.broadcast %cst_39 : f32 to vector<8x128xf32>
    %74 = arith.mulf %73, %72 : vector<8x128xf32>
    %75 = arith.select %9, %72, %74 : vector<8x128xi1>, vector<8x128xf32>
    %76 = math.tanh %75 : vector<8x128xf32>
    %cst_40 = arith.constant 5.000000e-01 : f32
    %77 = vector.broadcast %cst_40 : f32 to vector<8x128xf32>
    %78 = arith.mulf %77, %76 : vector<8x128xf32>
    %cst_41 = arith.constant 5.000000e-01 : f32
    %79 = vector.broadcast %cst_41 : f32 to vector<8x128xf32>
    %80 = arith.addf %78, %79 : vector<8x128xf32>
    %81 = arith.select %9, %76, %80 : vector<8x128xi1>, vector<8x128xf32>
    %82 = vector.extract_strided_slice %81 {offsets = [0, 0], sizes = [8, 32], strides = [1, 1]} : vector<8x128xf32> to vector<8x32xf32>
    %83 = vector.extract_strided_slice %81 {offsets = [0, 32], sizes = [8, 32], strides = [1, 1]} : vector<8x128xf32> to vector<8x32xf32>
    %84 = vector.extract_strided_slice %81 {offsets = [0, 64], sizes = [8, 32], strides = [1, 1]} : vector<8x128xf32> to vector<8x32xf32>
    %85 = vector.extract_strided_slice %81 {offsets = [0, 96], sizes = [8, 32], strides = [1, 1]} : vector<8x128xf32> to vector<8x32xf32>
    %86 = arith.mulf %83, %59 : vector<8x32xf32>
    %87 = arith.mulf %82, %84 : vector<8x32xf32>
    %88 = arith.addf %86, %87 : vector<8x32xf32>
    %89 = math.tanh %88 : vector<8x32xf32>
    %90 = arith.mulf %85, %89 : vector<8x32xf32>
    %91 = vector.shape_cast %13 : vector<8x1xi1> to vector<8x1xi1>
    %92 = vector.broadcast %91 : vector<8x1xi1> to vector<8x32xi1>
    %93 = arith.select %92, %90, %57 : vector<8x32xi1>, vector<8x32xf32>
    %94 = vector.shape_cast %13 : vector<8x1xi1> to vector<8x1xi1>
    %95 = vector.broadcast %94 : vector<8x1xi1> to vector<8x32xi1>
    %96 = arith.select %95, %88, %59 : vector<8x32xi1>, vector<8x32xf32>
    %c1_42 = arith.constant 1 : index
    %c0_43 = arith.constant 0 : index
    %c0_44 = arith.constant 0 : index
    %97 = vector.load %arg11[%c1_42, %c0_43, %c0_44] : memref<2x8x32xf32, #tpu.memory_space<vmem>>, vector<1x8x32xf32>
    %98 = vector.shape_cast %97 : vector<1x8x32xf32> to vector<8x32xf32>
    %99 = vector.shape_cast %93 : vector<8x32xf32> to vector<1x8x32xf32>
    tpu.vector_store %arg11[%c1_42, %c0_43, %c0_44], %99 {strides = array<i32>} : memref<2x8x32xf32, #tpu.memory_space<vmem>>, vector<1x8x32xf32>,
    %c1_45 = arith.constant 1 : index
    %c0_46 = arith.constant 0 : index
    %c0_47 = arith.constant 0 : index
    %100 = vector.load %arg12[%c1_45, %c0_46, %c0_47] : memref<2x8x32xf32, #tpu.memory_space<vmem>>, vector<1x8x32xf32>
    %101 = vector.shape_cast %100 : vector<1x8x32xf32> to vector<8x32xf32>
    %102 = vector.shape_cast %96 : vector<8x32xf32> to vector<1x8x32xf32>
    tpu.vector_store %arg12[%c1_45, %c0_46, %c0_47], %102 {strides = array<i32>} : memref<2x8x32xf32, #tpu.memory_space<vmem>>, vector<1x8x32xf32>,
    %103 = arith.index_cast %c0_i32_2 : i32 to index
    %c0_48 = arith.constant 0 : index
    %c0_49 = arith.constant 0 : index
    %104 = vector.load %arg8[%103, %c0_48, %c0_49] : memref<6x8x32xf32, #tpu.memory_space<vmem>>, vector<1x8x32xf32>
    %105 = vector.shape_cast %104 : vector<1x8x32xf32> to vector<8x32xf32>
    %106 = vector.shape_cast %93 : vector<8x32xf32> to vector<1x8x32xf32>
    tpu.vector_store %arg8[%103, %c0_48, %c0_49], %106 {strides = array<i32>} : memref<6x8x32xf32, #tpu.memory_space<vmem>>, vector<1x8x32xf32>,
    %c1_i32 = arith.constant 1 : i32
    %c6_i32_50 = arith.constant 6 : i32
    %107 = arith.muli %arg0, %c6_i32_50 : i32
    %108 = arith.addi %107, %c1_i32 : i32
    %109 = vector.broadcast %108 : i32 to vector<8x1xi32>
    %110 = arith.cmpi slt, %109, %3 : vector<8x1xi32>
    %111 = arith.index_cast %c1_i32 : i32 to index
    %c0_51 = arith.constant 0 : index
    %c0_52 = arith.constant 0 : index
    %112 = vector.load %arg2[%111, %c0_51, %c0_52] : memref<6x8x128xf32, #tpu.memory_space<vmem>>, vector<1x8x128xf32>
    %113 = vector.shape_cast %112 : vector<1x8x128xf32> to vector<8x128xf32>
    %c0_53 = arith.constant 0 : index
    %c0_54 = arith.constant 0 : index
    %c0_55 = arith.constant 0 : index
    %114 = vector.load %arg11[%c0_53, %c0_54, %c0_55] : memref<2x8x32xf32, #tpu.memory_space<vmem>>, vector<1x8x32xf32>
    %115 = vector.shape_cast %114 : vector<1x8x32xf32> to vector<8x32xf32>
    %c0_56 = arith.constant 0 : index
    %c0_57 = arith.constant 0 : index
    %c0_58 = arith.constant 0 : index
    %116 = vector.load %arg12[%c0_56, %c0_57, %c0_58] : memref<2x8x32xf32, #tpu.memory_space<vmem>>, vector<1x8x32xf32>
    %117 = vector.shape_cast %116 : vector<1x8x32xf32> to vector<8x32xf32>
    %118 = arith.truncf %115 : vector<8x32xf32> to vector<8x32xbf16>
    %c0_59 = arith.constant 0 : index
    %c0_60 = arith.constant 0 : index
    %c0_61 = arith.constant 0 : index
    %119 = vector.load %arg4[%c0_59, %c0_60, %c0_61] : memref<2x32x128xbf16, #tpu.memory_space<vmem>>, vector<1x32x128xbf16>
    %120 = vector.shape_cast %119 : vector<1x32x128xbf16> to vector<32x128xbf16>
    %cst_62 = arith.constant dense<0.000000e+00> : vector<8x128xf32>
    %121 = tpu.matmul %118, %120, %cst_62 {dimension_numbers = #tpu.dot_dimension_numbers<[1], [0], [0], [1], [0, 0, 1, 1], [], []>} : vector<8x32xbf16>, vector<32x128xbf16>, vector<8x128xf32> -> vector<8x128xf32>
    %122 = arith.addf %113, %121 : vector<8x128xf32>
    %cst_63 = arith.constant 5.000000e-01 : f32
    %123 = vector.broadcast %cst_63 : f32 to vector<8x128xf32>
    %124 = arith.mulf %123, %122 : vector<8x128xf32>
    %125 = arith.select %9, %122, %124 : vector<8x128xi1>, vector<8x128xf32>
    %126 = math.tanh %125 : vector<8x128xf32>
    %cst_64 = arith.constant 5.000000e-01 : f32
    %127 = vector.broadcast %cst_64 : f32 to vector<8x128xf32>
    %128 = arith.mulf %127, %126 : vector<8x128xf32>
    %cst_65 = arith.constant 5.000000e-01 : f32
    %129 = vector.broadcast %cst_65 : f32 to vector<8x128xf32>
    %130 = arith.addf %128, %129 : vector<8x128xf32>
    %131 = arith.select %9, %126, %130 : vector<8x128xi1>, vector<8x128xf32>
    %132 = vector.extract_strided_slice %131 {offsets = [0, 0], sizes = [8, 32], strides = [1, 1]} : vector<8x128xf32> to vector<8x32xf32>
    %133 = vector.extract_strided_slice %131 {offsets = [0, 32], sizes = [8, 32], strides = [1, 1]} : vector<8x128xf32> to vector<8x32xf32>
    %134 = vector.extract_strided_slice %131 {offsets = [0, 64], sizes = [8, 32], strides = [1, 1]} : vector<8x128xf32> to vector<8x32xf32>
    %135 = vector.extract_strided_slice %131 {offsets = [0, 96], sizes = [8, 32], strides = [1, 1]} : vector<8x128xf32> to vector<8x32xf32>
    %136 = arith.mulf %133, %117 : vector<8x32xf32>
    %137 = arith.mulf %132, %134 : vector<8x32xf32>
    %138 = arith.addf %136, %137 : vector<8x32xf32>
    %139 = math.tanh %138 : vector<8x32xf32>
    %140 = arith.mulf %135, %139 : vector<8x32xf32>
    %141 = vector.shape_cast %110 : vector<8x1xi1> to vector<8x1xi1>
    %142 = vector.broadcast %141 : vector<8x1xi1> to vector<8x32xi1>
    %143 = arith.select %142, %140, %115 : vector<8x32xi1>, vector<8x32xf32>
    %144 = vector.shape_cast %110 : vector<8x1xi1> to vector<8x1xi1>
    %145 = vector.broadcast %144 : vector<8x1xi1> to vector<8x32xi1>
    %146 = arith.select %145, %138, %117 : vector<8x32xi1>, vector<8x32xf32>
    %c0_66 = arith.constant 0 : index
    %c0_67 = arith.constant 0 : index
    %c0_68 = arith.constant 0 : index
    %147 = vector.load %arg11[%c0_66, %c0_67, %c0_68] : memref<2x8x32xf32, #tpu.memory_space<vmem>>, vector<1x8x32xf32>
    %148 = vector.shape_cast %147 : vector<1x8x32xf32> to vector<8x32xf32>
    %149 = vector.shape_cast %143 : vector<8x32xf32> to vector<1x8x32xf32>
    tpu.vector_store %arg11[%c0_66, %c0_67, %c0_68], %149 {strides = array<i32>} : memref<2x8x32xf32, #tpu.memory_space<vmem>>, vector<1x8x32xf32>,
    %c0_69 = arith.constant 0 : index
    %c0_70 = arith.constant 0 : index
    %c0_71 = arith.constant 0 : index
    %150 = vector.load %arg12[%c0_69, %c0_70, %c0_71] : memref<2x8x32xf32, #tpu.memory_space<vmem>>, vector<1x8x32xf32>
    %151 = vector.shape_cast %150 : vector<1x8x32xf32> to vector<8x32xf32>
    %152 = vector.shape_cast %146 : vector<8x32xf32> to vector<1x8x32xf32>
    tpu.vector_store %arg12[%c0_69, %c0_70, %c0_71], %152 {strides = array<i32>} : memref<2x8x32xf32, #tpu.memory_space<vmem>>, vector<1x8x32xf32>,
    %c1_72 = arith.constant 1 : index
    %c0_73 = arith.constant 0 : index
    %c0_74 = arith.constant 0 : index
    %153 = vector.load %arg11[%c1_72, %c0_73, %c0_74] : memref<2x8x32xf32, #tpu.memory_space<vmem>>, vector<1x8x32xf32>
    %154 = vector.shape_cast %153 : vector<1x8x32xf32> to vector<8x32xf32>
    %c1_75 = arith.constant 1 : index
    %c0_76 = arith.constant 0 : index
    %c0_77 = arith.constant 0 : index
    %155 = vector.load %arg12[%c1_75, %c0_76, %c0_77] : memref<2x8x32xf32, #tpu.memory_space<vmem>>, vector<1x8x32xf32>
    %156 = vector.shape_cast %155 : vector<1x8x32xf32> to vector<8x32xf32>
    %157 = arith.truncf %154 : vector<8x32xf32> to vector<8x32xbf16>
    %c1_78 = arith.constant 1 : index
    %c0_79 = arith.constant 0 : index
    %c0_80 = arith.constant 0 : index
    %158 = vector.load %arg4[%c1_78, %c0_79, %c0_80] : memref<2x32x128xbf16, #tpu.memory_space<vmem>>, vector<1x32x128xbf16>
    %159 = vector.shape_cast %158 : vector<1x32x128xbf16> to vector<32x128xbf16>
    %cst_81 = arith.constant dense<0.000000e+00> : vector<8x128xf32>
    %160 = tpu.matmul %157, %159, %cst_81 {dimension_numbers = #tpu.dot_dimension_numbers<[1], [0], [0], [1], [0, 0, 1, 1], [], []>} : vector<8x32xbf16>, vector<32x128xbf16>, vector<8x128xf32> -> vector<8x128xf32>
    %c0_82 = arith.constant 0 : index
    %c0_83 = arith.constant 0 : index
    %c0_84 = arith.constant 0 : index
    %161 = vector.load %arg5[%c0_82, %c0_83, %c0_84] : memref<1x1x128xf32, #tpu.memory_space<vmem>>, vector<1x1x128xf32>
    %162 = vector.shape_cast %161 : vector<1x1x128xf32> to vector<1x128xf32>
    %163 = arith.truncf %143 : vector<8x32xf32> to vector<8x32xbf16>
    %c0_85 = arith.constant 0 : index
    %c0_86 = arith.constant 0 : index
    %c0_87 = arith.constant 0 : index
    %164 = vector.load %arg3[%c0_85, %c0_86, %c0_87] : memref<1x32x128xbf16, #tpu.memory_space<vmem>>, vector<1x32x128xbf16>
    %165 = vector.shape_cast %164 : vector<1x32x128xbf16> to vector<32x128xbf16>
    %cst_88 = arith.constant dense<0.000000e+00> : vector<8x128xf32>
    %166 = tpu.matmul %163, %165, %cst_88 {dimension_numbers = #tpu.dot_dimension_numbers<[1], [0], [0], [1], [0, 0, 1, 1], [], []>} : vector<8x32xbf16>, vector<32x128xbf16>, vector<8x128xf32> -> vector<8x128xf32>
    %167 = vector.broadcast %162 : vector<1x128xf32> to vector<8x128xf32>
    %168 = arith.addf %167, %166 : vector<8x128xf32>
    %169 = arith.addf %168, %160 : vector<8x128xf32>
    %cst_89 = arith.constant 5.000000e-01 : f32
    %170 = vector.broadcast %cst_89 : f32 to vector<8x128xf32>
    %171 = arith.mulf %170, %169 : vector<8x128xf32>
    %172 = arith.select %9, %169, %171 : vector<8x128xi1>, vector<8x128xf32>
    %173 = math.tanh %172 : vector<8x128xf32>
    %cst_90 = arith.constant 5.000000e-01 : f32
    %174 = vector.broadcast %cst_90 : f32 to vector<8x128xf32>
    %175 = arith.mulf %174, %173 : vector<8x128xf32>
    %cst_91 = arith.constant 5.000000e-01 : f32
    %176 = vector.broadcast %cst_91 : f32 to vector<8x128xf32>
    %177 = arith.addf %175, %176 : vector<8x128xf32>
    %178 = arith.select %9, %173, %177 : vector<8x128xi1>, vector<8x128xf32>
    %179 = vector.extract_strided_slice %178 {offsets = [0, 0], sizes = [8, 32], strides = [1, 1]} : vector<8x128xf32> to vector<8x32xf32>
    %180 = vector.extract_strided_slice %178 {offsets = [0, 32], sizes = [8, 32], strides = [1, 1]} : vector<8x128xf32> to vector<8x32xf32>
    %181 = vector.extract_strided_slice %178 {offsets = [0, 64], sizes = [8, 32], strides = [1, 1]} : vector<8x128xf32> to vector<8x32xf32>
    %182 = vector.extract_strided_slice %178 {offsets = [0, 96], sizes = [8, 32], strides = [1, 1]} : vector<8x128xf32> to vector<8x32xf32>
    %183 = arith.mulf %180, %156 : vector<8x32xf32>
    %184 = arith.mulf %179, %181 : vector<8x32xf32>
    %185 = arith.addf %183, %184 : vector<8x32xf32>
    %186 = math.tanh %185 : vector<8x32xf32>
    %187 = arith.mulf %182, %186 : vector<8x32xf32>
    %188 = vector.shape_cast %110 : vector<8x1xi1> to vector<8x1xi1>
    %189 = vector.broadcast %188 : vector<8x1xi1> to vector<8x32xi1>
    %190 = arith.select %189, %187, %154 : vector<8x32xi1>, vector<8x32xf32>
    %191 = vector.shape_cast %110 : vector<8x1xi1> to vector<8x1xi1>
    %192 = vector.broadcast %191 : vector<8x1xi1> to vector<8x32xi1>
    %193 = arith.select %192, %185, %156 : vector<8x32xi1>, vector<8x32xf32>
    %c1_92 = arith.constant 1 : index
    %c0_93 = arith.constant 0 : index
    %c0_94 = arith.constant 0 : index
    %194 = vector.load %arg11[%c1_92, %c0_93, %c0_94] : memref<2x8x32xf32, #tpu.memory_space<vmem>>, vector<1x8x32xf32>
    %195 = vector.shape_cast %194 : vector<1x8x32xf32> to vector<8x32xf32>
    %196 = vector.shape_cast %190 : vector<8x32xf32> to vector<1x8x32xf32>
    tpu.vector_store %arg11[%c1_92, %c0_93, %c0_94], %196 {strides = array<i32>} : memref<2x8x32xf32, #tpu.memory_space<vmem>>, vector<1x8x32xf32>,
    %c1_95 = arith.constant 1 : index
    %c0_96 = arith.constant 0 : index
    %c0_97 = arith.constant 0 : index
    %197 = vector.load %arg12[%c1_95, %c0_96, %c0_97] : memref<2x8x32xf32, #tpu.memory_space<vmem>>, vector<1x8x32xf32>
    %198 = vector.shape_cast %197 : vector<1x8x32xf32> to vector<8x32xf32>
    %199 = vector.shape_cast %193 : vector<8x32xf32> to vector<1x8x32xf32>
    tpu.vector_store %arg12[%c1_95, %c0_96, %c0_97], %199 {strides = array<i32>} : memref<2x8x32xf32, #tpu.memory_space<vmem>>, vector<1x8x32xf32>,
    %200 = arith.index_cast %c1_i32 : i32 to index
    %c0_98 = arith.constant 0 : index
    %c0_99 = arith.constant 0 : index
    %201 = vector.load %arg8[%200, %c0_98, %c0_99] : memref<6x8x32xf32, #tpu.memory_space<vmem>>, vector<1x8x32xf32>
    %202 = vector.shape_cast %201 : vector<1x8x32xf32> to vector<8x32xf32>
    %203 = vector.shape_cast %190 : vector<8x32xf32> to vector<1x8x32xf32>
    tpu.vector_store %arg8[%200, %c0_98, %c0_99], %203 {strides = array<i32>} : memref<6x8x32xf32, #tpu.memory_space<vmem>>, vector<1x8x32xf32>,
    %c2_i32 = arith.constant 2 : i32
    %c6_i32_100 = arith.constant 6 : i32
    %204 = arith.muli %arg0, %c6_i32_100 : i32
    %205 = arith.addi %204, %c2_i32 : i32
    %206 = vector.broadcast %205 : i32 to vector<8x1xi32>
    %207 = arith.cmpi slt, %206, %3 : vector<8x1xi32>
    %208 = arith.index_cast %c2_i32 : i32 to index
    %c0_101 = arith.constant 0 : index
    %c0_102 = arith.constant 0 : index
    %209 = vector.load %arg2[%208, %c0_101, %c0_102] : memref<6x8x128xf32, #tpu.memory_space<vmem>>, vector<1x8x128xf32>
    %210 = vector.shape_cast %209 : vector<1x8x128xf32> to vector<8x128xf32>
    %c0_103 = arith.constant 0 : index
    %c0_104 = arith.constant 0 : index
    %c0_105 = arith.constant 0 : index
    %211 = vector.load %arg11[%c0_103, %c0_104, %c0_105] : memref<2x8x32xf32, #tpu.memory_space<vmem>>, vector<1x8x32xf32>
    %212 = vector.shape_cast %211 : vector<1x8x32xf32> to vector<8x32xf32>
    %c0_106 = arith.constant 0 : index
    %c0_107 = arith.constant 0 : index
    %c0_108 = arith.constant 0 : index
    %213 = vector.load %arg12[%c0_106, %c0_107, %c0_108] : memref<2x8x32xf32, #tpu.memory_space<vmem>>, vector<1x8x32xf32>
    %214 = vector.shape_cast %213 : vector<1x8x32xf32> to vector<8x32xf32>
    %215 = arith.truncf %212 : vector<8x32xf32> to vector<8x32xbf16>
    %c0_109 = arith.constant 0 : index
    %c0_110 = arith.constant 0 : index
    %c0_111 = arith.constant 0 : index
    %216 = vector.load %arg4[%c0_109, %c0_110, %c0_111] : memref<2x32x128xbf16, #tpu.memory_space<vmem>>, vector<1x32x128xbf16>
    %217 = vector.shape_cast %216 : vector<1x32x128xbf16> to vector<32x128xbf16>
    %cst_112 = arith.constant dense<0.000000e+00> : vector<8x128xf32>
    %218 = tpu.matmul %215, %217, %cst_112 {dimension_numbers = #tpu.dot_dimension_numbers<[1], [0], [0], [1], [0, 0, 1, 1], [], []>} : vector<8x32xbf16>, vector<32x128xbf16>, vector<8x128xf32> -> vector<8x128xf32>
    %219 = arith.addf %210, %218 : vector<8x128xf32>
    %cst_113 = arith.constant 5.000000e-01 : f32
    %220 = vector.broadcast %cst_113 : f32 to vector<8x128xf32>
    %221 = arith.mulf %220, %219 : vector<8x128xf32>
    %222 = arith.select %9, %219, %221 : vector<8x128xi1>, vector<8x128xf32>
    %223 = math.tanh %222 : vector<8x128xf32>
    %cst_114 = arith.constant 5.000000e-01 : f32
    %224 = vector.broadcast %cst_114 : f32 to vector<8x128xf32>
    %225 = arith.mulf %224, %223 : vector<8x128xf32>
    %cst_115 = arith.constant 5.000000e-01 : f32
    %226 = vector.broadcast %cst_115 : f32 to vector<8x128xf32>
    %227 = arith.addf %225, %226 : vector<8x128xf32>
    %228 = arith.select %9, %223, %227 : vector<8x128xi1>, vector<8x128xf32>
    %229 = vector.extract_strided_slice %228 {offsets = [0, 0], sizes = [8, 32], strides = [1, 1]} : vector<8x128xf32> to vector<8x32xf32>
    %230 = vector.extract_strided_slice %228 {offsets = [0, 32], sizes = [8, 32], strides = [1, 1]} : vector<8x128xf32> to vector<8x32xf32>
    %231 = vector.extract_strided_slice %228 {offsets = [0, 64], sizes = [8, 32], strides = [1, 1]} : vector<8x128xf32> to vector<8x32xf32>
    %232 = vector.extract_strided_slice %228 {offsets = [0, 96], sizes = [8, 32], strides = [1, 1]} : vector<8x128xf32> to vector<8x32xf32>
    %233 = arith.mulf %230, %214 : vector<8x32xf32>
    %234 = arith.mulf %229, %231 : vector<8x32xf32>
    %235 = arith.addf %233, %234 : vector<8x32xf32>
    %236 = math.tanh %235 : vector<8x32xf32>
    %237 = arith.mulf %232, %236 : vector<8x32xf32>
    %238 = vector.shape_cast %207 : vector<8x1xi1> to vector<8x1xi1>
    %239 = vector.broadcast %238 : vector<8x1xi1> to vector<8x32xi1>
    %240 = arith.select %239, %237, %212 : vector<8x32xi1>, vector<8x32xf32>
    %241 = vector.shape_cast %207 : vector<8x1xi1> to vector<8x1xi1>
    %242 = vector.broadcast %241 : vector<8x1xi1> to vector<8x32xi1>
    %243 = arith.select %242, %235, %214 : vector<8x32xi1>, vector<8x32xf32>
    %c0_116 = arith.constant 0 : index
    %c0_117 = arith.constant 0 : index
    %c0_118 = arith.constant 0 : index
    %244 = vector.load %arg11[%c0_116, %c0_117, %c0_118] : memref<2x8x32xf32, #tpu.memory_space<vmem>>, vector<1x8x32xf32>
    %245 = vector.shape_cast %244 : vector<1x8x32xf32> to vector<8x32xf32>
    %246 = vector.shape_cast %240 : vector<8x32xf32> to vector<1x8x32xf32>
    tpu.vector_store %arg11[%c0_116, %c0_117, %c0_118], %246 {strides = array<i32>} : memref<2x8x32xf32, #tpu.memory_space<vmem>>, vector<1x8x32xf32>,
    %c0_119 = arith.constant 0 : index
    %c0_120 = arith.constant 0 : index
    %c0_121 = arith.constant 0 : index
    %247 = vector.load %arg12[%c0_119, %c0_120, %c0_121] : memref<2x8x32xf32, #tpu.memory_space<vmem>>, vector<1x8x32xf32>
    %248 = vector.shape_cast %247 : vector<1x8x32xf32> to vector<8x32xf32>
    %249 = vector.shape_cast %243 : vector<8x32xf32> to vector<1x8x32xf32>
    tpu.vector_store %arg12[%c0_119, %c0_120, %c0_121], %249 {strides = array<i32>} : memref<2x8x32xf32, #tpu.memory_space<vmem>>, vector<1x8x32xf32>,
    %c1_122 = arith.constant 1 : index
    %c0_123 = arith.constant 0 : index
    %c0_124 = arith.constant 0 : index
    %250 = vector.load %arg11[%c1_122, %c0_123, %c0_124] : memref<2x8x32xf32, #tpu.memory_space<vmem>>, vector<1x8x32xf32>
    %251 = vector.shape_cast %250 : vector<1x8x32xf32> to vector<8x32xf32>
    %c1_125 = arith.constant 1 : index
    %c0_126 = arith.constant 0 : index
    %c0_127 = arith.constant 0 : index
    %252 = vector.load %arg12[%c1_125, %c0_126, %c0_127] : memref<2x8x32xf32, #tpu.memory_space<vmem>>, vector<1x8x32xf32>
    %253 = vector.shape_cast %252 : vector<1x8x32xf32> to vector<8x32xf32>
    %254 = arith.truncf %251 : vector<8x32xf32> to vector<8x32xbf16>
    %c1_128 = arith.constant 1 : index
    %c0_129 = arith.constant 0 : index
    %c0_130 = arith.constant 0 : index
    %255 = vector.load %arg4[%c1_128, %c0_129, %c0_130] : memref<2x32x128xbf16, #tpu.memory_space<vmem>>, vector<1x32x128xbf16>
    %256 = vector.shape_cast %255 : vector<1x32x128xbf16> to vector<32x128xbf16>
    %cst_131 = arith.constant dense<0.000000e+00> : vector<8x128xf32>
    %257 = tpu.matmul %254, %256, %cst_131 {dimension_numbers = #tpu.dot_dimension_numbers<[1], [0], [0], [1], [0, 0, 1, 1], [], []>} : vector<8x32xbf16>, vector<32x128xbf16>, vector<8x128xf32> -> vector<8x128xf32>
    %c0_132 = arith.constant 0 : index
    %c0_133 = arith.constant 0 : index
    %c0_134 = arith.constant 0 : index
    %258 = vector.load %arg5[%c0_132, %c0_133, %c0_134] : memref<1x1x128xf32, #tpu.memory_space<vmem>>, vector<1x1x128xf32>
    %259 = vector.shape_cast %258 : vector<1x1x128xf32> to vector<1x128xf32>
    %260 = arith.truncf %240 : vector<8x32xf32> to vector<8x32xbf16>
    %c0_135 = arith.constant 0 : index
    %c0_136 = arith.constant 0 : index
    %c0_137 = arith.constant 0 : index
    %261 = vector.load %arg3[%c0_135, %c0_136, %c0_137] : memref<1x32x128xbf16, #tpu.memory_space<vmem>>, vector<1x32x128xbf16>
    %262 = vector.shape_cast %261 : vector<1x32x128xbf16> to vector<32x128xbf16>
    %cst_138 = arith.constant dense<0.000000e+00> : vector<8x128xf32>
    %263 = tpu.matmul %260, %262, %cst_138 {dimension_numbers = #tpu.dot_dimension_numbers<[1], [0], [0], [1], [0, 0, 1, 1], [], []>} : vector<8x32xbf16>, vector<32x128xbf16>, vector<8x128xf32> -> vector<8x128xf32>
    %264 = vector.broadcast %259 : vector<1x128xf32> to vector<8x128xf32>
    %265 = arith.addf %264, %263 : vector<8x128xf32>
    %266 = arith.addf %265, %257 : vector<8x128xf32>
    %cst_139 = arith.constant 5.000000e-01 : f32
    %267 = vector.broadcast %cst_139 : f32 to vector<8x128xf32>
    %268 = arith.mulf %267, %266 : vector<8x128xf32>
    %269 = arith.select %9, %266, %268 : vector<8x128xi1>, vector<8x128xf32>
    %270 = math.tanh %269 : vector<8x128xf32>
    %cst_140 = arith.constant 5.000000e-01 : f32
    %271 = vector.broadcast %cst_140 : f32 to vector<8x128xf32>
    %272 = arith.mulf %271, %270 : vector<8x128xf32>
    %cst_141 = arith.constant 5.000000e-01 : f32
    %273 = vector.broadcast %cst_141 : f32 to vector<8x128xf32>
    %274 = arith.addf %272, %273 : vector<8x128xf32>
    %275 = arith.select %9, %270, %274 : vector<8x128xi1>, vector<8x128xf32>
    %276 = vector.extract_strided_slice %275 {offsets = [0, 0], sizes = [8, 32], strides = [1, 1]} : vector<8x128xf32> to vector<8x32xf32>
    %277 = vector.extract_strided_slice %275 {offsets = [0, 32], sizes = [8, 32], strides = [1, 1]} : vector<8x128xf32> to vector<8x32xf32>
    %278 = vector.extract_strided_slice %275 {offsets = [0, 64], sizes = [8, 32], strides = [1, 1]} : vector<8x128xf32> to vector<8x32xf32>
    %279 = vector.extract_strided_slice %275 {offsets = [0, 96], sizes = [8, 32], strides = [1, 1]} : vector<8x128xf32> to vector<8x32xf32>
    %280 = arith.mulf %277, %253 : vector<8x32xf32>
    %281 = arith.mulf %276, %278 : vector<8x32xf32>
    %282 = arith.addf %280, %281 : vector<8x32xf32>
    %283 = math.tanh %282 : vector<8x32xf32>
    %284 = arith.mulf %279, %283 : vector<8x32xf32>
    %285 = vector.shape_cast %207 : vector<8x1xi1> to vector<8x1xi1>
    %286 = vector.broadcast %285 : vector<8x1xi1> to vector<8x32xi1>
    %287 = arith.select %286, %284, %251 : vector<8x32xi1>, vector<8x32xf32>
    %288 = vector.shape_cast %207 : vector<8x1xi1> to vector<8x1xi1>
    %289 = vector.broadcast %288 : vector<8x1xi1> to vector<8x32xi1>
    %290 = arith.select %289, %282, %253 : vector<8x32xi1>, vector<8x32xf32>
    %c1_142 = arith.constant 1 : index
    %c0_143 = arith.constant 0 : index
    %c0_144 = arith.constant 0 : index
    %291 = vector.load %arg11[%c1_142, %c0_143, %c0_144] : memref<2x8x32xf32, #tpu.memory_space<vmem>>, vector<1x8x32xf32>
    %292 = vector.shape_cast %291 : vector<1x8x32xf32> to vector<8x32xf32>
    %293 = vector.shape_cast %287 : vector<8x32xf32> to vector<1x8x32xf32>
    tpu.vector_store %arg11[%c1_142, %c0_143, %c0_144], %293 {strides = array<i32>} : memref<2x8x32xf32, #tpu.memory_space<vmem>>, vector<1x8x32xf32>,
    %c1_145 = arith.constant 1 : index
    %c0_146 = arith.constant 0 : index
    %c0_147 = arith.constant 0 : index
    %294 = vector.load %arg12[%c1_145, %c0_146, %c0_147] : memref<2x8x32xf32, #tpu.memory_space<vmem>>, vector<1x8x32xf32>
    %295 = vector.shape_cast %294 : vector<1x8x32xf32> to vector<8x32xf32>
    %296 = vector.shape_cast %290 : vector<8x32xf32> to vector<1x8x32xf32>
    tpu.vector_store %arg12[%c1_145, %c0_146, %c0_147], %296 {strides = array<i32>} : memref<2x8x32xf32, #tpu.memory_space<vmem>>, vector<1x8x32xf32>,
    %297 = arith.index_cast %c2_i32 : i32 to index
    %c0_148 = arith.constant 0 : index
    %c0_149 = arith.constant 0 : index
    %298 = vector.load %arg8[%297, %c0_148, %c0_149] : memref<6x8x32xf32, #tpu.memory_space<vmem>>, vector<1x8x32xf32>
    %299 = vector.shape_cast %298 : vector<1x8x32xf32> to vector<8x32xf32>
    %300 = vector.shape_cast %287 : vector<8x32xf32> to vector<1x8x32xf32>
    tpu.vector_store %arg8[%297, %c0_148, %c0_149], %300 {strides = array<i32>} : memref<6x8x32xf32, #tpu.memory_space<vmem>>, vector<1x8x32xf32>,
    %c3_i32 = arith.constant 3 : i32
    %c6_i32_150 = arith.constant 6 : i32
    %301 = arith.muli %arg0, %c6_i32_150 : i32
    %302 = arith.addi %301, %c3_i32 : i32
    %303 = vector.broadcast %302 : i32 to vector<8x1xi32>
    %304 = arith.cmpi slt, %303, %3 : vector<8x1xi32>
    %305 = arith.index_cast %c3_i32 : i32 to index
    %c0_151 = arith.constant 0 : index
    %c0_152 = arith.constant 0 : index
    %306 = vector.load %arg2[%305, %c0_151, %c0_152] : memref<6x8x128xf32, #tpu.memory_space<vmem>>, vector<1x8x128xf32>
    %307 = vector.shape_cast %306 : vector<1x8x128xf32> to vector<8x128xf32>
    %c0_153 = arith.constant 0 : index
    %c0_154 = arith.constant 0 : index
    %c0_155 = arith.constant 0 : index
    %308 = vector.load %arg11[%c0_153, %c0_154, %c0_155] : memref<2x8x32xf32, #tpu.memory_space<vmem>>, vector<1x8x32xf32>
    %309 = vector.shape_cast %308 : vector<1x8x32xf32> to vector<8x32xf32>
    %c0_156 = arith.constant 0 : index
    %c0_157 = arith.constant 0 : index
    %c0_158 = arith.constant 0 : index
    %310 = vector.load %arg12[%c0_156, %c0_157, %c0_158] : memref<2x8x32xf32, #tpu.memory_space<vmem>>, vector<1x8x32xf32>
    %311 = vector.shape_cast %310 : vector<1x8x32xf32> to vector<8x32xf32>
    %312 = arith.truncf %309 : vector<8x32xf32> to vector<8x32xbf16>
    %c0_159 = arith.constant 0 : index
    %c0_160 = arith.constant 0 : index
    %c0_161 = arith.constant 0 : index
    %313 = vector.load %arg4[%c0_159, %c0_160, %c0_161] : memref<2x32x128xbf16, #tpu.memory_space<vmem>>, vector<1x32x128xbf16>
    %314 = vector.shape_cast %313 : vector<1x32x128xbf16> to vector<32x128xbf16>
    %cst_162 = arith.constant dense<0.000000e+00> : vector<8x128xf32>
    %315 = tpu.matmul %312, %314, %cst_162 {dimension_numbers = #tpu.dot_dimension_numbers<[1], [0], [0], [1], [0, 0, 1, 1], [], []>} : vector<8x32xbf16>, vector<32x128xbf16>, vector<8x128xf32> -> vector<8x128xf32>
    %316 = arith.addf %307, %315 : vector<8x128xf32>
    %cst_163 = arith.constant 5.000000e-01 : f32
    %317 = vector.broadcast %cst_163 : f32 to vector<8x128xf32>
    %318 = arith.mulf %317, %316 : vector<8x128xf32>
    %319 = arith.select %9, %316, %318 : vector<8x128xi1>, vector<8x128xf32>
    %320 = math.tanh %319 : vector<8x128xf32>
    %cst_164 = arith.constant 5.000000e-01 : f32
    %321 = vector.broadcast %cst_164 : f32 to vector<8x128xf32>
    %322 = arith.mulf %321, %320 : vector<8x128xf32>
    %cst_165 = arith.constant 5.000000e-01 : f32
    %323 = vector.broadcast %cst_165 : f32 to vector<8x128xf32>
    %324 = arith.addf %322, %323 : vector<8x128xf32>
    %325 = arith.select %9, %320, %324 : vector<8x128xi1>, vector<8x128xf32>
    %326 = vector.extract_strided_slice %325 {offsets = [0, 0], sizes = [8, 32], strides = [1, 1]} : vector<8x128xf32> to vector<8x32xf32>
    %327 = vector.extract_strided_slice %325 {offsets = [0, 32], sizes = [8, 32], strides = [1, 1]} : vector<8x128xf32> to vector<8x32xf32>
    %328 = vector.extract_strided_slice %325 {offsets = [0, 64], sizes = [8, 32], strides = [1, 1]} : vector<8x128xf32> to vector<8x32xf32>
    %329 = vector.extract_strided_slice %325 {offsets = [0, 96], sizes = [8, 32], strides = [1, 1]} : vector<8x128xf32> to vector<8x32xf32>
    %330 = arith.mulf %327, %311 : vector<8x32xf32>
    %331 = arith.mulf %326, %328 : vector<8x32xf32>
    %332 = arith.addf %330, %331 : vector<8x32xf32>
    %333 = math.tanh %332 : vector<8x32xf32>
    %334 = arith.mulf %329, %333 : vector<8x32xf32>
    %335 = vector.shape_cast %304 : vector<8x1xi1> to vector<8x1xi1>
    %336 = vector.broadcast %335 : vector<8x1xi1> to vector<8x32xi1>
    %337 = arith.select %336, %334, %309 : vector<8x32xi1>, vector<8x32xf32>
    %338 = vector.shape_cast %304 : vector<8x1xi1> to vector<8x1xi1>
    %339 = vector.broadcast %338 : vector<8x1xi1> to vector<8x32xi1>
    %340 = arith.select %339, %332, %311 : vector<8x32xi1>, vector<8x32xf32>
    %c0_166 = arith.constant 0 : index
    %c0_167 = arith.constant 0 : index
    %c0_168 = arith.constant 0 : index
    %341 = vector.load %arg11[%c0_166, %c0_167, %c0_168] : memref<2x8x32xf32, #tpu.memory_space<vmem>>, vector<1x8x32xf32>
    %342 = vector.shape_cast %341 : vector<1x8x32xf32> to vector<8x32xf32>
    %343 = vector.shape_cast %337 : vector<8x32xf32> to vector<1x8x32xf32>
    tpu.vector_store %arg11[%c0_166, %c0_167, %c0_168], %343 {strides = array<i32>} : memref<2x8x32xf32, #tpu.memory_space<vmem>>, vector<1x8x32xf32>,
    %c0_169 = arith.constant 0 : index
    %c0_170 = arith.constant 0 : index
    %c0_171 = arith.constant 0 : index
    %344 = vector.load %arg12[%c0_169, %c0_170, %c0_171] : memref<2x8x32xf32, #tpu.memory_space<vmem>>, vector<1x8x32xf32>
    %345 = vector.shape_cast %344 : vector<1x8x32xf32> to vector<8x32xf32>
    %346 = vector.shape_cast %340 : vector<8x32xf32> to vector<1x8x32xf32>
    tpu.vector_store %arg12[%c0_169, %c0_170, %c0_171], %346 {strides = array<i32>} : memref<2x8x32xf32, #tpu.memory_space<vmem>>, vector<1x8x32xf32>,
    %c1_172 = arith.constant 1 : index
    %c0_173 = arith.constant 0 : index
    %c0_174 = arith.constant 0 : index
    %347 = vector.load %arg11[%c1_172, %c0_173, %c0_174] : memref<2x8x32xf32, #tpu.memory_space<vmem>>, vector<1x8x32xf32>
    %348 = vector.shape_cast %347 : vector<1x8x32xf32> to vector<8x32xf32>
    %c1_175 = arith.constant 1 : index
    %c0_176 = arith.constant 0 : index
    %c0_177 = arith.constant 0 : index
    %349 = vector.load %arg12[%c1_175, %c0_176, %c0_177] : memref<2x8x32xf32, #tpu.memory_space<vmem>>, vector<1x8x32xf32>
    %350 = vector.shape_cast %349 : vector<1x8x32xf32> to vector<8x32xf32>
    %351 = arith.truncf %348 : vector<8x32xf32> to vector<8x32xbf16>
    %c1_178 = arith.constant 1 : index
    %c0_179 = arith.constant 0 : index
    %c0_180 = arith.constant 0 : index
    %352 = vector.load %arg4[%c1_178, %c0_179, %c0_180] : memref<2x32x128xbf16, #tpu.memory_space<vmem>>, vector<1x32x128xbf16>
    %353 = vector.shape_cast %352 : vector<1x32x128xbf16> to vector<32x128xbf16>
    %cst_181 = arith.constant dense<0.000000e+00> : vector<8x128xf32>
    %354 = tpu.matmul %351, %353, %cst_181 {dimension_numbers = #tpu.dot_dimension_numbers<[1], [0], [0], [1], [0, 0, 1, 1], [], []>} : vector<8x32xbf16>, vector<32x128xbf16>, vector<8x128xf32> -> vector<8x128xf32>
    %c0_182 = arith.constant 0 : index
    %c0_183 = arith.constant 0 : index
    %c0_184 = arith.constant 0 : index
    %355 = vector.load %arg5[%c0_182, %c0_183, %c0_184] : memref<1x1x128xf32, #tpu.memory_space<vmem>>, vector<1x1x128xf32>
    %356 = vector.shape_cast %355 : vector<1x1x128xf32> to vector<1x128xf32>
    %357 = arith.truncf %337 : vector<8x32xf32> to vector<8x32xbf16>
    %c0_185 = arith.constant 0 : index
    %c0_186 = arith.constant 0 : index
    %c0_187 = arith.constant 0 : index
    %358 = vector.load %arg3[%c0_185, %c0_186, %c0_187] : memref<1x32x128xbf16, #tpu.memory_space<vmem>>, vector<1x32x128xbf16>
    %359 = vector.shape_cast %358 : vector<1x32x128xbf16> to vector<32x128xbf16>
    %cst_188 = arith.constant dense<0.000000e+00> : vector<8x128xf32>
    %360 = tpu.matmul %357, %359, %cst_188 {dimension_numbers = #tpu.dot_dimension_numbers<[1], [0], [0], [1], [0, 0, 1, 1], [], []>} : vector<8x32xbf16>, vector<32x128xbf16>, vector<8x128xf32> -> vector<8x128xf32>
    %361 = vector.broadcast %356 : vector<1x128xf32> to vector<8x128xf32>
    %362 = arith.addf %361, %360 : vector<8x128xf32>
    %363 = arith.addf %362, %354 : vector<8x128xf32>
    %cst_189 = arith.constant 5.000000e-01 : f32
    %364 = vector.broadcast %cst_189 : f32 to vector<8x128xf32>
    %365 = arith.mulf %364, %363 : vector<8x128xf32>
    %366 = arith.select %9, %363, %365 : vector<8x128xi1>, vector<8x128xf32>
    %367 = math.tanh %366 : vector<8x128xf32>
    %cst_190 = arith.constant 5.000000e-01 : f32
    %368 = vector.broadcast %cst_190 : f32 to vector<8x128xf32>
    %369 = arith.mulf %368, %367 : vector<8x128xf32>
    %cst_191 = arith.constant 5.000000e-01 : f32
    %370 = vector.broadcast %cst_191 : f32 to vector<8x128xf32>
    %371 = arith.addf %369, %370 : vector<8x128xf32>
    %372 = arith.select %9, %367, %371 : vector<8x128xi1>, vector<8x128xf32>
    %373 = vector.extract_strided_slice %372 {offsets = [0, 0], sizes = [8, 32], strides = [1, 1]} : vector<8x128xf32> to vector<8x32xf32>
    %374 = vector.extract_strided_slice %372 {offsets = [0, 32], sizes = [8, 32], strides = [1, 1]} : vector<8x128xf32> to vector<8x32xf32>
    %375 = vector.extract_strided_slice %372 {offsets = [0, 64], sizes = [8, 32], strides = [1, 1]} : vector<8x128xf32> to vector<8x32xf32>
    %376 = vector.extract_strided_slice %372 {offsets = [0, 96], sizes = [8, 32], strides = [1, 1]} : vector<8x128xf32> to vector<8x32xf32>
    %377 = arith.mulf %374, %350 : vector<8x32xf32>
    %378 = arith.mulf %373, %375 : vector<8x32xf32>
    %379 = arith.addf %377, %378 : vector<8x32xf32>
    %380 = math.tanh %379 : vector<8x32xf32>
    %381 = arith.mulf %376, %380 : vector<8x32xf32>
    %382 = vector.shape_cast %304 : vector<8x1xi1> to vector<8x1xi1>
    %383 = vector.broadcast %382 : vector<8x1xi1> to vector<8x32xi1>
    %384 = arith.select %383, %381, %348 : vector<8x32xi1>, vector<8x32xf32>
    %385 = vector.shape_cast %304 : vector<8x1xi1> to vector<8x1xi1>
    %386 = vector.broadcast %385 : vector<8x1xi1> to vector<8x32xi1>
    %387 = arith.select %386, %379, %350 : vector<8x32xi1>, vector<8x32xf32>
    %c1_192 = arith.constant 1 : index
    %c0_193 = arith.constant 0 : index
    %c0_194 = arith.constant 0 : index
    %388 = vector.load %arg11[%c1_192, %c0_193, %c0_194] : memref<2x8x32xf32, #tpu.memory_space<vmem>>, vector<1x8x32xf32>
    %389 = vector.shape_cast %388 : vector<1x8x32xf32> to vector<8x32xf32>
    %390 = vector.shape_cast %384 : vector<8x32xf32> to vector<1x8x32xf32>
    tpu.vector_store %arg11[%c1_192, %c0_193, %c0_194], %390 {strides = array<i32>} : memref<2x8x32xf32, #tpu.memory_space<vmem>>, vector<1x8x32xf32>,
    %c1_195 = arith.constant 1 : index
    %c0_196 = arith.constant 0 : index
    %c0_197 = arith.constant 0 : index
    %391 = vector.load %arg12[%c1_195, %c0_196, %c0_197] : memref<2x8x32xf32, #tpu.memory_space<vmem>>, vector<1x8x32xf32>
    %392 = vector.shape_cast %391 : vector<1x8x32xf32> to vector<8x32xf32>
    %393 = vector.shape_cast %387 : vector<8x32xf32> to vector<1x8x32xf32>
    tpu.vector_store %arg12[%c1_195, %c0_196, %c0_197], %393 {strides = array<i32>} : memref<2x8x32xf32, #tpu.memory_space<vmem>>, vector<1x8x32xf32>,
    %394 = arith.index_cast %c3_i32 : i32 to index
    %c0_198 = arith.constant 0 : index
    %c0_199 = arith.constant 0 : index
    %395 = vector.load %arg8[%394, %c0_198, %c0_199] : memref<6x8x32xf32, #tpu.memory_space<vmem>>, vector<1x8x32xf32>
    %396 = vector.shape_cast %395 : vector<1x8x32xf32> to vector<8x32xf32>
    %397 = vector.shape_cast %384 : vector<8x32xf32> to vector<1x8x32xf32>
    tpu.vector_store %arg8[%394, %c0_198, %c0_199], %397 {strides = array<i32>} : memref<6x8x32xf32, #tpu.memory_space<vmem>>, vector<1x8x32xf32>,
    %c4_i32 = arith.constant 4 : i32
    %c6_i32_200 = arith.constant 6 : i32
    %398 = arith.muli %arg0, %c6_i32_200 : i32
    %399 = arith.addi %398, %c4_i32 : i32
    %400 = vector.broadcast %399 : i32 to vector<8x1xi32>
    %401 = arith.cmpi slt, %400, %3 : vector<8x1xi32>
    %402 = arith.index_cast %c4_i32 : i32 to index
    %c0_201 = arith.constant 0 : index
    %c0_202 = arith.constant 0 : index
    %403 = vector.load %arg2[%402, %c0_201, %c0_202] : memref<6x8x128xf32, #tpu.memory_space<vmem>>, vector<1x8x128xf32>
    %404 = vector.shape_cast %403 : vector<1x8x128xf32> to vector<8x128xf32>
    %c0_203 = arith.constant 0 : index
    %c0_204 = arith.constant 0 : index
    %c0_205 = arith.constant 0 : index
    %405 = vector.load %arg11[%c0_203, %c0_204, %c0_205] : memref<2x8x32xf32, #tpu.memory_space<vmem>>, vector<1x8x32xf32>
    %406 = vector.shape_cast %405 : vector<1x8x32xf32> to vector<8x32xf32>
    %c0_206 = arith.constant 0 : index
    %c0_207 = arith.constant 0 : index
    %c0_208 = arith.constant 0 : index
    %407 = vector.load %arg12[%c0_206, %c0_207, %c0_208] : memref<2x8x32xf32, #tpu.memory_space<vmem>>, vector<1x8x32xf32>
    %408 = vector.shape_cast %407 : vector<1x8x32xf32> to vector<8x32xf32>
    %409 = arith.truncf %406 : vector<8x32xf32> to vector<8x32xbf16>
    %c0_209 = arith.constant 0 : index
    %c0_210 = arith.constant 0 : index
    %c0_211 = arith.constant 0 : index
    %410 = vector.load %arg4[%c0_209, %c0_210, %c0_211] : memref<2x32x128xbf16, #tpu.memory_space<vmem>>, vector<1x32x128xbf16>
    %411 = vector.shape_cast %410 : vector<1x32x128xbf16> to vector<32x128xbf16>
    %cst_212 = arith.constant dense<0.000000e+00> : vector<8x128xf32>
    %412 = tpu.matmul %409, %411, %cst_212 {dimension_numbers = #tpu.dot_dimension_numbers<[1], [0], [0], [1], [0, 0, 1, 1], [], []>} : vector<8x32xbf16>, vector<32x128xbf16>, vector<8x128xf32> -> vector<8x128xf32>
    %413 = arith.addf %404, %412 : vector<8x128xf32>
    %cst_213 = arith.constant 5.000000e-01 : f32
    %414 = vector.broadcast %cst_213 : f32 to vector<8x128xf32>
    %415 = arith.mulf %414, %413 : vector<8x128xf32>
    %416 = arith.select %9, %413, %415 : vector<8x128xi1>, vector<8x128xf32>
    %417 = math.tanh %416 : vector<8x128xf32>
    %cst_214 = arith.constant 5.000000e-01 : f32
    %418 = vector.broadcast %cst_214 : f32 to vector<8x128xf32>
    %419 = arith.mulf %418, %417 : vector<8x128xf32>
    %cst_215 = arith.constant 5.000000e-01 : f32
    %420 = vector.broadcast %cst_215 : f32 to vector<8x128xf32>
    %421 = arith.addf %419, %420 : vector<8x128xf32>
    %422 = arith.select %9, %417, %421 : vector<8x128xi1>, vector<8x128xf32>
    %423 = vector.extract_strided_slice %422 {offsets = [0, 0], sizes = [8, 32], strides = [1, 1]} : vector<8x128xf32> to vector<8x32xf32>
    %424 = vector.extract_strided_slice %422 {offsets = [0, 32], sizes = [8, 32], strides = [1, 1]} : vector<8x128xf32> to vector<8x32xf32>
    %425 = vector.extract_strided_slice %422 {offsets = [0, 64], sizes = [8, 32], strides = [1, 1]} : vector<8x128xf32> to vector<8x32xf32>
    %426 = vector.extract_strided_slice %422 {offsets = [0, 96], sizes = [8, 32], strides = [1, 1]} : vector<8x128xf32> to vector<8x32xf32>
    %427 = arith.mulf %424, %408 : vector<8x32xf32>
    %428 = arith.mulf %423, %425 : vector<8x32xf32>
    %429 = arith.addf %427, %428 : vector<8x32xf32>
    %430 = math.tanh %429 : vector<8x32xf32>
    %431 = arith.mulf %426, %430 : vector<8x32xf32>
    %432 = vector.shape_cast %401 : vector<8x1xi1> to vector<8x1xi1>
    %433 = vector.broadcast %432 : vector<8x1xi1> to vector<8x32xi1>
    %434 = arith.select %433, %431, %406 : vector<8x32xi1>, vector<8x32xf32>
    %435 = vector.shape_cast %401 : vector<8x1xi1> to vector<8x1xi1>
    %436 = vector.broadcast %435 : vector<8x1xi1> to vector<8x32xi1>
    %437 = arith.select %436, %429, %408 : vector<8x32xi1>, vector<8x32xf32>
    %c0_216 = arith.constant 0 : index
    %c0_217 = arith.constant 0 : index
    %c0_218 = arith.constant 0 : index
    %438 = vector.load %arg11[%c0_216, %c0_217, %c0_218] : memref<2x8x32xf32, #tpu.memory_space<vmem>>, vector<1x8x32xf32>
    %439 = vector.shape_cast %438 : vector<1x8x32xf32> to vector<8x32xf32>
    %440 = vector.shape_cast %434 : vector<8x32xf32> to vector<1x8x32xf32>
    tpu.vector_store %arg11[%c0_216, %c0_217, %c0_218], %440 {strides = array<i32>} : memref<2x8x32xf32, #tpu.memory_space<vmem>>, vector<1x8x32xf32>,
    %c0_219 = arith.constant 0 : index
    %c0_220 = arith.constant 0 : index
    %c0_221 = arith.constant 0 : index
    %441 = vector.load %arg12[%c0_219, %c0_220, %c0_221] : memref<2x8x32xf32, #tpu.memory_space<vmem>>, vector<1x8x32xf32>
    %442 = vector.shape_cast %441 : vector<1x8x32xf32> to vector<8x32xf32>
    %443 = vector.shape_cast %437 : vector<8x32xf32> to vector<1x8x32xf32>
    tpu.vector_store %arg12[%c0_219, %c0_220, %c0_221], %443 {strides = array<i32>} : memref<2x8x32xf32, #tpu.memory_space<vmem>>, vector<1x8x32xf32>,
    %c1_222 = arith.constant 1 : index
    %c0_223 = arith.constant 0 : index
    %c0_224 = arith.constant 0 : index
    %444 = vector.load %arg11[%c1_222, %c0_223, %c0_224] : memref<2x8x32xf32, #tpu.memory_space<vmem>>, vector<1x8x32xf32>
    %445 = vector.shape_cast %444 : vector<1x8x32xf32> to vector<8x32xf32>
    %c1_225 = arith.constant 1 : index
    %c0_226 = arith.constant 0 : index
    %c0_227 = arith.constant 0 : index
    %446 = vector.load %arg12[%c1_225, %c0_226, %c0_227] : memref<2x8x32xf32, #tpu.memory_space<vmem>>, vector<1x8x32xf32>
    %447 = vector.shape_cast %446 : vector<1x8x32xf32> to vector<8x32xf32>
    %448 = arith.truncf %445 : vector<8x32xf32> to vector<8x32xbf16>
    %c1_228 = arith.constant 1 : index
    %c0_229 = arith.constant 0 : index
    %c0_230 = arith.constant 0 : index
    %449 = vector.load %arg4[%c1_228, %c0_229, %c0_230] : memref<2x32x128xbf16, #tpu.memory_space<vmem>>, vector<1x32x128xbf16>
    %450 = vector.shape_cast %449 : vector<1x32x128xbf16> to vector<32x128xbf16>
    %cst_231 = arith.constant dense<0.000000e+00> : vector<8x128xf32>
    %451 = tpu.matmul %448, %450, %cst_231 {dimension_numbers = #tpu.dot_dimension_numbers<[1], [0], [0], [1], [0, 0, 1, 1], [], []>} : vector<8x32xbf16>, vector<32x128xbf16>, vector<8x128xf32> -> vector<8x128xf32>
    %c0_232 = arith.constant 0 : index
    %c0_233 = arith.constant 0 : index
    %c0_234 = arith.constant 0 : index
    %452 = vector.load %arg5[%c0_232, %c0_233, %c0_234] : memref<1x1x128xf32, #tpu.memory_space<vmem>>, vector<1x1x128xf32>
    %453 = vector.shape_cast %452 : vector<1x1x128xf32> to vector<1x128xf32>
    %454 = arith.truncf %434 : vector<8x32xf32> to vector<8x32xbf16>
    %c0_235 = arith.constant 0 : index
    %c0_236 = arith.constant 0 : index
    %c0_237 = arith.constant 0 : index
    %455 = vector.load %arg3[%c0_235, %c0_236, %c0_237] : memref<1x32x128xbf16, #tpu.memory_space<vmem>>, vector<1x32x128xbf16>
    %456 = vector.shape_cast %455 : vector<1x32x128xbf16> to vector<32x128xbf16>
    %cst_238 = arith.constant dense<0.000000e+00> : vector<8x128xf32>
    %457 = tpu.matmul %454, %456, %cst_238 {dimension_numbers = #tpu.dot_dimension_numbers<[1], [0], [0], [1], [0, 0, 1, 1], [], []>} : vector<8x32xbf16>, vector<32x128xbf16>, vector<8x128xf32> -> vector<8x128xf32>
    %458 = vector.broadcast %453 : vector<1x128xf32> to vector<8x128xf32>
    %459 = arith.addf %458, %457 : vector<8x128xf32>
    %460 = arith.addf %459, %451 : vector<8x128xf32>
    %cst_239 = arith.constant 5.000000e-01 : f32
    %461 = vector.broadcast %cst_239 : f32 to vector<8x128xf32>
    %462 = arith.mulf %461, %460 : vector<8x128xf32>
    %463 = arith.select %9, %460, %462 : vector<8x128xi1>, vector<8x128xf32>
    %464 = math.tanh %463 : vector<8x128xf32>
    %cst_240 = arith.constant 5.000000e-01 : f32
    %465 = vector.broadcast %cst_240 : f32 to vector<8x128xf32>
    %466 = arith.mulf %465, %464 : vector<8x128xf32>
    %cst_241 = arith.constant 5.000000e-01 : f32
    %467 = vector.broadcast %cst_241 : f32 to vector<8x128xf32>
    %468 = arith.addf %466, %467 : vector<8x128xf32>
    %469 = arith.select %9, %464, %468 : vector<8x128xi1>, vector<8x128xf32>
    %470 = vector.extract_strided_slice %469 {offsets = [0, 0], sizes = [8, 32], strides = [1, 1]} : vector<8x128xf32> to vector<8x32xf32>
    %471 = vector.extract_strided_slice %469 {offsets = [0, 32], sizes = [8, 32], strides = [1, 1]} : vector<8x128xf32> to vector<8x32xf32>
    %472 = vector.extract_strided_slice %469 {offsets = [0, 64], sizes = [8, 32], strides = [1, 1]} : vector<8x128xf32> to vector<8x32xf32>
    %473 = vector.extract_strided_slice %469 {offsets = [0, 96], sizes = [8, 32], strides = [1, 1]} : vector<8x128xf32> to vector<8x32xf32>
    %474 = arith.mulf %471, %447 : vector<8x32xf32>
    %475 = arith.mulf %470, %472 : vector<8x32xf32>
    %476 = arith.addf %474, %475 : vector<8x32xf32>
    %477 = math.tanh %476 : vector<8x32xf32>
    %478 = arith.mulf %473, %477 : vector<8x32xf32>
    %479 = vector.shape_cast %401 : vector<8x1xi1> to vector<8x1xi1>
    %480 = vector.broadcast %479 : vector<8x1xi1> to vector<8x32xi1>
    %481 = arith.select %480, %478, %445 : vector<8x32xi1>, vector<8x32xf32>
    %482 = vector.shape_cast %401 : vector<8x1xi1> to vector<8x1xi1>
    %483 = vector.broadcast %482 : vector<8x1xi1> to vector<8x32xi1>
    %484 = arith.select %483, %476, %447 : vector<8x32xi1>, vector<8x32xf32>
    %c1_242 = arith.constant 1 : index
    %c0_243 = arith.constant 0 : index
    %c0_244 = arith.constant 0 : index
    %485 = vector.load %arg11[%c1_242, %c0_243, %c0_244] : memref<2x8x32xf32, #tpu.memory_space<vmem>>, vector<1x8x32xf32>
    %486 = vector.shape_cast %485 : vector<1x8x32xf32> to vector<8x32xf32>
    %487 = vector.shape_cast %481 : vector<8x32xf32> to vector<1x8x32xf32>
    tpu.vector_store %arg11[%c1_242, %c0_243, %c0_244], %487 {strides = array<i32>} : memref<2x8x32xf32, #tpu.memory_space<vmem>>, vector<1x8x32xf32>,
    %c1_245 = arith.constant 1 : index
    %c0_246 = arith.constant 0 : index
    %c0_247 = arith.constant 0 : index
    %488 = vector.load %arg12[%c1_245, %c0_246, %c0_247] : memref<2x8x32xf32, #tpu.memory_space<vmem>>, vector<1x8x32xf32>
    %489 = vector.shape_cast %488 : vector<1x8x32xf32> to vector<8x32xf32>
    %490 = vector.shape_cast %484 : vector<8x32xf32> to vector<1x8x32xf32>
    tpu.vector_store %arg12[%c1_245, %c0_246, %c0_247], %490 {strides = array<i32>} : memref<2x8x32xf32, #tpu.memory_space<vmem>>, vector<1x8x32xf32>,
    %491 = arith.index_cast %c4_i32 : i32 to index
    %c0_248 = arith.constant 0 : index
    %c0_249 = arith.constant 0 : index
    %492 = vector.load %arg8[%491, %c0_248, %c0_249] : memref<6x8x32xf32, #tpu.memory_space<vmem>>, vector<1x8x32xf32>
    %493 = vector.shape_cast %492 : vector<1x8x32xf32> to vector<8x32xf32>
    %494 = vector.shape_cast %481 : vector<8x32xf32> to vector<1x8x32xf32>
    tpu.vector_store %arg8[%491, %c0_248, %c0_249], %494 {strides = array<i32>} : memref<6x8x32xf32, #tpu.memory_space<vmem>>, vector<1x8x32xf32>,
    %c5_i32 = arith.constant 5 : i32
    %c6_i32_250 = arith.constant 6 : i32
    %495 = arith.muli %arg0, %c6_i32_250 : i32
    %496 = arith.addi %495, %c5_i32 : i32
    %497 = vector.broadcast %496 : i32 to vector<8x1xi32>
    %498 = arith.cmpi slt, %497, %3 : vector<8x1xi32>
    %499 = arith.index_cast %c5_i32 : i32 to index
    %c0_251 = arith.constant 0 : index
    %c0_252 = arith.constant 0 : index
    %500 = vector.load %arg2[%499, %c0_251, %c0_252] : memref<6x8x128xf32, #tpu.memory_space<vmem>>, vector<1x8x128xf32>
    %501 = vector.shape_cast %500 : vector<1x8x128xf32> to vector<8x128xf32>
    %c0_253 = arith.constant 0 : index
    %c0_254 = arith.constant 0 : index
    %c0_255 = arith.constant 0 : index
    %502 = vector.load %arg11[%c0_253, %c0_254, %c0_255] : memref<2x8x32xf32, #tpu.memory_space<vmem>>, vector<1x8x32xf32>
    %503 = vector.shape_cast %502 : vector<1x8x32xf32> to vector<8x32xf32>
    %c0_256 = arith.constant 0 : index
    %c0_257 = arith.constant 0 : index
    %c0_258 = arith.constant 0 : index
    %504 = vector.load %arg12[%c0_256, %c0_257, %c0_258] : memref<2x8x32xf32, #tpu.memory_space<vmem>>, vector<1x8x32xf32>
    %505 = vector.shape_cast %504 : vector<1x8x32xf32> to vector<8x32xf32>
    %506 = arith.truncf %503 : vector<8x32xf32> to vector<8x32xbf16>
    %c0_259 = arith.constant 0 : index
    %c0_260 = arith.constant 0 : index
    %c0_261 = arith.constant 0 : index
    %507 = vector.load %arg4[%c0_259, %c0_260, %c0_261] : memref<2x32x128xbf16, #tpu.memory_space<vmem>>, vector<1x32x128xbf16>
    %508 = vector.shape_cast %507 : vector<1x32x128xbf16> to vector<32x128xbf16>
    %cst_262 = arith.constant dense<0.000000e+00> : vector<8x128xf32>
    %509 = tpu.matmul %506, %508, %cst_262 {dimension_numbers = #tpu.dot_dimension_numbers<[1], [0], [0], [1], [0, 0, 1, 1], [], []>} : vector<8x32xbf16>, vector<32x128xbf16>, vector<8x128xf32> -> vector<8x128xf32>
    %510 = arith.addf %501, %509 : vector<8x128xf32>
    %cst_263 = arith.constant 5.000000e-01 : f32
    %511 = vector.broadcast %cst_263 : f32 to vector<8x128xf32>
    %512 = arith.mulf %511, %510 : vector<8x128xf32>
    %513 = arith.select %9, %510, %512 : vector<8x128xi1>, vector<8x128xf32>
    %514 = math.tanh %513 : vector<8x128xf32>
    %cst_264 = arith.constant 5.000000e-01 : f32
    %515 = vector.broadcast %cst_264 : f32 to vector<8x128xf32>
    %516 = arith.mulf %515, %514 : vector<8x128xf32>
    %cst_265 = arith.constant 5.000000e-01 : f32
    %517 = vector.broadcast %cst_265 : f32 to vector<8x128xf32>
    %518 = arith.addf %516, %517 : vector<8x128xf32>
    %519 = arith.select %9, %514, %518 : vector<8x128xi1>, vector<8x128xf32>
    %520 = vector.extract_strided_slice %519 {offsets = [0, 0], sizes = [8, 32], strides = [1, 1]} : vector<8x128xf32> to vector<8x32xf32>
    %521 = vector.extract_strided_slice %519 {offsets = [0, 32], sizes = [8, 32], strides = [1, 1]} : vector<8x128xf32> to vector<8x32xf32>
    %522 = vector.extract_strided_slice %519 {offsets = [0, 64], sizes = [8, 32], strides = [1, 1]} : vector<8x128xf32> to vector<8x32xf32>
    %523 = vector.extract_strided_slice %519 {offsets = [0, 96], sizes = [8, 32], strides = [1, 1]} : vector<8x128xf32> to vector<8x32xf32>
    %524 = arith.mulf %521, %505 : vector<8x32xf32>
    %525 = arith.mulf %520, %522 : vector<8x32xf32>
    %526 = arith.addf %524, %525 : vector<8x32xf32>
    %527 = math.tanh %526 : vector<8x32xf32>
    %528 = arith.mulf %523, %527 : vector<8x32xf32>
    %529 = vector.shape_cast %498 : vector<8x1xi1> to vector<8x1xi1>
    %530 = vector.broadcast %529 : vector<8x1xi1> to vector<8x32xi1>
    %531 = arith.select %530, %528, %503 : vector<8x32xi1>, vector<8x32xf32>
    %532 = vector.shape_cast %498 : vector<8x1xi1> to vector<8x1xi1>
    %533 = vector.broadcast %532 : vector<8x1xi1> to vector<8x32xi1>
    %534 = arith.select %533, %526, %505 : vector<8x32xi1>, vector<8x32xf32>
    %c0_266 = arith.constant 0 : index
    %c0_267 = arith.constant 0 : index
    %c0_268 = arith.constant 0 : index
    %535 = vector.load %arg11[%c0_266, %c0_267, %c0_268] : memref<2x8x32xf32, #tpu.memory_space<vmem>>, vector<1x8x32xf32>
    %536 = vector.shape_cast %535 : vector<1x8x32xf32> to vector<8x32xf32>
    %537 = vector.shape_cast %531 : vector<8x32xf32> to vector<1x8x32xf32>
    tpu.vector_store %arg11[%c0_266, %c0_267, %c0_268], %537 {strides = array<i32>} : memref<2x8x32xf32, #tpu.memory_space<vmem>>, vector<1x8x32xf32>,
    %c0_269 = arith.constant 0 : index
    %c0_270 = arith.constant 0 : index
    %c0_271 = arith.constant 0 : index
    %538 = vector.load %arg12[%c0_269, %c0_270, %c0_271] : memref<2x8x32xf32, #tpu.memory_space<vmem>>, vector<1x8x32xf32>
    %539 = vector.shape_cast %538 : vector<1x8x32xf32> to vector<8x32xf32>
    %540 = vector.shape_cast %534 : vector<8x32xf32> to vector<1x8x32xf32>
    tpu.vector_store %arg12[%c0_269, %c0_270, %c0_271], %540 {strides = array<i32>} : memref<2x8x32xf32, #tpu.memory_space<vmem>>, vector<1x8x32xf32>,
    %c1_272 = arith.constant 1 : index
    %c0_273 = arith.constant 0 : index
    %c0_274 = arith.constant 0 : index
    %541 = vector.load %arg11[%c1_272, %c0_273, %c0_274] : memref<2x8x32xf32, #tpu.memory_space<vmem>>, vector<1x8x32xf32>
    %542 = vector.shape_cast %541 : vector<1x8x32xf32> to vector<8x32xf32>
    %c1_275 = arith.constant 1 : index
    %c0_276 = arith.constant 0 : index
    %c0_277 = arith.constant 0 : index
    %543 = vector.load %arg12[%c1_275, %c0_276, %c0_277] : memref<2x8x32xf32, #tpu.memory_space<vmem>>, vector<1x8x32xf32>
    %544 = vector.shape_cast %543 : vector<1x8x32xf32> to vector<8x32xf32>
    %545 = arith.truncf %542 : vector<8x32xf32> to vector<8x32xbf16>
    %c1_278 = arith.constant 1 : index
    %c0_279 = arith.constant 0 : index
    %c0_280 = arith.constant 0 : index
    %546 = vector.load %arg4[%c1_278, %c0_279, %c0_280] : memref<2x32x128xbf16, #tpu.memory_space<vmem>>, vector<1x32x128xbf16>
    %547 = vector.shape_cast %546 : vector<1x32x128xbf16> to vector<32x128xbf16>
    %cst_281 = arith.constant dense<0.000000e+00> : vector<8x128xf32>
    %548 = tpu.matmul %545, %547, %cst_281 {dimension_numbers = #tpu.dot_dimension_numbers<[1], [0], [0], [1], [0, 0, 1, 1], [], []>} : vector<8x32xbf16>, vector<32x128xbf16>, vector<8x128xf32> -> vector<8x128xf32>
    %c0_282 = arith.constant 0 : index
    %c0_283 = arith.constant 0 : index
    %c0_284 = arith.constant 0 : index
    %549 = vector.load %arg5[%c0_282, %c0_283, %c0_284] : memref<1x1x128xf32, #tpu.memory_space<vmem>>, vector<1x1x128xf32>
    %550 = vector.shape_cast %549 : vector<1x1x128xf32> to vector<1x128xf32>
    %551 = arith.truncf %531 : vector<8x32xf32> to vector<8x32xbf16>
    %c0_285 = arith.constant 0 : index
    %c0_286 = arith.constant 0 : index
    %c0_287 = arith.constant 0 : index
    %552 = vector.load %arg3[%c0_285, %c0_286, %c0_287] : memref<1x32x128xbf16, #tpu.memory_space<vmem>>, vector<1x32x128xbf16>
    %553 = vector.shape_cast %552 : vector<1x32x128xbf16> to vector<32x128xbf16>
    %cst_288 = arith.constant dense<0.000000e+00> : vector<8x128xf32>
    %554 = tpu.matmul %551, %553, %cst_288 {dimension_numbers = #tpu.dot_dimension_numbers<[1], [0], [0], [1], [0, 0, 1, 1], [], []>} : vector<8x32xbf16>, vector<32x128xbf16>, vector<8x128xf32> -> vector<8x128xf32>
    %555 = vector.broadcast %550 : vector<1x128xf32> to vector<8x128xf32>
    %556 = arith.addf %555, %554 : vector<8x128xf32>
    %557 = arith.addf %556, %548 : vector<8x128xf32>
    %cst_289 = arith.constant 5.000000e-01 : f32
    %558 = vector.broadcast %cst_289 : f32 to vector<8x128xf32>
    %559 = arith.mulf %558, %557 : vector<8x128xf32>
    %560 = arith.select %9, %557, %559 : vector<8x128xi1>, vector<8x128xf32>
    %561 = math.tanh %560 : vector<8x128xf32>
    %cst_290 = arith.constant 5.000000e-01 : f32
    %562 = vector.broadcast %cst_290 : f32 to vector<8x128xf32>
    %563 = arith.mulf %562, %561 : vector<8x128xf32>
    %cst_291 = arith.constant 5.000000e-01 : f32
    %564 = vector.broadcast %cst_291 : f32 to vector<8x128xf32>
    %565 = arith.addf %563, %564 : vector<8x128xf32>
    %566 = arith.select %9, %561, %565 : vector<8x128xi1>, vector<8x128xf32>
    %567 = vector.extract_strided_slice %566 {offsets = [0, 0], sizes = [8, 32], strides = [1, 1]} : vector<8x128xf32> to vector<8x32xf32>
    %568 = vector.extract_strided_slice %566 {offsets = [0, 32], sizes = [8, 32], strides = [1, 1]} : vector<8x128xf32> to vector<8x32xf32>
    %569 = vector.extract_strided_slice %566 {offsets = [0, 64], sizes = [8, 32], strides = [1, 1]} : vector<8x128xf32> to vector<8x32xf32>
    %570 = vector.extract_strided_slice %566 {offsets = [0, 96], sizes = [8, 32], strides = [1, 1]} : vector<8x128xf32> to vector<8x32xf32>
    %571 = arith.mulf %568, %544 : vector<8x32xf32>
    %572 = arith.mulf %567, %569 : vector<8x32xf32>
    %573 = arith.addf %571, %572 : vector<8x32xf32>
    %574 = math.tanh %573 : vector<8x32xf32>
    %575 = arith.mulf %570, %574 : vector<8x32xf32>
    %576 = vector.shape_cast %498 : vector<8x1xi1> to vector<8x1xi1>
    %577 = vector.broadcast %576 : vector<8x1xi1> to vector<8x32xi1>
    %578 = arith.select %577, %575, %542 : vector<8x32xi1>, vector<8x32xf32>
    %579 = vector.shape_cast %498 : vector<8x1xi1> to vector<8x1xi1>
    %580 = vector.broadcast %579 : vector<8x1xi1> to vector<8x32xi1>
    %581 = arith.select %580, %573, %544 : vector<8x32xi1>, vector<8x32xf32>
    %c1_292 = arith.constant 1 : index
    %c0_293 = arith.constant 0 : index
    %c0_294 = arith.constant 0 : index
    %582 = vector.load %arg11[%c1_292, %c0_293, %c0_294] : memref<2x8x32xf32, #tpu.memory_space<vmem>>, vector<1x8x32xf32>
    %583 = vector.shape_cast %582 : vector<1x8x32xf32> to vector<8x32xf32>
    %584 = vector.shape_cast %578 : vector<8x32xf32> to vector<1x8x32xf32>
    tpu.vector_store %arg11[%c1_292, %c0_293, %c0_294], %584 {strides = array<i32>} : memref<2x8x32xf32, #tpu.memory_space<vmem>>, vector<1x8x32xf32>,
    %c1_295 = arith.constant 1 : index
    %c0_296 = arith.constant 0 : index
    %c0_297 = arith.constant 0 : index
    %585 = vector.load %arg12[%c1_295, %c0_296, %c0_297] : memref<2x8x32xf32, #tpu.memory_space<vmem>>, vector<1x8x32xf32>
    %586 = vector.shape_cast %585 : vector<1x8x32xf32> to vector<8x32xf32>
    %587 = vector.shape_cast %581 : vector<8x32xf32> to vector<1x8x32xf32>
    tpu.vector_store %arg12[%c1_295, %c0_296, %c0_297], %587 {strides = array<i32>} : memref<2x8x32xf32, #tpu.memory_space<vmem>>, vector<1x8x32xf32>,
    %588 = arith.index_cast %c5_i32 : i32 to index
    %c0_298 = arith.constant 0 : index
    %c0_299 = arith.constant 0 : index
    %589 = vector.load %arg8[%588, %c0_298, %c0_299] : memref<6x8x32xf32, #tpu.memory_space<vmem>>, vector<1x8x32xf32>
    %590 = vector.shape_cast %589 : vector<1x8x32xf32> to vector<8x32xf32>
    %591 = vector.shape_cast %578 : vector<8x32xf32> to vector<1x8x32xf32>
    tpu.vector_store %arg8[%588, %c0_298, %c0_299], %591 {strides = array<i32>} : memref<6x8x32xf32, #tpu.memory_space<vmem>>, vector<1x8x32xf32>,
    %c6_i32_300 = arith.constant 6 : i32
    %c0_i32_301 = arith.constant 0 : i32
    %592 = arith.cmpi eq, %arg0, %c0_i32_301 : i32
    %593 = arith.extui %592 : i1 to i32
    %c0_i32_302 = arith.constant 0 : i32
    %594 = arith.cmpi ne, %593, %c0_i32_302 : i32
    scf.if %594 {
      %c0_303 = arith.constant 0 : index
      %c0_304 = arith.constant 0 : index
      %c0_305 = arith.constant 0 : index
      %595 = vector.load %arg11[%c0_303, %c0_304, %c0_305] : memref<2x8x32xf32, #tpu.memory_space<vmem>>, vector<2x8x32xf32>
      %c0_306 = arith.constant 0 : index
      %c0_307 = arith.constant 0 : index
      %c0_308 = arith.constant 0 : index
      %596 = vector.load %arg9[%c0_306, %c0_307, %c0_308] : memref<2x8x32xf32, #tpu.memory_space<vmem>>, vector<2x8x32xf32>
      tpu.vector_store %arg9[%c0_306, %c0_307, %c0_308], %595 {strides = array<i32>} : memref<2x8x32xf32, #tpu.memory_space<vmem>>, vector<2x8x32xf32>,
      %c0_309 = arith.constant 0 : index
      %c0_310 = arith.constant 0 : index
      %c0_311 = arith.constant 0 : index
      %597 = vector.load %arg12[%c0_309, %c0_310, %c0_311] : memref<2x8x32xf32, #tpu.memory_space<vmem>>, vector<2x8x32xf32>
      %c0_312 = arith.constant 0 : index
      %c0_313 = arith.constant 0 : index
      %c0_314 = arith.constant 0 : index
      %598 = vector.load %arg10[%c0_312, %c0_313, %c0_314] : memref<2x8x32xf32, #tpu.memory_space<vmem>>, vector<2x8x32xf32>
      tpu.vector_store %arg10[%c0_312, %c0_313, %c0_314], %597 {strides = array<i32>} : memref<2x8x32xf32, #tpu.memory_space<vmem>>, vector<2x8x32xf32>,
    } else {
    }
    return
  }
  func.func @transform_0(%arg0: i32) -> (i32, i32) {
    %c0_i32 = arith.constant 0 : i32
    %c0_i32_0 = arith.constant 0 : i32
    %c0_i32_1 = arith.constant 0 : i32
    return %c0_i32, %c0_i32_0 : i32, i32
  }
  func.func @transform_1(%arg0: i32) -> (i32, i32, i32) {
    %c0_i32 = arith.constant 0 : i32
    %c0_i32_0 = arith.constant 0 : i32
    %c0_i32_1 = arith.constant 0 : i32
    return %arg0, %c0_i32, %c0_i32_0 : i32, i32, i32
  }
  func.func @transform_2(%arg0: i32) -> (i32, i32, i32) {
    %c0_i32 = arith.constant 0 : i32
    %c0_i32_0 = arith.constant 0 : i32
    %c0_i32_1 = arith.constant 0 : i32
    %c0_i32_2 = arith.constant 0 : i32
    return %c0_i32, %c0_i32_0, %c0_i32_1 : i32, i32, i32
  }
  func.func @transform_3(%arg0: i32) -> (i32, i32, i32) {
    %c0_i32 = arith.constant 0 : i32
    %c0_i32_0 = arith.constant 0 : i32
    %c0_i32_1 = arith.constant 0 : i32
    %c0_i32_2 = arith.constant 0 : i32
    return %c0_i32, %c0_i32_0, %c0_i32_1 : i32, i32, i32
  }
  func.func @transform_4(%arg0: i32) -> (i32, i32, i32) {
    %c0_i32 = arith.constant 0 : i32
    %c0_i32_0 = arith.constant 0 : i32
    %c0_i32_1 = arith.constant 0 : i32
    %c0_i32_2 = arith.constant 0 : i32
    return %c0_i32, %c0_i32_0, %c0_i32_1 : i32, i32, i32
  }
  func.func @transform_5(%arg0: i32) -> (i32, i32, i32) {
    %c0_i32 = arith.constant 0 : i32
    %c0_i32_0 = arith.constant 0 : i32
    %c0_i32_1 = arith.constant 0 : i32
    %c0_i32_2 = arith.constant 0 : i32
    return %c0_i32, %c0_i32_0, %c0_i32_1 : i32, i32, i32
  }
  func.func @transform_6(%arg0: i32) -> (i32, i32, i32) {
    %c0_i32 = arith.constant 0 : i32
    %c0_i32_0 = arith.constant 0 : i32
    %c0_i32_1 = arith.constant 0 : i32
    %c0_i32_2 = arith.constant 0 : i32
    return %c0_i32, %c0_i32_0, %c0_i32_1 : i32, i32, i32
  }
  func.func @transform_7(%arg0: i32) -> (i32, i32, i32) {
    %c0_i32 = arith.constant 0 : i32
    %c0_i32_0 = arith.constant 0 : i32
    %c0_i32_1 = arith.constant 0 : i32
    return %arg0, %c0_i32, %c0_i32_0 : i32, i32, i32
  }
  func.func @transform_8(%arg0: i32) -> (i32, i32, i32) {
    %c0_i32 = arith.constant 0 : i32
    %c0_i32_0 = arith.constant 0 : i32
    %c0_i32_1 = arith.constant 0 : i32
    %c0_i32_2 = arith.constant 0 : i32
    return %c0_i32, %c0_i32_0, %c0_i32_1 : i32, i32, i32
  }
  func.func @transform_9(%arg0: i32) -> (i32, i32, i32) {
    %c0_i32 = arith.constant 0 : i32
    %c0_i32_0 = arith.constant 0 : i32
    %c0_i32_1 = arith.constant 0 : i32
    %c0_i32_2 = arith.constant 0 : i32
    return %c0_i32, %c0_i32_0, %c0_i32_1 : i32, i32, i32
  }
}

</mosaic_0001>

<bundles_post_ra>
// kernel: seq2seq_forward.5
= control target key start
LH: loop header
LB: loop body
LE: loop exit
PB: predicated region body
PF: predicated region fallthrough
CT: control target
= control target key end

     0   :  { %vm39_vm0 = vcmask 130048   ;;  %s180_s1 = inlined_call_operand.vmem [shape: bf16[16,128], index: 1, kind: input, shape index: {}]   ;;  %s181_s0 = inlined_call_operand.vmem [shape: f32[64,16], index: 0, kind: input, shape index: {}]   ;;  %s182_s2 = inlined_call_operand.vmem [shape: f32[1,128], index: 2, kind: input, shape index: {}]   ;;  %s183_s3 = inlined_call_operand.vmem [shape: f32[64,128], index: 3, kind: output, shape index: {}]  }
   0x1   :  { %v101_v0 = vld [vmem:[%s180_s1] sm:$0xff]  ;;  %v16_v2 = vld [vmem:[%s181_s0 + $0x8] sm:$0xff]  ;;  %v17_v4 = vld [vmem:[%s181_s0 + $0x10] sm:$0xff] }
   0x2   :  { %v15_v1 = vld [vmem:[%s181_s0] sm:$0xff]  ;;  %v18_v5 = vld [vmem:[%s181_s0 + $0x18] sm:$0xff]  ;;  %59 = vmatpush.bf16.msra.mxu0 %v101_v0  ;;  %102 = vmatpush.bf16.msra.mxu1 %v101_v0  ;;  %v20_v8 = vld [vmem:[%s181_s0 + $0x28] sm:$0xff] }
   0x3   :  { %v23_v3 = vpack.c.bf16 %v16_v2, %v15_v1  ;;  %v19_v6 = vld [vmem:[%s181_s0 + $0x20] sm:$0xff]  ;;  %v24_v7 = vpack.c.bf16 %v18_v5, %v17_v4  ;;  %v21_v9 = vld [vmem:[%s181_s0 + $0x30] sm:$0xff]  ;;  %v22_v10 = vld [vmem:[%s181_s0 + $0x38] sm:$0xff]  ;;  %103 = vmatpush.bf16.msra.mxu2 %v101_v0  ;;  %104 = vmatpush.bf16.msra.mxu3 %v101_v0 }
   0x4   :  { %v25_v11 = vpack.c.bf16 %v20_v8, %v19_v6  ;;  %v26_v12 = vpack.c.bf16 %v22_v10, %v21_v9  ;;  %v105_v13 = vld [vmem:[%s182_s2] ss:$0 sm:$0xff] }
   0x5   :  { %97 = vmatmul.msk.bf16.vlgmr.msra.gmra.mxu0 %vm39_vm0, %v23_v3  ;;  %98 = vmatmul.msk.bf16.vlgmr.msra.gmra.mxu1 %vm39_vm0, %v24_v7 }
   0x6   :  { %99 = vmatmul.msk.bf16.vlgmr.msra.gmra.mxu2 %vm39_vm0, %v25_v11  ;;  %100 = vmatmul.msk.bf16.vlgmr.msra.gmra.mxu3 %vm39_vm0, %v26_v12 }
  0x82   :  { %v61_v14 = vpop.f32.mrf.mxu0  ;;  %v66_v15 = vpop.f32.mrf.mxu1 }
  0x83   :  { %v62_v16 = vadd.f32 %v105_v13, %v61_v14  ;;  %v67_v17 = vadd.f32 %v105_v13, %v66_v15 }
  0x85   :  { %81 = vst [vmem:[%s183_s3] sm:$0xff] %v62_v16 }
  0x86   :  { %83 = vst [vmem:[%s183_s3 + $0x10] sm:$0xff] %v67_v17 }
  0x89   :  { %v71_v18 = vpop.f32.mrf.mxu2  ;;  %v76_v19 = vpop.f32.mrf.mxu3 }
  0x8a   :  { %v72_v20 = vadd.f32 %v105_v13, %v71_v18  ;;  %v77_v21 = vadd.f32 %v105_v13, %v76_v19  ;;  %v63_v22 = vpop.f32.mrf.mxu0  ;;  %v68_v23 = vpop.f32.mrf.mxu1 }
  0x8b   :  { %v64_v24 = vadd.f32 %v105_v13, %v63_v22  ;;  %v69_v25 = vadd.f32 %v105_v13, %v68_v23 }
  0x8c   :  { %85 = vst [vmem:[%s183_s3 + $0x20] sm:$0xff] %v72_v20 }
  0x8d   :  { %87 = vst [vmem:[%s183_s3 + $0x30] sm:$0xff] %v77_v21 }
  0x8e   :  { %82 = vst [vmem:[%s183_s3 + $0x8] sm:$0xff] %v64_v24 }
  0x8f   :  { %84 = vst [vmem:[%s183_s3 + $0x18] sm:$0xff] %v69_v25 }
  0x91   :  { %v73_v26 = vpop.f32.mrf.mxu2  ;;  %v78_v27 = vpop.f32.mrf.mxu3 }
  0x92   :  { %v74_v28 = vadd.f32 %v105_v13, %v73_v26  ;;  %v79_v29 = vadd.f32 %v105_v13, %v78_v27 }
  0x94   :  { %86 = vst [vmem:[%s183_s3 + $0x28] sm:$0xff] %v74_v28 }
  0x95   :  { %88 = vst [vmem:[%s183_s3 + $0x38] sm:$0xff] %v79_v29 }

// kernel: seq2seq_forward.7
= control target key start
LH: loop header
LB: loop body
LE: loop exit
PB: predicated region body
PF: predicated region fallthrough
CT: control target
= control target key end

     0   :  { %vm36_vm0 = vcmask 130048   ;;  %s153_s1 = inlined_call_operand.vmem [shape: bf16[16,128], index: 1, kind: input, shape index: {}]   ;;  %s154_s0 = inlined_call_operand.vmem [shape: f32[48,16], index: 0, kind: input, shape index: {}]   ;;  %s155_s2 = inlined_call_operand.vmem [shape: f32[1,128], index: 2, kind: input, shape index: {}]   ;;  %s156_s3 = inlined_call_operand.vmem [shape: f32[48,128], index: 3, kind: output, shape index: {}]  }
   0x1   :  { %v87_v0 = vld [vmem:[%s153_s1] sm:$0xff]  ;;  %v16_v2 = vld [vmem:[%s154_s0 + $0x8] sm:$0xff]  ;;  %v17_v4 = vld [vmem:[%s154_s0 + $0x10] sm:$0xff] }
   0x2   :  { %v15_v1 = vld [vmem:[%s154_s0] sm:$0xff]  ;;  %v18_v5 = vld [vmem:[%s154_s0 + $0x18] sm:$0xff]  ;;  %53 = vmatpush.bf16.msra.mxu0 %v87_v0  ;;  %88 = vmatpush.bf16.msra.mxu1 %v87_v0  ;;  %v20_v8 = vld [vmem:[%s154_s0 + $0x28] sm:$0xff] }
   0x3   :  { %v21_v3 = vpack.c.bf16 %v16_v2, %v15_v1  ;;  %v19_v6 = vld [vmem:[%s154_s0 + $0x20] sm:$0xff]  ;;  %v22_v7 = vpack.c.bf16 %v18_v5, %v17_v4  ;;  %89 = vmatpush.bf16.msra.mxu2 %v87_v0 }
   0x4   :  { %v23_v9 = vpack.c.bf16 %v20_v8, %v19_v6  ;;  %v90_v10 = vld [vmem:[%s155_s2] ss:$0 sm:$0xff] }
   0x5   :  { %84 = vmatmul.msk.bf16.vlgmr.msra.gmra.mxu0 %vm36_vm0, %v21_v3  ;;  %85 = vmatmul.msk.bf16.vlgmr.msra.gmra.mxu1 %vm36_vm0, %v22_v7 }
   0x6   :  { %86 = vmatmul.msk.bf16.vlgmr.msra.gmra.mxu2 %vm36_vm0, %v23_v9 }
  0x82   :  { %v55_v11 = vpop.f32.mrf.mxu0  ;;  %v60_v12 = vpop.f32.mrf.mxu1 }
  0x83   :  { %v56_v13 = vadd.f32 %v90_v10, %v55_v11  ;;  %v61_v14 = vadd.f32 %v90_v10, %v60_v12 }
  0x85   :  { %70 = vst [vmem:[%s156_s3] sm:$0xff] %v56_v13 }
  0x86   :  { %72 = vst [vmem:[%s156_s3 + $0x10] sm:$0xff] %v61_v14 }
  0x89   :  { %v65_v15 = vpop.f32.mrf.mxu2 }
  0x8a   :  { %v66_v16 = vadd.f32 %v90_v10, %v65_v15  ;;  %v57_v17 = vpop.f32.mrf.mxu0  ;;  %v62_v18 = vpop.f32.mrf.mxu1 }
  0x8b   :  { %v58_v19 = vadd.f32 %v90_v10, %v57_v17  ;;  %v63_v20 = vadd.f32 %v90_v10, %v62_v18 }
  0x8c   :  { %74 = vst [vmem:[%s156_s3 + $0x20] sm:$0xff] %v66_v16 }
  0x8d   :  { %71 = vst [vmem:[%s156_s3 + $0x8] sm:$0xff] %v58_v19 }
  0x8e   :  { %73 = vst [vmem:[%s156_s3 + $0x18] sm:$0xff] %v63_v20 }
  0x91   :  { %v67_v21 = vpop.f32.mrf.mxu2 }
  0x92   :  { %v68_v22 = vadd.f32 %v90_v10, %v67_v21 }
  0x94   :  { %75 = vst [vmem:[%s156_s3 + $0x28] sm:$0xff] %v68_v22 }

// kernel: seq2seq_forward.9
= control target key start
LH: loop header
LB: loop body
LE: loop exit
PB: predicated region body
PF: predicated region fallthrough
CT: control target
= control target key end

     0   :  { %vm44_vm0 = vcmask 261120   ;;  %s171_s1 = inlined_call_operand.vmem [shape: bf16[32,128], index: 1, kind: input, shape index: {}]   ;;  %s172_s0 = inlined_call_operand.vmem [shape: f32[48,32], index: 0, kind: input, shape index: {}]   ;;  %s173_s2 = inlined_call_operand.vmem [shape: f32[1,128], index: 2, kind: input, shape index: {}]   ;;  %s174_s3 = inlined_call_operand.vmem [shape: f32[48,128], index: 3, kind: output, shape index: {}]  }
   0x1   :  { %v100_v0 = vld [vmem:[%s171_s1 + $0x8] sm:$0xff]  ;;  %v99_v1 = vld [vmem:[%s171_s1] sm:$0xff]  ;;  %v17_v4 = vld [vmem:[%s172_s0 + $0x10] sm:$0xff] }
   0x2   :  { %v15_v2 = vld [vmem:[%s172_s0] sm:$0xff]  ;;  %v16_v3 = vld [vmem:[%s172_s0 + $0x8] sm:$0xff]  ;;  %60 = vmatpush.bf16.msra.mxu0 %v100_v0  ;;  %101 = vmatpush.bf16.msra.mxu1 %v100_v0  ;;  %v18_v5 = vld [vmem:[%s172_s0 + $0x18] sm:$0xff] }
   0x3   :  { %102 = vmatpush.bf16.msra.mxu2 %v100_v0  ;;  %v19_v6 = vld [vmem:[%s172_s0 + $0x20] sm:$0xff]  ;;  %v20_v7 = vld [vmem:[%s172_s0 + $0x28] sm:$0xff]  ;;  %v21_v8 = vpack.c.bf16 %v16_v3, %v15_v2  ;;  %v22_v9 = vpack.c.bf16 %v18_v5, %v17_v4 }
   0x4   :  { %v23_v10 = vpack.c.bf16 %v20_v7, %v19_v6  ;;  %v105_v11 = vld [vmem:[%s173_s2] ss:$0 sm:$0xff] }
   0x6   :  { %61 = vmatpush.bf16.msra.mxu0 %v99_v1  ;;  %103 = vmatpush.bf16.msra.mxu1 %v99_v1 }
   0x7   :  { %104 = vmatpush.bf16.msra.mxu2 %v99_v1 }
   0x9   :  { %96 = vmatmul.msk.bf16.vlgmr.msra.gmra.mxu0 %vm44_vm0, %v21_v8  ;;  %97 = vmatmul.msk.bf16.vlgmr.msra.gmra.mxu1 %vm44_vm0, %v22_v9 }
   0xa   :  { %98 = vmatmul.msk.bf16.vlgmr.msra.gmra.mxu2 %vm44_vm0, %v23_v10 }
  0x86   :  { %v63_v12 = vpop.f32.mrf.mxu0  ;;  %v68_v13 = vpop.f32.mrf.mxu1 }
  0x87   :  { %v64_v14 = vadd.f32 %v105_v11, %v63_v12  ;;  %v69_v15 = vadd.f32 %v105_v11, %v68_v13 }
  0x89   :  { %78 = vst [vmem:[%s174_s3] sm:$0xff] %v64_v14 }
  0x8a   :  { %80 = vst [vmem:[%s174_s3 + $0x10] sm:$0xff] %v69_v15 }
  0x8d   :  { %v73_v16 = vpop.f32.mrf.mxu2 }
  0x8e   :  { %v74_v17 = vadd.f32 %v105_v11, %v73_v16  ;;  %v65_v18 = vpop.f32.mrf.mxu0  ;;  %v70_v19 = vpop.f32.mrf.mxu1 }
  0x8f   :  { %v66_v20 = vadd.f32 %v105_v11, %v65_v18  ;;  %v71_v21 = vadd.f32 %v105_v11, %v70_v19 }
  0x90   :  { %82 = vst [vmem:[%s174_s3 + $0x20] sm:$0xff] %v74_v17 }
  0x91   :  { %79 = vst [vmem:[%s174_s3 + $0x8] sm:$0xff] %v66_v20 }
  0x92   :  { %81 = vst [vmem:[%s174_s3 + $0x18] sm:$0xff] %v71_v21 }
  0x95   :  { %v75_v22 = vpop.f32.mrf.mxu2 }
  0x96   :  { %v76_v23 = vadd.f32 %v105_v11, %v75_v22 }
  0x98   :  { %83 = vst [vmem:[%s174_s3 + $0x28] sm:$0xff] %v76_v23 }

// kernel: seq2seq_forward.6
= control target key start
LH: loop header
LB: loop body
LE: loop exit
PB: predicated region body
PF: predicated region fallthrough
CT: control target
= control target key end

     0   :  { %vm37_vm0 = vcmask 261120   ;;  %s2863_s0 = inlined_call_operand.vmem [shape: s32[8,1], index: 0, kind: input, shape index: {}]   ;;  %s2864_s1 = inlined_call_operand.vmem [shape: f32[8,8,128], index: 1, kind: input, shape index: {}]   ;;  %s2865_s2 = inlined_call_operand.vmem [shape: bf16[1,32,128], index: 2, kind: input, shape index: {}]   ;;  %s2866_s3 = inlined_call_operand.vmem [shape: bf16[2,32,128], index: 3, kind: input, shape index: {}]   ;;  %s2867_s4 = inlined_call_operand.vmem [shape: f32[1,1,128], index: 4, kind: input, shape index: {}]   ;;  %s2868_s5 = inlined_call_operand.vmem [shape: f32[2,8,32], index: 5, kind: input, shape index: {}, may-alias: {5,6}]   ;;  %s2869_s6 = inlined_call_operand.vmem [shape: f32[2,8,32], index: 6, kind: input, shape index: {}, may-alias: {5,6}]   ;;  %s2870_s7 = inlined_call_operand.hbm [shape: f32[8,8,32], index: 7, kind: output, shape index: {0}]   ;;  %s2871_s8 = inlined_call_operand.vmem [shape: f32[2,8,32], index: 8, kind: output, shape index: {1}]   ;;  %s2872_s9 = inlined_call_operand.vmem [shape: f32[2,8,32], index: 9, kind: output, shape index: {2}]  }
   0x1   :  { %v2041_v0 = vld [vmem:[%s2866_s3 + $0x8] sm:$0xff]  ;;  %v35_v1 = vld [vmem:[%s2868_s5] sm:$0xff] }
   0x2   :  { %38 = vst.msk [vmem:[#allocation2] sm:$0xff] %vm37_vm0, %v35_v1  ;;  %83 = vmatpush.bf16.msra.mxu0 %v2041_v0  ;;  %v2040_v2 = vld [vmem:[%s2866_s3] sm:$0xff] }
   0x3   :  { %15 = vsyncpa [#allocation5], 0  ;;  %v40_v5 = vld [vmem:[%s2869_s6] sm:$0xff]  ;;  %v45_v6 = vlaneseq  ;;  %s2197_s19 = smov 64   ;;  %s2198_s20 = smov 32   ;;  %v2199_v21 = vmov 0  }
   0x4   :  { %42 = vst.msk [vmem:[#allocation3] sm:$0xff] %vm37_vm0, %v40_v5  ;;  %v53_v8 = vld [vmem:[%s2864_s1] sm:$0xff]  ;;  %2095 = vset.pattern.permute.xlu2 %v2199_v21  ;;  %2096 = vset.pattern.permute.xlu0 %v2199_v21  ;;  %s2200_s23 = smov 96   ;;  %v2043_v34 = vld [vmem:[%s2866_s3 + $0x18] sm:$0xff]  ;;  %v2045_v35 = vld [vmem:[%s2865_s2 + $0x8] sm:$0xff]  ;;  %s1757_s12 = sshll.u32 %s2870_s7, 4  ;;  %s1758_s12 = int_to_ptr.hbm [resolvable:$true] %s1757_s12 }
   0x5   :  { %v46_v7 = vand.u32 127, %v45_v6  ;;  %v2285_v20 = vld [vmem:[%s2863_s0] sm:$0xff]  ;;  %2097 = vset.pattern.permute.xlu1 %v2199_v21  ;;  %170 = vmatpush.bf16.msra.mxu1 %v2043_v34  ;;  %v2042_v36 = vld [vmem:[%s2866_s3 + $0x10] sm:$0xff]  ;;  %v36_v42 = vld [vmem:[%s2868_s5 + $0x8] sm:$0xff]  ;;  %s2203_s13 = smov 8  }
   0x6   :  { %84 = vmatpush.bf16.msra.mxu0 %v2040_v2  ;;  %vm1777_vm4 = vcmp.gt.s32.totalorder %v2285_v20, 0  ;;  %207 = vmatpush.bf16.msra.mxu2 %v2045_v35  ;;  %v2044_v37 = vld [vmem:[%s2865_s2] sm:$0xff]  ;;  %39 = vst.msk [vmem:[#allocation2 + $0x8] sm:$0xff] %vm37_vm0, %v36_v42  ;;  %v2047_v45 = vld [vmem:[%s2866_s3 + $0x8] sm:$0xff]  ;;  %vm1809_vm6 = vcmp.gt.s32.totalorder %v2285_v20, 1  ;;  %vm1842_vm8 = vcmp.gt.s32.totalorder %v2285_v20, 2 }
   0x7   :  { %vm47_vm1 = vcmp.ge.s32.totalorder %v46_v7, 64  ;;  %vm48_vm2 = vcmp.lt.s32.totalorder %v46_v7, 96  ;;  %v118_v22 = vsel %vm1777_vm4, 1, %v2199_v21  ;;  %296 = vmatpush.bf16.msra.mxu3 %v2047_v45  ;;  %v2046_v46 = vld [vmem:[%s2866_s3] sm:$0xff]  ;;  %v41_v47 = vld [vmem:[%s2869_s6 + $0x8] sm:$0xff]  ;;  %v2049_v45 = vld [vmem:[%s2866_s3 + $0x18] sm:$0xff] }
   0x8   :  { %vm2272_vm3 = vmand %vm47_vm1, %vm48_vm2  ;;  %120 = vperm.xlu2 %2095, %v118_v22   ;;  %43 = vst.msk [vmem:[#allocation3 + $0x8] sm:$0xff] %vm37_vm0, %v41_v47  ;;  %v2098_v55 = vld [vmem:[%s2867_s4] ss:$0 sm:$0xff]  ;;  %v1810_v60 = vld [vmem:[%s2864_s1 + $0x8] sm:$0xff]  ;;  %vm1875_vm10 = vcmp.gt.s32.totalorder %v2285_v20, 3  ;;  %vm1908_vm12 = vcmp.gt.s32.totalorder %v2285_v20, 4 }
   0x9   :  { %v54_v3 = vld [vmem:[#allocation2] sm:$0xff]  ;;  %171 = vmatpush.bf16.msra.mxu1 %v2042_v36  ;;  %v2048_v47 = vld [vmem:[%s2866_s3 + $0x10] sm:$0xff] }
   0xa   :  { %v56_v4 = vpack.c.bf16 %v54_v3, %v54_v3  ;;  %208 = vmatpush.bf16.msra.mxu2 %v2044_v37  ;;  %380 = vmatpush.bf16.msrb.mxu0 %v2049_v45 }
   0xb   :  { %v55_v19 = vld [vmem:[#allocation3] sm:$0xff]  ;;  %297 = vmatpush.bf16.msra.mxu3 %v2046_v46  ;;  %v2050_v46 = vld [vmem:[%s2865_s2] sm:$0xff] }
   0xc   :  { %1786 = vmatmul.msk.bf16.vlgmr.msra.gmra.mxu0 %vm37_vm0, %v56_v4 }
   0xd   :  { %v140_v43 = vld [vmem:[#allocation2 + $0x8] sm:$0xff] }
   0xe   :  { %v143_v44 = vpack.c.bf16 %v140_v43, %v140_v43  ;;  %381 = vmatpush.bf16.msrb.mxu0 %v2048_v47 }
   0xf   :  { %v142_v48 = vld [vmem:[#allocation3 + $0x8] sm:$0xff] }
  0x10   :  { %124 = vrot.lane.b32.xlu2 %v54_v3, %s2200_s23  ;;  %1799 = vmatmul.msk.bf16.vlgmr.msra.gmra.mxu1 %vm37_vm0, %v143_v44  ;;  %v2051_v44 = vld [vmem:[%s2865_s2 + $0x8] sm:$0xff] }
  0x11   :  { %417 = vmatpush.bf16.msrb.mxu1 %v2051_v44 }
  0x15   :  { %418 = vmatpush.bf16.msrb.mxu1 %v2050_v46 }
  0x62   :  { %v2294_v26 = vpop.permute.xlu2 %120 }
  0x63   :  { %vm122_vm5 = vcmp.eq.s32.totalorder %v2294_v26, 1 }
  0x6a   :  { %v125_v32 = vpop.permute.xlu2 %124 }
  0x89   :  { %v86_v9 = vpop.f32.mrf.mxu0 }
  0x8a   :  { %v90_v10 = vadd.f32 %v86_v9, %v53_v8 }
  0x8c   :  { %v91_v12 = vmul.f32 0.5, %v90_v10 }
  0x8d   :  { %v173_v53 = vpop.f32.mrf.mxu1 }
  0x8e   :  { %v92_v13 = vsel %vm2272_vm3, %v90_v10, %v91_v12 }
  0x8f   :  { %2106 = vtanh.f32 %v92_v13 }
  0x91   :  { %v88_v14 = vpop.f32.mrf.mxu0 }
  0x95   :  { %v2107_v15 = vpop.eup %2106  ;;  %v175_v54 = vpop.f32.mrf.mxu1 }
  0x96   :  { %v94_v16 = vmul.f32 0.5, %v2107_v15 }
  0x98   :  { %v95_v17 = vadd.f32 0.5, %v94_v16 }
  0x9a   :  { %v96_v18 = vsel %vm2272_vm3, %v2107_v15, %v95_v17 }
  0x9b   :  { %103 = vrot.lane.b32.xlu0 %v96_v18, %s2197_s19 }
  0xa3   :  { %98 = vrot.lane.b32.xlu0 %v55_v19, %s2198_s20 }
 0x10d   :  { %v104_v23 = vpop.permute.xlu0 %103 }
 0x10e   :  { %v106_v24 = vmul.f32 %v104_v23, %v96_v18 }
 0x110   :  { %108 = vrot.lane.b32.xlu1 %v106_v24, %s2198_s20 }
 0x115   :  { %v99_v25 = vpop.permute.xlu0 %98 }
 0x116   :  { %v101_v27 = vmul.f32 %v99_v25, %v96_v18 }
 0x182   :  { %v109_v28 = vpop.permute.xlu1 %108 }
 0x183   :  { %v111_v29 = vadd.f32 %v109_v28, %v101_v27 }
 0x185   :  { %2108 = vtanh.f32 %v111_v29  ;;  %v128_v30 = vsel %vm122_vm5, %v111_v29, %v99_v25 }
 0x186   :  { %135 = vrot.lane.b32.xlu2 %v128_v30, %s2200_s23 }
 0x18b   :  { %v2109_v31 = vpop.eup %2108 }
 0x18c   :  { %114 = vrot.lane.b32.xlu1 %v2109_v31, %s2197_s19  ;;  %v331_v31 = vsel %vm1809_vm6, 1, %v2199_v21 }
 0x18e   :  { %226 = vrot.lane.b32.xlu2 %v142_v48, %s2198_s20  ;;  %v2053_v48 = vld [vmem:[%s2866_s3 + $0x8] sm:$0xff] }
 0x18f   :  { %507 = vmatpush.bf16.msrb.mxu2 %v2053_v48 }
 0x1e0   :  { %v136_v33 = vpop.permute.xlu2 %135 }
 0x1e1   :  { %138 = vst.msk [vmem:[#allocation3] sm:$0xff] %vm37_vm0, %v136_v33 }
 0x1e8   :  { %v269_v13 = vld [vmem:[#allocation3] sm:$0xff] }
 0x1fe   :  { %v115_v38 = vpop.permute.xlu1 %114 }
 0x1ff   :  { %v117_v39 = vmul.f32 %v115_v38, %v96_v18  ;;  %v227_v18 = vpop.permute.xlu2 %226 }
 0x201   :  { %v127_v40 = vsel %vm122_vm5, %v117_v39, %v125_v32 }
 0x202   :  { %130 = vrot.lane.b32.xlu0 %v127_v40, %s2198_s20  ;;  %v178_v41 = vpack.c.bf16 %v127_v40, %v127_v40 }
 0x204   :  { %184 = vrot.lane.b32.xlu1 %v178_v41, %s2198_s20 }
 0x274   :  { %v131_v49 = vpop.permute.xlu0 %130 }
 0x275   :  { %133 = vst.msk [vmem:[#allocation2] sm:$0xff] %vm37_vm0, %v131_v49 }
 0x276   :  { %v185_v50 = vpop.permute.xlu1 %184 }
 0x277   :  { %1808 = vmatmul.msk.bf16.vlgmr.msra.gmra.mxu2 %vm37_vm0, %v185_v50  ;;  %v2052_v50 = vld [vmem:[%s2866_s3] sm:$0xff] }
 0x278   :  { %508 = vmatpush.bf16.msrb.mxu2 %v2052_v50 }
 0x27c   :  { %v268_v51 = vld [vmem:[#allocation2] sm:$0xff] }
 0x27d   :  { %v270_v52 = vpack.c.bf16 %v268_v51, %v268_v51 }
 0x27f   :  { %1819 = vmatmul.msk.bf16.vlgmr.msra.gmra.mxu3 %vm37_vm0, %v270_v52 }
 0x2fa   :  { %v210_v56 = vpop.f32.mrf.mxu2 }
 0x2fb   :  { %v217_v57 = vadd.f32 %v2098_v55, %v210_v56 }
 0x2fd   :  { %v218_v58 = vadd.f32 %v217_v57, %v173_v53 }
 0x2ff   :  { %v219_v59 = vmul.f32 0.5, %v218_v58 }
 0x301   :  { %v220_v61 = vsel %vm2272_vm3, %v218_v58, %v219_v59  ;;  %v2099_v58 = vld [vmem:[%s2867_s4] ss:$0 sm:$0xff] }
 0x302   :  { %2110 = vtanh.f32 %v220_v61  ;;  %v212_v62 = vpop.f32.mrf.mxu2  ;;  %v299_v63 = vpop.f32.mrf.mxu3 }
 0x303   :  { %v303_v0 = vadd.f32 %v1810_v60, %v299_v63 }
 0x305   :  { %v304_v1 = vmul.f32 0.5, %v303_v0 }
 0x307   :  { %v305_v2 = vsel %vm2272_vm3, %v303_v0, %v304_v1 }
 0x308   :  { %v2111_v3 = vpop.eup %2110  ;;  %2112 = vtanh.f32 %v305_v2 }
 0x309   :  { %v222_v4 = vmul.f32 0.5, %v2111_v3 }
 0x30a   :  { %v301_v5 = vpop.f32.mrf.mxu3 }
 0x30b   :  { %v223_v6 = vadd.f32 0.5, %v222_v4 }
 0x30d   :  { %v224_v7 = vsel %vm2272_vm3, %v2111_v3, %v223_v6 }
 0x30e   :  { %v2113_v8 = vpop.eup %2112  ;;  %231 = vrot.lane.b32.xlu0 %v224_v7, %s2197_s19  ;;  %v229_v27 = vmul.f32 %v227_v18, %v224_v7 }
 0x30f   :  { %v307_v9 = vmul.f32 0.5, %v2113_v8 }
 0x311   :  { %v308_v10 = vadd.f32 0.5, %v307_v9 }
 0x313   :  { %v309_v12 = vsel %vm2272_vm3, %v2113_v8, %v308_v10  ;;  %v1843_v8 = vld [vmem:[%s2864_s1 + $0x10] sm:$0xff] }
 0x314   :  { %316 = vrot.lane.b32.xlu1 %v309_v12, %s2197_s19 }
 0x31c   :  { %311 = vrot.lane.b32.xlu1 %v269_v13, %s2198_s20 }
 0x324   :  { %247 = vrot.lane.b32.xlu1 %v140_v43, %s2200_s23 }
 0x32c   :  { %337 = vrot.lane.b32.xlu1 %v268_v51, %s2200_s23 }
 0x380   :  { %v232_v14 = vpop.permute.xlu0 %231 }
 0x381   :  { %v234_v15 = vmul.f32 %v232_v14, %v224_v7 }
 0x383   :  { %236 = vrot.lane.b32.xlu0 %v234_v15, %s2198_s20 }
 0x386   :  { %v317_v16 = vpop.permute.xlu1 %316 }
 0x387   :  { %v319_v17 = vmul.f32 %v317_v16, %v309_v12 }
 0x389   :  { %321 = vrot.lane.b32.xlu2 %v319_v17, %s2198_s20 }
 0x38e   :  { %v312_v19 = vpop.permute.xlu1 %311 }
 0x38f   :  { %v314_v22 = vmul.f32 %v312_v19, %v309_v12 }
 0x396   :  { %v248_v33 = vpop.permute.xlu1 %247 }
 0x39e   :  { %v338_v40 = vpop.permute.xlu1 %337 }
 0x3e3   :  { %v322_v23 = vpop.permute.xlu2 %321 }
 0x3e4   :  { %v324_v24 = vadd.f32 %v322_v23, %v314_v22 }
 0x3e6   :  { %2114 = vtanh.f32 %v324_v24 }
 0x3ec   :  { %v2115_v25 = vpop.eup %2114 }
 0x3ed   :  { %327 = vrot.lane.b32.xlu2 %v2115_v25, %s2197_s19 }
 0x3f5   :  { %v237_v28 = vpop.permute.xlu0 %236 }
 0x3f6   :  { %v239_v29 = vadd.f32 %v237_v28, %v229_v27 }
 0x3f8   :  { %2116 = vtanh.f32 %v239_v29  ;;  %v251_v32 = vsel %vm122_vm5, %v239_v29, %v227_v18 }
 0x3fe   :  { %v2117_v30 = vpop.eup %2116 }
 0x3ff   :  { %242 = vrot.lane.b32.xlu0 %v2117_v30, %s2197_s19 }
 0x407   :  { %333 = vperm.xlu0 %2096, %v331_v31  }
 0x40f   :  { %258 = vrot.lane.b32.xlu0 %v251_v32, %s2200_s23  ;;  %v542_v32 = vsel %vm1842_vm8, 1, %v2199_v21 }
 0x447   :  { %v328_v37 = vpop.permute.xlu2 %327 }
 0x448   :  { %v330_v38 = vmul.f32 %v328_v37, %v309_v12 }
 0x471   :  { %v243_v34 = vpop.permute.xlu0 %242 }
 0x472   :  { %v245_v35 = vmul.f32 %v243_v34, %v224_v7 }
 0x474   :  { %v250_v36 = vsel %vm122_vm5, %v245_v35, %v248_v33 }
 0x475   :  { %253 = vrot.lane.b32.xlu2 %v250_v36, %s2198_s20 }
 0x479   :  { %v2368_v39 = vpop.permute.xlu0 %333 }
 0x47a   :  { %vm335_vm7 = vcmp.eq.s32.totalorder %v2368_v39, 1  ;;  %v2055_v39 = vld [vmem:[%s2866_s3 + $0x18] sm:$0xff] }
 0x47b   :  { %v340_v41 = vsel %vm335_vm7, %v330_v38, %v338_v40  ;;  %v341_v26 = vsel %vm335_vm7, %v324_v24, %v312_v19  ;;  %591 = vmatpush.bf16.msrb.mxu3 %v2055_v39 }
 0x47c   :  { %343 = vrot.lane.b32.xlu1 %v340_v41, %s2198_s20  ;;  %v388_v42 = vpack.c.bf16 %v340_v41, %v340_v41 }
 0x47e   :  { %394 = vrot.lane.b32.xlu2 %v388_v42, %s2198_s20 }
 0x481   :  { %v259_v43 = vpop.permute.xlu0 %258 }
 0x482   :  { %261 = vst.msk [vmem:[#allocation3 + $0x8] sm:$0xff] %vm37_vm0, %v259_v43 }
 0x486   :  { %348 = vrot.lane.b32.xlu2 %v341_v26, %s2200_s23 }
 0x489   :  { %v353_v7 = vld [vmem:[#allocation3 + $0x8] sm:$0xff] }
 0x4cf   :  { %v254_v49 = vpop.permute.xlu2 %253 }
 0x4d0   :  { %256 = vst.msk [vmem:[#allocation2 + $0x8] sm:$0xff] %vm37_vm0, %v254_v49 }
 0x4d1   :  { %262 = vst.msk [vmem:[#allocation4] sm:$0xff] %vm37_vm0, %v254_v49  ;;  %v2054_v49 = vld [vmem:[%s2866_s3 + $0x10] sm:$0xff] }
 0x4d2   :  { %592 = vmatpush.bf16.msrb.mxu3 %v2054_v49 }
 0x4d7   :  { %v352_v51 = vld [vmem:[#allocation2 + $0x8] sm:$0xff] }
 0x4d8   :  { %v395_v52 = vpop.permute.xlu2 %394  ;;  %v354_v53 = vpack.c.bf16 %v352_v51, %v352_v51 }
 0x4d9   :  { %1841 = vmatmul.msk.bf16.vlgmr.msrb.gmra.mxu1 %vm37_vm0, %v395_v52 }
 0x4da   :  { %1832 = vmatmul.msk.bf16.vlgmr.msrb.gmra.mxu0 %vm37_vm0, %v354_v53 }
 0x4e0   :  { %v349_v54 = vpop.permute.xlu2 %348 }
 0x4e1   :  { %351 = vst.msk [vmem:[#allocation3] sm:$0xff] %vm37_vm0, %v349_v54 }
 0x4e8   :  { %v480_v19 = vld [vmem:[#allocation3] sm:$0xff] }
 0x4ee   :  { %v344_v55 = vpop.permute.xlu1 %343 }
 0x4ef   :  { %346 = vst.msk [vmem:[#allocation2] sm:$0xff] %vm37_vm0, %v344_v55 }
 0x4f6   :  { %v479_v56 = vld [vmem:[#allocation2] sm:$0xff] }
 0x4f7   :  { %v481_v57 = vpack.c.bf16 %v479_v56, %v479_v56 }
 0x4f9   :  { %1852 = vmatmul.msk.bf16.vlgmr.msrb.gmra.mxu2 %vm37_vm0, %v481_v57  ;;  %v2058_v57 = vld [vmem:[%s2866_s3] sm:$0xff] }
 0x556   :  { %v420_v59 = vpop.f32.mrf.mxu1 }
 0x557   :  { %v427_v60 = vadd.f32 %v2099_v58, %v420_v59  ;;  %v383_v61 = vpop.f32.mrf.mxu0  ;;  %v2057_v58 = vld [vmem:[%s2865_s2 + $0x8] sm:$0xff]  ;;  %v2056_v59 = vld [vmem:[%s2865_s2] sm:$0xff] }
 0x558   :  { %628 = vmatpush.bf16.msra.mxu0 %v2057_v58  ;;  %v2063_v58 = vld [vmem:[%s2865_s2 + $0x8] sm:$0xff] }
 0x559   :  { %v428_v62 = vadd.f32 %v427_v60, %v383_v61  ;;  %839 = vmatpush.bf16.msra.mxu3 %v2063_v58 }
 0x55b   :  { %v429_v63 = vmul.f32 0.5, %v428_v62 }
 0x55c   :  { %629 = vmatpush.bf16.msra.mxu0 %v2056_v59  ;;  %v2062_v59 = vld [vmem:[%s2865_s2] sm:$0xff] }
 0x55d   :  { %v430_v0 = vsel %vm2272_vm3, %v428_v62, %v429_v63  ;;  %840 = vmatpush.bf16.msra.mxu3 %v2062_v59 }
 0x55e   :  { %2118 = vtanh.f32 %v430_v0  ;;  %v422_v1 = vpop.f32.mrf.mxu1 }
 0x55f   :  { %v385_v2 = vpop.f32.mrf.mxu0 }
 0x564   :  { %v2119_v3 = vpop.eup %2118 }
 0x565   :  { %v432_v4 = vmul.f32 0.5, %v2119_v3 }
 0x567   :  { %v433_v5 = vadd.f32 0.5, %v432_v4 }
 0x569   :  { %v434_v6 = vsel %vm2272_vm3, %v2119_v3, %v433_v5  ;;  %v1876_v3 = vld [vmem:[%s2864_s1 + $0x18] sm:$0xff] }
 0x56a   :  { %441 = vrot.lane.b32.xlu1 %v434_v6, %s2197_s19 }
 0x572   :  { %436 = vrot.lane.b32.xlu1 %v353_v7, %s2198_s20 }
 0x57c   :  { %v510_v9 = vpop.f32.mrf.mxu2 }
 0x57d   :  { %v514_v10 = vadd.f32 %v1843_v8, %v510_v9 }
 0x57f   :  { %v515_v12 = vmul.f32 0.5, %v514_v10 }
 0x581   :  { %v516_v13 = vsel %vm2272_vm3, %v514_v10, %v515_v12  ;;  %v2100_v10 = vld [vmem:[%s2867_s4] ss:$0 sm:$0xff] }
 0x582   :  { %2120 = vtanh.f32 %v516_v13 }
 0x584   :  { %v512_v14 = vpop.f32.mrf.mxu2 }
 0x588   :  { %v2121_v15 = vpop.eup %2120 }
 0x589   :  { %v518_v16 = vmul.f32 0.5, %v2121_v15 }
 0x58b   :  { %v519_v17 = vadd.f32 0.5, %v518_v16 }
 0x58d   :  { %v520_v18 = vsel %vm2272_vm3, %v2121_v15, %v519_v17 }
 0x58e   :  { %527 = vrot.lane.b32.xlu0 %v520_v18, %s2197_s19 }
 0x596   :  { %522 = vrot.lane.b32.xlu0 %v480_v19, %s2198_s20 }
 0x59e   :  { %457 = vrot.lane.b32.xlu0 %v352_v51, %s2200_s23 }
 0x5a6   :  { %548 = vrot.lane.b32.xlu0 %v479_v56, %s2200_s23  ;;  %v2059_v56 = vld [vmem:[%s2866_s3 + $0x8] sm:$0xff] }
 0x5a7   :  { %718 = vmatpush.bf16.msra.mxu1 %v2059_v56  ;;  %v2061_v56 = vld [vmem:[%s2866_s3 + $0x18] sm:$0xff] }
 0x5a8   :  { %802 = vmatpush.bf16.msra.mxu2 %v2061_v56 }
 0x5ab   :  { %719 = vmatpush.bf16.msra.mxu1 %v2058_v57  ;;  %v2060_v57 = vld [vmem:[%s2866_s3 + $0x10] sm:$0xff] }
 0x5ac   :  { %803 = vmatpush.bf16.msra.mxu2 %v2060_v57  ;;  %v2068_v57 = vld [vmem:[%s2865_s2] sm:$0xff] }
 0x5dc   :  { %v442_v22 = vpop.permute.xlu1 %441 }
 0x5dd   :  { %v444_v23 = vmul.f32 %v442_v22, %v434_v6 }
 0x5df   :  { %446 = vrot.lane.b32.xlu2 %v444_v23, %s2198_s20 }
 0x5e4   :  { %v437_v27 = vpop.permute.xlu1 %436 }
 0x5e5   :  { %v439_v28 = vmul.f32 %v437_v27, %v434_v6 }
 0x600   :  { %v528_v24 = vpop.permute.xlu0 %527 }
 0x601   :  { %v530_v25 = vmul.f32 %v528_v24, %v520_v18 }
 0x603   :  { %532 = vrot.lane.b32.xlu1 %v530_v25, %s2198_s20 }
 0x608   :  { %v523_v33 = vpop.permute.xlu0 %522 }
 0x609   :  { %v525_v34 = vmul.f32 %v523_v33, %v520_v18 }
 0x610   :  { %v458_v41 = vpop.permute.xlu0 %457 }
 0x618   :  { %v549_v46 = vpop.permute.xlu0 %548 }
 0x639   :  { %v447_v29 = vpop.permute.xlu2 %446 }
 0x63a   :  { %v449_v30 = vadd.f32 %v447_v29, %v439_v28 }
 0x63c   :  { %2122 = vtanh.f32 %v449_v30  ;;  %v461_v43 = vsel %vm335_vm7, %v449_v30, %v437_v27 }
 0x642   :  { %v2123_v31 = vpop.eup %2122 }
 0x643   :  { %452 = vrot.lane.b32.xlu2 %v2123_v31, %s2197_s19 }
 0x64b   :  { %544 = vperm.xlu2 %2095, %v542_v32  }
 0x675   :  { %v533_v35 = vpop.permute.xlu1 %532 }
 0x676   :  { %v535_v36 = vadd.f32 %v533_v35, %v525_v34 }
 0x678   :  { %2124 = vtanh.f32 %v535_v36 }
 0x67e   :  { %v2125_v37 = vpop.eup %2124 }
 0x67f   :  { %538 = vrot.lane.b32.xlu1 %v2125_v37, %s2197_s19 }
 0x69d   :  { %v453_v38 = vpop.permute.xlu2 %452 }
 0x69e   :  { %v455_v40 = vmul.f32 %v453_v38, %v434_v6 }
 0x6a0   :  { %v460_v42 = vsel %vm335_vm7, %v455_v40, %v458_v41 }
 0x6a1   :  { %463 = vrot.lane.b32.xlu1 %v460_v42, %s2198_s20 }
 0x6a5   :  { %v2436_v26 = vpop.permute.xlu2 %544 }
 0x6a6   :  { %vm546_vm9 = vcmp.eq.s32.totalorder %v2436_v26, 1  ;;  %v2065_v26 = vld [vmem:[%s2866_s3 + $0x8] sm:$0xff] }
 0x6a7   :  { %v552_v50 = vsel %vm546_vm9, %v535_v36, %v523_v33  ;;  %929 = vmatpush.bf16.msrb.mxu0 %v2065_v26 }
 0x6a9   :  { %468 = vrot.lane.b32.xlu1 %v461_v43, %s2200_s23 }
 0x6f1   :  { %v539_v44 = vpop.permute.xlu1 %538 }
 0x6f2   :  { %v541_v45 = vmul.f32 %v539_v44, %v520_v18  ;;  %v753_v44 = vsel %vm1875_vm10, 1, %v2199_v21 }
 0x6f4   :  { %v551_v47 = vsel %vm546_vm9, %v541_v45, %v549_v46 }
 0x6f5   :  { %554 = vrot.lane.b32.xlu2 %v551_v47, %s2198_s20  ;;  %v599_v48 = vpack.c.bf16 %v551_v47, %v551_v47 }
 0x6f7   :  { %605 = vrot.lane.b32.xlu0 %v599_v48, %s2198_s20 }
 0x6fd   :  { %559 = vrot.lane.b32.xlu2 %v552_v50, %s2200_s23 }
 0x713   :  { %v464_v51 = vpop.permute.xlu1 %463 }
 0x714   :  { %466 = vst.msk [vmem:[#allocation2 + $0x8] sm:$0xff] %vm37_vm0, %v464_v51 }
 0x715   :  { %473 = vst.msk [vmem:[#allocation4 + $0x8] sm:$0xff] %vm37_vm0, %v464_v51 }
 0x71b   :  { %v469_v52 = vpop.permute.xlu1 %468  ;;  %v563_v53 = vld [vmem:[#allocation2 + $0x8] sm:$0xff] }
 0x71c   :  { %471 = vst.msk [vmem:[#allocation3 + $0x8] sm:$0xff] %vm37_vm0, %v469_v52  ;;  %v565_v54 = vpack.c.bf16 %v563_v53, %v563_v53 }
 0x71e   :  { %1865 = vmatmul.msk.bf16.vlgmr.msrb.gmra.mxu3 %vm37_vm0, %v565_v54 }
 0x723   :  { %v564_v55 = vld [vmem:[#allocation3 + $0x8] sm:$0xff] }
 0x724   :  { %647 = vrot.lane.b32.xlu2 %v564_v55, %s2198_s20 }
 0x74f   :  { %v555_v60 = vpop.permute.xlu2 %554 }
 0x750   :  { %557 = vst.msk [vmem:[#allocation2] sm:$0xff] %vm37_vm0, %v555_v60 }
 0x757   :  { %v560_v61 = vpop.permute.xlu2 %559  ;;  %v690_v62 = vld [vmem:[#allocation2] sm:$0xff] }
 0x758   :  { %562 = vst.msk [vmem:[#allocation3] sm:$0xff] %vm37_vm0, %v560_v61  ;;  %v692_v63 = vpack.c.bf16 %v690_v62, %v690_v62  ;;  %v2064_v61 = vld [vmem:[%s2866_s3] sm:$0xff] }
 0x759   :  { %930 = vmatpush.bf16.msrb.mxu0 %v2064_v61 }
 0x75a   :  { %1885 = vmatmul.msk.bf16.vlgmr.msra.gmra.mxu1 %vm37_vm0, %v692_v63 }
 0x75f   :  { %v691_v23 = vld [vmem:[#allocation3] sm:$0xff] }
 0x769   :  { %v606_v0 = vpop.permute.xlu0 %605 }
 0x76a   :  { %1874 = vmatmul.msk.bf16.vlgmr.msra.gmra.mxu0 %vm37_vm0, %v606_v0 }
 0x77e   :  { %v648_v33 = vpop.permute.xlu2 %647 }
 0x7a1   :  { %v594_v1 = vpop.f32.mrf.mxu3 }
 0x7a9   :  { %v596_v2 = vpop.f32.mrf.mxu3 }
 0x7d7   :  { %v721_v4 = vpop.f32.mrf.mxu1 }
 0x7d8   :  { %v725_v5 = vadd.f32 %v1876_v3, %v721_v4 }
 0x7da   :  { %v726_v6 = vmul.f32 0.5, %v725_v5 }
 0x7dc   :  { %v727_v7 = vsel %vm2272_vm3, %v725_v5, %v726_v6 }
 0x7dd   :  { %2126 = vtanh.f32 %v727_v7 }
 0x7df   :  { %v723_v8 = vpop.f32.mrf.mxu1 }
 0x7e3   :  { %v2127_v9 = vpop.eup %2126 }
 0x7e4   :  { %v729_v12 = vmul.f32 0.5, %v2127_v9 }
 0x7e6   :  { %v730_v13 = vadd.f32 0.5, %v729_v12  ;;  %v1909_v12 = vld [vmem:[%s2864_s1 + $0x20] sm:$0xff] }
 0x7e7   :  { %v631_v14 = vpop.f32.mrf.mxu0 }
 0x7e8   :  { %v638_v15 = vadd.f32 %v2100_v10, %v631_v14  ;;  %v731_v16 = vsel %vm2272_vm3, %v2127_v9, %v730_v13  ;;  %v2101_v9 = vld [vmem:[%s2867_s4] ss:$0 sm:$0xff] }
 0x7e9   :  { %738 = vrot.lane.b32.xlu1 %v731_v16, %s2197_s19 }
 0x7ea   :  { %v639_v17 = vadd.f32 %v638_v15, %v594_v1 }
 0x7ec   :  { %v640_v18 = vmul.f32 0.5, %v639_v17 }
 0x7ee   :  { %v641_v19 = vsel %vm2272_vm3, %v639_v17, %v640_v18 }
 0x7ef   :  { %2128 = vtanh.f32 %v641_v19  ;;  %v633_v22 = vpop.f32.mrf.mxu0 }
 0x7f1   :  { %733 = vrot.lane.b32.xlu1 %v691_v23, %s2198_s20 }
 0x7f5   :  { %v2129_v24 = vpop.eup %2128 }
 0x7f6   :  { %v643_v25 = vmul.f32 0.5, %v2129_v24 }
 0x7f8   :  { %v644_v27 = vadd.f32 0.5, %v643_v25 }
 0x7f9   :  { %668 = vrot.lane.b32.xlu1 %v563_v53, %s2200_s23 }
 0x7fa   :  { %v645_v28 = vsel %vm2272_vm3, %v2129_v24, %v644_v27 }
 0x7fb   :  { %652 = vrot.lane.b32.xlu0 %v645_v28, %s2197_s19  ;;  %v650_v40 = vmul.f32 %v648_v33, %v645_v28 }
 0x801   :  { %759 = vrot.lane.b32.xlu1 %v690_v62, %s2200_s23 }
 0x85b   :  { %v739_v29 = vpop.permute.xlu1 %738 }
 0x85c   :  { %v741_v30 = vmul.f32 %v739_v29, %v731_v16 }
 0x85e   :  { %743 = vrot.lane.b32.xlu2 %v741_v30, %s2198_s20 }
 0x863   :  { %v734_v34 = vpop.permute.xlu1 %733 }
 0x864   :  { %v736_v35 = vmul.f32 %v734_v34, %v731_v16 }
 0x86b   :  { %v669_v45 = vpop.permute.xlu1 %668 }
 0x86d   :  { %v653_v31 = vpop.permute.xlu0 %652 }
 0x86e   :  { %v655_v32 = vmul.f32 %v653_v31, %v645_v28 }
 0x870   :  { %657 = vrot.lane.b32.xlu0 %v655_v32, %s2198_s20 }
 0x873   :  { %v760_v51 = vpop.permute.xlu1 %759 }
 0x8b8   :  { %v744_v36 = vpop.permute.xlu2 %743 }
 0x8b9   :  { %v746_v37 = vadd.f32 %v744_v36, %v736_v35 }
 0x8bb   :  { %2130 = vtanh.f32 %v746_v37 }
 0x8c1   :  { %v2131_v38 = vpop.eup %2130 }
 0x8c2   :  { %749 = vrot.lane.b32.xlu2 %v2131_v38, %s2197_s19 }
 0x8e2   :  { %v658_v41 = vpop.permute.xlu0 %657 }
 0x8e3   :  { %v660_v42 = vadd.f32 %v658_v41, %v650_v40 }
 0x8e5   :  { %2132 = vtanh.f32 %v660_v42  ;;  %v672_v54 = vsel %vm546_vm9, %v660_v42, %v648_v33 }
 0x8eb   :  { %v2133_v43 = vpop.eup %2132 }
 0x8ec   :  { %663 = vrot.lane.b32.xlu0 %v2133_v43, %s2197_s19 }
 0x8f4   :  { %755 = vperm.xlu0 %2096, %v753_v44  }
 0x91c   :  { %v750_v39 = vpop.permute.xlu2 %749 }
 0x91d   :  { %v752_v49 = vmul.f32 %v750_v39, %v731_v16 }
 0x95e   :  { %v664_v46 = vpop.permute.xlu0 %663 }
 0x95f   :  { %v666_v47 = vmul.f32 %v664_v46, %v645_v28 }
 0x961   :  { %v671_v48 = vsel %vm546_vm9, %v666_v47, %v669_v45 }
 0x962   :  { %674 = vrot.lane.b32.xlu2 %v671_v48, %s2198_s20 }
 0x966   :  { %v2501_v50 = vpop.permute.xlu0 %755 }
 0x967   :  { %vm757_vm11 = vcmp.eq.s32.totalorder %v2501_v50, 1  ;;  %v2067_v50 = vld [vmem:[%s2866_s3 + $0x18] sm:$0xff] }
 0x968   :  { %v762_v52 = vsel %vm757_vm11, %v752_v49, %v760_v51  ;;  %v763_v55 = vsel %vm757_vm11, %v746_v37, %v734_v34  ;;  %v964_v37 = vsel %vm1908_vm12, 1, %v2199_v21  ;;  %1013 = vmatpush.bf16.msrb.mxu1 %v2067_v50 }
 0x969   :  { %765 = vrot.lane.b32.xlu0 %v762_v52, %s2198_s20  ;;  %v810_v53 = vpack.c.bf16 %v762_v52, %v762_v52 }
 0x96a   :  { %679 = vrot.lane.b32.xlu2 %v672_v54, %s2200_s23 }
 0x96b   :  { %816 = vrot.lane.b32.xlu1 %v810_v53, %s2198_s20 }
 0x971   :  { %770 = vrot.lane.b32.xlu0 %v763_v55, %s2200_s23  ;;  %v2069_v55 = vld [vmem:[%s2865_s2 + $0x8] sm:$0xff] }
 0x972   :  { %1050 = vmatpush.bf16.msrb.mxu2 %v2069_v55 }
 0x976   :  { %1051 = vmatpush.bf16.msrb.mxu2 %v2068_v57 }
 0x9bc   :  { %v675_v60 = vpop.permute.xlu2 %674 }
 0x9bd   :  { %677 = vst.msk [vmem:[#allocation2 + $0x8] sm:$0xff] %vm37_vm0, %v675_v60 }
 0x9be   :  { %684 = vst.msk [vmem:[#allocation4 + $0x10] sm:$0xff] %vm37_vm0, %v675_v60 }
 0x9c4   :  { %v680_v62 = vpop.permute.xlu2 %679  ;;  %v2534_v63 = vld [vmem:[#allocation2 + $0x8] sm:$0xff] }
 0x9c5   :  { %682 = vst.msk [vmem:[#allocation3 + $0x8] sm:$0xff] %vm37_vm0, %v680_v62  ;;  %v776_v0 = vpack.c.bf16 %v2534_v63, %v2534_v63 }
 0x9c7   :  { %1898 = vmatmul.msk.bf16.vlgmr.msra.gmra.mxu2 %vm37_vm0, %v776_v0  ;;  %v2070_v0 = vld [vmem:[%s2866_s3] sm:$0xff] }
 0x9cc   :  { %v775_v1 = vld [vmem:[#allocation3 + $0x8] sm:$0xff] }
 0x9cd   :  { %858 = vrot.lane.b32.xlu0 %v775_v1, %s2198_s20 }
 0x9db   :  { %v766_v2 = vpop.permute.xlu0 %765 }
 0x9dc   :  { %768 = vst.msk [vmem:[#allocation2] sm:$0xff] %vm37_vm0, %v766_v2  ;;  %v2066_v2 = vld [vmem:[%s2866_s3 + $0x10] sm:$0xff] }
 0x9dd   :  { %v817_v3 = vpop.permute.xlu1 %816  ;;  %1014 = vmatpush.bf16.msrb.mxu1 %v2066_v2  ;;  %v2073_v2 = vld [vmem:[%s2866_s3 + $0x18] sm:$0xff] }
 0x9de   :  { %1907 = vmatmul.msk.bf16.vlgmr.msra.gmra.mxu3 %vm37_vm0, %v817_v3  ;;  %1224 = vmatpush.bf16.msra.mxu0 %v2073_v2 }
 0x9e3   :  { %v771_v4 = vpop.permute.xlu0 %770  ;;  %v901_v5 = vld [vmem:[#allocation2] sm:$0xff] }
 0x9e4   :  { %773 = vst.msk [vmem:[#allocation3] sm:$0xff] %vm37_vm0, %v771_v4  ;;  %v903_v6 = vpack.c.bf16 %v901_v5, %v901_v5 }
 0x9e6   :  { %1918 = vmatmul.msk.bf16.vlgmr.msrb.gmra.mxu0 %vm37_vm0, %v903_v6 }
 0x9eb   :  { %v902_v34 = vld [vmem:[#allocation3] sm:$0xff] }
 0xa3f   :  { %v859_v41 = vpop.permute.xlu0 %858 }
 0xa4a   :  { %v805_v7 = vpop.f32.mrf.mxu2 }
 0xa52   :  { %v807_v8 = vpop.f32.mrf.mxu2 }
 0xa61   :  { %v842_v10 = vpop.f32.mrf.mxu3 }
 0xa62   :  { %v849_v13 = vadd.f32 %v2101_v9, %v842_v10 }
 0xa63   :  { %v932_v14 = vpop.f32.mrf.mxu0 }
 0xa64   :  { %v850_v15 = vadd.f32 %v849_v13, %v805_v7  ;;  %v936_v16 = vadd.f32 %v1909_v12, %v932_v14 }
 0xa66   :  { %v851_v17 = vmul.f32 0.5, %v850_v15  ;;  %v937_v18 = vmul.f32 0.5, %v936_v16 }
 0xa68   :  { %v852_v19 = vsel %vm2272_vm3, %v850_v15, %v851_v17  ;;  %v938_v22 = vsel %vm2272_vm3, %v936_v16, %v937_v18  ;;  %v1942_v15 = vld [vmem:[%s2864_s1 + $0x28] sm:$0xff] }
 0xa69   :  { %2134 = vtanh.f32 %v852_v19  ;;  %v844_v23 = vpop.f32.mrf.mxu3 }
 0xa6a   :  { %2136 = vtanh.f32 %v938_v22 }
 0xa6b   :  { %v934_v24 = vpop.f32.mrf.mxu0 }
 0xa6c   :  { %v2102_v24 = vld [vmem:[%s2867_s4] ss:$0 sm:$0xff] }
 0xa6f   :  { %v2135_v25 = vpop.eup %2134 }
 0xa70   :  { %v2137_v27 = vpop.eup %2136  ;;  %v854_v28 = vmul.f32 0.5, %v2135_v25 }
 0xa71   :  { %v940_v29 = vmul.f32 0.5, %v2137_v27 }
 0xa72   :  { %v855_v30 = vadd.f32 0.5, %v854_v28 }
 0xa73   :  { %v941_v31 = vadd.f32 0.5, %v940_v29 }
 0xa74   :  { %v856_v32 = vsel %vm2272_vm3, %v2135_v25, %v855_v30 }
 0xa75   :  { %863 = vrot.lane.b32.xlu1 %v856_v32, %s2197_s19  ;;  %v942_v33 = vsel %vm2272_vm3, %v2137_v27, %v941_v31  ;;  %v861_v43 = vmul.f32 %v859_v41, %v856_v32 }
 0xa76   :  { %949 = vrot.lane.b32.xlu2 %v942_v33, %s2197_s19 }
 0xa7d   :  { %944 = vrot.lane.b32.xlu1 %v902_v34, %s2198_s20 }
 0xad0   :  { %v950_v35 = vpop.permute.xlu2 %949 }
 0xad1   :  { %v952_v36 = vmul.f32 %v950_v35, %v942_v33 }
 0xad3   :  { %954 = vrot.lane.b32.xlu0 %v952_v36, %s2198_s20 }
 0xadb   :  { %966 = vperm.xlu0 %2096, %v964_v37  }
 0xae7   :  { %v864_v38 = vpop.permute.xlu1 %863 }
 0xae8   :  { %v866_v40 = vmul.f32 %v864_v38, %v856_v32 }
 0xaea   :  { %868 = vrot.lane.b32.xlu2 %v866_v40, %s2198_s20 }
 0xaef   :  { %v945_v42 = vpop.permute.xlu1 %944 }
 0xaf0   :  { %v947_v44 = vmul.f32 %v945_v42, %v942_v33 }
 0xb44   :  { %v869_v45 = vpop.permute.xlu2 %868 }
 0xb45   :  { %v955_v46 = vpop.permute.xlu0 %954  ;;  %v871_v47 = vadd.f32 %v869_v45, %v861_v43 }
 0xb46   :  { %v957_v48 = vadd.f32 %v955_v46, %v947_v44 }
 0xb47   :  { %2138 = vtanh.f32 %v871_v47  ;;  %v883_v62 = vsel %vm757_vm11, %v871_v47, %v859_v41 }
 0xb48   :  { %2140 = vtanh.f32 %v957_v48 }
 0xb4d   :  { %v2139_v39 = vpop.eup %2138  ;;  %v2571_v51 = vpop.permute.xlu0 %966 }
 0xb4e   :  { %v2141_v49 = vpop.eup %2140  ;;  %874 = vrot.lane.b32.xlu1 %v2139_v39, %s2197_s19  ;;  %vm968_vm13 = vcmp.eq.s32.totalorder %v2571_v51, 1 }
 0xb4f   :  { %960 = vrot.lane.b32.xlu2 %v2141_v49, %s2197_s19  ;;  %v974_v26 = vsel %vm968_vm13, %v957_v48, %v945_v42  ;;  %v2639_v49 = vld [vmem:[%s2863_s0] sm:$0xff]  ;;  %s2201_s0 = smov [#allocation4]  }
 0xb50   :  { %vm1941_vm14 = vcmp.gt.s32.totalorder %v2639_v49, 5  ;;  %vm1974_vm1 = vcmp.gt.s32.totalorder %v2639_v49, 6  ;;  %vm2007_vm4 = vcmp.gt.s32.totalorder %v2639_v49, 7  ;;  %s1755_s30 = sshll.u32 %s2201_s0, 4  ;;  %s1756_s30 = int_to_ptr.vmem [resolvable:$true] %s1755_s30 }
 0xb56   :  { %879 = vrot.lane.b32.xlu1 %v2534_v63, %s2200_s23  ;;  %v2071_v63 = vld [vmem:[%s2866_s3 + $0x8] sm:$0xff] }
 0xb57   :  { %970 = vrot.lane.b32.xlu2 %v901_v5, %s2200_s23  ;;  %1140 = vmatpush.bf16.msrb.mxu3 %v2071_v63 }
 0xb5b   :  { %1141 = vmatpush.bf16.msrb.mxu3 %v2070_v0 }
 0xba9   :  { %v961_v20 = vpop.permute.xlu2 %960 }
 0xbaa   :  { %v963_v52 = vmul.f32 %v961_v20, %v942_v33  ;;  %v1175_v20 = vsel %vm1941_vm14, 1, %v2199_v21 }
 0xbb1   :  { %v971_v53 = vpop.permute.xlu2 %970 }
 0xbb2   :  { %v973_v54 = vsel %vm968_vm13, %v963_v52, %v971_v53 }
 0xbb3   :  { %976 = vrot.lane.b32.xlu1 %v973_v54, %s2198_s20  ;;  %v1021_v56 = vpack.c.bf16 %v973_v54, %v973_v54 }
 0xbb5   :  { %1027 = vrot.lane.b32.xlu2 %v1021_v56, %s2198_s20 }
 0xbbb   :  { %981 = vrot.lane.b32.xlu1 %v974_v26, %s2200_s23 }
 0xbc0   :  { %v875_v58 = vpop.permute.xlu1 %874 }
 0xbc1   :  { %v877_v59 = vmul.f32 %v875_v58, %v856_v32 }
 0xbc8   :  { %v880_v60 = vpop.permute.xlu1 %879 }
 0xbc9   :  { %v882_v61 = vsel %vm757_vm11, %v877_v59, %v880_v60 }
 0xbca   :  { %885 = vrot.lane.b32.xlu0 %v882_v61, %s2198_s20 }
 0xbd2   :  { %890 = vrot.lane.b32.xlu0 %v883_v62, %s2200_s23 }
 0xc0f   :  { %v1028_v1 = vpop.permute.xlu2 %1027 }
 0xc10   :  { %1940 = vmatmul.msk.bf16.vlgmr.msrb.gmra.mxu2 %vm37_vm0, %v1028_v1 }
 0xc25   :  { %v977_v3 = vpop.permute.xlu1 %976 }
 0xc26   :  { %979 = vst.msk [vmem:[#allocation2] sm:$0xff] %vm37_vm0, %v977_v3  ;;  %v2072_v3 = vld [vmem:[%s2866_s3 + $0x10] sm:$0xff] }
 0xc27   :  { %1225 = vmatpush.bf16.msra.mxu0 %v2072_v3 }
 0xc2d   :  { %v982_v4 = vpop.permute.xlu1 %981  ;;  %v1112_v5 = vld [vmem:[#allocation2] sm:$0xff] }
 0xc2e   :  { %984 = vst.msk [vmem:[#allocation3] sm:$0xff] %vm37_vm0, %v982_v4  ;;  %v1114_v6 = vpack.c.bf16 %v1112_v5, %v1112_v5 }
 0xc30   :  { %1951 = vmatmul.msk.bf16.vlgmr.msrb.gmra.mxu3 %vm37_vm0, %v1114_v6  ;;  %v2075_v6 = vld [vmem:[%s2865_s2 + $0x8] sm:$0xff] }
 0xc31   :  { %1261 = vmatpush.bf16.msra.mxu1 %v2075_v6 }
 0xc35   :  { %v1113_v35 = vld [vmem:[#allocation3] sm:$0xff] }
 0xc3c   :  { %v886_v7 = vpop.permute.xlu0 %885 }
 0xc3d   :  { %888 = vst.msk [vmem:[#allocation2 + $0x8] sm:$0xff] %vm37_vm0, %v886_v7 }
 0xc3e   :  { %895 = vst.msk [vmem:[#allocation4 + $0x18] sm:$0xff] %vm37_vm0, %v886_v7  ;;  %v2076_v7 = vld [vmem:[%s2866_s3] sm:$0xff] }
 0xc44   :  { %v891_v8 = vpop.permute.xlu0 %890  ;;  %v985_v9 = vld [vmem:[#allocation2 + $0x8] sm:$0xff] }
 0xc45   :  { %893 = vst.msk [vmem:[#allocation3 + $0x8] sm:$0xff] %vm37_vm0, %v891_v8  ;;  %v987_v10 = vpack.c.bf16 %v985_v9, %v985_v9 }
 0xc47   :  { %1931 = vmatmul.msk.bf16.vlgmr.msrb.gmra.mxu1 %vm37_vm0, %v987_v10 }
 0xc4c   :  { %v986_v12 = vld [vmem:[#allocation3 + $0x8] sm:$0xff] }
 0xc4d   :  { %1069 = vrot.lane.b32.xlu1 %v986_v12, %s2198_s20  ;;  %v2074_v12 = vld [vmem:[%s2865_s2] sm:$0xff] }
 0xc4e   :  { %1262 = vmatpush.bf16.msra.mxu1 %v2074_v12  ;;  %v2080_v12 = vld [vmem:[%s2865_s2] sm:$0xff] }
 0xc93   :  { %v1053_v13 = vpop.f32.mrf.mxu2 }
 0xc94   :  { %v1060_v28 = vadd.f32 %v2102_v24, %v1053_v13 }
 0xc9b   :  { %v1055_v14 = vpop.f32.mrf.mxu2 }
 0xcb3   :  { %v1143_v16 = vpop.f32.mrf.mxu3 }
 0xcb4   :  { %v1147_v17 = vadd.f32 %v1942_v15, %v1143_v16 }
 0xcb6   :  { %v1148_v18 = vmul.f32 0.5, %v1147_v17 }
 0xcb8   :  { %v1149_v19 = vsel %vm2272_vm3, %v1147_v17, %v1148_v18 }
 0xcb9   :  { %2142 = vtanh.f32 %v1149_v19 }
 0xcbb   :  { %v1145_v22 = vpop.f32.mrf.mxu3 }
 0xcbc   :  { %v1975_v22 = vld [vmem:[%s2864_s1 + $0x30] sm:$0xff] }
 0xcbf   :  { %v2143_v23 = vpop.eup %2142  ;;  %v1070_v45 = vpop.permute.xlu1 %1069 }
 0xcc0   :  { %v1151_v25 = vmul.f32 0.5, %v2143_v23 }
 0xcc2   :  { %v1152_v27 = vadd.f32 0.5, %v1151_v25 }
 0xcc4   :  { %v1016_v29 = vpop.f32.mrf.mxu1  ;;  %v1153_v30 = vsel %vm2272_vm3, %v2143_v23, %v1152_v27 }
 0xcc5   :  { %v1061_v31 = vadd.f32 %v1060_v28, %v1016_v29  ;;  %1160 = vrot.lane.b32.xlu0 %v1153_v30, %s2197_s19  ;;  %v2103_v28 = vld [vmem:[%s2867_s4] ss:$0 sm:$0xff] }
 0xcc7   :  { %v1062_v32 = vmul.f32 0.5, %v1061_v31 }
 0xcc9   :  { %v1063_v33 = vsel %vm2272_vm3, %v1061_v31, %v1062_v32 }
 0xcca   :  { %2144 = vtanh.f32 %v1063_v33 }
 0xccc   :  { %v1018_v34 = vpop.f32.mrf.mxu1 }
 0xccd   :  { %1155 = vrot.lane.b32.xlu0 %v1113_v35, %s2198_s20 }
 0xcd0   :  { %v2145_v36 = vpop.eup %2144 }
 0xcd1   :  { %v1065_v37 = vmul.f32 0.5, %v2145_v36 }
 0xcd3   :  { %v1066_v38 = vadd.f32 0.5, %v1065_v37 }
 0xcd5   :  { %1090 = vrot.lane.b32.xlu0 %v985_v9, %s2200_s23  ;;  %v1067_v40 = vsel %vm2272_vm3, %v2145_v36, %v1066_v38 }
 0xcd6   :  { %1074 = vrot.lane.b32.xlu2 %v1067_v40, %s2197_s19  ;;  %v1072_v46 = vmul.f32 %v1070_v45, %v1067_v40 }
 0xcdd   :  { %1181 = vrot.lane.b32.xlu0 %v1112_v5, %s2200_s23  ;;  %v2077_v5 = vld [vmem:[%s2866_s3 + $0x8] sm:$0xff] }
 0xcde   :  { %1351 = vmatpush.bf16.msra.mxu2 %v2077_v5 }
 0xce2   :  { %1352 = vmatpush.bf16.msra.mxu2 %v2076_v7 }
 0xd30   :  { %v1075_v41 = vpop.permute.xlu2 %1074 }
 0xd31   :  { %v1077_v42 = vmul.f32 %v1075_v41, %v1067_v40 }
 0xd33   :  { %1079 = vrot.lane.b32.xlu2 %v1077_v42, %s2198_s20 }
 0xd37   :  { %v1161_v43 = vpop.permute.xlu0 %1160 }
 0xd38   :  { %v1163_v44 = vmul.f32 %v1161_v43, %v1153_v30 }
 0xd3a   :  { %1165 = vrot.lane.b32.xlu1 %v1163_v44, %s2198_s20 }
 0xd3f   :  { %v1156_v52 = vpop.permute.xlu0 %1155 }
 0xd40   :  { %v1158_v53 = vmul.f32 %v1156_v52, %v1153_v30 }
 0xd47   :  { %v1091_v58 = vpop.permute.xlu0 %1090 }
 0xd4f   :  { %v1182_v0 = vpop.permute.xlu0 %1181 }
 0xd8d   :  { %v1080_v47 = vpop.permute.xlu2 %1079 }
 0xd8e   :  { %v1082_v48 = vadd.f32 %v1080_v47, %v1072_v46 }
 0xd90   :  { %2146 = vtanh.f32 %v1082_v48  ;;  %v1094_v60 = vsel %vm968_vm13, %v1082_v48, %v1070_v45 }
 0xd96   :  { %v2147_v39 = vpop.eup %2146 }
 0xd97   :  { %1085 = vrot.lane.b32.xlu2 %v2147_v39, %s2197_s19 }
 0xd9f   :  { %1177 = vperm.xlu2 %2095, %v1175_v20  }
 0xdac   :  { %v1166_v54 = vpop.permute.xlu1 %1165 }
 0xdad   :  { %v1168_v55 = vadd.f32 %v1166_v54, %v1158_v53 }
 0xdaf   :  { %2148 = vtanh.f32 %v1168_v55 }
 0xdb5   :  { %v2149_v56 = vpop.eup %2148 }
 0xdb6   :  { %1171 = vrot.lane.b32.xlu1 %v2149_v56, %s2197_s19 }
 0xdf1   :  { %v1086_v57 = vpop.permute.xlu2 %1085 }
 0xdf2   :  { %v1088_v26 = vmul.f32 %v1086_v57, %v1067_v40 }
 0xdf4   :  { %v1093_v59 = vsel %vm968_vm13, %v1088_v26, %v1091_v58 }
 0xdf5   :  { %1096 = vrot.lane.b32.xlu1 %v1093_v59, %s2198_s20 }
 0xdf9   :  { %v2650_v61 = vpop.permute.xlu2 %1177 }
 0xdfa   :  { %vm1179_vm15 = vcmp.eq.s32.totalorder %v2650_v61, 1  ;;  %v2081_v61 = vld [vmem:[%s2865_s2 + $0x8] sm:$0xff] }
 0xdfb   :  { %v1185_v51 = vsel %vm1179_vm15, %v1168_v55, %v1156_v52  ;;  %1472 = vmatpush.bf16.msrb.mxu0 %v2081_v61 }
 0xdfd   :  { %1101 = vrot.lane.b32.xlu1 %v1094_v60, %s2200_s23 }
 0xdff   :  { %1473 = vmatpush.bf16.msrb.mxu0 %v2080_v12 }
 0xe28   :  { %v1172_v62 = vpop.permute.xlu1 %1171 }
 0xe29   :  { %v1174_v63 = vmul.f32 %v1172_v62, %v1153_v30  ;;  %v1386_v62 = vsel %vm1974_vm1, 1, %v2199_v21 }
 0xe2b   :  { %v1184_v1 = vsel %vm1179_vm15, %v1174_v63, %v1182_v0 }
 0xe2c   :  { %1187 = vrot.lane.b32.xlu2 %v1184_v1, %s2198_s20  ;;  %v1232_v50 = vpack.c.bf16 %v1184_v1, %v1184_v1 }
 0xe2e   :  { %1238 = vrot.lane.b32.xlu0 %v1232_v50, %s2198_s20 }
 0xe36   :  { %1192 = vrot.lane.b32.xlu0 %v1185_v51, %s2200_s23 }
 0xe67   :  { %v1097_v4 = vpop.permute.xlu1 %1096 }
 0xe68   :  { %1099 = vst.msk [vmem:[#allocation2 + $0x8] sm:$0xff] %vm37_vm0, %v1097_v4 }
 0xe69   :  { %1106 = vst.msk [vmem:[#allocation4 + $0x20] sm:$0xff] %vm37_vm0, %v1097_v4 }
 0xe6f   :  { %v1102_v8 = vpop.permute.xlu1 %1101  ;;  %v1196_v9 = vld [vmem:[#allocation2 + $0x8] sm:$0xff] }
 0xe70   :  { %1104 = vst.msk [vmem:[#allocation3 + $0x8] sm:$0xff] %vm37_vm0, %v1102_v8  ;;  %v1198_v10 = vpack.c.bf16 %v1196_v9, %v1196_v9 }
 0xe72   :  { %1964 = vmatmul.msk.bf16.vlgmr.msra.gmra.mxu0 %vm37_vm0, %v1198_v10  ;;  %v2078_v10 = vld [vmem:[%s2866_s3 + $0x10] sm:$0xff] }
 0xe77   :  { %v1197_v46 = vld [vmem:[#allocation3 + $0x8] sm:$0xff] }
 0xe86   :  { %v1188_v13 = vpop.permute.xlu2 %1187 }
 0xe87   :  { %1190 = vst.msk [vmem:[#allocation2] sm:$0xff] %vm37_vm0, %v1188_v13 }
 0xe8e   :  { %v1323_v14 = vld [vmem:[#allocation2] sm:$0xff] }
 0xe8f   :  { %v1325_v15 = vpack.c.bf16 %v1323_v14, %v1323_v14 }
 0xe91   :  { %1984 = vmatmul.msk.bf16.vlgmr.msra.gmra.mxu2 %vm37_vm0, %v1325_v15  ;;  %v2082_v15 = vld [vmem:[%s2866_s3] sm:$0xff] }
 0xea0   :  { %v1239_v16 = vpop.permute.xlu0 %1238 }
 0xea1   :  { %1973 = vmatmul.msk.bf16.vlgmr.msra.gmra.mxu1 %vm37_vm0, %v1239_v16 }
 0xea8   :  { %v1193_v17 = vpop.permute.xlu0 %1192 }
 0xea9   :  { %1195 = vst.msk [vmem:[#allocation3] sm:$0xff] %vm37_vm0, %v1193_v17 }
 0xeb0   :  { %v1324_v42 = vld [vmem:[#allocation3] sm:$0xff] }
 0xeef   :  { %v1227_v18 = vpop.f32.mrf.mxu0 }
 0xef7   :  { %v1229_v19 = vpop.f32.mrf.mxu0 }
 0xf14   :  { %v1354_v23 = vpop.f32.mrf.mxu2 }
 0xf15   :  { %v1358_v24 = vadd.f32 %v1975_v22, %v1354_v23 }
 0xf17   :  { %v1359_v25 = vmul.f32 0.5, %v1358_v24 }
 0xf19   :  { %v1360_v27 = vsel %vm2272_vm3, %v1358_v24, %v1359_v25 }
 0xf1a   :  { %2150 = vtanh.f32 %v1360_v27 }
 0xf1c   :  { %v1356_v29 = vpop.f32.mrf.mxu2 }
 0xf1e   :  { %v1264_v30 = vpop.f32.mrf.mxu1 }
 0xf1f   :  { %v1271_v31 = vadd.f32 %v2103_v28, %v1264_v30  ;;  %v2104_v30 = vld [vmem:[%s2867_s4] ss:$0 sm:$0xff] }
 0xf20   :  { %v2151_v32 = vpop.eup %2150 }
 0xf21   :  { %v1272_v33 = vadd.f32 %v1271_v31, %v1227_v18  ;;  %v1362_v34 = vmul.f32 0.5, %v2151_v32 }
 0xf23   :  { %v1273_v35 = vmul.f32 0.5, %v1272_v33  ;;  %v1363_v36 = vadd.f32 0.5, %v1362_v34 }
 0xf25   :  { %v1274_v37 = vsel %vm2272_vm3, %v1272_v33, %v1273_v35  ;;  %v1364_v38 = vsel %vm2272_vm3, %v2151_v32, %v1363_v36  ;;  %v2008_v35 = vld [vmem:[%s2864_s1 + $0x38] sm:$0xff] }
 0xf26   :  { %2152 = vtanh.f32 %v1274_v37  ;;  %v1266_v40 = vpop.f32.mrf.mxu1  ;;  %1371 = vrot.lane.b32.xlu1 %v1364_v38, %s2197_s19 }
 0xf2c   :  { %v2153_v41 = vpop.eup %2152 }
 0xf2d   :  { %v1276_v43 = vmul.f32 0.5, %v2153_v41 }
 0xf2e   :  { %1366 = vrot.lane.b32.xlu1 %v1324_v42, %s2198_s20 }
 0xf2f   :  { %v1277_v44 = vadd.f32 0.5, %v1276_v43 }
 0xf31   :  { %v1278_v45 = vsel %vm2272_vm3, %v2153_v41, %v1277_v44 }
 0xf32   :  { %1285 = vrot.lane.b32.xlu2 %v1278_v45, %s2197_s19 }
 0xf36   :  { %1301 = vrot.lane.b32.xlu1 %v1196_v9, %s2200_s23  ;;  %v2079_v9 = vld [vmem:[%s2866_s3 + $0x18] sm:$0xff] }
 0xf37   :  { %1435 = vmatpush.bf16.msra.mxu3 %v2079_v9  ;;  %v2085_v9 = vld [vmem:[%s2866_s3 + $0x18] sm:$0xff] }
 0xf38   :  { %1646 = vmatpush.bf16.msrb.mxu2 %v2085_v9 }
 0xf3a   :  { %1280 = vrot.lane.b32.xlu2 %v1197_v46, %s2198_s20 }
 0xf3b   :  { %1436 = vmatpush.bf16.msra.mxu3 %v2078_v10 }
 0xf3e   :  { %1392 = vrot.lane.b32.xlu1 %v1323_v14, %s2200_s23  ;;  %v2083_v14 = vld [vmem:[%s2866_s3 + $0x8] sm:$0xff] }
 0xf3f   :  { %1562 = vmatpush.bf16.msrb.mxu1 %v2083_v14 }
 0xf43   :  { %1563 = vmatpush.bf16.msrb.mxu1 %v2082_v15 }
 0xf8c   :  { %v1286_v47 = vpop.permute.xlu2 %1285 }
 0xf8d   :  { %v1288_v48 = vmul.f32 %v1286_v47, %v1278_v45 }
 0xf8f   :  { %1290 = vrot.lane.b32.xlu0 %v1288_v48, %s2198_s20 }
 0xf94   :  { %v1281_v52 = vpop.permute.xlu2 %1280 }
 0xf95   :  { %v1283_v26 = vmul.f32 %v1281_v52, %v1278_v45 }
 0xf98   :  { %v1372_v39 = vpop.permute.xlu1 %1371 }
 0xf99   :  { %v1374_v20 = vmul.f32 %v1372_v39, %v1364_v38 }
 0xf9b   :  { %1376 = vrot.lane.b32.xlu2 %v1374_v20, %s2198_s20 }
 0xfa0   :  { %v1367_v53 = vpop.permute.xlu1 %1366 }
 0xfa1   :  { %v1369_v54 = vmul.f32 %v1367_v53, %v1364_v38 }
 0xfa8   :  { %v1302_v63 = vpop.permute.xlu1 %1301 }
 0xfb0   :  { %v1393_v4 = vpop.permute.xlu1 %1392 }
 0xff5   :  { %v1377_v55 = vpop.permute.xlu2 %1376 }
 0xff6   :  { %v1379_v56 = vadd.f32 %v1377_v55, %v1369_v54 }
 0xff8   :  { %2154 = vtanh.f32 %v1379_v56 }
 0xffe   :  { %v2155_v57 = vpop.eup %2154 }
 0xfff   :  { %1382 = vrot.lane.b32.xlu2 %v2155_v57, %s2197_s19 }
0x1001   :  { %v1291_v58 = vpop.permute.xlu0 %1290 }
0x1002   :  { %v1293_v59 = vadd.f32 %v1291_v58, %v1283_v26 }
0x1004   :  { %2156 = vtanh.f32 %v1293_v59  ;;  %v1305_v7 = vsel %vm1179_vm15, %v1293_v59, %v1281_v52 }
0x100a   :  { %v2157_v60 = vpop.eup %2156 }
0x100b   :  { %1296 = vrot.lane.b32.xlu0 %v2157_v60, %s2197_s19 }
0x1013   :  { %1388 = vperm.xlu0 %2096, %v1386_v62  }
0x1059   :  { %v1383_v51 = vpop.permute.xlu2 %1382 }
0x105a   :  { %v1385_v2 = vmul.f32 %v1383_v51, %v1364_v38 }
0x107d   :  { %v1297_v0 = vpop.permute.xlu0 %1296 }
0x107e   :  { %v1299_v1 = vmul.f32 %v1297_v0, %v1278_v45 }
0x1080   :  { %v1304_v50 = vsel %vm1179_vm15, %v1299_v1, %v1302_v63 }
0x1081   :  { %1307 = vrot.lane.b32.xlu2 %v1304_v50, %s2198_s20 }
0x1085   :  { %v2715_v3 = vpop.permute.xlu0 %1388 }
0x1086   :  { %vm1390_vm2 = vcmp.eq.s32.totalorder %v2715_v3, 1  ;;  %v2086_v3 = vld [vmem:[%s2865_s2] sm:$0xff] }
0x1087   :  { %v1395_v5 = vsel %vm1390_vm2, %v1385_v2, %v1393_v4  ;;  %v1396_v8 = vsel %vm1390_vm2, %v1379_v56, %v1367_v53  ;;  %v1597_v4 = vsel %vm2007_vm4, 1, %v2199_v21 }
0x1088   :  { %1398 = vrot.lane.b32.xlu0 %v1395_v5, %s2198_s20  ;;  %v1443_v6 = vpack.c.bf16 %v1395_v5, %v1395_v5 }
0x1089   :  { %1312 = vrot.lane.b32.xlu2 %v1305_v7, %s2200_s23 }
0x108a   :  { %1449 = vrot.lane.b32.xlu1 %v1443_v6, %s2198_s20 }
0x1090   :  { %1403 = vrot.lane.b32.xlu0 %v1396_v8, %s2200_s23  ;;  %v2087_v8 = vld [vmem:[%s2865_s2 + $0x8] sm:$0xff] }
0x1091   :  { %1683 = vmatpush.bf16.msrb.mxu3 %v2087_v8 }
0x1095   :  { %1684 = vmatpush.bf16.msrb.mxu3 %v2086_v3 }
0x10db   :  { %v1308_v13 = vpop.permute.xlu2 %1307 }
0x10dc   :  { %1310 = vst.msk [vmem:[#allocation2 + $0x8] sm:$0xff] %vm37_vm0, %v1308_v13 }
0x10dd   :  { %1317 = vst.msk [vmem:[#allocation4 + $0x28] sm:$0xff] %vm37_vm0, %v1308_v13 }
0x10e3   :  { %v1313_v16 = vpop.permute.xlu2 %1312  ;;  %v1407_v17 = vld [vmem:[#allocation2 + $0x8] sm:$0xff] }
0x10e4   :  { %1315 = vst.msk [vmem:[#allocation3 + $0x8] sm:$0xff] %vm37_vm0, %v1313_v16  ;;  %v1409_v18 = vpack.c.bf16 %v1407_v17, %v1407_v17 }
0x10e6   :  { %1997 = vmatmul.msk.bf16.vlgmr.msra.gmra.mxu3 %vm37_vm0, %v1409_v18 }
0x10eb   :  { %v1408_v19 = vld [vmem:[#allocation3 + $0x8] sm:$0xff] }
0x10ec   :  { %1491 = vrot.lane.b32.xlu0 %v1408_v19, %s2198_s20 }
0x10fa   :  { %v1399_v22 = vpop.permute.xlu0 %1398 }
0x10fb   :  { %1401 = vst.msk [vmem:[#allocation2] sm:$0xff] %vm37_vm0, %v1399_v22 }
0x10fc   :  { %v1450_v23 = vpop.permute.xlu1 %1449 }
0x10fd   :  { %2006 = vmatmul.msk.bf16.vlgmr.msrb.gmra.mxu0 %vm37_vm0, %v1450_v23 }
0x1102   :  { %v1404_v24 = vpop.permute.xlu0 %1403  ;;  %v1534_v25 = vld [vmem:[#allocation2] sm:$0xff] }
0x1103   :  { %1406 = vst.msk [vmem:[#allocation3] sm:$0xff] %vm37_vm0, %v1404_v24  ;;  %v1536_v27 = vpack.c.bf16 %v1534_v25, %v1534_v25  ;;  %v2105_v24 = vld [vmem:[%s2867_s4] ss:$0 sm:$0xff] }
0x1105   :  { %2017 = vmatmul.msk.bf16.vlgmr.msrb.gmra.mxu1 %vm37_vm0, %v1536_v27 }
0x110a   :  { %v1535_v53 = vld [vmem:[#allocation3] sm:$0xff] }
0x115e   :  { %v1492_v26 = vpop.permute.xlu0 %1491 }
0x1169   :  { %v1438_v28 = vpop.f32.mrf.mxu3 }
0x1171   :  { %v1440_v29 = vpop.f32.mrf.mxu3 }
0x117a   :  { %v1475_v31 = vpop.f32.mrf.mxu0 }
0x117b   :  { %v1482_v32 = vadd.f32 %v2104_v30, %v1475_v31 }
0x117d   :  { %v1483_v33 = vadd.f32 %v1482_v32, %v1438_v28 }
0x117f   :  { %v1484_v34 = vmul.f32 0.5, %v1483_v33 }
0x1181   :  { %v1485_v36 = vsel %vm2272_vm3, %v1483_v33, %v1484_v34 }
0x1182   :  { %2158 = vtanh.f32 %v1485_v36  ;;  %v1477_v37 = vpop.f32.mrf.mxu0  ;;  %v1565_v38 = vpop.f32.mrf.mxu1 }
0x1183   :  { %v1569_v40 = vadd.f32 %v2008_v35, %v1565_v38 }
0x1185   :  { %v1570_v41 = vmul.f32 0.5, %v1569_v40 }
0x1187   :  { %v1571_v42 = vsel %vm2272_vm3, %v1569_v40, %v1570_v41 }
0x1188   :  { %v2159_v43 = vpop.eup %2158  ;;  %2160 = vtanh.f32 %v1571_v42 }
0x1189   :  { %v1487_v44 = vmul.f32 0.5, %v2159_v43 }
0x118a   :  { %v1567_v45 = vpop.f32.mrf.mxu1 }
0x118b   :  { %v1488_v46 = vadd.f32 0.5, %v1487_v44 }
0x118d   :  { %v1489_v47 = vsel %vm2272_vm3, %v2159_v43, %v1488_v46 }
0x118e   :  { %v2161_v48 = vpop.eup %2160  ;;  %1496 = vrot.lane.b32.xlu1 %v1489_v47, %s2197_s19  ;;  %v1494_v0 = vmul.f32 %v1492_v26, %v1489_v47 }
0x118f   :  { %v1573_v39 = vmul.f32 0.5, %v2161_v48 }
0x1191   :  { %v1574_v20 = vadd.f32 0.5, %v1573_v39 }
0x1193   :  { %v1575_v52 = vsel %vm2272_vm3, %v2161_v48, %v1574_v20 }
0x1194   :  { %1582 = vrot.lane.b32.xlu2 %v1575_v52, %s2197_s19 }
0x119c   :  { %1577 = vrot.lane.b32.xlu2 %v1535_v53, %s2198_s20 }
0x11a4   :  { %1512 = vrot.lane.b32.xlu2 %v1407_v17, %s2200_s23  ;;  %v2084_v17 = vld [vmem:[%s2866_s3 + $0x10] sm:$0xff] }
0x11a5   :  { %1647 = vmatpush.bf16.msrb.mxu2 %v2084_v17 }
0x11ac   :  { %1603 = vrot.lane.b32.xlu2 %v1534_v25, %s2200_s23 }
0x11ee   :  { %v1583_v54 = vpop.permute.xlu2 %1582 }
0x11ef   :  { %v1585_v55 = vmul.f32 %v1583_v54, %v1575_v52 }
0x11f1   :  { %1587 = vrot.lane.b32.xlu0 %v1585_v55, %s2198_s20 }
0x11f6   :  { %v2776_v58 = vpop.permute.xlu2 %1577 }
0x11f7   :  { %v1580_v59 = vmul.f32 %v2776_v58, %v1575_v52 }
0x11fe   :  { %v1513_v5 = vpop.permute.xlu2 %1512 }
0x1200   :  { %v1497_v56 = vpop.permute.xlu1 %1496 }
0x1201   :  { %v1499_v57 = vmul.f32 %v1497_v56, %v1489_v47 }
0x1203   :  { %1501 = vrot.lane.b32.xlu1 %v1499_v57, %s2198_s20 }
0x1206   :  { %v1604_v6 = vpop.permute.xlu2 %1603 }
0x1263   :  { %v1588_v60 = vpop.permute.xlu0 %1587 }
0x1264   :  { %v2779_v62 = vadd.f32 %v1588_v60, %v1580_v59 }
0x1266   :  { %2162 = vtanh.f32 %v2779_v62 }
0x126c   :  { %v2163_v63 = vpop.eup %2162 }
0x126d   :  { %1593 = vrot.lane.b32.xlu0 %v2163_v63, %s2197_s19 }
0x1275   :  { %v1502_v1 = vpop.permute.xlu1 %1501 }
0x1276   :  { %v1504_v50 = vadd.f32 %v1502_v1, %v1494_v0 }
0x1278   :  { %2164 = vtanh.f32 %v1504_v50  ;;  %v1516_v51 = vsel %vm1390_vm2, %v1504_v50, %v1492_v26 }
0x1279   :  { %1523 = vrot.lane.b32.xlu2 %v1516_v51, %s2200_s23 }
0x127e   :  { %v2165_v2 = vpop.eup %2164 }
0x127f   :  { %1507 = vrot.lane.b32.xlu1 %v2165_v2, %s2197_s19 }
0x1287   :  { %1599 = vperm.xlu1 %2097, %v1597_v4  }
0x12d3   :  { %v1524_v7 = vpop.permute.xlu2 %1523 }
0x12d4   :  { %1526 = vst.msk [vmem:[#allocation3 + $0x8] sm:$0xff] %vm37_vm0, %v1524_v7 }
0x12db   :  { %v1619_v16 = vld [vmem:[#allocation3 + $0x8] sm:$0xff] }
0x12df   :  { %v1594_v61 = vpop.permute.xlu0 %1593 }
0x12e0   :  { %v1596_v12 = vmul.f32 %v1594_v61, %v1575_v52 }
0x12f1   :  { %v1508_v10 = vpop.permute.xlu1 %1507 }
0x12f2   :  { %v1510_v49 = vmul.f32 %v1508_v10, %v1489_v47 }
0x12f4   :  { %v1515_v21 = vsel %vm1390_vm2, %v1510_v49, %v1513_v5 }
0x12f5   :  { %1518 = vrot.lane.b32.xlu0 %v1515_v21, %s2198_s20 }
0x12f9   :  { %v2799_v13 = vpop.permute.xlu1 %1599 }
0x12fa   :  { %vm1601_vm5 = vcmp.eq.s32.totalorder %v2799_v13, 1 }
0x12fb   :  { %v1606_v14 = vsel %vm1601_vm5, %v1596_v12, %v1604_v6  ;;  %v1607_v48 = vsel %vm1601_vm5, %v2779_v62, %v2776_v58 }
0x12fc   :  { %v1654_v15 = vpack.c.bf16 %v1606_v14, %v1606_v14 }
0x12fe   :  { %1660 = vrot.lane.b32.xlu1 %v1654_v15, %s2198_s20 }
0x1306   :  { %1702 = vrot.lane.b32.xlu1 %v1619_v16, %s2198_s20 }
0x1367   :  { %v1519_v18 = vpop.permute.xlu0 %1518 }
0x1368   :  { %1521 = vst.msk [vmem:[#allocation2 + $0x8] sm:$0xff] %vm37_vm0, %v1519_v18 }
0x1369   :  { %1528 = vst.msk [vmem:[#allocation4 + $0x30] sm:$0xff] %vm37_vm0, %v1519_v18 }
0x136f   :  { %v1618_v19 = vld [vmem:[#allocation2 + $0x8] sm:$0xff] }
0x1370   :  { %v1620_v22 = vpack.c.bf16 %v1618_v19, %v1618_v19  ;;  %1723 = vrot.lane.b32.xlu1 %v1618_v19, %s2200_s23  ;;  %v1661_v23 = vpop.permute.xlu1 %1660 }
0x1371   :  { %2039 = vmatmul.msk.bf16.vlgmr.msrb.gmra.mxu3 %vm37_vm0, %v1661_v23 }
0x1372   :  { %2030 = vmatmul.msk.bf16.vlgmr.msrb.gmra.mxu2 %vm37_vm0, %v1620_v22 }
0x1378   :  { %v1703_v41 = vpop.permute.xlu1 %1702 }
0x13e2   :  { %v1724_v54 = vpop.permute.xlu1 %1723 }
0x13f4   :  { %v1686_v25 = vpop.f32.mrf.mxu3 }
0x13f5   :  { %v1693_v27 = vadd.f32 %v2105_v24, %v1686_v25  ;;  %v1649_v28 = vpop.f32.mrf.mxu2 }
0x13f7   :  { %v1694_v29 = vadd.f32 %v1693_v27, %v1649_v28 }
0x13f9   :  { %v1695_v30 = vmul.f32 0.5, %v1694_v29 }
0x13fb   :  { %v1696_v31 = vsel %vm2272_vm3, %v1694_v29, %v1695_v30 }
0x13fc   :  { %2166 = vtanh.f32 %v1696_v31  ;;  %v1688_v32 = vpop.f32.mrf.mxu3 }
0x13fd   :  { %v1651_v33 = vpop.f32.mrf.mxu2 }
0x1402   :  { %v2167_v34 = vpop.eup %2166 }
0x1403   :  { %v1698_v35 = vmul.f32 0.5, %v2167_v34 }
0x1405   :  { %v1699_v36 = vadd.f32 0.5, %v1698_v35 }
0x1407   :  { %v1700_v37 = vsel %vm2272_vm3, %v2167_v34, %v1699_v36 }
0x1408   :  { %1707 = vrot.lane.b32.xlu0 %v1700_v37, %s2197_s19  ;;  %v1705_v42 = vmul.f32 %v1703_v41, %v1700_v37 }
0x147a   :  { %v1708_v38 = vpop.permute.xlu0 %1707 }
0x147b   :  { %v1710_v40 = vmul.f32 %v1708_v38, %v1700_v37 }
0x147d   :  { %1712 = vrot.lane.b32.xlu2 %v1710_v40, %s2198_s20 }
0x1485   :  { %1609 = vrot.lane.b32.xlu2 %v1606_v14, %s2198_s20 }
0x14d7   :  { %v1713_v43 = vpop.permute.xlu2 %1712 }
0x14d8   :  { %v1715_v44 = vadd.f32 %v1713_v43, %v1705_v42 }
0x14da   :  { %2168 = vtanh.f32 %v1715_v44  ;;  %v1727_v45 = vsel %vm1601_vm5, %v1715_v44, %v1703_v41 }
0x14db   :  { %1734 = vrot.lane.b32.xlu2 %v1727_v45, %s2200_s23 }
0x14df   :  { %v1610_v11 = vpop.permute.xlu2 %1609 }
0x14e0   :  { %v2169_v46 = vpop.eup %2168  ;;  %1612 = vst.msk [vmem:[#allocation2] sm:$0xff] %vm37_vm0, %v1610_v11 }
0x14e1   :  { %1718 = vrot.lane.b32.xlu0 %v2169_v46, %s2197_s19 }
0x14e7   :  { %v1743_v47 = vld [vmem:[#allocation2] sm:$0xff] }
0x14e8   :  { %1745 = vst.msk [vmem:[%s2871_s8] sm:$0xff] %vm37_vm0, %v1743_v47 }
0x14e9   :  { %1614 = vrot.lane.b32.xlu0 %v1607_v48, %s2200_s23 }
0x1535   :  { %v1735_v39 = vpop.permute.xlu2 %1734 }
0x1536   :  { %1737 = vst.msk [vmem:[#allocation3 + $0x8] sm:$0xff] %vm37_vm0, %v1735_v39 }
0x153d   :  { %v1748_v20 = vld [vmem:[#allocation3 + $0x8] sm:$0xff] }
0x153e   :  { %1750 = vst.msk [vmem:[%s2872_s9 + $0x8] sm:$0xff] %vm37_vm0, %v1748_v20 }
0x1553   :  { %v1719_v52 = vpop.permute.xlu0 %1718 }
0x1554   :  { %v1721_v53 = vmul.f32 %v1719_v52, %v1700_v37 }
0x1556   :  { %v1726_v55 = vsel %vm1601_vm5, %v1721_v53, %v1724_v54 }
0x1557   :  { %1729 = vrot.lane.b32.xlu1 %v1726_v55, %s2198_s20  ;;  %s2202_s20 = smov 128  }
0x155b   :  { %v1615_v56 = vpop.permute.xlu0 %1614 }
0x155c   :  { %1617 = vst.msk [vmem:[#allocation3] sm:$0xff] %vm37_vm0, %v1615_v56 }
0x1563   :  { %v1747_v57 = vld [vmem:[#allocation3] sm:$0xff] }
0x1564   :  { %1749 = vst.msk [vmem:[%s2872_s9] sm:$0xff] %vm37_vm0, %v1747_v57 }
0x15c9   :  { %v1730_v26 = vpop.permute.xlu1 %1729 }
0x15ca   :  { %1732 = vst.msk [vmem:[#allocation2 + $0x8] sm:$0xff] %vm37_vm0, %v1730_v26 }
0x15cb   :  { %1739 = vst.msk [vmem:[#allocation4 + $0x38] sm:$0xff] %vm37_vm0, %v1730_v26 }
0x15cc   :  { %1763 = dma.vmem_to_hbm [thread:$0]  %s1756_s30, 1024, %s1758_s12, [#allocation5], %s2202_s20, %s2202_s20, %s2203_s13  }
0x15d1   :  { %v1744_v58 = vld [vmem:[#allocation2 + $0x8] sm:$0xff] }
0x15d2   :  { %1746 = vst.msk [vmem:[%s2871_s8 + $0x8] sm:$0xff] %vm37_vm0, %v1744_v58 }
0x15d3   :  { %2195 = dma.done.wait [#allocation5], 1024  }
0x15d4   :  { %2196 = vsyncadd [#allocation5], 4294966272 }
0x15d5   :  { %1776 = vsyncpa [#allocation5], 1 }

// kernel: seq2seq_forward.8
= control target key start
LH: loop header
LB: loop body
LE: loop exit
PB: predicated region body
PF: predicated region fallthrough
CT: control target
= control target key end

     0   :  { %15 = vsyncpa [#allocation5], 0  ;;  %vm38_vm0 = vcmask 261120   ;;  %s2261_s0 = inlined_call_operand.vmem [shape: s32[8,1], index: 0, kind: input, shape index: {}]   ;;  %s2262_s1 = inlined_call_operand.vmem [shape: f32[6,8,128], index: 1, kind: input, shape index: {}]   ;;  %s2263_s2 = inlined_call_operand.vmem [shape: bf16[1,32,128], index: 2, kind: input, shape index: {}]   ;;  %s2264_s3 = inlined_call_operand.vmem [shape: bf16[2,32,128], index: 3, kind: input, shape index: {}]   ;;  %s2265_s4 = inlined_call_operand.vmem [shape: f32[1,1,128], index: 4, kind: input, shape index: {}]   ;;  %s2266_s5 = inlined_call_operand.vmem [shape: f32[2,8,32], index: 5, kind: input, shape index: {}]   ;;  %s2267_s6 = inlined_call_operand.vmem [shape: f32[2,8,32], index: 6, kind: input, shape index: {}]   ;;  %s2268_s7 = inlined_call_operand.vmem [shape: f32[6,8,32], index: 7, kind: output, shape index: {0}]   ;;  %s2269_s8 = inlined_call_operand.hbm [shape: f32[2,8,32], index: 8, kind: output, shape index: {1}]   ;;  %s2270_s9 = inlined_call_operand.hbm [shape: f32[2,8,32], index: 9, kind: output, shape index: {2}]  }
   0x1   :  { %v1573_v0 = vld [vmem:[%s2264_s3 + $0x8] sm:$0xff]  ;;  %v36_v1 = vld [vmem:[%s2266_s5] sm:$0xff] }
   0x2   :  { %39 = vst.msk [vmem:[#allocation2] sm:$0xff] %vm38_vm0, %v36_v1  ;;  %84 = vmatpush.bf16.msra.mxu0 %v1573_v0  ;;  %v1572_v2 = vld [vmem:[%s2264_s3] sm:$0xff] }
   0x3   :  { %16 = vsyncpa [#allocation7], 0  ;;  %v41_v5 = vld [vmem:[%s2267_s6] sm:$0xff]  ;;  %v46_v6 = vlaneseq  ;;  %s1725_s19 = smov 64   ;;  %s1726_s20 = smov 32   ;;  %v1727_v21 = vmov 0  }
   0x4   :  { %43 = vst.msk [vmem:[#allocation3] sm:$0xff] %vm38_vm0, %v41_v5  ;;  %v54_v8 = vld [vmem:[%s2262_s1] sm:$0xff]  ;;  %1616 = vset.pattern.permute.xlu2 %v1727_v21  ;;  %1617 = vset.pattern.permute.xlu0 %v1727_v21  ;;  %s1728_s23 = smov 96   ;;  %v1575_v34 = vld [vmem:[%s2264_s3 + $0x18] sm:$0xff]  ;;  %v1577_v35 = vld [vmem:[%s2263_s2 + $0x8] sm:$0xff]  ;;  %s1351_s27 = sshll.u32 %s2270_s9, 4  ;;  %s1352_s27 = int_to_ptr.hbm [resolvable:$true] %s1351_s27 }
   0x5   :  { %v47_v7 = vand.u32 127, %v46_v6  ;;  %v1814_v20 = vld [vmem:[%s2261_s0] sm:$0xff]  ;;  %171 = vmatpush.bf16.msra.mxu1 %v1575_v34  ;;  %208 = vmatpush.bf16.msra.mxu2 %v1577_v35  ;;  %v1574_v36 = vld [vmem:[%s2264_s3 + $0x10] sm:$0xff]  ;;  %v37_v42 = vld [vmem:[%s2266_s5 + $0x8] sm:$0xff]  ;;  %s1730_s28 = smov 128   ;;  %s1731_s29 = smov 8  }
   0x6   :  { %85 = vmatpush.bf16.msra.mxu0 %v1572_v2  ;;  %vm1370_vm4 = vcmp.gt.s32.totalorder %v1814_v20, 0  ;;  %v1576_v37 = vld [vmem:[%s2263_s2] sm:$0xff]  ;;  %40 = vst.msk [vmem:[#allocation2 + $0x8] sm:$0xff] %vm38_vm0, %v37_v42  ;;  %v1579_v45 = vld [vmem:[%s2264_s3 + $0x8] sm:$0xff]  ;;  %vm1402_vm6 = vcmp.gt.s32.totalorder %v1814_v20, 1  ;;  %vm1436_vm8 = vcmp.gt.s32.totalorder %v1814_v20, 2 }
   0x7   :  { %vm48_vm1 = vcmp.ge.s32.totalorder %v47_v7, 64  ;;  %vm49_vm2 = vcmp.lt.s32.totalorder %v47_v7, 96  ;;  %v119_v22 = vsel %vm1370_vm4, 1, %v1727_v21  ;;  %297 = vmatpush.bf16.msra.mxu3 %v1579_v45  ;;  %v1578_v46 = vld [vmem:[%s2264_s3] sm:$0xff]  ;;  %v42_v47 = vld [vmem:[%s2267_s6 + $0x8] sm:$0xff]  ;;  %v1581_v45 = vld [vmem:[%s2264_s3 + $0x18] sm:$0xff] }
   0x8   :  { %vm1801_vm3 = vmand %vm48_vm1, %vm49_vm2  ;;  %121 = vperm.xlu2 %1616, %v119_v22   ;;  %44 = vst.msk [vmem:[#allocation3 + $0x8] sm:$0xff] %vm38_vm0, %v42_v47  ;;  %v1618_v55 = vld [vmem:[%s2265_s4] ss:$0 sm:$0xff]  ;;  %v1403_v60 = vld [vmem:[%s2262_s1 + $0x8] sm:$0xff]  ;;  %vm1470_vm10 = vcmp.gt.s32.totalorder %v1814_v20, 3  ;;  %vm1504_vm12 = vcmp.gt.s32.totalorder %v1814_v20, 4 }
   0x9   :  { %v55_v3 = vld [vmem:[#allocation2] sm:$0xff]  ;;  %172 = vmatpush.bf16.msra.mxu1 %v1574_v36  ;;  %209 = vmatpush.bf16.msra.mxu2 %v1576_v37  ;;  %v1580_v47 = vld [vmem:[%s2264_s3 + $0x10] sm:$0xff]  ;;  %s1732_s10 = smov [#allocation4]   ;;  %s1338_s13 = sshll.u32 %s2269_s8, 4  ;;  %s1339_s13 = int_to_ptr.hbm [resolvable:$true] %s1338_s13 }
   0xa   :  { %v57_v4 = vpack.c.bf16 %v55_v3, %v55_v3  ;;  %381 = vmatpush.bf16.msrb.mxu0 %v1581_v45  ;;  %s1336_s11 = sshll.u32 %s1732_s10, 4  ;;  %s1337_s11 = int_to_ptr.vmem [resolvable:$true] %s1336_s11 }
   0xb   :  { %v56_v19 = vld [vmem:[#allocation3] sm:$0xff]  ;;  %298 = vmatpush.bf16.msra.mxu3 %v1578_v46  ;;  %v1582_v46 = vld [vmem:[%s2263_s2] sm:$0xff] }
   0xc   :  { %1379 = vmatmul.msk.bf16.vlgmr.msra.gmra.mxu0 %vm38_vm0, %v57_v4 }
   0xd   :  { %v141_v43 = vld [vmem:[#allocation2 + $0x8] sm:$0xff] }
   0xe   :  { %v144_v44 = vpack.c.bf16 %v141_v43, %v141_v43  ;;  %382 = vmatpush.bf16.msrb.mxu0 %v1580_v47 }
   0xf   :  { %v143_v48 = vld [vmem:[#allocation3 + $0x8] sm:$0xff] }
  0x10   :  { %125 = vrot.lane.b32.xlu2 %v55_v3, %s1728_s23  ;;  %1392 = vmatmul.msk.bf16.vlgmr.msra.gmra.mxu1 %vm38_vm0, %v144_v44  ;;  %v1583_v44 = vld [vmem:[%s2263_s2 + $0x8] sm:$0xff] }
  0x11   :  { %418 = vmatpush.bf16.msrb.mxu1 %v1583_v44 }
  0x15   :  { %419 = vmatpush.bf16.msrb.mxu1 %v1582_v46 }
  0x62   :  { %v1822_v26 = vpop.permute.xlu2 %121 }
  0x63   :  { %vm123_vm5 = vcmp.eq.s32.totalorder %v1822_v26, 1 }
  0x6a   :  { %v126_v32 = vpop.permute.xlu2 %125 }
  0x89   :  { %v87_v9 = vpop.f32.mrf.mxu0 }
  0x8a   :  { %v91_v10 = vadd.f32 %v87_v9, %v54_v8 }
  0x8c   :  { %v92_v12 = vmul.f32 0.5, %v91_v10 }
  0x8d   :  { %v174_v53 = vpop.f32.mrf.mxu1 }
  0x8e   :  { %v93_v13 = vsel %vm1801_vm3, %v91_v10, %v92_v12 }
  0x8f   :  { %1624 = vtanh.f32 %v93_v13 }
  0x91   :  { %v89_v14 = vpop.f32.mrf.mxu0 }
  0x95   :  { %v1625_v15 = vpop.eup %1624  ;;  %v176_v54 = vpop.f32.mrf.mxu1 }
  0x96   :  { %v95_v16 = vmul.f32 0.5, %v1625_v15 }
  0x98   :  { %v96_v17 = vadd.f32 0.5, %v95_v16 }
  0x9a   :  { %v97_v18 = vsel %vm1801_vm3, %v1625_v15, %v96_v17 }
  0x9b   :  { %104 = vrot.lane.b32.xlu0 %v97_v18, %s1725_s19 }
  0xa3   :  { %99 = vrot.lane.b32.xlu0 %v56_v19, %s1726_s20 }
 0x10d   :  { %v105_v23 = vpop.permute.xlu0 %104 }
 0x10e   :  { %v107_v24 = vmul.f32 %v105_v23, %v97_v18 }
 0x110   :  { %109 = vrot.lane.b32.xlu1 %v107_v24, %s1726_s20 }
 0x115   :  { %v100_v25 = vpop.permute.xlu0 %99 }
 0x116   :  { %v102_v27 = vmul.f32 %v100_v25, %v97_v18 }
 0x182   :  { %v110_v28 = vpop.permute.xlu1 %109 }
 0x183   :  { %v112_v29 = vadd.f32 %v110_v28, %v102_v27 }
 0x185   :  { %1626 = vtanh.f32 %v112_v29  ;;  %v129_v30 = vsel %vm123_vm5, %v112_v29, %v100_v25 }
 0x186   :  { %136 = vrot.lane.b32.xlu2 %v129_v30, %s1728_s23 }
 0x18b   :  { %v1627_v31 = vpop.eup %1626 }
 0x18c   :  { %115 = vrot.lane.b32.xlu1 %v1627_v31, %s1725_s19  ;;  %v332_v31 = vsel %vm1402_vm6, 1, %v1727_v21 }
 0x18e   :  { %227 = vrot.lane.b32.xlu2 %v143_v48, %s1726_s20  ;;  %v1585_v48 = vld [vmem:[%s2264_s3 + $0x8] sm:$0xff] }
 0x18f   :  { %508 = vmatpush.bf16.msrb.mxu2 %v1585_v48 }
 0x1e0   :  { %v137_v33 = vpop.permute.xlu2 %136 }
 0x1e1   :  { %139 = vst.msk [vmem:[#allocation3] sm:$0xff] %vm38_vm0, %v137_v33 }
 0x1e8   :  { %v270_v13 = vld [vmem:[#allocation3] sm:$0xff] }
 0x1fe   :  { %v116_v38 = vpop.permute.xlu1 %115 }
 0x1ff   :  { %v118_v39 = vmul.f32 %v116_v38, %v97_v18  ;;  %v228_v18 = vpop.permute.xlu2 %227 }
 0x201   :  { %v128_v40 = vsel %vm123_vm5, %v118_v39, %v126_v32 }
 0x202   :  { %131 = vrot.lane.b32.xlu0 %v128_v40, %s1726_s20  ;;  %v179_v41 = vpack.c.bf16 %v128_v40, %v128_v40 }
 0x204   :  { %185 = vrot.lane.b32.xlu1 %v179_v41, %s1726_s20 }
 0x274   :  { %v132_v49 = vpop.permute.xlu0 %131 }
 0x275   :  { %134 = vst.msk [vmem:[#allocation2] sm:$0xff] %vm38_vm0, %v132_v49 }
 0x276   :  { %v186_v50 = vpop.permute.xlu1 %185 }
 0x277   :  { %1401 = vmatmul.msk.bf16.vlgmr.msra.gmra.mxu2 %vm38_vm0, %v186_v50  ;;  %v1584_v50 = vld [vmem:[%s2264_s3] sm:$0xff] }
 0x278   :  { %509 = vmatpush.bf16.msrb.mxu2 %v1584_v50 }
 0x27c   :  { %v269_v51 = vld [vmem:[#allocation2] sm:$0xff] }
 0x27d   :  { %v271_v52 = vpack.c.bf16 %v269_v51, %v269_v51 }
 0x27f   :  { %1412 = vmatmul.msk.bf16.vlgmr.msra.gmra.mxu3 %vm38_vm0, %v271_v52 }
 0x2fa   :  { %v211_v56 = vpop.f32.mrf.mxu2 }
 0x2fb   :  { %v218_v57 = vadd.f32 %v1618_v55, %v211_v56 }
 0x2fd   :  { %v219_v58 = vadd.f32 %v218_v57, %v174_v53 }
 0x2ff   :  { %v220_v59 = vmul.f32 0.5, %v219_v58 }
 0x301   :  { %v221_v61 = vsel %vm1801_vm3, %v219_v58, %v220_v59  ;;  %v1619_v58 = vld [vmem:[%s2265_s4] ss:$0 sm:$0xff] }
 0x302   :  { %1628 = vtanh.f32 %v221_v61  ;;  %v213_v62 = vpop.f32.mrf.mxu2  ;;  %v300_v63 = vpop.f32.mrf.mxu3 }
 0x303   :  { %v304_v0 = vadd.f32 %v1403_v60, %v300_v63 }
 0x305   :  { %v305_v1 = vmul.f32 0.5, %v304_v0 }
 0x307   :  { %v306_v2 = vsel %vm1801_vm3, %v304_v0, %v305_v1 }
 0x308   :  { %v1629_v3 = vpop.eup %1628  ;;  %1630 = vtanh.f32 %v306_v2 }
 0x309   :  { %v223_v4 = vmul.f32 0.5, %v1629_v3 }
 0x30a   :  { %v302_v5 = vpop.f32.mrf.mxu3 }
 0x30b   :  { %v224_v6 = vadd.f32 0.5, %v223_v4 }
 0x30d   :  { %v225_v7 = vsel %vm1801_vm3, %v1629_v3, %v224_v6 }
 0x30e   :  { %v1631_v8 = vpop.eup %1630  ;;  %232 = vrot.lane.b32.xlu0 %v225_v7, %s1725_s19  ;;  %v230_v27 = vmul.f32 %v228_v18, %v225_v7 }
 0x30f   :  { %v308_v9 = vmul.f32 0.5, %v1631_v8 }
 0x311   :  { %v309_v10 = vadd.f32 0.5, %v308_v9 }
 0x313   :  { %v310_v12 = vsel %vm1801_vm3, %v1631_v8, %v309_v10  ;;  %v1437_v8 = vld [vmem:[%s2262_s1 + $0x10] sm:$0xff] }
 0x314   :  { %317 = vrot.lane.b32.xlu1 %v310_v12, %s1725_s19 }
 0x31c   :  { %312 = vrot.lane.b32.xlu1 %v270_v13, %s1726_s20 }
 0x324   :  { %248 = vrot.lane.b32.xlu1 %v141_v43, %s1728_s23 }
 0x32c   :  { %338 = vrot.lane.b32.xlu1 %v269_v51, %s1728_s23 }
 0x380   :  { %v233_v14 = vpop.permute.xlu0 %232 }
 0x381   :  { %v235_v15 = vmul.f32 %v233_v14, %v225_v7 }
 0x383   :  { %237 = vrot.lane.b32.xlu0 %v235_v15, %s1726_s20 }
 0x386   :  { %v318_v16 = vpop.permute.xlu1 %317 }
 0x387   :  { %v320_v17 = vmul.f32 %v318_v16, %v310_v12 }
 0x389   :  { %322 = vrot.lane.b32.xlu2 %v320_v17, %s1726_s20 }
 0x38e   :  { %v313_v19 = vpop.permute.xlu1 %312 }
 0x38f   :  { %v315_v22 = vmul.f32 %v313_v19, %v310_v12 }
 0x396   :  { %v249_v33 = vpop.permute.xlu1 %248 }
 0x39e   :  { %v339_v40 = vpop.permute.xlu1 %338 }
 0x3e3   :  { %v323_v23 = vpop.permute.xlu2 %322 }
 0x3e4   :  { %v325_v24 = vadd.f32 %v323_v23, %v315_v22 }
 0x3e6   :  { %1632 = vtanh.f32 %v325_v24 }
 0x3ec   :  { %v1633_v25 = vpop.eup %1632 }
 0x3ed   :  { %328 = vrot.lane.b32.xlu2 %v1633_v25, %s1725_s19 }
 0x3f5   :  { %v238_v28 = vpop.permute.xlu0 %237 }
 0x3f6   :  { %v240_v29 = vadd.f32 %v238_v28, %v230_v27 }
 0x3f8   :  { %1634 = vtanh.f32 %v240_v29  ;;  %v252_v32 = vsel %vm123_vm5, %v240_v29, %v228_v18 }
 0x3fe   :  { %v1635_v30 = vpop.eup %1634 }
 0x3ff   :  { %243 = vrot.lane.b32.xlu0 %v1635_v30, %s1725_s19 }
 0x407   :  { %334 = vperm.xlu0 %1617, %v332_v31  }
 0x40f   :  { %259 = vrot.lane.b32.xlu0 %v252_v32, %s1728_s23  ;;  %v543_v32 = vsel %vm1436_vm8, 1, %v1727_v21 }
 0x447   :  { %v329_v37 = vpop.permute.xlu2 %328 }
 0x448   :  { %v331_v38 = vmul.f32 %v329_v37, %v310_v12 }
 0x471   :  { %v244_v34 = vpop.permute.xlu0 %243 }
 0x472   :  { %v246_v35 = vmul.f32 %v244_v34, %v225_v7 }
 0x474   :  { %v251_v36 = vsel %vm123_vm5, %v246_v35, %v249_v33 }
 0x475   :  { %254 = vrot.lane.b32.xlu2 %v251_v36, %s1726_s20 }
 0x479   :  { %v1896_v39 = vpop.permute.xlu0 %334 }
 0x47a   :  { %vm336_vm7 = vcmp.eq.s32.totalorder %v1896_v39, 1  ;;  %v1587_v39 = vld [vmem:[%s2264_s3 + $0x18] sm:$0xff] }
 0x47b   :  { %v341_v41 = vsel %vm336_vm7, %v331_v38, %v339_v40  ;;  %v342_v26 = vsel %vm336_vm7, %v325_v24, %v313_v19  ;;  %592 = vmatpush.bf16.msrb.mxu3 %v1587_v39 }
 0x47c   :  { %344 = vrot.lane.b32.xlu1 %v341_v41, %s1726_s20  ;;  %v389_v42 = vpack.c.bf16 %v341_v41, %v341_v41 }
 0x47e   :  { %395 = vrot.lane.b32.xlu2 %v389_v42, %s1726_s20 }
 0x481   :  { %v260_v43 = vpop.permute.xlu0 %259 }
 0x482   :  { %262 = vst.msk [vmem:[#allocation3 + $0x8] sm:$0xff] %vm38_vm0, %v260_v43 }
 0x486   :  { %349 = vrot.lane.b32.xlu2 %v342_v26, %s1728_s23 }
 0x489   :  { %v354_v7 = vld [vmem:[#allocation3 + $0x8] sm:$0xff] }
 0x4cf   :  { %v255_v49 = vpop.permute.xlu2 %254 }
 0x4d0   :  { %257 = vst.msk [vmem:[#allocation2 + $0x8] sm:$0xff] %vm38_vm0, %v255_v49 }
 0x4d1   :  { %263 = vst.msk [vmem:[%s2268_s7] sm:$0xff] %vm38_vm0, %v255_v49  ;;  %v1586_v49 = vld [vmem:[%s2264_s3 + $0x10] sm:$0xff] }
 0x4d2   :  { %593 = vmatpush.bf16.msrb.mxu3 %v1586_v49 }
 0x4d7   :  { %v353_v51 = vld [vmem:[#allocation2 + $0x8] sm:$0xff] }
 0x4d8   :  { %v396_v52 = vpop.permute.xlu2 %395  ;;  %v355_v53 = vpack.c.bf16 %v353_v51, %v353_v51 }
 0x4d9   :  { %1434 = vmatmul.msk.bf16.vlgmr.msrb.gmra.mxu1 %vm38_vm0, %v396_v52 }
 0x4da   :  { %1425 = vmatmul.msk.bf16.vlgmr.msrb.gmra.mxu0 %vm38_vm0, %v355_v53 }
 0x4e0   :  { %v350_v54 = vpop.permute.xlu2 %349 }
 0x4e1   :  { %352 = vst.msk [vmem:[#allocation3] sm:$0xff] %vm38_vm0, %v350_v54 }
 0x4e8   :  { %v481_v19 = vld [vmem:[#allocation3] sm:$0xff] }
 0x4ee   :  { %v345_v55 = vpop.permute.xlu1 %344 }
 0x4ef   :  { %347 = vst.msk [vmem:[#allocation2] sm:$0xff] %vm38_vm0, %v345_v55 }
 0x4f6   :  { %v480_v56 = vld [vmem:[#allocation2] sm:$0xff] }
 0x4f7   :  { %v482_v57 = vpack.c.bf16 %v480_v56, %v480_v56 }
 0x4f9   :  { %1446 = vmatmul.msk.bf16.vlgmr.msrb.gmra.mxu2 %vm38_vm0, %v482_v57  ;;  %v1590_v57 = vld [vmem:[%s2264_s3] sm:$0xff] }
 0x556   :  { %v421_v59 = vpop.f32.mrf.mxu1 }
 0x557   :  { %v428_v60 = vadd.f32 %v1619_v58, %v421_v59  ;;  %v384_v61 = vpop.f32.mrf.mxu0  ;;  %v1589_v58 = vld [vmem:[%s2263_s2 + $0x8] sm:$0xff]  ;;  %v1588_v59 = vld [vmem:[%s2263_s2] sm:$0xff] }
 0x558   :  { %629 = vmatpush.bf16.msra.mxu0 %v1589_v58  ;;  %v1595_v58 = vld [vmem:[%s2263_s2 + $0x8] sm:$0xff] }
 0x559   :  { %v429_v62 = vadd.f32 %v428_v60, %v384_v61  ;;  %840 = vmatpush.bf16.msra.mxu3 %v1595_v58 }
 0x55b   :  { %v430_v63 = vmul.f32 0.5, %v429_v62 }
 0x55c   :  { %630 = vmatpush.bf16.msra.mxu0 %v1588_v59  ;;  %v1594_v59 = vld [vmem:[%s2263_s2] sm:$0xff] }
 0x55d   :  { %v431_v0 = vsel %vm1801_vm3, %v429_v62, %v430_v63  ;;  %841 = vmatpush.bf16.msra.mxu3 %v1594_v59 }
 0x55e   :  { %1636 = vtanh.f32 %v431_v0  ;;  %v423_v1 = vpop.f32.mrf.mxu1 }
 0x55f   :  { %v386_v2 = vpop.f32.mrf.mxu0 }
 0x564   :  { %v1637_v3 = vpop.eup %1636 }
 0x565   :  { %v433_v4 = vmul.f32 0.5, %v1637_v3 }
 0x567   :  { %v434_v5 = vadd.f32 0.5, %v433_v4 }
 0x569   :  { %v435_v6 = vsel %vm1801_vm3, %v1637_v3, %v434_v5  ;;  %v1471_v3 = vld [vmem:[%s2262_s1 + $0x18] sm:$0xff] }
 0x56a   :  { %442 = vrot.lane.b32.xlu1 %v435_v6, %s1725_s19 }
 0x572   :  { %437 = vrot.lane.b32.xlu1 %v354_v7, %s1726_s20 }
 0x57c   :  { %v511_v9 = vpop.f32.mrf.mxu2 }
 0x57d   :  { %v515_v10 = vadd.f32 %v1437_v8, %v511_v9 }
 0x57f   :  { %v516_v12 = vmul.f32 0.5, %v515_v10 }
 0x581   :  { %v517_v13 = vsel %vm1801_vm3, %v515_v10, %v516_v12  ;;  %v1620_v10 = vld [vmem:[%s2265_s4] ss:$0 sm:$0xff] }
 0x582   :  { %1638 = vtanh.f32 %v517_v13 }
 0x584   :  { %v513_v14 = vpop.f32.mrf.mxu2 }
 0x588   :  { %v1639_v15 = vpop.eup %1638 }
 0x589   :  { %v519_v16 = vmul.f32 0.5, %v1639_v15 }
 0x58b   :  { %v520_v17 = vadd.f32 0.5, %v519_v16 }
 0x58d   :  { %v521_v18 = vsel %vm1801_vm3, %v1639_v15, %v520_v17 }
 0x58e   :  { %528 = vrot.lane.b32.xlu0 %v521_v18, %s1725_s19 }
 0x596   :  { %523 = vrot.lane.b32.xlu0 %v481_v19, %s1726_s20 }
 0x59e   :  { %458 = vrot.lane.b32.xlu0 %v353_v51, %s1728_s23 }
 0x5a6   :  { %549 = vrot.lane.b32.xlu0 %v480_v56, %s1728_s23  ;;  %v1591_v56 = vld [vmem:[%s2264_s3 + $0x8] sm:$0xff] }
 0x5a7   :  { %719 = vmatpush.bf16.msra.mxu1 %v1591_v56  ;;  %v1593_v56 = vld [vmem:[%s2264_s3 + $0x18] sm:$0xff] }
 0x5a8   :  { %803 = vmatpush.bf16.msra.mxu2 %v1593_v56 }
 0x5ab   :  { %720 = vmatpush.bf16.msra.mxu1 %v1590_v57  ;;  %v1592_v57 = vld [vmem:[%s2264_s3 + $0x10] sm:$0xff] }
 0x5ac   :  { %804 = vmatpush.bf16.msra.mxu2 %v1592_v57  ;;  %v1600_v57 = vld [vmem:[%s2263_s2] sm:$0xff] }
 0x5dc   :  { %v443_v22 = vpop.permute.xlu1 %442 }
 0x5dd   :  { %v445_v23 = vmul.f32 %v443_v22, %v435_v6 }
 0x5df   :  { %447 = vrot.lane.b32.xlu2 %v445_v23, %s1726_s20 }
 0x5e4   :  { %v438_v27 = vpop.permute.xlu1 %437 }
 0x5e5   :  { %v440_v28 = vmul.f32 %v438_v27, %v435_v6 }
 0x600   :  { %v529_v24 = vpop.permute.xlu0 %528 }
 0x601   :  { %v531_v25 = vmul.f32 %v529_v24, %v521_v18 }
 0x603   :  { %533 = vrot.lane.b32.xlu1 %v531_v25, %s1726_s20 }
 0x608   :  { %v524_v33 = vpop.permute.xlu0 %523 }
 0x609   :  { %v526_v34 = vmul.f32 %v524_v33, %v521_v18 }
 0x610   :  { %v459_v41 = vpop.permute.xlu0 %458 }
 0x618   :  { %v550_v46 = vpop.permute.xlu0 %549 }
 0x639   :  { %v448_v29 = vpop.permute.xlu2 %447 }
 0x63a   :  { %v450_v30 = vadd.f32 %v448_v29, %v440_v28 }
 0x63c   :  { %1640 = vtanh.f32 %v450_v30  ;;  %v462_v43 = vsel %vm336_vm7, %v450_v30, %v438_v27 }
 0x642   :  { %v1641_v31 = vpop.eup %1640 }
 0x643   :  { %453 = vrot.lane.b32.xlu2 %v1641_v31, %s1725_s19 }
 0x64b   :  { %545 = vperm.xlu2 %1616, %v543_v32  }
 0x675   :  { %v534_v35 = vpop.permute.xlu1 %533 }
 0x676   :  { %v536_v36 = vadd.f32 %v534_v35, %v526_v34 }
 0x678   :  { %1642 = vtanh.f32 %v536_v36 }
 0x67e   :  { %v1643_v37 = vpop.eup %1642 }
 0x67f   :  { %539 = vrot.lane.b32.xlu1 %v1643_v37, %s1725_s19 }
 0x69d   :  { %v454_v38 = vpop.permute.xlu2 %453 }
 0x69e   :  { %v456_v40 = vmul.f32 %v454_v38, %v435_v6 }
 0x6a0   :  { %v461_v42 = vsel %vm336_vm7, %v456_v40, %v459_v41 }
 0x6a1   :  { %464 = vrot.lane.b32.xlu1 %v461_v42, %s1726_s20 }
 0x6a5   :  { %v1967_v26 = vpop.permute.xlu2 %545 }
 0x6a6   :  { %vm547_vm9 = vcmp.eq.s32.totalorder %v1967_v26, 1  ;;  %v1597_v26 = vld [vmem:[%s2264_s3 + $0x8] sm:$0xff] }
 0x6a7   :  { %v553_v50 = vsel %vm547_vm9, %v536_v36, %v524_v33  ;;  %930 = vmatpush.bf16.msrb.mxu0 %v1597_v26 }
 0x6a9   :  { %469 = vrot.lane.b32.xlu1 %v462_v43, %s1728_s23 }
 0x6f1   :  { %v540_v44 = vpop.permute.xlu1 %539 }
 0x6f2   :  { %v542_v45 = vmul.f32 %v540_v44, %v521_v18  ;;  %v754_v44 = vsel %vm1470_vm10, 1, %v1727_v21 }
 0x6f4   :  { %v552_v47 = vsel %vm547_vm9, %v542_v45, %v550_v46 }
 0x6f5   :  { %555 = vrot.lane.b32.xlu2 %v552_v47, %s1726_s20  ;;  %v600_v48 = vpack.c.bf16 %v552_v47, %v552_v47 }
 0x6f7   :  { %606 = vrot.lane.b32.xlu0 %v600_v48, %s1726_s20 }
 0x6fd   :  { %560 = vrot.lane.b32.xlu2 %v553_v50, %s1728_s23 }
 0x713   :  { %v465_v51 = vpop.permute.xlu1 %464 }
 0x714   :  { %467 = vst.msk [vmem:[#allocation2 + $0x8] sm:$0xff] %vm38_vm0, %v465_v51 }
 0x715   :  { %1435 = vst.msk [vmem:[%s2268_s7 + $0x8] sm:$0xff] %vm38_vm0, %v465_v51 }
 0x71b   :  { %v470_v52 = vpop.permute.xlu1 %469  ;;  %v564_v53 = vld [vmem:[#allocation2 + $0x8] sm:$0xff] }
 0x71c   :  { %472 = vst.msk [vmem:[#allocation3 + $0x8] sm:$0xff] %vm38_vm0, %v470_v52  ;;  %v566_v54 = vpack.c.bf16 %v564_v53, %v564_v53 }
 0x71e   :  { %1459 = vmatmul.msk.bf16.vlgmr.msrb.gmra.mxu3 %vm38_vm0, %v566_v54 }
 0x723   :  { %v565_v55 = vld [vmem:[#allocation3 + $0x8] sm:$0xff] }
 0x724   :  { %648 = vrot.lane.b32.xlu2 %v565_v55, %s1726_s20 }
 0x74f   :  { %v556_v60 = vpop.permute.xlu2 %555 }
 0x750   :  { %558 = vst.msk [vmem:[#allocation2] sm:$0xff] %vm38_vm0, %v556_v60 }
 0x757   :  { %v561_v61 = vpop.permute.xlu2 %560  ;;  %v691_v62 = vld [vmem:[#allocation2] sm:$0xff] }
 0x758   :  { %563 = vst.msk [vmem:[#allocation3] sm:$0xff] %vm38_vm0, %v561_v61  ;;  %v693_v63 = vpack.c.bf16 %v691_v62, %v691_v62  ;;  %v1596_v61 = vld [vmem:[%s2264_s3] sm:$0xff] }
 0x759   :  { %931 = vmatpush.bf16.msrb.mxu0 %v1596_v61 }
 0x75a   :  { %1480 = vmatmul.msk.bf16.vlgmr.msra.gmra.mxu1 %vm38_vm0, %v693_v63 }
 0x75f   :  { %v692_v23 = vld [vmem:[#allocation3] sm:$0xff] }
 0x769   :  { %v607_v0 = vpop.permute.xlu0 %606 }
 0x76a   :  { %1468 = vmatmul.msk.bf16.vlgmr.msra.gmra.mxu0 %vm38_vm0, %v607_v0 }
 0x77e   :  { %v649_v33 = vpop.permute.xlu2 %648 }
 0x7a1   :  { %v595_v1 = vpop.f32.mrf.mxu3 }
 0x7a9   :  { %v597_v2 = vpop.f32.mrf.mxu3 }
 0x7d7   :  { %v722_v4 = vpop.f32.mrf.mxu1 }
 0x7d8   :  { %v726_v5 = vadd.f32 %v1471_v3, %v722_v4 }
 0x7da   :  { %v727_v6 = vmul.f32 0.5, %v726_v5 }
 0x7dc   :  { %v728_v7 = vsel %vm1801_vm3, %v726_v5, %v727_v6 }
 0x7dd   :  { %1644 = vtanh.f32 %v728_v7 }
 0x7df   :  { %v724_v8 = vpop.f32.mrf.mxu1 }
 0x7e3   :  { %v1645_v9 = vpop.eup %1644 }
 0x7e4   :  { %v730_v12 = vmul.f32 0.5, %v1645_v9 }
 0x7e6   :  { %v731_v13 = vadd.f32 0.5, %v730_v12  ;;  %v1505_v12 = vld [vmem:[%s2262_s1 + $0x20] sm:$0xff] }
 0x7e7   :  { %v632_v14 = vpop.f32.mrf.mxu0 }
 0x7e8   :  { %v639_v15 = vadd.f32 %v1620_v10, %v632_v14  ;;  %v732_v16 = vsel %vm1801_vm3, %v1645_v9, %v731_v13  ;;  %v1621_v9 = vld [vmem:[%s2265_s4] ss:$0 sm:$0xff] }
 0x7e9   :  { %739 = vrot.lane.b32.xlu1 %v732_v16, %s1725_s19 }
 0x7ea   :  { %v640_v17 = vadd.f32 %v639_v15, %v595_v1 }
 0x7ec   :  { %v641_v18 = vmul.f32 0.5, %v640_v17 }
 0x7ee   :  { %v642_v19 = vsel %vm1801_vm3, %v640_v17, %v641_v18 }
 0x7ef   :  { %1646 = vtanh.f32 %v642_v19  ;;  %v634_v22 = vpop.f32.mrf.mxu0 }
 0x7f1   :  { %734 = vrot.lane.b32.xlu1 %v692_v23, %s1726_s20 }
 0x7f5   :  { %v1647_v24 = vpop.eup %1646 }
 0x7f6   :  { %v644_v25 = vmul.f32 0.5, %v1647_v24 }
 0x7f8   :  { %v645_v27 = vadd.f32 0.5, %v644_v25 }
 0x7f9   :  { %669 = vrot.lane.b32.xlu1 %v564_v53, %s1728_s23 }
 0x7fa   :  { %v646_v28 = vsel %vm1801_vm3, %v1647_v24, %v645_v27 }
 0x7fb   :  { %653 = vrot.lane.b32.xlu0 %v646_v28, %s1725_s19  ;;  %v651_v40 = vmul.f32 %v649_v33, %v646_v28 }
 0x801   :  { %760 = vrot.lane.b32.xlu1 %v691_v62, %s1728_s23 }
 0x85b   :  { %v740_v29 = vpop.permute.xlu1 %739 }
 0x85c   :  { %v742_v30 = vmul.f32 %v740_v29, %v732_v16 }
 0x85e   :  { %744 = vrot.lane.b32.xlu2 %v742_v30, %s1726_s20 }
 0x863   :  { %v735_v34 = vpop.permute.xlu1 %734 }
 0x864   :  { %v737_v35 = vmul.f32 %v735_v34, %v732_v16 }
 0x86b   :  { %v670_v45 = vpop.permute.xlu1 %669 }
 0x86d   :  { %v654_v31 = vpop.permute.xlu0 %653 }
 0x86e   :  { %v656_v32 = vmul.f32 %v654_v31, %v646_v28 }
 0x870   :  { %658 = vrot.lane.b32.xlu0 %v656_v32, %s1726_s20 }
 0x873   :  { %v761_v51 = vpop.permute.xlu1 %760 }
 0x8b8   :  { %v745_v36 = vpop.permute.xlu2 %744 }
 0x8b9   :  { %v747_v37 = vadd.f32 %v745_v36, %v737_v35 }
 0x8bb   :  { %1648 = vtanh.f32 %v747_v37 }
 0x8c1   :  { %v1649_v38 = vpop.eup %1648 }
 0x8c2   :  { %750 = vrot.lane.b32.xlu2 %v1649_v38, %s1725_s19 }
 0x8e2   :  { %v659_v41 = vpop.permute.xlu0 %658 }
 0x8e3   :  { %v661_v42 = vadd.f32 %v659_v41, %v651_v40 }
 0x8e5   :  { %1650 = vtanh.f32 %v661_v42  ;;  %v673_v54 = vsel %vm547_vm9, %v661_v42, %v649_v33 }
 0x8eb   :  { %v1651_v43 = vpop.eup %1650 }
 0x8ec   :  { %664 = vrot.lane.b32.xlu0 %v1651_v43, %s1725_s19 }
 0x8f4   :  { %756 = vperm.xlu0 %1617, %v754_v44  }
 0x91c   :  { %v751_v39 = vpop.permute.xlu2 %750 }
 0x91d   :  { %v753_v49 = vmul.f32 %v751_v39, %v732_v16 }
 0x95e   :  { %v665_v46 = vpop.permute.xlu0 %664 }
 0x95f   :  { %v667_v47 = vmul.f32 %v665_v46, %v646_v28 }
 0x961   :  { %v672_v48 = vsel %vm547_vm9, %v667_v47, %v670_v45 }
 0x962   :  { %675 = vrot.lane.b32.xlu2 %v672_v48, %s1726_s20 }
 0x966   :  { %v2035_v50 = vpop.permute.xlu0 %756 }
 0x967   :  { %vm758_vm11 = vcmp.eq.s32.totalorder %v2035_v50, 1  ;;  %v1599_v50 = vld [vmem:[%s2264_s3 + $0x18] sm:$0xff] }
 0x968   :  { %v763_v52 = vsel %vm758_vm11, %v753_v49, %v761_v51  ;;  %v764_v55 = vsel %vm758_vm11, %v747_v37, %v735_v34  ;;  %v965_v37 = vsel %vm1504_vm12, 1, %v1727_v21  ;;  %1014 = vmatpush.bf16.msrb.mxu1 %v1599_v50 }
 0x969   :  { %766 = vrot.lane.b32.xlu0 %v763_v52, %s1726_s20  ;;  %v811_v53 = vpack.c.bf16 %v763_v52, %v763_v52 }
 0x96a   :  { %680 = vrot.lane.b32.xlu2 %v673_v54, %s1728_s23 }
 0x96b   :  { %817 = vrot.lane.b32.xlu1 %v811_v53, %s1726_s20 }
 0x971   :  { %771 = vrot.lane.b32.xlu0 %v764_v55, %s1728_s23  ;;  %v1601_v55 = vld [vmem:[%s2263_s2 + $0x8] sm:$0xff] }
 0x972   :  { %1051 = vmatpush.bf16.msrb.mxu2 %v1601_v55 }
 0x976   :  { %1052 = vmatpush.bf16.msrb.mxu2 %v1600_v57 }
 0x9bc   :  { %v676_v60 = vpop.permute.xlu2 %675 }
 0x9bd   :  { %678 = vst.msk [vmem:[#allocation2 + $0x8] sm:$0xff] %vm38_vm0, %v676_v60 }
 0x9be   :  { %1469 = vst.msk [vmem:[%s2268_s7 + $0x10] sm:$0xff] %vm38_vm0, %v676_v60 }
 0x9c4   :  { %v681_v62 = vpop.permute.xlu2 %680  ;;  %v2071_v63 = vld [vmem:[#allocation2 + $0x8] sm:$0xff] }
 0x9c5   :  { %683 = vst.msk [vmem:[#allocation3 + $0x8] sm:$0xff] %vm38_vm0, %v681_v62  ;;  %v777_v0 = vpack.c.bf16 %v2071_v63, %v2071_v63 }
 0x9c7   :  { %1493 = vmatmul.msk.bf16.vlgmr.msra.gmra.mxu2 %vm38_vm0, %v777_v0  ;;  %v1602_v0 = vld [vmem:[%s2264_s3] sm:$0xff] }
 0x9cc   :  { %v776_v1 = vld [vmem:[#allocation3 + $0x8] sm:$0xff] }
 0x9cd   :  { %859 = vrot.lane.b32.xlu0 %v776_v1, %s1726_s20 }
 0x9db   :  { %v767_v2 = vpop.permute.xlu0 %766 }
 0x9dc   :  { %769 = vst.msk [vmem:[#allocation2] sm:$0xff] %vm38_vm0, %v767_v2  ;;  %v1598_v2 = vld [vmem:[%s2264_s3 + $0x10] sm:$0xff] }
 0x9dd   :  { %v818_v3 = vpop.permute.xlu1 %817  ;;  %1015 = vmatpush.bf16.msrb.mxu1 %v1598_v2  ;;  %v1605_v2 = vld [vmem:[%s2264_s3 + $0x18] sm:$0xff] }
 0x9de   :  { %1502 = vmatmul.msk.bf16.vlgmr.msra.gmra.mxu3 %vm38_vm0, %v818_v3  ;;  %1225 = vmatpush.bf16.msra.mxu0 %v1605_v2 }
 0x9e3   :  { %v772_v4 = vpop.permute.xlu0 %771  ;;  %v902_v5 = vld [vmem:[#allocation2] sm:$0xff] }
 0x9e4   :  { %774 = vst.msk [vmem:[#allocation3] sm:$0xff] %vm38_vm0, %v772_v4  ;;  %v904_v6 = vpack.c.bf16 %v902_v5, %v902_v5 }
 0x9e6   :  { %1514 = vmatmul.msk.bf16.vlgmr.msrb.gmra.mxu0 %vm38_vm0, %v904_v6 }
 0x9eb   :  { %v903_v34 = vld [vmem:[#allocation3] sm:$0xff] }
 0xa3f   :  { %v860_v41 = vpop.permute.xlu0 %859 }
 0xa4a   :  { %v806_v7 = vpop.f32.mrf.mxu2 }
 0xa52   :  { %v808_v8 = vpop.f32.mrf.mxu2 }
 0xa61   :  { %v843_v10 = vpop.f32.mrf.mxu3 }
 0xa62   :  { %v850_v13 = vadd.f32 %v1621_v9, %v843_v10 }
 0xa63   :  { %v933_v14 = vpop.f32.mrf.mxu0 }
 0xa64   :  { %v851_v15 = vadd.f32 %v850_v13, %v806_v7  ;;  %v937_v16 = vadd.f32 %v1505_v12, %v933_v14 }
 0xa66   :  { %v852_v17 = vmul.f32 0.5, %v851_v15  ;;  %v938_v18 = vmul.f32 0.5, %v937_v16 }
 0xa68   :  { %v853_v19 = vsel %vm1801_vm3, %v851_v15, %v852_v17  ;;  %v939_v22 = vsel %vm1801_vm3, %v937_v16, %v938_v18  ;;  %v1539_v15 = vld [vmem:[%s2262_s1 + $0x28] sm:$0xff] }
 0xa69   :  { %1652 = vtanh.f32 %v853_v19  ;;  %v845_v23 = vpop.f32.mrf.mxu3 }
 0xa6a   :  { %1654 = vtanh.f32 %v939_v22 }
 0xa6b   :  { %v935_v24 = vpop.f32.mrf.mxu0 }
 0xa6c   :  { %v1622_v24 = vld [vmem:[%s2265_s4] ss:$0 sm:$0xff] }
 0xa6f   :  { %v1653_v25 = vpop.eup %1652 }
 0xa70   :  { %v1655_v27 = vpop.eup %1654  ;;  %v855_v28 = vmul.f32 0.5, %v1653_v25 }
 0xa71   :  { %v941_v29 = vmul.f32 0.5, %v1655_v27 }
 0xa72   :  { %v856_v30 = vadd.f32 0.5, %v855_v28 }
 0xa73   :  { %v942_v31 = vadd.f32 0.5, %v941_v29 }
 0xa74   :  { %v857_v32 = vsel %vm1801_vm3, %v1653_v25, %v856_v30 }
 0xa75   :  { %864 = vrot.lane.b32.xlu1 %v857_v32, %s1725_s19  ;;  %v943_v33 = vsel %vm1801_vm3, %v1655_v27, %v942_v31  ;;  %v862_v43 = vmul.f32 %v860_v41, %v857_v32 }
 0xa76   :  { %950 = vrot.lane.b32.xlu2 %v943_v33, %s1725_s19 }
 0xa7d   :  { %945 = vrot.lane.b32.xlu1 %v903_v34, %s1726_s20 }
 0xad0   :  { %v951_v35 = vpop.permute.xlu2 %950 }
 0xad1   :  { %v953_v36 = vmul.f32 %v951_v35, %v943_v33 }
 0xad3   :  { %955 = vrot.lane.b32.xlu0 %v953_v36, %s1726_s20 }
 0xadb   :  { %967 = vperm.xlu0 %1617, %v965_v37  }
 0xae7   :  { %v865_v38 = vpop.permute.xlu1 %864 }
 0xae8   :  { %v867_v40 = vmul.f32 %v865_v38, %v857_v32 }
 0xaea   :  { %869 = vrot.lane.b32.xlu2 %v867_v40, %s1726_s20 }
 0xaef   :  { %v946_v42 = vpop.permute.xlu1 %945 }
 0xaf0   :  { %v948_v44 = vmul.f32 %v946_v42, %v943_v33 }
 0xb44   :  { %v870_v45 = vpop.permute.xlu2 %869 }
 0xb45   :  { %v956_v46 = vpop.permute.xlu0 %955  ;;  %v872_v47 = vadd.f32 %v870_v45, %v862_v43 }
 0xb46   :  { %v958_v48 = vadd.f32 %v956_v46, %v948_v44 }
 0xb47   :  { %1656 = vtanh.f32 %v872_v47  ;;  %v884_v62 = vsel %vm758_vm11, %v872_v47, %v860_v41 }
 0xb48   :  { %1658 = vtanh.f32 %v958_v48 }
 0xb4d   :  { %v1657_v39 = vpop.eup %1656  ;;  %v2108_v51 = vpop.permute.xlu0 %967 }
 0xb4e   :  { %v1659_v49 = vpop.eup %1658  ;;  %875 = vrot.lane.b32.xlu1 %v1657_v39, %s1725_s19  ;;  %vm969_vm13 = vcmp.eq.s32.totalorder %v2108_v51, 1 }
 0xb4f   :  { %961 = vrot.lane.b32.xlu2 %v1659_v49, %s1725_s19  ;;  %v975_v26 = vsel %vm969_vm13, %v958_v48, %v946_v42 }
 0xb56   :  { %880 = vrot.lane.b32.xlu1 %v2071_v63, %s1728_s23  ;;  %v1603_v63 = vld [vmem:[%s2264_s3 + $0x8] sm:$0xff] }
 0xb57   :  { %971 = vrot.lane.b32.xlu2 %v902_v5, %s1728_s23  ;;  %1141 = vmatpush.bf16.msrb.mxu3 %v1603_v63 }
 0xb5b   :  { %1142 = vmatpush.bf16.msrb.mxu3 %v1602_v0 }
 0xba9   :  { %v962_v20 = vpop.permute.xlu2 %961 }
 0xbaa   :  { %v964_v52 = vmul.f32 %v962_v20, %v943_v33  ;;  %v1672_v20 = vld [vmem:[%s2261_s0] sm:$0xff] }
 0xbab   :  { %vm1538_vm14 = vcmp.gt.s32.totalorder %v1672_v20, 5 }
 0xbb1   :  { %v972_v53 = vpop.permute.xlu2 %971 }
 0xbb2   :  { %v974_v54 = vsel %vm969_vm13, %v964_v52, %v972_v53  ;;  %v1176_v52 = vsel %vm1538_vm14, 1, %v1727_v21 }
 0xbb3   :  { %977 = vrot.lane.b32.xlu1 %v974_v54, %s1726_s20  ;;  %v1022_v56 = vpack.c.bf16 %v974_v54, %v974_v54 }
 0xbb5   :  { %1028 = vrot.lane.b32.xlu2 %v1022_v56, %s1726_s20 }
 0xbbb   :  { %982 = vrot.lane.b32.xlu1 %v975_v26, %s1728_s23 }
 0xbc0   :  { %v876_v58 = vpop.permute.xlu1 %875 }
 0xbc1   :  { %v878_v59 = vmul.f32 %v876_v58, %v857_v32 }
 0xbc8   :  { %v881_v60 = vpop.permute.xlu1 %880 }
 0xbc9   :  { %v883_v61 = vsel %vm758_vm11, %v878_v59, %v881_v60 }
 0xbca   :  { %886 = vrot.lane.b32.xlu0 %v883_v61, %s1726_s20 }
 0xbd2   :  { %891 = vrot.lane.b32.xlu0 %v884_v62, %s1728_s23 }
 0xc0f   :  { %v1029_v1 = vpop.permute.xlu2 %1028 }
 0xc10   :  { %1536 = vmatmul.msk.bf16.vlgmr.msrb.gmra.mxu2 %vm38_vm0, %v1029_v1 }
 0xc25   :  { %v978_v3 = vpop.permute.xlu1 %977 }
 0xc26   :  { %980 = vst.msk [vmem:[#allocation2] sm:$0xff] %vm38_vm0, %v978_v3  ;;  %v1604_v3 = vld [vmem:[%s2264_s3 + $0x10] sm:$0xff] }
 0xc27   :  { %1226 = vmatpush.bf16.msra.mxu0 %v1604_v3 }
 0xc2d   :  { %v983_v4 = vpop.permute.xlu1 %982  ;;  %v1113_v5 = vld [vmem:[#allocation2] sm:$0xff] }
 0xc2e   :  { %985 = vst.msk [vmem:[#allocation3] sm:$0xff] %vm38_vm0, %v983_v4  ;;  %v1115_v6 = vpack.c.bf16 %v1113_v5, %v1113_v5  ;;  %v1607_v4 = vld [vmem:[%s2263_s2 + $0x8] sm:$0xff] }
 0xc2f   :  { %1262 = vmatpush.bf16.msra.mxu1 %v1607_v4 }
 0xc30   :  { %1548 = vmatmul.msk.bf16.vlgmr.msrb.gmra.mxu3 %vm38_vm0, %v1115_v6 }
 0xc35   :  { %v1114_v35 = vld [vmem:[#allocation3] sm:$0xff] }
 0xc3c   :  { %v887_v7 = vpop.permute.xlu0 %886 }
 0xc3d   :  { %889 = vst.msk [vmem:[#allocation2 + $0x8] sm:$0xff] %vm38_vm0, %v887_v7 }
 0xc3e   :  { %1503 = vst.msk [vmem:[%s2268_s7 + $0x18] sm:$0xff] %vm38_vm0, %v887_v7 }
 0xc44   :  { %v892_v8 = vpop.permute.xlu0 %891  ;;  %v986_v9 = vld [vmem:[#allocation2 + $0x8] sm:$0xff] }
 0xc45   :  { %894 = vst.msk [vmem:[#allocation3 + $0x8] sm:$0xff] %vm38_vm0, %v892_v8  ;;  %v988_v10 = vpack.c.bf16 %v986_v9, %v986_v9 }
 0xc47   :  { %1527 = vmatmul.msk.bf16.vlgmr.msrb.gmra.mxu1 %vm38_vm0, %v988_v10 }
 0xc4c   :  { %v987_v12 = vld [vmem:[#allocation3 + $0x8] sm:$0xff] }
 0xc4d   :  { %1070 = vrot.lane.b32.xlu1 %v987_v12, %s1726_s20 }
 0xc93   :  { %v1054_v13 = vpop.f32.mrf.mxu2 }
 0xc94   :  { %v1061_v28 = vadd.f32 %v1622_v24, %v1054_v13  ;;  %v1623_v13 = vld [vmem:[%s2265_s4] ss:$0 sm:$0xff]  ;;  %s1729_s4 = smov [#allocation6]  }
 0xc9b   :  { %v1056_v14 = vpop.f32.mrf.mxu2 }
 0xcb3   :  { %v1144_v16 = vpop.f32.mrf.mxu3 }
 0xcb4   :  { %v1148_v17 = vadd.f32 %v1539_v15, %v1144_v16 }
 0xcb6   :  { %v1149_v18 = vmul.f32 0.5, %v1148_v17 }
 0xcb8   :  { %v1150_v19 = vsel %vm1801_vm3, %v1148_v17, %v1149_v18 }
 0xcb9   :  { %1660 = vtanh.f32 %v1150_v19 }
 0xcbb   :  { %v1146_v22 = vpop.f32.mrf.mxu3 }
 0xcbf   :  { %v1661_v23 = vpop.eup %1660  ;;  %v1071_v45 = vpop.permute.xlu1 %1070 }
 0xcc0   :  { %v1152_v25 = vmul.f32 0.5, %v1661_v23 }
 0xcc2   :  { %v1153_v27 = vadd.f32 0.5, %v1152_v25 }
 0xcc4   :  { %v1017_v29 = vpop.f32.mrf.mxu1  ;;  %v1154_v30 = vsel %vm1801_vm3, %v1661_v23, %v1153_v27 }
 0xcc5   :  { %v1062_v31 = vadd.f32 %v1061_v28, %v1017_v29  ;;  %1161 = vrot.lane.b32.xlu0 %v1154_v30, %s1725_s19 }
 0xcc7   :  { %v1063_v32 = vmul.f32 0.5, %v1062_v31 }
 0xcc9   :  { %v1064_v33 = vsel %vm1801_vm3, %v1062_v31, %v1063_v32 }
 0xcca   :  { %1662 = vtanh.f32 %v1064_v33 }
 0xccc   :  { %v1019_v34 = vpop.f32.mrf.mxu1 }
 0xccd   :  { %1156 = vrot.lane.b32.xlu0 %v1114_v35, %s1726_s20 }
 0xcd0   :  { %v1663_v36 = vpop.eup %1662 }
 0xcd1   :  { %v1066_v37 = vmul.f32 0.5, %v1663_v36 }
 0xcd3   :  { %v1067_v38 = vadd.f32 0.5, %v1066_v37 }
 0xcd5   :  { %1091 = vrot.lane.b32.xlu0 %v986_v9, %s1728_s23  ;;  %v1068_v40 = vsel %vm1801_vm3, %v1663_v36, %v1067_v38 }
 0xcd6   :  { %1075 = vrot.lane.b32.xlu2 %v1068_v40, %s1725_s19  ;;  %v1073_v46 = vmul.f32 %v1071_v45, %v1068_v40 }
 0xcdd   :  { %1182 = vrot.lane.b32.xlu0 %v1113_v5, %s1728_s23  ;;  %v1606_v5 = vld [vmem:[%s2263_s2] sm:$0xff] }
 0xcde   :  { %1263 = vmatpush.bf16.msra.mxu1 %v1606_v5 }
 0xd30   :  { %v1076_v41 = vpop.permute.xlu2 %1075 }
 0xd31   :  { %v1078_v42 = vmul.f32 %v1076_v41, %v1068_v40 }
 0xd33   :  { %1080 = vrot.lane.b32.xlu2 %v1078_v42, %s1726_s20 }
 0xd37   :  { %v1162_v43 = vpop.permute.xlu0 %1161 }
 0xd38   :  { %v1164_v44 = vmul.f32 %v1162_v43, %v1154_v30 }
 0xd3a   :  { %1166 = vrot.lane.b32.xlu1 %v1164_v44, %s1726_s20 }
 0xd3f   :  { %v2183_v53 = vpop.permute.xlu0 %1156 }
 0xd40   :  { %v1159_v54 = vmul.f32 %v2183_v53, %v1154_v30 }
 0xd47   :  { %v1092_v26 = vpop.permute.xlu0 %1091 }
 0xd4f   :  { %v1183_v21 = vpop.permute.xlu0 %1182 }
 0xd8d   :  { %v1081_v47 = vpop.permute.xlu2 %1080 }
 0xd8e   :  { %v1083_v48 = vadd.f32 %v1081_v47, %v1073_v46 }
 0xd90   :  { %1664 = vtanh.f32 %v1083_v48  ;;  %v1095_v39 = vsel %vm969_vm13, %v1083_v48, %v1071_v45 }
 0xd91   :  { %1102 = vrot.lane.b32.xlu0 %v1095_v39, %s1728_s23 }
 0xd96   :  { %v1665_v49 = vpop.eup %1664 }
 0xd97   :  { %1086 = vrot.lane.b32.xlu2 %v1665_v49, %s1725_s19 }
 0xd9f   :  { %1178 = vperm.xlu2 %1616, %v1176_v52  }
 0xdac   :  { %v1167_v55 = vpop.permute.xlu1 %1166 }
 0xdad   :  { %v2186_v56 = vadd.f32 %v1167_v55, %v1159_v54 }
 0xdaf   :  { %1666 = vtanh.f32 %v2186_v56 }
 0xdb5   :  { %v1667_v57 = vpop.eup %1666 }
 0xdb6   :  { %1172 = vrot.lane.b32.xlu1 %v1667_v57, %s1725_s19 }
 0xdf1   :  { %v1087_v58 = vpop.permute.xlu2 %1086 }
 0xdf2   :  { %v1089_v59 = vmul.f32 %v1087_v58, %v1068_v40 }
 0xdf4   :  { %v1094_v60 = vsel %vm969_vm13, %v1089_v59, %v1092_v26 }
 0xdf5   :  { %1097 = vrot.lane.b32.xlu1 %v1094_v60, %s1726_s20 }
 0xdf9   :  { %v2194_v62 = vpop.permute.xlu2 %1178 }
 0xdfa   :  { %vm1180_vm15 = vcmp.eq.s32.totalorder %v2194_v62, 1 }
 0xdfb   :  { %v1186_v36 = vsel %vm1180_vm15, %v2186_v56, %v2183_v53 }
 0xe03   :  { %v1103_v61 = vpop.permute.xlu0 %1102 }
 0xe04   :  { %1105 = vst.msk [vmem:[#allocation3 + $0x8] sm:$0xff] %vm38_vm0, %v1103_v61 }
 0xe0b   :  { %v1198_v51 = vld [vmem:[#allocation3 + $0x8] sm:$0xff] }
 0xe28   :  { %v1173_v63 = vpop.permute.xlu1 %1172 }
 0xe29   :  { %v1175_v0 = vmul.f32 %v1173_v63, %v1154_v30 }
 0xe2b   :  { %v1185_v1 = vsel %vm1180_vm15, %v1175_v0, %v1183_v21 }
 0xe2c   :  { %v1233_v50 = vpack.c.bf16 %v1185_v1, %v1185_v1 }
 0xe2e   :  { %1239 = vrot.lane.b32.xlu2 %v1233_v50, %s1726_s20 }
 0xe36   :  { %1281 = vrot.lane.b32.xlu2 %v1198_v51, %s1726_s20 }
 0xe67   :  { %v1098_v6 = vpop.permute.xlu1 %1097 }
 0xe68   :  { %1100 = vst.msk [vmem:[#allocation2 + $0x8] sm:$0xff] %vm38_vm0, %v1098_v6 }
 0xe69   :  { %1537 = vst.msk [vmem:[%s2268_s7 + $0x20] sm:$0xff] %vm38_vm0, %v1098_v6 }
 0xe6f   :  { %v1197_v7 = vld [vmem:[#allocation2 + $0x8] sm:$0xff] }
 0xe70   :  { %v1199_v8 = vpack.c.bf16 %v1197_v7, %v1197_v7  ;;  %1302 = vrot.lane.b32.xlu2 %v1197_v7, %s1728_s23 }
 0xe72   :  { %1561 = vmatmul.msk.bf16.vlgmr.msra.gmra.mxu0 %vm38_vm0, %v1199_v8 }
 0xe88   :  { %v1240_v9 = vpop.permute.xlu2 %1239 }
 0xe89   :  { %1570 = vmatmul.msk.bf16.vlgmr.msra.gmra.mxu1 %vm38_vm0, %v1240_v9 }
 0xe90   :  { %v1282_v29 = vpop.permute.xlu2 %1281 }
 0xeca   :  { %v1303_v41 = vpop.permute.xlu2 %1302 }
 0xeef   :  { %v1228_v10 = vpop.f32.mrf.mxu0 }
 0xef7   :  { %v1230_v12 = vpop.f32.mrf.mxu0 }
 0xf06   :  { %v1265_v14 = vpop.f32.mrf.mxu1 }
 0xf07   :  { %v1272_v15 = vadd.f32 %v1623_v13, %v1265_v14 }
 0xf09   :  { %v1273_v16 = vadd.f32 %v1272_v15, %v1228_v10 }
 0xf0b   :  { %v1274_v17 = vmul.f32 0.5, %v1273_v16 }
 0xf0d   :  { %v1275_v18 = vsel %vm1801_vm3, %v1273_v16, %v1274_v17 }
 0xf0e   :  { %1668 = vtanh.f32 %v1275_v18  ;;  %v1267_v19 = vpop.f32.mrf.mxu1 }
 0xf14   :  { %v1669_v22 = vpop.eup %1668 }
 0xf15   :  { %v1277_v23 = vmul.f32 0.5, %v1669_v22 }
 0xf17   :  { %v1278_v24 = vadd.f32 0.5, %v1277_v23 }
 0xf19   :  { %v1279_v25 = vsel %vm1801_vm3, %v1669_v22, %v1278_v24 }
 0xf1a   :  { %1286 = vrot.lane.b32.xlu1 %v1279_v25, %s1725_s19  ;;  %v1284_v30 = vmul.f32 %v1282_v29, %v1279_v25 }
 0xf8c   :  { %v1287_v27 = vpop.permute.xlu1 %1286 }
 0xf8d   :  { %v1289_v28 = vmul.f32 %v1287_v27, %v1279_v25 }
 0xf8f   :  { %1291 = vrot.lane.b32.xlu0 %v1289_v28, %s1726_s20 }
 0xf97   :  { %1188 = vrot.lane.b32.xlu0 %v1185_v1, %s1726_s20 }
0x1001   :  { %v1292_v31 = vpop.permute.xlu0 %1291 }
0x1002   :  { %v1294_v32 = vadd.f32 %v1292_v31, %v1284_v30 }
0x1004   :  { %1670 = vtanh.f32 %v1294_v32  ;;  %v1306_v33 = vsel %vm1180_vm15, %v1294_v32, %v1282_v29 }
0x1005   :  { %1313 = vrot.lane.b32.xlu0 %v1306_v33, %s1728_s23 }
0x1009   :  { %v1189_v11 = vpop.permute.xlu0 %1188 }
0x100a   :  { %v1671_v34 = vpop.eup %1670  ;;  %1191 = vst.msk [vmem:[#allocation2] sm:$0xff] %vm38_vm0, %v1189_v11 }
0x100b   :  { %1297 = vrot.lane.b32.xlu1 %v1671_v34, %s1725_s19  ;;  %s1349_s19 = sshll.u32 %s1729_s4, 4  ;;  %s1350_s19 = int_to_ptr.vmem [resolvable:$true] %s1349_s19 }
0x1011   :  { %v1322_v35 = vld [vmem:[#allocation2] sm:$0xff] }
0x1012   :  { %1324 = vst.msk [vmem:[#allocation4] sm:$0xff] %vm38_vm0, %v1322_v35 }
0x1013   :  { %1193 = vrot.lane.b32.xlu1 %v1186_v36, %s1728_s23 }
0x1077   :  { %v1314_v37 = vpop.permute.xlu0 %1313 }
0x1078   :  { %1316 = vst.msk [vmem:[#allocation3 + $0x8] sm:$0xff] %vm38_vm0, %v1314_v37 }
0x107d   :  { %v1298_v38 = vpop.permute.xlu1 %1297 }
0x107e   :  { %v1300_v40 = vmul.f32 %v1298_v38, %v1279_v25 }
0x107f   :  { %v1327_v42 = vld [vmem:[#allocation3 + $0x8] sm:$0xff] }
0x1080   :  { %v1305_v43 = vsel %vm1180_vm15, %v1300_v40, %v1303_v41  ;;  %1329 = vst.msk [vmem:[#allocation6 + $0x8] sm:$0xff] %vm38_vm0, %v1327_v42 }
0x1081   :  { %1308 = vrot.lane.b32.xlu2 %v1305_v43, %s1726_s20 }
0x1085   :  { %v1194_v44 = vpop.permute.xlu1 %1193 }
0x1086   :  { %1196 = vst.msk [vmem:[#allocation3] sm:$0xff] %vm38_vm0, %v1194_v44 }
0x108d   :  { %v1326_v45 = vld [vmem:[#allocation3] sm:$0xff] }
0x108e   :  { %1328 = vst.msk [vmem:[#allocation6] sm:$0xff] %vm38_vm0, %v1326_v45 }
0x108f   :  { %1357 = dma.vmem_to_hbm [thread:$0]  %s1350_s19, 256, %s1352_s27, [#allocation7], %s1730_s28, %s1730_s28, %s1731_s29  }
0x10db   :  { %v1309_v46 = vpop.permute.xlu2 %1308 }
0x10dc   :  { %1311 = vst.msk [vmem:[#allocation2 + $0x8] sm:$0xff] %vm38_vm0, %v1309_v46 }
0x10dd   :  { %1571 = vst.msk [vmem:[%s2268_s7 + $0x28] sm:$0xff] %vm38_vm0, %v1309_v46 }
0x10e3   :  { %v1323_v47 = vld [vmem:[#allocation2 + $0x8] sm:$0xff] }
0x10e4   :  { %1325 = vst.msk [vmem:[#allocation4 + $0x8] sm:$0xff] %vm38_vm0, %v1323_v47 }
0x10e5   :  { %1344 = dma.vmem_to_hbm [thread:$0]  %s1337_s11, 256, %s1339_s13, [#allocation5], %s1730_s28, %s1730_s28, %s1731_s29  }
0x10e6   :  { %1721 = dma.done.wait [#allocation5], 256  }
0x10e7   :  { %1722 = vsyncadd [#allocation5], 4294967040 }
0x10e8   :  { %1723 = dma.done.wait [#allocation7], 256  }
0x10e9   :  { %1724 = vsyncadd [#allocation7], 4294967040 }
0x10ea   :  { %1368 = vsyncpa [#allocation5], 1 }
0x10eb   :  { %1369 = vsyncpa [#allocation7], 1 }

</bundles_post_ra>
